<compile_context>
chip_gen: v6e
topology: v6e:2x2x1
jax: 0.10.0
libtpu: 0.0.40
codegen_flags: <defaults>
</compile_context>

<pallas_src>
import jax
import jax.numpy as jnp
from jax import lax
from jax.experimental import pallas as pl
from jax.experimental.pallas import tpu as pltpu

C_PAD = 128  # all layers padded to 128 channels -> lane-dense everywhere


# ----------------------------- Pallas kernel --------------------------------

def _conv3x3_bias_relu(x_full, w_ref, b_ref, layer, H, W):
    """One 3x3 conv + folded-BN bias + ReLU on a zero-haloed activation slab.

    x_full : (H+2, Wp, C) f32 value; rows 0 / H+1 and cols >= W are zero.
    w_ref  : (L, 9, C, C) bf16 ref; tap t = kh*3 + kw, row = cin, col = cout.
    b_ref  : (L, 1, C) f32 ref (conv bias + BN shift folded).
    layer  : static or traced layer index.
    returns (H*W, C) f32 activation (pre final-BN).
    """
    Hp2, Wp, C = x_full.shape
    flat = x_full.reshape(Hp2 * Wp, C)          # free view: Wp is a tile multiple
    # pltpu.roll == jnp.roll: out[i] = in[i - shift].  On the flattened
    # (row-major) view a +-1 sublane roll wraps in the zero-pad column of the
    # neighbouring row, which is exactly the padding=1 boundary condition in W.
    x_l = pltpu.roll(flat, 1, axis=0).reshape(Hp2, Wp, C)               # x[w-1]
    x_r = pltpu.roll(flat, Hp2 * Wp - 1, axis=0).reshape(Hp2, Wp, C)    # x[w+1]
    # bf16 LHS for the MXU (f32 accumulation below); kw = 0,1,2 sources.
    srcs = tuple(v.astype(jnp.bfloat16) for v in (x_l, x_full, x_r))

    acc = None
    for kh in range(3):
        for kw in range(3):
            a = srcs[kw][kh:kh + H, 0:W, :].reshape(H * W, C)   # aligned slices
            d = jnp.dot(a, w_ref[layer, kh * 3 + kw],
                        preferred_element_type=jnp.float32)
            acc = d if acc is None else acc + d
    return jnp.maximum(acc + b_ref[layer], 0.0)


def _fused_conv_block_kernel(x_ref, w_ref, b_ref, fs_ref, fb_ref, o_ref, buf_ref):
    """Fused 7x(3x3 conv + folded-BN + ReLU) + final folded-BN + ReLU, one image.

    x_ref  : (1, H, W, C)      one image, channels zero-padded to C=128
    w_ref  : (L, 9, C, C)      bf16 per-tap weights (BN scale folded in)
    b_ref  : (L, 1, C)         f32 folded bias
    fs_ref : (1, C)            final BN scale
    fb_ref : (1, C)            final BN bias
    o_ref  : (1, H, W, C)      output (only HBM-facing store of the block)
    buf_ref: (2, H+2, Wp, C)   f32 ping-pong activation; zero halo rows 0/H+1
                               and zero pad columns W..Wp-1.
    """
    _, H, W, _ = x_ref.shape
    _, _, Wp, C = buf_ref.shape
    L = w_ref.shape[0]

    # Zero only the halo strips (interiors are fully overwritten every layer).
    zrow = jnp.zeros((Wp, C), jnp.float32)
    zpad = jnp.zeros((H, Wp - W, C), jnp.float32)
    for s in range(2):
        buf_ref[s, 0, :, :] = zrow
        buf_ref[s, H + 1, :, :] = zrow
        buf_ref[s, 1:H + 1, W:Wp, :] = zpad

    # Place the input image: aligned store (interior starts at column 0).
    buf_ref[0, 1:H + 1, 0:W, :] = x_ref[0]

    num_stages = L - 1            # conv layers before the peeled final layer
    num_pairs = num_stages // 2

    def ping_pong_pair(t, carry):
        l0 = 2 * t
        y0 = _conv3x3_bias_relu(buf_ref[0], w_ref, b_ref, l0, H, W)
        buf_ref[1, 1:H + 1, 0:W, :] = y0.reshape(H, W, C)
        y1 = _conv3x3_bias_relu(buf_ref[1], w_ref, b_ref, l0 + 1, H, W)
        buf_ref[0, 1:H + 1, 0:W, :] = y1.reshape(H, W, C)
        return carry

    lax.fori_loop(0, num_pairs, ping_pong_pair, 0)

    src = 0
    if num_stages % 2 == 1:       # static Python branch (not hit for 7 layers)
        y = _conv3x3_bias_relu(buf_ref[0], w_ref, b_ref, num_stages - 1, H, W)
        buf_ref[1, 1:H + 1, 0:W, :] = y.reshape(H, W, C)
        src = 1

    # Last conv layer; its epilogue fuses the final BatchNorm + ReLU.
    y = _conv3x3_bias_relu(buf_ref[src], w_ref, b_ref, L - 1, H, W)
    y = jnp.maximum(y * fs_ref[...] + fb_ref[...], 0.0)
    o_ref[0] = y.reshape(H, W, C).astype(o_ref.dtype)


# ------------------------------ wrapper --------------------------------------

def prepare_kernel_params(params, c_pad=C_PAD):
    """Fold BN scale into conv weights, pad channels, stack per-tap bf16 weights.

    Call ONCE outside the jitted forward (review: hoist weight prep).
    """
    w_list, b_list = [], []
    for (w, s, b) in params["layers"]:
        _, _, cin, cout = w.shape
        wf = (w * s[None, None, None, :]).astype(jnp.float32)   # exact in eval mode
        wf = jnp.pad(wf, ((0, 0), (0, 0), (0, c_pad - cin), (0, c_pad - cout)))
        w_list.append(wf.reshape(9, c_pad, c_pad))              # tap = kh*3 + kw
        b_list.append(jnp.pad(b, (0, c_pad - cout)).reshape(1, c_pad))
    w_stack = jnp.stack(w_list).astype(jnp.bfloat16)            # (L, 9, C, C)
    b_stack = jnp.stack(b_list).astype(jnp.float32)             # (L, 1, C)
    fs = params["final_scale"].reshape(1, c_pad).astype(jnp.float32)
    fb = params["final_bias"].reshape(1, c_pad).astype(jnp.float32)
    return w_stack, b_stack, fs, fb


def conv_block_initial_forward(x_nchw, w_stack, b_stack, fs, fb, c_pad=C_PAD):
    """Pallas implementation of ConvBlockInitial.forward (NCHW in / NCHW out)."""
    x = jnp.transpose(x_nchw, (0, 2, 3, 1))                     # -> NHWC
    N, H, W, cin = x.shape
    x = jnp.pad(x, ((0, 0), (0, 0), (0, 0), (0, c_pad - cin)))  # lane pad, once
    L = w_stack.shape[0]
    wp = ((W + 1 + 7) // 8) * 8      # interior + >=1 zero col, sublane-aligned

    out = pl.pallas_call(
        _fused_conv_block_kernel,
        out_shape=jax.ShapeDtypeStruct((N, H, W, c_pad), jnp.float32),
        grid=(N,),
        in_specs=[
            pl.BlockSpec((1, H, W, c_pad), lambda n: (n, 0, 0, 0)),
            pl.BlockSpec((L, 9, c_pad, c_pad), lambda n: (0, 0, 0, 0)),
            pl.BlockSpec((L, 1, c_pad), lambda n: (0, 0, 0)),
            pl.BlockSpec((1, c_pad), lambda n: (0, 0)),
            pl.BlockSpec((1, c_pad), lambda n: (0, 0)),
        ],
        out_specs=pl.BlockSpec((1, H, W, c_pad), lambda n: (n, 0, 0, 0)),
        scratch_shapes=[pltpu.VMEM((2, H + 2, wp, c_pad), jnp.float32)],
        compiler_params=pltpu.CompilerParams(
            dimension_semantics=("parallel",)),
    )(x, w_stack, b_stack, fs, fb)

    return jnp.transpose(out, (0, 3, 1, 2))                     # -> NCHW (Cout=128)


# --------------------------- parameter init ---------------------------------

def _fold_bn(conv_b, gamma, beta, rmean, rvar, eps=1e-5):
    scale = gamma / jnp.sqrt(rvar + eps)
    bias = (conv_b - rmean) * scale + beta
    return scale.astype(jnp.float32), bias.astype(jnp.float32)


def init_params(key, in_channels, num_filters=(16, 32, 64, 128, 128, 128, 128)):
    chans = [in_channels] + list(num_filters)
    layers = []
    for i in range(len(chans) - 1):
        cin, cout = chans[i], chans[i + 1]
        key, kw, kb, kg, kbe, km, kv = jax.random.split(key, 7)
        w = jax.random.normal(kw, (3, 3, cin, cout), jnp.float32) / jnp.sqrt(9.0 * cin)
        conv_b = 0.01 * jax.random.normal(kb, (cout,), jnp.float32)
        gamma = 1.0 + 0.1 * jax.random.normal(kg, (cout,), jnp.float32)
        beta = 0.1 * jax.random.normal(kbe, (cout,), jnp.float32)
        rmean = 0.05 * jax.random.normal(km, (cout,), jnp.float32)
        rvar = 1.0 + 0.1 * jax.random.uniform(kv, (cout,), jnp.float32)
        s, b = _fold_bn(conv_b, gamma, beta, rmean, rvar)
        layers.append((w, s, b))

    # Final BatchNorm2d(num_filters[-1]) (no conv bias to fold).
    cout = chans[-1]
    key, kg, kbe, km, kv = jax.random.split(key, 5)
    gamma = 1.0 + 0.1 * jax.random.normal(kg, (cout,), jnp.float32)
    beta = 0.1 * jax.random.normal(kbe, (cout,), jnp.float32)
    rmean = 0.05 * jax.random.normal(km, (cout,), jnp.float32)
    rvar = 1.0 + 0.1 * jax.random.uniform(kv, (cout,), jnp.float32)
    fs, fb = _fold_bn(jnp.zeros((cout,), jnp.float32), gamma, beta, rmean, rvar)
    return {"layers": layers, "final_scale": fs, "final_bias": fb}


# ------------------------- pure-JAX reference --------------------------------

def reference_forward(x_nchw, params, matmul_dtype=jnp.float32):
    """Pure-JAX reference.  With matmul_dtype=bfloat16 it mirrors the kernel's
    numerics exactly (bf16 folded weights & layer inputs, f32 accumulation and
    f32 bias/ReLU/final-BN epilogue)."""
    x = jnp.transpose(x_nchw, (0, 2, 3, 1))
    for (w, s, b) in params["layers"]:
        wf = (w * s[None, None, None, :]).astype(matmul_dtype)
        y = lax.conv_general_dilated(
            x.astype(matmul_dtype), wf, window_strides=(1, 1),
            padding=((1, 1), (1, 1)),
            dimension_numbers=("NHWC", "HWIO", "NHWC"),
            preferred_element_type=jnp.float32)
        x = jnp.maximum(y + b, 0.0)
    x = jnp.maximum(x * params["final_scale"] + params["final_bias"], 0.0)
    return jnp.transpose(x, (0, 3, 1, 2))


# ---------------------------------- main -------------------------------------

if __name__ == "__main__":
    key = jax.random.PRNGKey(0)
    k_x, k_p = jax.random.split(key)

    N, C_in, H, W = 2, 4, 16, 16
    x = jax.random.normal(k_x, (N, C_in, H, W), jnp.float32)   # NCHW, like PyTorch
    params = init_params(k_p, C_in)

    # Fold / pad / stack the weights ONCE, outside the per-call jit.
    w_stack, b_stack, fs, fb = prepare_kernel_params(params)

    fwd = jax.jit(conv_block_initial_forward)
    out = jax.block_until_ready(fwd(x, w_stack, b_stack, fs, fb))

    # Reference mirroring the kernel's bf16-input / f32-accumulate numerics so a
    # tight tolerance remains meaningful after 7 chained convolutions.
    ref = jax.block_until_ready(
        reference_forward(x, params, matmul_dtype=jnp.bfloat16))

    assert out.shape == (N, 128, H, W), out.shape
    if not jnp.allclose(out, ref, rtol=5e-3, atol=5e-3):
        max_err = float(jnp.max(jnp.abs(out - ref)))
        raise AssertionError(f"mismatch vs reference, max abs err = {max_err}")

    print("KERNEL_OK")
</pallas_src>

<mosaic_0001>
module attributes {stable_mosaic.version = 11 : i64} {
  func.func @_fused_conv_block_kernel(%arg0: i32, %arg1: memref<1x16x16x128xf32, #tpu.memory_space<vmem>>, %arg2: memref<7x9x128x128xbf16, #tpu.memory_space<vmem>>, %arg3: memref<7x1x128xf32, #tpu.memory_space<vmem>>, %arg4: memref<1x128xf32, #tpu.memory_space<vmem>>, %arg5: memref<1x128xf32, #tpu.memory_space<vmem>>, %arg6: memref<1x16x16x128xf32, #tpu.memory_space<vmem>>, %arg7: memref<2x18x24x128xf32, #tpu.memory_space<vmem>>) attributes {dimension_semantics = [#tpu.dimension_semantics<parallel>], iteration_bounds = array<i64: 2>, scalar_prefetch = 0 : i64, scratch_operands = 1 : i64, tpu.core_type = #tpu.core_type<tc>, window_params = [{transform_indices = @transform_0, window_bounds = array<i64: 1, 16, 16, 128>}, {pipeline_mode = #tpu.pipeline_mode<synchronous>, transform_indices = @transform_1, window_bounds = array<i64: 7, 9, 128, 128>}, {pipeline_mode = #tpu.pipeline_mode<synchronous>, transform_indices = @transform_2, window_bounds = array<i64: 7, 1, 128>}, {pipeline_mode = #tpu.pipeline_mode<synchronous>, transform_indices = @transform_3, window_bounds = array<i64: 1, 128>}, {pipeline_mode = #tpu.pipeline_mode<synchronous>, transform_indices = @transform_4, window_bounds = array<i64: 1, 128>}, {transform_indices = @transform_5, window_bounds = array<i64: 1, 16, 16, 128>}]} {
    %cst = arith.constant 0.000000e+00 : f32
    %0 = vector.broadcast %cst : f32 to vector<24x128xf32>
    %cst_0 = arith.constant 0.000000e+00 : f32
    %1 = vector.broadcast %cst_0 : f32 to vector<16x8x128xf32>
    %c0 = arith.constant 0 : index
    %c0_1 = arith.constant 0 : index
    %c0_2 = arith.constant 0 : index
    %c0_3 = arith.constant 0 : index
    %2 = vector.load %arg7[%c0, %c0_1, %c0_2, %c0_3] : memref<2x18x24x128xf32, #tpu.memory_space<vmem>>, vector<1x1x24x128xf32>
    %3 = vector.shape_cast %2 : vector<1x1x24x128xf32> to vector<24x128xf32>
    %4 = vector.shape_cast %0 : vector<24x128xf32> to vector<1x1x24x128xf32>
    tpu.vector_store %arg7[%c0, %c0_1, %c0_2, %c0_3], %4 {strides = array<i32>} : memref<2x18x24x128xf32, #tpu.memory_space<vmem>>, vector<1x1x24x128xf32>,
    %c0_4 = arith.constant 0 : index
    %c17 = arith.constant 17 : index
    %c0_5 = arith.constant 0 : index
    %c0_6 = arith.constant 0 : index
    %5 = vector.load %arg7[%c0_4, %c17, %c0_5, %c0_6] : memref<2x18x24x128xf32, #tpu.memory_space<vmem>>, vector<1x1x24x128xf32>
    %6 = vector.shape_cast %5 : vector<1x1x24x128xf32> to vector<24x128xf32>
    %7 = vector.shape_cast %0 : vector<24x128xf32> to vector<1x1x24x128xf32>
    tpu.vector_store %arg7[%c0_4, %c17, %c0_5, %c0_6], %7 {strides = array<i32>} : memref<2x18x24x128xf32, #tpu.memory_space<vmem>>, vector<1x1x24x128xf32>,
    %c0_7 = arith.constant 0 : index
    %c1 = arith.constant 1 : index
    %c16 = arith.constant 16 : index
    %c0_8 = arith.constant 0 : index
    %8 = vector.load %arg7[%c0_7, %c1, %c16, %c0_8] : memref<2x18x24x128xf32, #tpu.memory_space<vmem>>, vector<1x16x8x128xf32>
    %9 = vector.shape_cast %8 : vector<1x16x8x128xf32> to vector<16x8x128xf32>
    %10 = vector.shape_cast %1 : vector<16x8x128xf32> to vector<1x16x8x128xf32>
    tpu.vector_store %arg7[%c0_7, %c1, %c16, %c0_8], %10 {strides = array<i32>} : memref<2x18x24x128xf32, #tpu.memory_space<vmem>>, vector<1x16x8x128xf32>,
    %c1_9 = arith.constant 1 : index
    %c0_10 = arith.constant 0 : index
    %c0_11 = arith.constant 0 : index
    %c0_12 = arith.constant 0 : index
    %11 = vector.load %arg7[%c1_9, %c0_10, %c0_11, %c0_12] : memref<2x18x24x128xf32, #tpu.memory_space<vmem>>, vector<1x1x24x128xf32>
    %12 = vector.shape_cast %11 : vector<1x1x24x128xf32> to vector<24x128xf32>
    %13 = vector.shape_cast %0 : vector<24x128xf32> to vector<1x1x24x128xf32>
    tpu.vector_store %arg7[%c1_9, %c0_10, %c0_11, %c0_12], %13 {strides = array<i32>} : memref<2x18x24x128xf32, #tpu.memory_space<vmem>>, vector<1x1x24x128xf32>,
    %c1_13 = arith.constant 1 : index
    %c17_14 = arith.constant 17 : index
    %c0_15 = arith.constant 0 : index
    %c0_16 = arith.constant 0 : index
    %14 = vector.load %arg7[%c1_13, %c17_14, %c0_15, %c0_16] : memref<2x18x24x128xf32, #tpu.memory_space<vmem>>, vector<1x1x24x128xf32>
    %15 = vector.shape_cast %14 : vector<1x1x24x128xf32> to vector<24x128xf32>
    %16 = vector.shape_cast %0 : vector<24x128xf32> to vector<1x1x24x128xf32>
    tpu.vector_store %arg7[%c1_13, %c17_14, %c0_15, %c0_16], %16 {strides = array<i32>} : memref<2x18x24x128xf32, #tpu.memory_space<vmem>>, vector<1x1x24x128xf32>,
    %c1_17 = arith.constant 1 : index
    %c1_18 = arith.constant 1 : index
    %c16_19 = arith.constant 16 : index
    %c0_20 = arith.constant 0 : index
    %17 = vector.load %arg7[%c1_17, %c1_18, %c16_19, %c0_20] : memref<2x18x24x128xf32, #tpu.memory_space<vmem>>, vector<1x16x8x128xf32>
    %18 = vector.shape_cast %17 : vector<1x16x8x128xf32> to vector<16x8x128xf32>
    %19 = vector.shape_cast %1 : vector<16x8x128xf32> to vector<1x16x8x128xf32>
    tpu.vector_store %arg7[%c1_17, %c1_18, %c16_19, %c0_20], %19 {strides = array<i32>} : memref<2x18x24x128xf32, #tpu.memory_space<vmem>>, vector<1x16x8x128xf32>,
    %c0_21 = arith.constant 0 : index
    %c0_22 = arith.constant 0 : index
    %c0_23 = arith.constant 0 : index
    %c0_24 = arith.constant 0 : index
    %20 = vector.load %arg1[%c0_21, %c0_22, %c0_23, %c0_24] : memref<1x16x16x128xf32, #tpu.memory_space<vmem>>, vector<1x16x16x128xf32>
    %21 = vector.shape_cast %20 : vector<1x16x16x128xf32> to vector<16x16x128xf32>
    %c0_25 = arith.constant 0 : index
    %c1_26 = arith.constant 1 : index
    %c0_27 = arith.constant 0 : index
    %c0_28 = arith.constant 0 : index
    %22 = vector.load %arg7[%c0_25, %c1_26, %c0_27, %c0_28] : memref<2x18x24x128xf32, #tpu.memory_space<vmem>>, vector<1x16x16x128xf32>
    %23 = vector.shape_cast %22 : vector<1x16x16x128xf32> to vector<16x16x128xf32>
    %24 = vector.shape_cast %21 : vector<16x16x128xf32> to vector<1x16x16x128xf32>
    tpu.vector_store %arg7[%c0_25, %c1_26, %c0_27, %c0_28], %24 {strides = array<i32>} : memref<2x18x24x128xf32, #tpu.memory_space<vmem>>, vector<1x16x16x128xf32>,
    %c0_i32 = arith.constant 0 : i32
    %c3_i32 = arith.constant 3 : i32
    %25 = arith.addi %c0_i32, %c3_i32 : i32
    %c1_i32 = arith.constant 1 : i32
    scf.for %arg8 = %c0_i32 to %25 step %c1_i32  : i32 {
      %c2_i32 = arith.constant 2 : i32
      %107 = arith.muli %c2_i32, %arg8 : i32
      %c0_86 = arith.constant 0 : index
      %c0_87 = arith.constant 0 : index
      %c0_88 = arith.constant 0 : index
      %c0_89 = arith.constant 0 : index
      %108 = vector.load %arg7[%c0_86, %c0_87, %c0_88, %c0_89] : memref<2x18x24x128xf32, #tpu.memory_space<vmem>>, vector<1x18x24x128xf32>
      %109 = vector.shape_cast %108 : vector<1x18x24x128xf32> to vector<18x24x128xf32>
      %110 = vector.shape_cast %109 : vector<18x24x128xf32> to vector<432x128xf32>
      %c1_i32_90 = arith.constant 1 : i32
      %111 = tpu.dynamic_rotate %110 by %c1_i32_90 dim 0 : vector<432x128xf32>, i32 -> vector<432x128xf32>
      %112 = vector.shape_cast %111 : vector<432x128xf32> to vector<18x24x128xf32>
      %c431_i32_91 = arith.constant 431 : i32
      %113 = tpu.dynamic_rotate %110 by %c431_i32_91 dim 0 : vector<432x128xf32>, i32 -> vector<432x128xf32>
      %114 = vector.shape_cast %113 : vector<432x128xf32> to vector<18x24x128xf32>
      %115 = arith.truncf %112 : vector<18x24x128xf32> to vector<18x24x128xbf16>
      %116 = arith.truncf %109 : vector<18x24x128xf32> to vector<18x24x128xbf16>
      %117 = arith.truncf %114 : vector<18x24x128xf32> to vector<18x24x128xbf16>
      %118 = vector.extract_strided_slice %115 {offsets = [0, 0, 0], sizes = [16, 16, 128], strides = [1, 1, 1]} : vector<18x24x128xbf16> to vector<16x16x128xbf16>
      %119 = vector.shape_cast %118 : vector<16x16x128xbf16> to vector<256x128xbf16>
      %120 = arith.index_cast %107 : i32 to index
      %c0_92 = arith.constant 0 : index
      %c0_93 = arith.constant 0 : index
      %c0_94 = arith.constant 0 : index
      %121 = vector.load %arg2[%120, %c0_92, %c0_93, %c0_94] : memref<7x9x128x128xbf16, #tpu.memory_space<vmem>>, vector<1x1x128x128xbf16>
      %122 = vector.shape_cast %121 : vector<1x1x128x128xbf16> to vector<128x128xbf16>
      %cst_95 = arith.constant dense<0.000000e+00> : vector<256x128xf32>
      %123 = tpu.matmul %119, %122, %cst_95 {dimension_numbers = #tpu.dot_dimension_numbers<[1], [0], [0], [1], [0, 0, 1, 1], [], []>} : vector<256x128xbf16>, vector<128x128xbf16>, vector<256x128xf32> -> vector<256x128xf32>
      %124 = vector.extract_strided_slice %116 {offsets = [0, 0, 0], sizes = [16, 16, 128], strides = [1, 1, 1]} : vector<18x24x128xbf16> to vector<16x16x128xbf16>
      %125 = vector.shape_cast %124 : vector<16x16x128xbf16> to vector<256x128xbf16>
      %126 = arith.index_cast %107 : i32 to index
      %c1_96 = arith.constant 1 : index
      %c0_97 = arith.constant 0 : index
      %c0_98 = arith.constant 0 : index
      %127 = vector.load %arg2[%126, %c1_96, %c0_97, %c0_98] : memref<7x9x128x128xbf16, #tpu.memory_space<vmem>>, vector<1x1x128x128xbf16>
      %128 = vector.shape_cast %127 : vector<1x1x128x128xbf16> to vector<128x128xbf16>
      %cst_99 = arith.constant dense<0.000000e+00> : vector<256x128xf32>
      %129 = tpu.matmul %125, %128, %cst_99 {dimension_numbers = #tpu.dot_dimension_numbers<[1], [0], [0], [1], [0, 0, 1, 1], [], []>} : vector<256x128xbf16>, vector<128x128xbf16>, vector<256x128xf32> -> vector<256x128xf32>
      %130 = arith.addf %123, %129 : vector<256x128xf32>
      %131 = vector.extract_strided_slice %117 {offsets = [0, 0, 0], sizes = [16, 16, 128], strides = [1, 1, 1]} : vector<18x24x128xbf16> to vector<16x16x128xbf16>
      %132 = vector.shape_cast %131 : vector<16x16x128xbf16> to vector<256x128xbf16>
      %133 = arith.index_cast %107 : i32 to index
      %c2_100 = arith.constant 2 : index
      %c0_101 = arith.constant 0 : index
      %c0_102 = arith.constant 0 : index
      %134 = vector.load %arg2[%133, %c2_100, %c0_101, %c0_102] : memref<7x9x128x128xbf16, #tpu.memory_space<vmem>>, vector<1x1x128x128xbf16>
      %135 = vector.shape_cast %134 : vector<1x1x128x128xbf16> to vector<128x128xbf16>
      %cst_103 = arith.constant dense<0.000000e+00> : vector<256x128xf32>
      %136 = tpu.matmul %132, %135, %cst_103 {dimension_numbers = #tpu.dot_dimension_numbers<[1], [0], [0], [1], [0, 0, 1, 1], [], []>} : vector<256x128xbf16>, vector<128x128xbf16>, vector<256x128xf32> -> vector<256x128xf32>
      %137 = arith.addf %130, %136 : vector<256x128xf32>
      %138 = vector.extract_strided_slice %115 {offsets = [1, 0, 0], sizes = [16, 16, 128], strides = [1, 1, 1]} : vector<18x24x128xbf16> to vector<16x16x128xbf16>
      %139 = vector.shape_cast %138 : vector<16x16x128xbf16> to vector<256x128xbf16>
      %140 = arith.index_cast %107 : i32 to index
      %c3_104 = arith.constant 3 : index
      %c0_105 = arith.constant 0 : index
      %c0_106 = arith.constant 0 : index
      %141 = vector.load %arg2[%140, %c3_104, %c0_105, %c0_106] : memref<7x9x128x128xbf16, #tpu.memory_space<vmem>>, vector<1x1x128x128xbf16>
      %142 = vector.shape_cast %141 : vector<1x1x128x128xbf16> to vector<128x128xbf16>
      %cst_107 = arith.constant dense<0.000000e+00> : vector<256x128xf32>
      %143 = tpu.matmul %139, %142, %cst_107 {dimension_numbers = #tpu.dot_dimension_numbers<[1], [0], [0], [1], [0, 0, 1, 1], [], []>} : vector<256x128xbf16>, vector<128x128xbf16>, vector<256x128xf32> -> vector<256x128xf32>
      %144 = arith.addf %137, %143 : vector<256x128xf32>
      %145 = vector.extract_strided_slice %116 {offsets = [1, 0, 0], sizes = [16, 16, 128], strides = [1, 1, 1]} : vector<18x24x128xbf16> to vector<16x16x128xbf16>
      %146 = vector.shape_cast %145 : vector<16x16x128xbf16> to vector<256x128xbf16>
      %147 = arith.index_cast %107 : i32 to index
      %c4_108 = arith.constant 4 : index
      %c0_109 = arith.constant 0 : index
      %c0_110 = arith.constant 0 : index
      %148 = vector.load %arg2[%147, %c4_108, %c0_109, %c0_110] : memref<7x9x128x128xbf16, #tpu.memory_space<vmem>>, vector<1x1x128x128xbf16>
      %149 = vector.shape_cast %148 : vector<1x1x128x128xbf16> to vector<128x128xbf16>
      %cst_111 = arith.constant dense<0.000000e+00> : vector<256x128xf32>
      %150 = tpu.matmul %146, %149, %cst_111 {dimension_numbers = #tpu.dot_dimension_numbers<[1], [0], [0], [1], [0, 0, 1, 1], [], []>} : vector<256x128xbf16>, vector<128x128xbf16>, vector<256x128xf32> -> vector<256x128xf32>
      %151 = arith.addf %144, %150 : vector<256x128xf32>
      %152 = vector.extract_strided_slice %117 {offsets = [1, 0, 0], sizes = [16, 16, 128], strides = [1, 1, 1]} : vector<18x24x128xbf16> to vector<16x16x128xbf16>
      %153 = vector.shape_cast %152 : vector<16x16x128xbf16> to vector<256x128xbf16>
      %154 = arith.index_cast %107 : i32 to index
      %c5_112 = arith.constant 5 : index
      %c0_113 = arith.constant 0 : index
      %c0_114 = arith.constant 0 : index
      %155 = vector.load %arg2[%154, %c5_112, %c0_113, %c0_114] : memref<7x9x128x128xbf16, #tpu.memory_space<vmem>>, vector<1x1x128x128xbf16>
      %156 = vector.shape_cast %155 : vector<1x1x128x128xbf16> to vector<128x128xbf16>
      %cst_115 = arith.constant dense<0.000000e+00> : vector<256x128xf32>
      %157 = tpu.matmul %153, %156, %cst_115 {dimension_numbers = #tpu.dot_dimension_numbers<[1], [0], [0], [1], [0, 0, 1, 1], [], []>} : vector<256x128xbf16>, vector<128x128xbf16>, vector<256x128xf32> -> vector<256x128xf32>
      %158 = arith.addf %151, %157 : vector<256x128xf32>
      %159 = vector.extract_strided_slice %115 {offsets = [2, 0, 0], sizes = [16, 16, 128], strides = [1, 1, 1]} : vector<18x24x128xbf16> to vector<16x16x128xbf16>
      %160 = vector.shape_cast %159 : vector<16x16x128xbf16> to vector<256x128xbf16>
      %161 = arith.index_cast %107 : i32 to index
      %c6_116 = arith.constant 6 : index
      %c0_117 = arith.constant 0 : index
      %c0_118 = arith.constant 0 : index
      %162 = vector.load %arg2[%161, %c6_116, %c0_117, %c0_118] : memref<7x9x128x128xbf16, #tpu.memory_space<vmem>>, vector<1x1x128x128xbf16>
      %163 = vector.shape_cast %162 : vector<1x1x128x128xbf16> to vector<128x128xbf16>
      %cst_119 = arith.constant dense<0.000000e+00> : vector<256x128xf32>
      %164 = tpu.matmul %160, %163, %cst_119 {dimension_numbers = #tpu.dot_dimension_numbers<[1], [0], [0], [1], [0, 0, 1, 1], [], []>} : vector<256x128xbf16>, vector<128x128xbf16>, vector<256x128xf32> -> vector<256x128xf32>
      %165 = arith.addf %158, %164 : vector<256x128xf32>
      %166 = vector.extract_strided_slice %116 {offsets = [2, 0, 0], sizes = [16, 16, 128], strides = [1, 1, 1]} : vector<18x24x128xbf16> to vector<16x16x128xbf16>
      %167 = vector.shape_cast %166 : vector<16x16x128xbf16> to vector<256x128xbf16>
      %168 = arith.index_cast %107 : i32 to index
      %c7_120 = arith.constant 7 : index
      %c0_121 = arith.constant 0 : index
      %c0_122 = arith.constant 0 : index
      %169 = vector.load %arg2[%168, %c7_120, %c0_121, %c0_122] : memref<7x9x128x128xbf16, #tpu.memory_space<vmem>>, vector<1x1x128x128xbf16>
      %170 = vector.shape_cast %169 : vector<1x1x128x128xbf16> to vector<128x128xbf16>
      %cst_123 = arith.constant dense<0.000000e+00> : vector<256x128xf32>
      %171 = tpu.matmul %167, %170, %cst_123 {dimension_numbers = #tpu.dot_dimension_numbers<[1], [0], [0], [1], [0, 0, 1, 1], [], []>} : vector<256x128xbf16>, vector<128x128xbf16>, vector<256x128xf32> -> vector<256x128xf32>
      %172 = arith.addf %165, %171 : vector<256x128xf32>
      %173 = vector.extract_strided_slice %117 {offsets = [2, 0, 0], sizes = [16, 16, 128], strides = [1, 1, 1]} : vector<18x24x128xbf16> to vector<16x16x128xbf16>
      %174 = vector.shape_cast %173 : vector<16x16x128xbf16> to vector<256x128xbf16>
      %175 = arith.index_cast %107 : i32 to index
      %c8_124 = arith.constant 8 : index
      %c0_125 = arith.constant 0 : index
      %c0_126 = arith.constant 0 : index
      %176 = vector.load %arg2[%175, %c8_124, %c0_125, %c0_126] : memref<7x9x128x128xbf16, #tpu.memory_space<vmem>>, vector<1x1x128x128xbf16>
      %177 = vector.shape_cast %176 : vector<1x1x128x128xbf16> to vector<128x128xbf16>
      %cst_127 = arith.constant dense<0.000000e+00> : vector<256x128xf32>
      %178 = tpu.matmul %174, %177, %cst_127 {dimension_numbers = #tpu.dot_dimension_numbers<[1], [0], [0], [1], [0, 0, 1, 1], [], []>} : vector<256x128xbf16>, vector<128x128xbf16>, vector<256x128xf32> -> vector<256x128xf32>
      %179 = arith.addf %172, %178 : vector<256x128xf32>
      %180 = arith.index_cast %107 : i32 to index
      %c0_128 = arith.constant 0 : index
      %c0_129 = arith.constant 0 : index
      %181 = vector.load %arg3[%180, %c0_128, %c0_129] : memref<7x1x128xf32, #tpu.memory_space<vmem>>, vector<1x1x128xf32>
      %182 = vector.shape_cast %181 : vector<1x1x128xf32> to vector<1x128xf32>
      %183 = vector.broadcast %182 : vector<1x128xf32> to vector<256x128xf32>
      %184 = arith.addf %179, %183 : vector<256x128xf32>
      %cst_130 = arith.constant 0.000000e+00 : f32
      %185 = vector.broadcast %cst_130 : f32 to vector<256x128xf32>
      %186 = arith.maximumf %184, %185 : vector<256x128xf32>
      %187 = vector.shape_cast %186 : vector<256x128xf32> to vector<16x16x128xf32>
      %c1_131 = arith.constant 1 : index
      %c1_132 = arith.constant 1 : index
      %c0_133 = arith.constant 0 : index
      %c0_134 = arith.constant 0 : index
      %188 = vector.load %arg7[%c1_131, %c1_132, %c0_133, %c0_134] : memref<2x18x24x128xf32, #tpu.memory_space<vmem>>, vector<1x16x16x128xf32>
      %189 = vector.shape_cast %188 : vector<1x16x16x128xf32> to vector<16x16x128xf32>
      %190 = vector.shape_cast %187 : vector<16x16x128xf32> to vector<1x16x16x128xf32>
      tpu.vector_store %arg7[%c1_131, %c1_132, %c0_133, %c0_134], %190 {strides = array<i32>} : memref<2x18x24x128xf32, #tpu.memory_space<vmem>>, vector<1x16x16x128xf32>,
      %c1_135 = arith.constant 1 : index
      %c0_136 = arith.constant 0 : index
      %c0_137 = arith.constant 0 : index
      %c0_138 = arith.constant 0 : index
      %191 = vector.load %arg7[%c1_135, %c0_136, %c0_137, %c0_138] : memref<2x18x24x128xf32, #tpu.memory_space<vmem>>, vector<1x18x24x128xf32>
      %192 = vector.shape_cast %191 : vector<1x18x24x128xf32> to vector<18x24x128xf32>
      %c1_i32_139 = arith.constant 1 : i32
      %193 = arith.addi %107, %c1_i32_139 : i32
      %194 = vector.shape_cast %192 : vector<18x24x128xf32> to vector<432x128xf32>
      %c1_i32_140 = arith.constant 1 : i32
      %195 = tpu.dynamic_rotate %194 by %c1_i32_140 dim 0 : vector<432x128xf32>, i32 -> vector<432x128xf32>
      %196 = vector.shape_cast %195 : vector<432x128xf32> to vector<18x24x128xf32>
      %c431_i32_141 = arith.constant 431 : i32
      %197 = tpu.dynamic_rotate %194 by %c431_i32_141 dim 0 : vector<432x128xf32>, i32 -> vector<432x128xf32>
      %198 = vector.shape_cast %197 : vector<432x128xf32> to vector<18x24x128xf32>
      %199 = arith.truncf %196 : vector<18x24x128xf32> to vector<18x24x128xbf16>
      %200 = arith.truncf %192 : vector<18x24x128xf32> to vector<18x24x128xbf16>
      %201 = arith.truncf %198 : vector<18x24x128xf32> to vector<18x24x128xbf16>
      %202 = vector.extract_strided_slice %199 {offsets = [0, 0, 0], sizes = [16, 16, 128], strides = [1, 1, 1]} : vector<18x24x128xbf16> to vector<16x16x128xbf16>
      %203 = vector.shape_cast %202 : vector<16x16x128xbf16> to vector<256x128xbf16>
      %204 = arith.index_cast %193 : i32 to index
      %c0_142 = arith.constant 0 : index
      %c0_143 = arith.constant 0 : index
      %c0_144 = arith.constant 0 : index
      %205 = vector.load %arg2[%204, %c0_142, %c0_143, %c0_144] : memref<7x9x128x128xbf16, #tpu.memory_space<vmem>>, vector<1x1x128x128xbf16>
      %206 = vector.shape_cast %205 : vector<1x1x128x128xbf16> to vector<128x128xbf16>
      %cst_145 = arith.constant dense<0.000000e+00> : vector<256x128xf32>
      %207 = tpu.matmul %203, %206, %cst_145 {dimension_numbers = #tpu.dot_dimension_numbers<[1], [0], [0], [1], [0, 0, 1, 1], [], []>} : vector<256x128xbf16>, vector<128x128xbf16>, vector<256x128xf32> -> vector<256x128xf32>
      %208 = vector.extract_strided_slice %200 {offsets = [0, 0, 0], sizes = [16, 16, 128], strides = [1, 1, 1]} : vector<18x24x128xbf16> to vector<16x16x128xbf16>
      %209 = vector.shape_cast %208 : vector<16x16x128xbf16> to vector<256x128xbf16>
      %210 = arith.index_cast %193 : i32 to index
      %c1_146 = arith.constant 1 : index
      %c0_147 = arith.constant 0 : index
      %c0_148 = arith.constant 0 : index
      %211 = vector.load %arg2[%210, %c1_146, %c0_147, %c0_148] : memref<7x9x128x128xbf16, #tpu.memory_space<vmem>>, vector<1x1x128x128xbf16>
      %212 = vector.shape_cast %211 : vector<1x1x128x128xbf16> to vector<128x128xbf16>
      %cst_149 = arith.constant dense<0.000000e+00> : vector<256x128xf32>
      %213 = tpu.matmul %209, %212, %cst_149 {dimension_numbers = #tpu.dot_dimension_numbers<[1], [0], [0], [1], [0, 0, 1, 1], [], []>} : vector<256x128xbf16>, vector<128x128xbf16>, vector<256x128xf32> -> vector<256x128xf32>
      %214 = arith.addf %207, %213 : vector<256x128xf32>
      %215 = vector.extract_strided_slice %201 {offsets = [0, 0, 0], sizes = [16, 16, 128], strides = [1, 1, 1]} : vector<18x24x128xbf16> to vector<16x16x128xbf16>
      %216 = vector.shape_cast %215 : vector<16x16x128xbf16> to vector<256x128xbf16>
      %217 = arith.index_cast %193 : i32 to index
      %c2_150 = arith.constant 2 : index
      %c0_151 = arith.constant 0 : index
      %c0_152 = arith.constant 0 : index
      %218 = vector.load %arg2[%217, %c2_150, %c0_151, %c0_152] : memref<7x9x128x128xbf16, #tpu.memory_space<vmem>>, vector<1x1x128x128xbf16>
      %219 = vector.shape_cast %218 : vector<1x1x128x128xbf16> to vector<128x128xbf16>
      %cst_153 = arith.constant dense<0.000000e+00> : vector<256x128xf32>
      %220 = tpu.matmul %216, %219, %cst_153 {dimension_numbers = #tpu.dot_dimension_numbers<[1], [0], [0], [1], [0, 0, 1, 1], [], []>} : vector<256x128xbf16>, vector<128x128xbf16>, vector<256x128xf32> -> vector<256x128xf32>
      %221 = arith.addf %214, %220 : vector<256x128xf32>
      %222 = vector.extract_strided_slice %199 {offsets = [1, 0, 0], sizes = [16, 16, 128], strides = [1, 1, 1]} : vector<18x24x128xbf16> to vector<16x16x128xbf16>
      %223 = vector.shape_cast %222 : vector<16x16x128xbf16> to vector<256x128xbf16>
      %224 = arith.index_cast %193 : i32 to index
      %c3_154 = arith.constant 3 : index
      %c0_155 = arith.constant 0 : index
      %c0_156 = arith.constant 0 : index
      %225 = vector.load %arg2[%224, %c3_154, %c0_155, %c0_156] : memref<7x9x128x128xbf16, #tpu.memory_space<vmem>>, vector<1x1x128x128xbf16>
      %226 = vector.shape_cast %225 : vector<1x1x128x128xbf16> to vector<128x128xbf16>
      %cst_157 = arith.constant dense<0.000000e+00> : vector<256x128xf32>
      %227 = tpu.matmul %223, %226, %cst_157 {dimension_numbers = #tpu.dot_dimension_numbers<[1], [0], [0], [1], [0, 0, 1, 1], [], []>} : vector<256x128xbf16>, vector<128x128xbf16>, vector<256x128xf32> -> vector<256x128xf32>
      %228 = arith.addf %221, %227 : vector<256x128xf32>
      %229 = vector.extract_strided_slice %200 {offsets = [1, 0, 0], sizes = [16, 16, 128], strides = [1, 1, 1]} : vector<18x24x128xbf16> to vector<16x16x128xbf16>
      %230 = vector.shape_cast %229 : vector<16x16x128xbf16> to vector<256x128xbf16>
      %231 = arith.index_cast %193 : i32 to index
      %c4_158 = arith.constant 4 : index
      %c0_159 = arith.constant 0 : index
      %c0_160 = arith.constant 0 : index
      %232 = vector.load %arg2[%231, %c4_158, %c0_159, %c0_160] : memref<7x9x128x128xbf16, #tpu.memory_space<vmem>>, vector<1x1x128x128xbf16>
      %233 = vector.shape_cast %232 : vector<1x1x128x128xbf16> to vector<128x128xbf16>
      %cst_161 = arith.constant dense<0.000000e+00> : vector<256x128xf32>
      %234 = tpu.matmul %230, %233, %cst_161 {dimension_numbers = #tpu.dot_dimension_numbers<[1], [0], [0], [1], [0, 0, 1, 1], [], []>} : vector<256x128xbf16>, vector<128x128xbf16>, vector<256x128xf32> -> vector<256x128xf32>
      %235 = arith.addf %228, %234 : vector<256x128xf32>
      %236 = vector.extract_strided_slice %201 {offsets = [1, 0, 0], sizes = [16, 16, 128], strides = [1, 1, 1]} : vector<18x24x128xbf16> to vector<16x16x128xbf16>
      %237 = vector.shape_cast %236 : vector<16x16x128xbf16> to vector<256x128xbf16>
      %238 = arith.index_cast %193 : i32 to index
      %c5_162 = arith.constant 5 : index
      %c0_163 = arith.constant 0 : index
      %c0_164 = arith.constant 0 : index
      %239 = vector.load %arg2[%238, %c5_162, %c0_163, %c0_164] : memref<7x9x128x128xbf16, #tpu.memory_space<vmem>>, vector<1x1x128x128xbf16>
      %240 = vector.shape_cast %239 : vector<1x1x128x128xbf16> to vector<128x128xbf16>
      %cst_165 = arith.constant dense<0.000000e+00> : vector<256x128xf32>
      %241 = tpu.matmul %237, %240, %cst_165 {dimension_numbers = #tpu.dot_dimension_numbers<[1], [0], [0], [1], [0, 0, 1, 1], [], []>} : vector<256x128xbf16>, vector<128x128xbf16>, vector<256x128xf32> -> vector<256x128xf32>
      %242 = arith.addf %235, %241 : vector<256x128xf32>
      %243 = vector.extract_strided_slice %199 {offsets = [2, 0, 0], sizes = [16, 16, 128], strides = [1, 1, 1]} : vector<18x24x128xbf16> to vector<16x16x128xbf16>
      %244 = vector.shape_cast %243 : vector<16x16x128xbf16> to vector<256x128xbf16>
      %245 = arith.index_cast %193 : i32 to index
      %c6_166 = arith.constant 6 : index
      %c0_167 = arith.constant 0 : index
      %c0_168 = arith.constant 0 : index
      %246 = vector.load %arg2[%245, %c6_166, %c0_167, %c0_168] : memref<7x9x128x128xbf16, #tpu.memory_space<vmem>>, vector<1x1x128x128xbf16>
      %247 = vector.shape_cast %246 : vector<1x1x128x128xbf16> to vector<128x128xbf16>
      %cst_169 = arith.constant dense<0.000000e+00> : vector<256x128xf32>
      %248 = tpu.matmul %244, %247, %cst_169 {dimension_numbers = #tpu.dot_dimension_numbers<[1], [0], [0], [1], [0, 0, 1, 1], [], []>} : vector<256x128xbf16>, vector<128x128xbf16>, vector<256x128xf32> -> vector<256x128xf32>
      %249 = arith.addf %242, %248 : vector<256x128xf32>
      %250 = vector.extract_strided_slice %200 {offsets = [2, 0, 0], sizes = [16, 16, 128], strides = [1, 1, 1]} : vector<18x24x128xbf16> to vector<16x16x128xbf16>
      %251 = vector.shape_cast %250 : vector<16x16x128xbf16> to vector<256x128xbf16>
      %252 = arith.index_cast %193 : i32 to index
      %c7_170 = arith.constant 7 : index
      %c0_171 = arith.constant 0 : index
      %c0_172 = arith.constant 0 : index
      %253 = vector.load %arg2[%252, %c7_170, %c0_171, %c0_172] : memref<7x9x128x128xbf16, #tpu.memory_space<vmem>>, vector<1x1x128x128xbf16>
      %254 = vector.shape_cast %253 : vector<1x1x128x128xbf16> to vector<128x128xbf16>
      %cst_173 = arith.constant dense<0.000000e+00> : vector<256x128xf32>
      %255 = tpu.matmul %251, %254, %cst_173 {dimension_numbers = #tpu.dot_dimension_numbers<[1], [0], [0], [1], [0, 0, 1, 1], [], []>} : vector<256x128xbf16>, vector<128x128xbf16>, vector<256x128xf32> -> vector<256x128xf32>
      %256 = arith.addf %249, %255 : vector<256x128xf32>
      %257 = vector.extract_strided_slice %201 {offsets = [2, 0, 0], sizes = [16, 16, 128], strides = [1, 1, 1]} : vector<18x24x128xbf16> to vector<16x16x128xbf16>
      %258 = vector.shape_cast %257 : vector<16x16x128xbf16> to vector<256x128xbf16>
      %259 = arith.index_cast %193 : i32 to index
      %c8_174 = arith.constant 8 : index
      %c0_175 = arith.constant 0 : index
      %c0_176 = arith.constant 0 : index
      %260 = vector.load %arg2[%259, %c8_174, %c0_175, %c0_176] : memref<7x9x128x128xbf16, #tpu.memory_space<vmem>>, vector<1x1x128x128xbf16>
      %261 = vector.shape_cast %260 : vector<1x1x128x128xbf16> to vector<128x128xbf16>
      %cst_177 = arith.constant dense<0.000000e+00> : vector<256x128xf32>
      %262 = tpu.matmul %258, %261, %cst_177 {dimension_numbers = #tpu.dot_dimension_numbers<[1], [0], [0], [1], [0, 0, 1, 1], [], []>} : vector<256x128xbf16>, vector<128x128xbf16>, vector<256x128xf32> -> vector<256x128xf32>
      %263 = arith.addf %256, %262 : vector<256x128xf32>
      %264 = arith.index_cast %193 : i32 to index
      %c0_178 = arith.constant 0 : index
      %c0_179 = arith.constant 0 : index
      %265 = vector.load %arg3[%264, %c0_178, %c0_179] : memref<7x1x128xf32, #tpu.memory_space<vmem>>, vector<1x1x128xf32>
      %266 = vector.shape_cast %265 : vector<1x1x128xf32> to vector<1x128xf32>
      %267 = vector.broadcast %266 : vector<1x128xf32> to vector<256x128xf32>
      %268 = arith.addf %263, %267 : vector<256x128xf32>
      %cst_180 = arith.constant 0.000000e+00 : f32
      %269 = vector.broadcast %cst_180 : f32 to vector<256x128xf32>
      %270 = arith.maximumf %268, %269 : vector<256x128xf32>
      %271 = vector.shape_cast %270 : vector<256x128xf32> to vector<16x16x128xf32>
      %c0_181 = arith.constant 0 : index
      %c1_182 = arith.constant 1 : index
      %c0_183 = arith.constant 0 : index
      %c0_184 = arith.constant 0 : index
      %272 = vector.load %arg7[%c0_181, %c1_182, %c0_183, %c0_184] : memref<2x18x24x128xf32, #tpu.memory_space<vmem>>, vector<1x16x16x128xf32>
      %273 = vector.shape_cast %272 : vector<1x16x16x128xf32> to vector<16x16x128xf32>
      %274 = vector.shape_cast %271 : vector<16x16x128xf32> to vector<1x16x16x128xf32>
      tpu.vector_store %arg7[%c0_181, %c1_182, %c0_183, %c0_184], %274 {strides = array<i32>} : memref<2x18x24x128xf32, #tpu.memory_space<vmem>>, vector<1x16x16x128xf32>,
    }
    %c3_i32_29 = arith.constant 3 : i32
    %c0_30 = arith.constant 0 : index
    %c0_31 = arith.constant 0 : index
    %c0_32 = arith.constant 0 : index
    %c0_33 = arith.constant 0 : index
    %26 = vector.load %arg7[%c0_30, %c0_31, %c0_32, %c0_33] : memref<2x18x24x128xf32, #tpu.memory_space<vmem>>, vector<1x18x24x128xf32>
    %27 = vector.shape_cast %26 : vector<1x18x24x128xf32> to vector<18x24x128xf32>
    %28 = vector.shape_cast %27 : vector<18x24x128xf32> to vector<432x128xf32>
    %c1_i32_34 = arith.constant 1 : i32
    %29 = tpu.dynamic_rotate %28 by %c1_i32_34 dim 0 : vector<432x128xf32>, i32 -> vector<432x128xf32>
    %30 = vector.shape_cast %29 : vector<432x128xf32> to vector<18x24x128xf32>
    %c431_i32 = arith.constant 431 : i32
    %31 = tpu.dynamic_rotate %28 by %c431_i32 dim 0 : vector<432x128xf32>, i32 -> vector<432x128xf32>
    %32 = vector.shape_cast %31 : vector<432x128xf32> to vector<18x24x128xf32>
    %33 = arith.truncf %30 : vector<18x24x128xf32> to vector<18x24x128xbf16>
    %34 = arith.truncf %27 : vector<18x24x128xf32> to vector<18x24x128xbf16>
    %35 = arith.truncf %32 : vector<18x24x128xf32> to vector<18x24x128xbf16>
    %36 = vector.extract_strided_slice %33 {offsets = [0, 0, 0], sizes = [16, 16, 128], strides = [1, 1, 1]} : vector<18x24x128xbf16> to vector<16x16x128xbf16>
    %37 = vector.shape_cast %36 : vector<16x16x128xbf16> to vector<256x128xbf16>
    %c6 = arith.constant 6 : index
    %c0_35 = arith.constant 0 : index
    %c0_36 = arith.constant 0 : index
    %c0_37 = arith.constant 0 : index
    %38 = vector.load %arg2[%c6, %c0_35, %c0_36, %c0_37] : memref<7x9x128x128xbf16, #tpu.memory_space<vmem>>, vector<1x1x128x128xbf16>
    %39 = vector.shape_cast %38 : vector<1x1x128x128xbf16> to vector<128x128xbf16>
    %cst_38 = arith.constant dense<0.000000e+00> : vector<256x128xf32>
    %40 = tpu.matmul %37, %39, %cst_38 {dimension_numbers = #tpu.dot_dimension_numbers<[1], [0], [0], [1], [0, 0, 1, 1], [], []>} : vector<256x128xbf16>, vector<128x128xbf16>, vector<256x128xf32> -> vector<256x128xf32>
    %41 = vector.extract_strided_slice %34 {offsets = [0, 0, 0], sizes = [16, 16, 128], strides = [1, 1, 1]} : vector<18x24x128xbf16> to vector<16x16x128xbf16>
    %42 = vector.shape_cast %41 : vector<16x16x128xbf16> to vector<256x128xbf16>
    %c6_39 = arith.constant 6 : index
    %c1_40 = arith.constant 1 : index
    %c0_41 = arith.constant 0 : index
    %c0_42 = arith.constant 0 : index
    %43 = vector.load %arg2[%c6_39, %c1_40, %c0_41, %c0_42] : memref<7x9x128x128xbf16, #tpu.memory_space<vmem>>, vector<1x1x128x128xbf16>
    %44 = vector.shape_cast %43 : vector<1x1x128x128xbf16> to vector<128x128xbf16>
    %cst_43 = arith.constant dense<0.000000e+00> : vector<256x128xf32>
    %45 = tpu.matmul %42, %44, %cst_43 {dimension_numbers = #tpu.dot_dimension_numbers<[1], [0], [0], [1], [0, 0, 1, 1], [], []>} : vector<256x128xbf16>, vector<128x128xbf16>, vector<256x128xf32> -> vector<256x128xf32>
    %46 = arith.addf %40, %45 : vector<256x128xf32>
    %47 = vector.extract_strided_slice %35 {offsets = [0, 0, 0], sizes = [16, 16, 128], strides = [1, 1, 1]} : vector<18x24x128xbf16> to vector<16x16x128xbf16>
    %48 = vector.shape_cast %47 : vector<16x16x128xbf16> to vector<256x128xbf16>
    %c6_44 = arith.constant 6 : index
    %c2 = arith.constant 2 : index
    %c0_45 = arith.constant 0 : index
    %c0_46 = arith.constant 0 : index
    %49 = vector.load %arg2[%c6_44, %c2, %c0_45, %c0_46] : memref<7x9x128x128xbf16, #tpu.memory_space<vmem>>, vector<1x1x128x128xbf16>
    %50 = vector.shape_cast %49 : vector<1x1x128x128xbf16> to vector<128x128xbf16>
    %cst_47 = arith.constant dense<0.000000e+00> : vector<256x128xf32>
    %51 = tpu.matmul %48, %50, %cst_47 {dimension_numbers = #tpu.dot_dimension_numbers<[1], [0], [0], [1], [0, 0, 1, 1], [], []>} : vector<256x128xbf16>, vector<128x128xbf16>, vector<256x128xf32> -> vector<256x128xf32>
    %52 = arith.addf %46, %51 : vector<256x128xf32>
    %53 = vector.extract_strided_slice %33 {offsets = [1, 0, 0], sizes = [16, 16, 128], strides = [1, 1, 1]} : vector<18x24x128xbf16> to vector<16x16x128xbf16>
    %54 = vector.shape_cast %53 : vector<16x16x128xbf16> to vector<256x128xbf16>
    %c6_48 = arith.constant 6 : index
    %c3 = arith.constant 3 : index
    %c0_49 = arith.constant 0 : index
    %c0_50 = arith.constant 0 : index
    %55 = vector.load %arg2[%c6_48, %c3, %c0_49, %c0_50] : memref<7x9x128x128xbf16, #tpu.memory_space<vmem>>, vector<1x1x128x128xbf16>
    %56 = vector.shape_cast %55 : vector<1x1x128x128xbf16> to vector<128x128xbf16>
    %cst_51 = arith.constant dense<0.000000e+00> : vector<256x128xf32>
    %57 = tpu.matmul %54, %56, %cst_51 {dimension_numbers = #tpu.dot_dimension_numbers<[1], [0], [0], [1], [0, 0, 1, 1], [], []>} : vector<256x128xbf16>, vector<128x128xbf16>, vector<256x128xf32> -> vector<256x128xf32>
    %58 = arith.addf %52, %57 : vector<256x128xf32>
    %59 = vector.extract_strided_slice %34 {offsets = [1, 0, 0], sizes = [16, 16, 128], strides = [1, 1, 1]} : vector<18x24x128xbf16> to vector<16x16x128xbf16>
    %60 = vector.shape_cast %59 : vector<16x16x128xbf16> to vector<256x128xbf16>
    %c6_52 = arith.constant 6 : index
    %c4 = arith.constant 4 : index
    %c0_53 = arith.constant 0 : index
    %c0_54 = arith.constant 0 : index
    %61 = vector.load %arg2[%c6_52, %c4, %c0_53, %c0_54] : memref<7x9x128x128xbf16, #tpu.memory_space<vmem>>, vector<1x1x128x128xbf16>
    %62 = vector.shape_cast %61 : vector<1x1x128x128xbf16> to vector<128x128xbf16>
    %cst_55 = arith.constant dense<0.000000e+00> : vector<256x128xf32>
    %63 = tpu.matmul %60, %62, %cst_55 {dimension_numbers = #tpu.dot_dimension_numbers<[1], [0], [0], [1], [0, 0, 1, 1], [], []>} : vector<256x128xbf16>, vector<128x128xbf16>, vector<256x128xf32> -> vector<256x128xf32>
    %64 = arith.addf %58, %63 : vector<256x128xf32>
    %65 = vector.extract_strided_slice %35 {offsets = [1, 0, 0], sizes = [16, 16, 128], strides = [1, 1, 1]} : vector<18x24x128xbf16> to vector<16x16x128xbf16>
    %66 = vector.shape_cast %65 : vector<16x16x128xbf16> to vector<256x128xbf16>
    %c6_56 = arith.constant 6 : index
    %c5 = arith.constant 5 : index
    %c0_57 = arith.constant 0 : index
    %c0_58 = arith.constant 0 : index
    %67 = vector.load %arg2[%c6_56, %c5, %c0_57, %c0_58] : memref<7x9x128x128xbf16, #tpu.memory_space<vmem>>, vector<1x1x128x128xbf16>
    %68 = vector.shape_cast %67 : vector<1x1x128x128xbf16> to vector<128x128xbf16>
    %cst_59 = arith.constant dense<0.000000e+00> : vector<256x128xf32>
    %69 = tpu.matmul %66, %68, %cst_59 {dimension_numbers = #tpu.dot_dimension_numbers<[1], [0], [0], [1], [0, 0, 1, 1], [], []>} : vector<256x128xbf16>, vector<128x128xbf16>, vector<256x128xf32> -> vector<256x128xf32>
    %70 = arith.addf %64, %69 : vector<256x128xf32>
    %71 = vector.extract_strided_slice %33 {offsets = [2, 0, 0], sizes = [16, 16, 128], strides = [1, 1, 1]} : vector<18x24x128xbf16> to vector<16x16x128xbf16>
    %72 = vector.shape_cast %71 : vector<16x16x128xbf16> to vector<256x128xbf16>
    %c6_60 = arith.constant 6 : index
    %c6_61 = arith.constant 6 : index
    %c0_62 = arith.constant 0 : index
    %c0_63 = arith.constant 0 : index
    %73 = vector.load %arg2[%c6_60, %c6_61, %c0_62, %c0_63] : memref<7x9x128x128xbf16, #tpu.memory_space<vmem>>, vector<1x1x128x128xbf16>
    %74 = vector.shape_cast %73 : vector<1x1x128x128xbf16> to vector<128x128xbf16>
    %cst_64 = arith.constant dense<0.000000e+00> : vector<256x128xf32>
    %75 = tpu.matmul %72, %74, %cst_64 {dimension_numbers = #tpu.dot_dimension_numbers<[1], [0], [0], [1], [0, 0, 1, 1], [], []>} : vector<256x128xbf16>, vector<128x128xbf16>, vector<256x128xf32> -> vector<256x128xf32>
    %76 = arith.addf %70, %75 : vector<256x128xf32>
    %77 = vector.extract_strided_slice %34 {offsets = [2, 0, 0], sizes = [16, 16, 128], strides = [1, 1, 1]} : vector<18x24x128xbf16> to vector<16x16x128xbf16>
    %78 = vector.shape_cast %77 : vector<16x16x128xbf16> to vector<256x128xbf16>
    %c6_65 = arith.constant 6 : index
    %c7 = arith.constant 7 : index
    %c0_66 = arith.constant 0 : index
    %c0_67 = arith.constant 0 : index
    %79 = vector.load %arg2[%c6_65, %c7, %c0_66, %c0_67] : memref<7x9x128x128xbf16, #tpu.memory_space<vmem>>, vector<1x1x128x128xbf16>
    %80 = vector.shape_cast %79 : vector<1x1x128x128xbf16> to vector<128x128xbf16>
    %cst_68 = arith.constant dense<0.000000e+00> : vector<256x128xf32>
    %81 = tpu.matmul %78, %80, %cst_68 {dimension_numbers = #tpu.dot_dimension_numbers<[1], [0], [0], [1], [0, 0, 1, 1], [], []>} : vector<256x128xbf16>, vector<128x128xbf16>, vector<256x128xf32> -> vector<256x128xf32>
    %82 = arith.addf %76, %81 : vector<256x128xf32>
    %83 = vector.extract_strided_slice %35 {offsets = [2, 0, 0], sizes = [16, 16, 128], strides = [1, 1, 1]} : vector<18x24x128xbf16> to vector<16x16x128xbf16>
    %84 = vector.shape_cast %83 : vector<16x16x128xbf16> to vector<256x128xbf16>
    %c6_69 = arith.constant 6 : index
    %c8 = arith.constant 8 : index
    %c0_70 = arith.constant 0 : index
    %c0_71 = arith.constant 0 : index
    %85 = vector.load %arg2[%c6_69, %c8, %c0_70, %c0_71] : memref<7x9x128x128xbf16, #tpu.memory_space<vmem>>, vector<1x1x128x128xbf16>
    %86 = vector.shape_cast %85 : vector<1x1x128x128xbf16> to vector<128x128xbf16>
    %cst_72 = arith.constant dense<0.000000e+00> : vector<256x128xf32>
    %87 = tpu.matmul %84, %86, %cst_72 {dimension_numbers = #tpu.dot_dimension_numbers<[1], [0], [0], [1], [0, 0, 1, 1], [], []>} : vector<256x128xbf16>, vector<128x128xbf16>, vector<256x128xf32> -> vector<256x128xf32>
    %88 = arith.addf %82, %87 : vector<256x128xf32>
    %c6_73 = arith.constant 6 : index
    %c0_74 = arith.constant 0 : index
    %c0_75 = arith.constant 0 : index
    %89 = vector.load %arg3[%c6_73, %c0_74, %c0_75] : memref<7x1x128xf32, #tpu.memory_space<vmem>>, vector<1x1x128xf32>
    %90 = vector.shape_cast %89 : vector<1x1x128xf32> to vector<1x128xf32>
    %91 = vector.broadcast %90 : vector<1x128xf32> to vector<256x128xf32>
    %92 = arith.addf %88, %91 : vector<256x128xf32>
    %cst_76 = arith.constant 0.000000e+00 : f32
    %93 = vector.broadcast %cst_76 : f32 to vector<256x128xf32>
    %94 = arith.maximumf %92, %93 : vector<256x128xf32>
    %c0_77 = arith.constant 0 : index
    %c0_78 = arith.constant 0 : index
    %95 = vector.load %arg4[%c0_77, %c0_78] : memref<1x128xf32, #tpu.memory_space<vmem>>, vector<1x128xf32>
    %96 = vector.broadcast %95 : vector<1x128xf32> to vector<256x128xf32>
    %97 = arith.mulf %94, %96 : vector<256x128xf32>
    %c0_79 = arith.constant 0 : index
    %c0_80 = arith.constant 0 : index
    %98 = vector.load %arg5[%c0_79, %c0_80] : memref<1x128xf32, #tpu.memory_space<vmem>>, vector<1x128xf32>
    %99 = vector.broadcast %98 : vector<1x128xf32> to vector<256x128xf32>
    %100 = arith.addf %97, %99 : vector<256x128xf32>
    %cst_81 = arith.constant 0.000000e+00 : f32
    %101 = vector.broadcast %cst_81 : f32 to vector<256x128xf32>
    %102 = arith.maximumf %100, %101 : vector<256x128xf32>
    %103 = vector.shape_cast %102 : vector<256x128xf32> to vector<16x16x128xf32>
    %c0_82 = arith.constant 0 : index
    %c0_83 = arith.constant 0 : index
    %c0_84 = arith.constant 0 : index
    %c0_85 = arith.constant 0 : index
    %104 = vector.load %arg6[%c0_82, %c0_83, %c0_84, %c0_85] : memref<1x16x16x128xf32, #tpu.memory_space<vmem>>, vector<1x16x16x128xf32>
    %105 = vector.shape_cast %104 : vector<1x16x16x128xf32> to vector<16x16x128xf32>
    %106 = vector.shape_cast %103 : vector<16x16x128xf32> to vector<1x16x16x128xf32>
    tpu.vector_store %arg6[%c0_82, %c0_83, %c0_84, %c0_85], %106 {strides = array<i32>} : memref<1x16x16x128xf32, #tpu.memory_space<vmem>>, vector<1x16x16x128xf32>,
    return
  }
  func.func @transform_0(%arg0: i32) -> (i32, i32, i32, i32) {
    %c0_i32 = arith.constant 0 : i32
    %c0_i32_0 = arith.constant 0 : i32
    %c0_i32_1 = arith.constant 0 : i32
    %c0_i32_2 = arith.constant 0 : i32
    return %arg0, %c0_i32, %c0_i32_0, %c0_i32_1 : i32, i32, i32, i32
  }
  func.func @transform_1(%arg0: i32) -> (i32, i32, i32, i32) {
    %c0_i32 = arith.constant 0 : i32
    %c0_i32_0 = arith.constant 0 : i32
    %c0_i32_1 = arith.constant 0 : i32
    %c0_i32_2 = arith.constant 0 : i32
    %c0_i32_3 = arith.constant 0 : i32
    return %c0_i32, %c0_i32_0, %c0_i32_1, %c0_i32_2 : i32, i32, i32, i32
  }
  func.func @transform_2(%arg0: i32) -> (i32, i32, i32) {
    %c0_i32 = arith.constant 0 : i32
    %c0_i32_0 = arith.constant 0 : i32
    %c0_i32_1 = arith.constant 0 : i32
    %c0_i32_2 = arith.constant 0 : i32
    return %c0_i32, %c0_i32_0, %c0_i32_1 : i32, i32, i32
  }
  func.func @transform_3(%arg0: i32) -> (i32, i32) {
    %c0_i32 = arith.constant 0 : i32
    %c0_i32_0 = arith.constant 0 : i32
    %c0_i32_1 = arith.constant 0 : i32
    return %c0_i32, %c0_i32_0 : i32, i32
  }
  func.func @transform_4(%arg0: i32) -> (i32, i32) {
    %c0_i32 = arith.constant 0 : i32
    %c0_i32_0 = arith.constant 0 : i32
    %c0_i32_1 = arith.constant 0 : i32
    return %c0_i32, %c0_i32_0 : i32, i32
  }
  func.func @transform_5(%arg0: i32) -> (i32, i32, i32, i32) {
    %c0_i32 = arith.constant 0 : i32
    %c0_i32_0 = arith.constant 0 : i32
    %c0_i32_1 = arith.constant 0 : i32
    %c0_i32_2 = arith.constant 0 : i32
    return %arg0, %c0_i32, %c0_i32_0, %c0_i32_1 : i32, i32, i32, i32
  }
}

</mosaic_0001>

<bundles_post_ra>
// kernel: conv_block_initial_forward.1
= control target key start
LH: loop header
LB: loop body
LE: loop exit
PB: predicated region body
PF: predicated region fallthrough
CT: control target
= control target key end

     0   :  { %10 = vsyncpa [#allocation4], 0  ;;  %s16311_s0 = inlined_call_operand.vmem [shape: f32[2,16,16,128], index: 0, kind: input, shape index: {}]   ;;  %s16312_s1 = inlined_call_operand.hbm [shape: bf16[7,9,128,128], index: 1, kind: input, shape index: {}]   ;;  %s16313_s2 = inlined_call_operand.hbm [shape: f32[7,1,128], index: 2, kind: input, shape index: {}]   ;;  %s16314_s3 = inlined_call_operand.hbm [shape: f32[1,128], index: 3, kind: input, shape index: {}]   ;;  %s16315_s4 = inlined_call_operand.hbm [shape: f32[1,128], index: 4, kind: input, shape index: {}]   ;;  %s16316_s5 = inlined_call_operand.hbm [shape: f32[2,16,16,128], index: 5, kind: output, shape index: {}]  }
   0x1   :  { %11 = vsyncpa [#allocation7], 0 }
   0x2   :  { %12 = vsyncpa [#allocation10], 0 }
   0x3   :  { %13 = vsyncpa [#allocation5], 0 }
   0x4   :  { %15 = vsyncpa [#allocation5 + $0x1], 0  ;;  %s11767_s18 = smov 0   ;;  %s11769_s19 = smov 0  }
   0x5   :  { %s11771_s20 = smov 0   ;;  %s11773_s21 = smov 0  }
   0x6 LB: > { %s11788_s22 = sadd.s32 4294967295, %s11719_s21   ;;  %s8709_s23 = sadd.s32 4294967294, %s11719_s21   ;;  %s11719_s21 = sphi %s11773_s21, %s17093_s21   ;;  %s11715_s20 = sphi %s11771_s20, %s17092_s20   ;;  %s11711_s19 = sphi %s11769_s19, %s17091_s19   ;;  %s11707_s18 = sphi %s11767_s18, %s17090_s18  }
   0x7   : > { %s11792_s24 = sadd.s32 1, %s11719_s21   ;;  %s138_s25 = sadd.s32 1, %s11715_s20 }
   0x8   : > { %s135_s26 = ssub.s32 %s11719_s21, %s11792_s24  ;;  %p148_p0 = scmp.ne.s32.totalorder %s11715_s20, %s11711_s19 }
   0x9   : > { %p136_p1 = scmp.eq.s32.totalorder %s135_s26, 0  ;;  %p149_p2 = scmp.eq.s32.totalorder %s11788_s22, 1 }
   0xa   : > { %p154_p3 = scmp.ne.s32.totalorder %s11711_s19, %s11707_s18  ;;  %p155_p4 = scmp.eq.s32.totalorder %s8709_s23, 1 }
   0xb   : > { %s11803_s27 = scalar_select %p136_p1, %s11715_s20, %s138_s25  }
   0xc   : > { %p11805_p5 = por %p149_p2, %p148_p0  ;;  %p11809_p6 = por %p155_p4, %p154_p3 }
   0xd   : > { %p8710_p7 = scmp.ge.s32.totalorder %s11719_s21, 1  ;;  %p162_p8 = scmp.lt.s32.totalorder %s11719_s21, 3 }
   0xe   : > { %s16451_s28 = scalar_select %p11805_p5, 1, 0 }
   0xf   : > { %s16452_s29 = scalar_select %p11809_p6, 1, 0 }
  0x10   : > { %p16317_p9 = scmp.eq.s32.totalorder %s11788_s22, 0  ;;  %p11816_p10 = pnand %p8710_p7, %p162_p8 }
  0x11   : > { %s11725_s6 = smov [#allocation6]   ;;  %s11726_s9 = smov [#allocation3]  }
  0x12   : > { %s187_s7 = sshll.u32 %s11725_s6, 4  ;;  %p11242_p11 = pneg %p11816_p10  ;;  %s188_s7 = int_to_ptr.vmem [resolvable:$true] %s187_s7 }
  0x13   : > { %s174_s10 = sshll.u32 %s11726_s9, 4  ;;  %s11550_s11 = scalar_lea.vmem %s188_s7, 112  ;;  %s11828_s10 = int_to_ptr.vmem [resolvable:$true] %s174_s10 }
  0x14   : > { %p11824_p12 = pnand %p16317_p9, %p11242_p11  ;;  %p11551_p0 = scmp.ne.s32.totalorder %s188_s7, %s11550_s11 }
  0x15   : > { %s11557_s12 = scalar_lea.vmem %s188_s7, 128  ;;  %p11558_p3 = scmp.lt.s32.totalorder %s188_s7, %s188_s7 }
  0x16   : > { %p11541_p13 = pneg %p11824_p12  ;;  %p11559_p4 = scmp.lt.s32.totalorder %s11557_s12, %s11550_s11 }
  0x18   : > { %p11553_p1 = pnand %p11551_p0, %p11541_p13  ;;  %p11560_p7 = por %p11559_p4, %p11558_p3 }
  0x1a   : > { %p11554_p2 = pneg %p11553_p1 }
  0x1c   : > { %p11561_p8 = pnand %p11560_p7, %p11554_p2 }
  0x1e   : > { %11564 = shalt.err (!%p11561_p8)
}
  0x1f   : > { %s11727_s13 = smov 16   ;;  %s11728_s14 = smov 1  }
  0x20   : > { %11248 = dma.hbm_to_vmem [thread:$0]  (!%p11824_p12), %s16313_s2, 112, %s188_s7, [#allocation7], %s11727_s13, %s11727_s13, %s11728_s14  }
  0x21   : > { %s11576_s17 = scalar_lea.vmem %s11828_s10, 64512  ;;  %p11584_p2 = scmp.lt.s32.totalorder %s11828_s10, %s11828_s10 }
  0x22   : > { %p11577_p11 = scmp.ne.s32.totalorder %s11828_s10, %s11576_s17  ;;  %p11585_p3 = scmp.lt.s32.totalorder %s11576_s17, %s11576_s17 }
  0x24   : > { %p11579_p0 = pnand %p11577_p11, %p11541_p13  ;;  %p11586_p4 = por %p11585_p3, %p11584_p2 }
  0x26   : > { %p11580_p1 = pneg %p11579_p0 }
  0x28   : > { %p11587_p7 = pnand %p11586_p4, %p11580_p1 }
  0x2a   : > { %11590 = shalt.err (!%p11587_p7)
}
  0x2b   : > { %s11729_s23 = smov 64   ;;  %s11730_s25 = smov 4  }
  0x2c   : > { %11245 = dma.hbm_to_vmem [thread:$0]  (!%p11824_p12), %s16312_s1, 64512, %s11828_s10, [#allocation4], %s11729_s23, %s11729_s23, %s11730_s25  }
  0x2d   : > { %s11731_s7 = smov [#allocation8]   ;;  %s11732_s11 = smov [#allocation9]  }
  0x2e   : > { %s201_s9 = sshll.u32 %s11731_s7, 4  ;;  %s212_s12 = sshll.u32 %s11732_s11, 4  ;;  %s202_s9 = int_to_ptr.vmem [resolvable:$true] %s201_s9  ;;  %s213_s12 = int_to_ptr.vmem [resolvable:$true] %s212_s12 }
  0x2f   : > { %s11602_s13 = scalar_lea.vmem %s202_s9, 16  ;;  %s11609_s14 = scalar_lea.vmem %s202_s9, 32 }
  0x30   : > { %p11603_p8 = scmp.ne.s32.totalorder %s202_s9, %s11602_s13  ;;  %p11610_p1 = scmp.lt.s32.totalorder %s202_s9, %s202_s9 }
  0x31   : > { %p11611_p2 = scmp.lt.s32.totalorder %s11609_s14, %s11602_s13 }
  0x32   : > { %p11605_p11 = pnand %p11603_p8, %p11541_p13 }
  0x33   : > { %p11612_p3 = por %p11611_p2, %p11610_p1 }
  0x34   : > { %p11606_p0 = pneg %p11605_p11 }
  0x36   : > { %p11613_p4 = pnand %p11612_p3, %p11606_p0 }
  0x38   : > { %11616 = shalt.err (!%p11613_p4)
}
  0x39   : > { %11251 = dma.hbm_to_vmem [thread:$0]  (!%p11824_p12), %s16314_s3, 16, %s202_s9, [#allocation7]  }
  0x3a   : > { %s11628_s16 = scalar_lea.vmem %s213_s12, 16  ;;  %s11635_s17 = scalar_lea.vmem %s213_s12, 32 }
  0x3b   : > { %p11629_p7 = scmp.ne.s32.totalorder %s213_s12, %s11628_s16  ;;  %p11636_p11 = scmp.lt.s32.totalorder %s213_s12, %s213_s12 }
  0x3c   : > { %p11637_p6 = scmp.lt.s32.totalorder %s11635_s17, %s11628_s16 }
  0x3d   : > { %p11631_p9 = pnand %p11629_p7, %p11541_p13 }
  0x3e   : > { %p11638_p5 = por %p11637_p6, %p11636_p11 }
  0x3f   : > { %p11632_p8 = pneg %p11631_p9 }
  0x41   : > { %p11639_p1 = pnand %p11638_p5, %p11632_p8 }
  0x43   : > { %11642 = shalt.err (!%p11639_p1)
}
  0x44   : > { %11254 = dma.hbm_to_vmem [thread:$0]  (!%p11824_p12), %s16315_s4, 16, %s213_s12, [#allocation10]  }
  0x45   : > { %233 = sbr.rel (%p11816_p10) target bundleno = 1672 (0x688), region = 40 }
  0x4a   : > { %p16455_p0 = scmp.eq.s32.totalorder %s11788_s22, 0 }
  0x4c   : > { %11690 = dma.done.wait (%p16455_p0), [#allocation4], 64512   ;;  %p16456_p9 = pmov %p16455_p0 }
  0x4d   : > { %p16457_p13 = pmov %p16455_p0 }
  0x4e   : > { %11692 = vsyncadd (%p16456_p9), [#allocation4], 4294902784 }
  0x4f   : > { %11694 = dma.done.wait (%p16457_p13), [#allocation7], 128   ;;  %p16458_p5 = pmov %p16455_p0 }
  0x50   : > { %p16459_p6 = pmov %p16455_p0 }
  0x51   : > { %11696 = vsyncadd (%p16458_p5), [#allocation7], 4294967168 }
  0x52   : > { %11698 = dma.done.wait (%p16459_p6), [#allocation10], 16   ;;  %p16460_p12 = pmov %p16455_p0 }
  0x53   : > { %s270_s30 = sand.u32 1, %s11711_s19   ;;  %p273_p10 = scmp.lt.s32.totalorder %s11788_s22, 1  ;;  %v11733_v0 = vmov 0.0  }
  0x54   : > { %11700 = vsyncadd (%p16460_p12), [#allocation10], 4294967280  ;;  %s11887_s8 = sshll.u32 %s270_s30, 8  ;;  %279 = vst [vmem:[#allocation2 + $0x240] sm:$0xff] %v11733_v0  ;;  %s11932_s13 = smov 0  }
  0x55   : > { %280 = vst [vmem:[#allocation2 + $0x350] sm:$0xff] %v11733_v0  ;;  %281 = vst [vmem:[#allocation2 + $0x10] sm:$0xff] %v11733_v0  ;;  %s274_s26 = scalar_select %p273_p10, %s11788_s22, 1 }
  0x56   : > { %283 = vst [vmem:[#allocation2 + $0x70] sm:$0xff] %v11733_v0  ;;  %284 = vst [vmem:[#allocation2 + $0x2e8] sm:$0xff] %v11733_v0  ;;  %s11930_s12 = scalar_lea.vmem [#allocation11], %s11887_s8 }
  0x57   : > { %285 = vst [vmem:[#allocation2 + $0x40] sm:$0xff] %v11733_v0  ;;  %287 = vst [vmem:[#allocation2 + $0x220] sm:$0xff] %v11733_v0  ;;  %s9261_s6 = sshll.u32 %s274_s26, 8 }
  0x58   : > { %288 = vst [vmem:[#allocation2 + $0x238] sm:$0xff] %v11733_v0  ;;  %289 = vst [vmem:[#allocation2 + $0x118] sm:$0xff] %v11733_v0  ;;  %s11895_s11 = scalar_lea.vmem %s16311_s0, %s9261_s6 }
  0x59   : > { %290 = vst [vmem:[#allocation2 + $0x2c0] sm:$0xff] %v11733_v0  ;;  %291 = vst [vmem:[#allocation2 + $0x2e0] sm:$0xff] %v11733_v0  ;;  %v328_v1 = vld [vmem:[%s11895_s11] sm:$0xff]  ;;  %v329_v2 = vld [vmem:[%s11895_s11 + $0x8] sm:$0xff] }
  0x5a   : > { %292 = vst [vmem:[#allocation2 + $0x208] sm:$0xff] %v11733_v0  ;;  %293 = vst [vmem:[#allocation2 + $0x198] sm:$0xff] %v11733_v0  ;;  %v330_v3 = vld [vmem:[%s11895_s11 + $0x10] sm:$0xff]  ;;  %v331_v4 = vld [vmem:[%s11895_s11 + $0x18] sm:$0xff] }
  0x5b   : > { %294 = vst [vmem:[#allocation2 + $0x260] sm:$0xff] %v11733_v0  ;;  %295 = vst [vmem:[#allocation2 + $0x2d8] sm:$0xff] %v11733_v0  ;;  %v332_v5 = vld [vmem:[%s11895_s11 + $0x20] sm:$0xff]  ;;  %v333_v6 = vld [vmem:[%s11895_s11 + $0x28] sm:$0xff] }
  0x5c   : > { %296 = vst [vmem:[#allocation2 + $0x1a0] sm:$0xff] %v11733_v0  ;;  %297 = vst [vmem:[#allocation2 + $0x258] sm:$0xff] %v11733_v0  ;;  %v334_v7 = vld [vmem:[%s11895_s11 + $0x30] sm:$0xff]  ;;  %v335_v8 = vld [vmem:[%s11895_s11 + $0x38] sm:$0xff] }
  0x5d   : > { %298 = vst [vmem:[#allocation2 + $0x50] sm:$0xff] %v11733_v0  ;;  %299 = vst [vmem:[#allocation2 + $0x68] sm:$0xff] %v11733_v0  ;;  %v336_v9 = vld [vmem:[%s11895_s11 + $0x40] sm:$0xff]  ;;  %v337_v10 = vld [vmem:[%s11895_s11 + $0x48] sm:$0xff] }
  0x5e   : > { %300 = vst [vmem:[#allocation2 + $0x310] sm:$0xff] %v11733_v0  ;;  %301 = vst [vmem:[#allocation2 + $0x270] sm:$0xff] %v11733_v0  ;;  %v338_v11 = vld [vmem:[%s11895_s11 + $0x50] sm:$0xff]  ;;  %v339_v12 = vld [vmem:[%s11895_s11 + $0x58] sm:$0xff] }
  0x5f   : > { %302 = vst [vmem:[#allocation2 + $0x1d0] sm:$0xff] %v11733_v0  ;;  %304 = vst [vmem:[#allocation2 + $0x318] sm:$0xff] %v11733_v0  ;;  %v340_v13 = vld [vmem:[%s11895_s11 + $0x60] sm:$0xff]  ;;  %v341_v14 = vld [vmem:[%s11895_s11 + $0x68] sm:$0xff] }
  0x60   : > { %305 = vst [vmem:[#allocation2 + $0x268] sm:$0xff] %v11733_v0  ;;  %306 = vst [vmem:[#allocation2 + $0x60] sm:$0xff] %v11733_v0  ;;  %v342_v15 = vld [vmem:[%s11895_s11 + $0x70] sm:$0xff]  ;;  %v343_v16 = vld [vmem:[%s11895_s11 + $0x78] sm:$0xff] }
  0x61   : > { %308 = vst [vmem:[#allocation2 + $0x180] sm:$0xff] %v11733_v0  ;;  %309 = vst [vmem:[#allocation2 + $0x8] sm:$0xff] %v11733_v0  ;;  %v344_v17 = vld [vmem:[%s11895_s11 + $0x80] sm:$0xff]  ;;  %v345_v18 = vld [vmem:[%s11895_s11 + $0x88] sm:$0xff] }
  0x62   : > { %310 = vst [vmem:[#allocation2 + $0x298] sm:$0xff] %v11733_v0  ;;  %312 = vst [vmem:[#allocation2 + $0xc8] sm:$0xff] %v11733_v0  ;;  %v346_v19 = vld [vmem:[%s11895_s11 + $0x90] sm:$0xff]  ;;  %v347_v20 = vld [vmem:[%s11895_s11 + $0x98] sm:$0xff] }
  0x63   : > { %313 = vst [vmem:[#allocation2 + $0x170] sm:$0xff] %v11733_v0  ;;  %314 = vst [vmem:[#allocation2 + $0x1f8] sm:$0xff] %v11733_v0  ;;  %v348_v21 = vld [vmem:[%s11895_s11 + $0xa0] sm:$0xff]  ;;  %v349_v22 = vld [vmem:[%s11895_s11 + $0xa8] sm:$0xff] }
  0x64   : > { %315 = vst [vmem:[#allocation2 + $0x1c8] sm:$0xff] %v11733_v0  ;;  %316 = vst [vmem:[#allocation2 + $0x340] sm:$0xff] %v11733_v0  ;;  %v350_v23 = vld [vmem:[%s11895_s11 + $0xb0] sm:$0xff]  ;;  %v351_v24 = vld [vmem:[%s11895_s11 + $0xb8] sm:$0xff] }
  0x65   : > { %317 = vst [vmem:[#allocation2 + $0x48] sm:$0xff] %v11733_v0  ;;  %318 = vst [vmem:[#allocation2 + $0x1c0] sm:$0xff] %v11733_v0  ;;  %v352_v25 = vld [vmem:[%s11895_s11 + $0xc0] sm:$0xff]  ;;  %v353_v26 = vld [vmem:[%s11895_s11 + $0xc8] sm:$0xff] }
  0x66   : > { %319 = vst [vmem:[#allocation2 + $0xb8] sm:$0xff] %v11733_v0  ;;  %320 = vst [vmem:[#allocation2 + $0xc0] sm:$0xff] %v11733_v0  ;;  %v354_v27 = vld [vmem:[%s11895_s11 + $0xd0] sm:$0xff]  ;;  %v355_v28 = vld [vmem:[%s11895_s11 + $0xd8] sm:$0xff] }
  0x67   : > { %321 = vst [vmem:[#allocation2 + $0xd8] sm:$0xff] %v11733_v0  ;;  %322 = vst [vmem:[#allocation2 + $0x278] sm:$0xff] %v11733_v0  ;;  %v356_v29 = vld [vmem:[%s11895_s11 + $0xe0] sm:$0xff]  ;;  %v357_v30 = vld [vmem:[%s11895_s11 + $0xe8] sm:$0xff] }
  0x68   : > { %323 = vst [vmem:[#allocation2 + $0x1b0] sm:$0xff] %v11733_v0  ;;  %324 = vst [vmem:[#allocation2 + $0x80] sm:$0xff] %v11733_v0  ;;  %v358_v31 = vld [vmem:[%s11895_s11 + $0xf0] sm:$0xff]  ;;  %v359_v32 = vld [vmem:[%s11895_s11 + $0xf8] sm:$0xff] }
  0x69   : > { %325 = vst [vmem:[#allocation2 + $0x150] sm:$0xff] %v11733_v0  ;;  %326 = vst [vmem:[#allocation2 + $0x2f0] sm:$0xff] %v11733_v0 }
  0x6a   : > { %327 = vst [vmem:[#allocation2 + $0x210] sm:$0xff] %v11733_v0  ;;  %360 = vst [vmem:[#allocation2 + $0xb0] sm:$0xff] %v328_v1 }
  0x6b   : > { %361 = vst [vmem:[#allocation2 + $0xa8] sm:$0xff] %v329_v2  ;;  %362 = vst [vmem:[#allocation2 + $0x218] sm:$0xff] %v330_v3 }
  0x6c   : > { %363 = vst [vmem:[#allocation2 + $0x2d0] sm:$0xff] %v331_v4  ;;  %364 = vst [vmem:[#allocation2 + $0x248] sm:$0xff] %v332_v5 }
  0x6d   : > { %365 = vst [vmem:[#allocation2 + $0x140] sm:$0xff] %v333_v6  ;;  %366 = vst [vmem:[#allocation2 + $0x38] sm:$0xff] %v334_v7 }
  0x6e   : > { %367 = vst [vmem:[#allocation2 + $0x108] sm:$0xff] %v335_v8  ;;  %368 = vst [vmem:[#allocation2 + $0x290] sm:$0xff] %v336_v9 }
  0x6f   : > { %369 = vst [vmem:[#allocation2 + $0x110] sm:$0xff] %v337_v10  ;;  %370 = vst [vmem:[#allocation2 + $0x2a8] sm:$0xff] %v338_v11 }
  0x70   : > { %371 = vst [vmem:[#allocation2 + $0x190] sm:$0xff] %v339_v12  ;;  %372 = vst [vmem:[#allocation2 + $0x1e0] sm:$0xff] %v340_v13 }
  0x71   : > { %373 = vst [vmem:[#allocation2 + $0x178] sm:$0xff] %v341_v14  ;;  %374 = vst [vmem:[#allocation2 + $0x1d8] sm:$0xff] %v342_v15 }
  0x72   : > { %375 = vst [vmem:[#allocation2] sm:$0xff] %v343_v16  ;;  %376 = vst [vmem:[#allocation2 + $0x1b8] sm:$0xff] %v344_v17 }
  0x73   : > { %377 = vst [vmem:[#allocation2 + $0x18] sm:$0xff] %v345_v18  ;;  %378 = vst [vmem:[#allocation2 + $0x2f8] sm:$0xff] %v346_v19 }
  0x74   : > { %379 = vst [vmem:[#allocation2 + $0x188] sm:$0xff] %v347_v20  ;;  %380 = vst [vmem:[#allocation2 + $0x148] sm:$0xff] %v348_v21 }
  0x75   : > { %381 = vst [vmem:[#allocation2 + $0x100] sm:$0xff] %v349_v22  ;;  %382 = vst [vmem:[#allocation2 + $0x128] sm:$0xff] %v350_v23 }
  0x76   : > { %383 = vst [vmem:[#allocation2 + $0x308] sm:$0xff] %v351_v24  ;;  %384 = vst [vmem:[#allocation2 + $0x338] sm:$0xff] %v352_v25 }
  0x77   : > { %385 = vst [vmem:[#allocation2 + $0xa0] sm:$0xff] %v353_v26  ;;  %386 = vst [vmem:[#allocation2 + $0xf8] sm:$0xff] %v354_v27 }
  0x78   : > { %387 = vst [vmem:[#allocation2 + $0x230] sm:$0xff] %v355_v28  ;;  %388 = vst [vmem:[#allocation2 + $0x250] sm:$0xff] %v356_v29 }
  0x79   : > { %389 = vst [vmem:[#allocation2 + $0x2b0] sm:$0xff] %v357_v30  ;;  %390 = vst [vmem:[#allocation2 + $0x280] sm:$0xff] %v358_v31 }
  0x7a   : > { %391 = vst [vmem:[#allocation2 + $0x160] sm:$0xff] %v359_v32 }
  0x7b LB: >> { %v399_v33 = vld [vmem:[#allocation2 + $0x240] sm:$0xff]  ;;  %v400_v34 = vld [vmem:[#allocation2 + $0x350] sm:$0xff]  ;;  %v507_v36 = vlaneseq  ;;  %s9262_s14 = smul.u32 1152, %s11723_s13  ;;  %v11974_v3 = vld [vmem:[#allocation2 + $0xa8] sm:$0xff]  ;;  %s8724_s15 = sshll.u32 %s11723_s13, 1  ;;  %s11723_s13 = sphi %s11932_s13, %s397_s13  }
  0x7c   : >> { %v452_v35 = vld [vmem:[#allocation2 + $0x40] sm:$0xff]  ;;  %v453_v37 = vrot.slane %v399_v33, 7  ;;  %v454_v38 = vrot.slane %v400_v34, 7  ;;  %v655_v39 = vpack.c.bf16 %v400_v34, %v399_v33  ;;  %v546_v50 = vrot.slane %v399_v33, 1  ;;  %v401_v53 = vld [vmem:[#allocation2 + $0x10] sm:$0xff]  ;;  %v11976_v4 = vld [vmem:[#allocation2 + $0x218] sm:$0xff] }
  0x7d   : >> { %v506_v40 = vrot.slane %v452_v35, 7  ;;  %v11938_v41 = vshrl.u32 %v507_v36, 7  ;;  %s11941_s10 = scalar_lea.vmem [#allocation3], %s9262_s14  ;;  %v547_v52 = vrot.slane %v400_v34, 1  ;;  %v548_v54 = vrot.slane %v401_v53, 1  ;;  %v11971_v1 = vld [vmem:[#allocation2 + $0xb0] sm:$0xff] }
  0x7e   : >> { %9928 = vmatprep.mubr.bf16.mxu0 %v655_v39  ;;  %v11319_v42 = vld [vmem:[%s11941_s10 + $0x78] sm:$0xff]   ;;  %v11321_v47 = vld [vmem:[%s11941_s10 + $0x70] sm:$0xff]   ;;  %v11323_v49 = vld [vmem:[%s11941_s10 + $0x68] sm:$0xff]   ;;  %v455_v8 = vrot.slane %v401_v53, 7  ;;  %v456_v9 = vrot.slane %v11971_v1, 7  ;;  %v457_v10 = vrot.slane %v11974_v3, 7  ;;  %v12009_v25 = vpack.c.bf16 %v11974_v3, %v11971_v1 }
  0x7f   : >> { %16461 = vst [vmem:[#allocation16_spill] sm:$0xff] %v11938_v41  ;;  %vm509_vm0 = vcmp.lt.s32.totalorder %v11938_v41, 1  ;;  %v11320_v45 = vld [vmem:[%s11941_s10 + $0x38] sm:$0xff]   ;;  %9912 = vmatprep.subr.bf16.mxu0 %v11319_v42  ;;  %v11322_v48 = vld [vmem:[%s11941_s10 + $0x30] sm:$0xff]   ;;  %v11324_v51 = vld [vmem:[%s11941_s10 + $0x28] sm:$0xff]   ;;  %vm600_vm1 = vcmp.lt.s32.totalorder %v11938_v41, 7 }
  0x80   : >> { %v544_v43 = vsel %vm509_vm0, %v453_v37, %v454_v38  ;;  %v545_v44 = vsel %vm509_vm0, %v506_v40, %v453_v37  ;;  %9960 = vmatprep.subr.bf16.mxu1 %v11320_v45  ;;  %9913 = vmatpush3.bf16.msra.mxu0 %v11319_v42  ;;  %v11325_v55 = vld [vmem:[%s11941_s10 + $0x60] sm:$0xff]   ;;  %v11958_v57 = vsel %vm600_vm1, %v547_v52, %v548_v54  ;;  %v11327_v60 = vld [vmem:[%s11941_s10 + $0x58] sm:$0xff]   ;;  %v11329_v62 = vld [vmem:[%s11941_s10 + $0x50] sm:$0xff]   ;;  %v459_v13 = vrot.slane %v11976_v4, 7  ;;  %s13566_s16 = scalar_lea.vmem [#allocation6], %s8724_s15  ;;  %s397_s13 = sadd.s32 1, %s11723_s13  }
  0x81   : >> { %v637_v46 = vpack.c.bf16 %v544_v43, %v545_v44  ;;  %9961 = vmatpush3.bf16.msra.mxu1 %v11320_v45  ;;  %9914 = vmatprep.subr.bf16.mxu0 %v11321_v47  ;;  %v11326_v56 = vld [vmem:[%s11941_s10 + $0x20] sm:$0xff]   ;;  %v11962_v58 = vsel %vm600_vm1, %v546_v50, %v547_v52  ;;  %v11328_v61 = vld [vmem:[%s11941_s10 + $0x18] sm:$0xff]   ;;  %v11330_v63 = vld [vmem:[%s11941_s10 + $0x10] sm:$0xff]   ;;  %v542_v19 = vsel %vm509_vm0, %v456_v9, %v457_v10  ;;  %p394_p2 = scmp.ge.s32.totalorder %s397_s13, 3  }
  0x82   : >> { %9962 = vmatprep.subr.bf16.mxu1 %v11322_v48  ;;  %v11331_v0 = vld [vmem:[%s11941_s10 + $0x48] sm:$0xff]   ;;  %v11978_v5 = vld [vmem:[#allocation2 + $0x2d0] sm:$0xff]  ;;  %v11980_v6 = vld [vmem:[#allocation2 + $0x220] sm:$0xff]  ;;  %v543_v20 = vsel %vm509_vm0, %v455_v8, %v456_v9  ;;  %16462 = vst [vmem:[#allocation17_spill] sm:$0xff] %v12009_v25  ;;  %s9263_s17 = sshll.u32 (%p394_p2), %s11788_s22, 12  ;;  %s8518_s23 = sshll.u32 (%p394_p2), %s11930_s12, 4  ;;  %s16265_s23 = int_to_ptr.vmem [resolvable:$true] %s8518_s23 }
  0x83   : >> { %9976 = vmatprep.mubr.bf16.mxu1 %v637_v46  ;;  %v11332_v2 = vld [vmem:[%s11941_s10 + $0x8] sm:$0xff]   ;;  %v11333_v7 = vld [vmem:[%s11941_s10 + $0x40] sm:$0xff]   ;;  %v458_v12 = vrot.slane %v11980_v6, 7  ;;  %v460_v14 = vrot.slane %v11978_v5, 7  ;;  %v11335_v15 = vld [vmem:[%s11941_s10 + $0xb8] sm:$0xff]   ;;  %v12015_v28 = vpack.c.bf16 %v542_v19, %v543_v20  ;;  %v12019_v29 = vpack.c.bf16 %v11978_v5, %v11976_v4  ;;  %s16263_s26 = scalar_lea.hbm (%p394_p2), %s16316_s5, %s9263_s17  ;;  %s16271_s22 = scalar_lea.sflag (%p394_p2), [#allocation5], %s270_s30 }
  0x84   : >> { %9915 = vmatpush3.bf16.msra.mxu0 %v11321_v47  ;;  %v11334_v11 = vld [vmem:[%s11941_s10] sm:$0xff]   ;;  %v11990_v16 = vld [vmem:[#allocation2 + $0x248] sm:$0xff]  ;;  %v11994_v18 = vld [vmem:[#allocation2 + $0x238] sm:$0xff]  ;;  %s11643_s6 = scalar_lea.vmem (%p394_p2), %s16265_s23, 4096  ;;  %p17088_p4 = scmp.ne.s32.totalorder (%p394_p2), %s16451_s28, 0 }
  0x85   : >> { %9963 = vmatpush3.bf16.msra.mxu1 %v11322_v48  ;;  %9916 = vmatprep.subr.bf16.mxu0 %v11323_v49  ;;  %v11992_v17 = vld [vmem:[#allocation2 + $0x140] sm:$0xff]  ;;  %v12000_v21 = vld [vmem:[#allocation2 + $0x118] sm:$0xff]  ;;  %v540_v23 = vsel %vm509_vm0, %v459_v13, %v460_v14  ;;  %v541_v24 = vsel %vm509_vm0, %v458_v12, %v459_v13  ;;  %v12013_v27 = vld [vmem:[#allocation2 + $0x108] sm:$0xff]  ;;  %16464 = vst [vmem:[#allocation19_spill] sm:$0xff] %v12019_v29  ;;  %v461_v30 = vrot.slane %v11994_v18, 7  ;;  %v462_v32 = vrot.slane %v11990_v16, 7  ;;  %p11644_p3 = scmp.ne.s32.totalorder (%p394_p2), %s16265_s23, %s11643_s6 }
  0x86   : >> { %9964 = vmatprep.subr.bf16.mxu1 %v11324_v51  ;;  %v11340_v22 = vld [vmem:[%s11941_s10 + $0xf8] sm:$0xff]   ;;  %v12022_v31 = vpack.c.bf16 %v540_v23, %v541_v24  ;;  %v463_v33 = vrot.slane %v11992_v17, 7  ;;  %v11336_v34 = vld [vmem:[%s11941_s10 + $0xb0] sm:$0xff]   ;;  %v464_v35 = vrot.slane %v12000_v21, 7  ;;  %v466_v37 = vrot.slane %v12013_v27, 7  ;;  %v12033_v39 = vld [vmem:[#allocation2 + $0x2c0] sm:$0xff] }
  0x87   : >> { %v12011_v26 = vld [vmem:[#allocation2 + $0x38] sm:$0xff]  ;;  %v11341_v38 = vld [vmem:[%s11941_s10 + $0xf0] sm:$0xff]   ;;  %v539_v42 = vsel %vm509_vm0, %v461_v30, %v462_v32  ;;  %v11337_v44 = vld [vmem:[%s11941_s10 + $0xa8] sm:$0xff]   ;;  %v12056_v50 = vpack.c.bf16 %v11992_v17, %v11990_v16  ;;  %p11645_p7 = pnand (%p394_p2), %p11644_p3, %p17088_p4  ;;  %s11734_s7 = smov (%p394_p2), [#allocation11]  }
  0x88   : >> { %9917 = vmatpush3.bf16.msra.mxu0 %v11323_v49  ;;  %16463 = vst [vmem:[#allocation18_spill] sm:$0xff] %v12011_v26  ;;  %v465_v36 = vrot.slane %v12011_v26, 7  ;;  %v538_v40 = vsel %vm509_vm0, %v462_v32, %v463_v33  ;;  %v12041_v43 = vld [vmem:[#allocation2 + $0x290] sm:$0xff]  ;;  %v12050_v48 = vld [vmem:[#allocation2 + $0x2a8] sm:$0xff]  ;;  %v12059_v52 = vld [vmem:[#allocation2 + $0x2e0] sm:$0xff]  ;;  %s11647_s9 = sshll.u32 (%p394_p2), %s11734_s7, 4  ;;  %s11648_s9 = int_to_ptr.vmem [resolvable:$false] %s11647_s9 }
  0x89   : >> { %9965 = vmatpush3.bf16.msra.mxu1 %v11324_v51  ;;  %9918 = vmatprep.subr.bf16.mxu0 %v11325_v55  ;;  %v12048_v47 = vld [vmem:[#allocation2 + $0x110] sm:$0xff]  ;;  %16465 = vst [vmem:[#allocation20_spill] sm:$0xff] %v12056_v50  ;;  %v467_v51 = vrot.slane %v12033_v39, 7  ;;  %v11343_v53 = vld [vmem:[%s11941_s10 + $0xe8] sm:$0xff]   ;;  %v12062_v54 = vpack.c.bf16 %v538_v40, %v539_v42  ;;  %v12079_v8 = vld [vmem:[#allocation2 + $0x178] sm:$0xff]  ;;  %p11646_p8 = pneg (%p394_p2), %p11645_p7  ;;  %s11649_s11 = scalar_lea.vmem (%p394_p2), %s11648_s9, 8192 }
  0x8a   : >> { %9966 = vmatprep.subr.bf16.mxu1 %v11326_v56  ;;  %v536_v45 = vsel %vm509_vm0, %v465_v36, %v466_v37  ;;  %v537_v46 = vsel %vm509_vm0, %v464_v35, %v465_v36  ;;  %v12052_v49 = vld [vmem:[#allocation2 + $0x190] sm:$0xff]  ;;  %v11344_v9 = vld [vmem:[%s11941_s10 + $0xe0] sm:$0xff]   ;;  %v12084_v10 = vld [vmem:[#allocation2 + $0x208] sm:$0xff]  ;;  %v12106_v30 = vpack.c.bf16 %v12048_v47, %v12041_v43  ;;  %v475_v37 = vrot.slane %v12079_v8, 7  ;;  %p11650_p11 = scmp.lt.s32.totalorder (%p394_p2), %s16265_s23, %s11648_s9  ;;  %p11651_p1 = scmp.lt.s32.totalorder (%p394_p2), %s11649_s11, %s11643_s6 }
  0x8b   : >> { %16466 = vst [vmem:[#allocation21_spill] sm:$0xff] %v12062_v54  ;;  %v12096_v19 = vld [vmem:[#allocation2 + $0x198] sm:$0xff]  ;;  %v473_v32 = vrot.slane %v12084_v10, 7  ;;  %v12114_v35 = vpack.c.bf16 %v12052_v49, %v12050_v48  ;;  %v12172_v59 = vld [vmem:[#allocation2 + $0x148] sm:$0xff]  ;;  %v12178_v20 = vld [vmem:[#allocation2 + $0x1a0] sm:$0xff] }
  0x8c   : >> { %9919 = vmatpush3.bf16.msra.mxu0 %v11325_v55  ;;  %v12066_v55 = vpack.c.bf16 %v12013_v27, %v12011_v26  ;;  %v11339_v24 = vld [vmem:[%s11941_s10 + $0x98] sm:$0xff]   ;;  %16469 = vst [vmem:[#allocation24_spill] sm:$0xff] %v12106_v30  ;;  %v476_v40 = vrot.slane %v12096_v19, 7  ;;  %p11652_p0 = por (%p394_p2), %p11651_p1, %p11650_p11 }
  0x8d   : >> { %9967 = vmatpush3.bf16.msra.mxu1 %v11326_v56  ;;  %9920 = vmatprep.subr.bf16.mxu0 %v11327_v60  ;;  %v12068_v56 = vpack.c.bf16 %v536_v45, %v537_v46  ;;  %v11346_v33 = vld [vmem:[%s11941_s10 + $0xd8] sm:$0xff]   ;;  %16471 = vst [vmem:[#allocation26_spill] sm:$0xff] %v12114_v35  ;;  %v12123_v45 = vld [vmem:[#allocation2 + $0x260] sm:$0xff]  ;;  %v11342_v46 = vld [vmem:[%s11941_s10 + $0x90] sm:$0xff]  }
  0x8e   : >> { %9968 = vmatprep.subr.bf16.mxu1 %v11328_v61  ;;  %16467 = vst [vmem:[#allocation22_spill] sm:$0xff] %v12066_v55  ;;  %p11653_p9 = pnand (%p394_p2), %p11652_p0, %p11646_p8 }
  0x8f   : >> { %16468 = vst [vmem:[#allocation23_spill] sm:$0xff] %v12068_v56 }
  0x90   : >> { %9921 = vmatpush3.bf16.msra.mxu0 %v11327_v60  ;;  %v468_v60 = vrot.slane %v12041_v43, 7 }
  0x91   : >> { %9969 = vmatpush3.bf16.msra.mxu1 %v11328_v61  ;;  %9922 = vmatprep.subr.bf16.mxu0 %v11329_v62  ;;  %v469_v61 = vrot.slane %v12048_v47, 7 }
  0x92   : >> { %9970 = vmatprep.subr.bf16.mxu1 %v11330_v63  ;;  %v535_v14 = vsel %vm509_vm0, %v467_v51, %v468_v60  ;;  %v11348_v51 = vld [vmem:[%s11941_s10 + $0x80] sm:$0xff]  }
  0x93   : >> { %v534_v13 = vsel %vm509_vm0, %v468_v60, %v469_v61  ;;  %v12130_v60 = vld [vmem:[#allocation2 + $0x18] sm:$0xff]  ;;  %v11347_v61 = vld [vmem:[%s11941_s10 + $0xd0] sm:$0xff]  }
  0x94   : >> { %9923 = vmatpush3.bf16.msra.mxu0 %v11329_v62  ;;  %v470_v62 = vrot.slane %v12059_v52, 7 }
  0x95   : >> { %9971 = vmatpush3.bf16.msra.mxu1 %v11330_v63  ;;  %9924 = vmatprep.subr.bf16.mxu0 %v11331_v0  ;;  %v471_v63 = vrot.slane %v12050_v48, 7 }
  0x96   : >> { %9972 = vmatprep.subr.bf16.mxu1 %v11332_v2 }
  0x97   : >> { %v533_v23 = vsel %vm509_vm0, %v470_v62, %v471_v63  ;;  %v12135_v62 = vld [vmem:[#allocation2 + $0x2f8] sm:$0xff] }
  0x98   : >> { %9925 = vmatpush3.bf16.msra.mxu0 %v11331_v0  ;;  %v472_v0 = vrot.slane %v12052_v49, 7 }
  0x99   : >> { %9973 = vmatpush3.bf16.msra.mxu1 %v11332_v2  ;;  %9926 = vmatprep.subr.bf16.mxu0 %v11333_v7  ;;  %v11338_v2 = vld [vmem:[%s11941_s10 + $0xa0] sm:$0xff]  }
  0x9a   : >> { %9974 = vmatprep.subr.bf16.mxu1 %v11334_v11 }
  0x9c   : >> { %9927 = vmatpush3.bf16.msra.mxu0 %v11333_v7  ;;  %v12077_v7 = vld [vmem:[#allocation2 + $0x1e0] sm:$0xff] }
  0x9d   : >> { %9975 = vmatpush3.bf16.msra.mxu1 %v11334_v11  ;;  %10008 = vmatprep.subr.bf16.mxu0 %v11335_v15  ;;  %v12086_v11 = vld [vmem:[#allocation2 + $0x1d8] sm:$0xff]  ;;  %v474_v36 = vrot.slane %v12077_v7, 7 }
  0x9e   : >> { %10056 = vmatprep.subr.bf16.mxu1 %v11340_v22  ;;  %v477_v42 = vrot.slane %v12086_v11, 7 }
  0x9f   : >> { %9929 = vmatmul.mubr.bf16.vlgmr.msra.gmra.mxu0 %v12009_v25  ;;  %v12227_v25 = vld [vmem:[#allocation2 + $0x50] sm:$0xff] }
  0xa0   : >> { %9977 = vmatmul.mubr.bf16.vlgmr.msra.gmra.mxu1 %v12015_v28  ;;  %10009 = vmatpush3.bf16.msra.mxu0 %v11335_v15  ;;  %v12094_v15 = vld [vmem:[#allocation2] sm:$0xff]  ;;  %16482 = vst [vmem:[#allocation37_spill] sm:$0xff] %v12227_v25 }
  0xa1   : >> { %9932 = vmatprep.mubr.bf16.mxu0 %v12019_v29  ;;  %9980 = vmatprep.mubr.bf16.mxu1 %v12022_v31  ;;  %v12225_v29 = vld [vmem:[#allocation2 + $0x338] sm:$0xff] }
  0xa2   : >> { %10010 = vmatprep.subr.bf16.mxu0 %v11336_v34  ;;  %10057 = vmatpush3.bf16.msra.mxu1 %v11340_v22  ;;  %v532_v22 = vsel %vm509_vm0, %v471_v63, %v472_v0  ;;  %v530_v0 = vsel %vm509_vm0, %v474_v36, %v475_v37  ;;  %v11345_v63 = vld [vmem:[%s11941_s10 + $0x88] sm:$0xff]   ;;  %v483_v37 = vrot.slane %v12135_v62, 7 }
  0xa3   : >> { %10058 = vmatprep.subr.bf16.mxu1 %v11341_v38 }
  0xa4   : >> { %10011 = vmatpush3.bf16.msra.mxu0 %v11336_v34  ;;  %v12110_v34 = vpack.c.bf16 %v534_v13, %v535_v14 }
  0xa5   : >> { %10012 = vmatprep.subr.bf16.mxu0 %v11337_v44 }
  0xa6   : >> { %10059 = vmatpush3.bf16.msra.mxu1 %v11341_v38  ;;  %16470 = vst [vmem:[#allocation25_spill] sm:$0xff] %v12110_v34  ;;  %v12118_v38 = vpack.c.bf16 %v532_v22, %v533_v23  ;;  %v529_v22 = vsel %vm509_vm0, %v476_v40, %v477_v42  ;;  %v12150_v23 = vld [vmem:[#allocation2 + $0x2d8] sm:$0xff]  ;;  %v12165_v40 = vpack.c.bf16 %v12094_v15, %v12086_v11 }
  0xa7   : >> { %9933 = vmatmul.mubr.bf16.gmra.mxu0 %v12056_v50  ;;  %10060 = vmatprep.subr.bf16.mxu1 %v11343_v53  ;;  %v482_v12 = vrot.slane %v12150_v23, 7 }
  0xa8   : >> { %9981 = vmatmul.mubr.bf16.gmra.mxu1 %v12062_v54  ;;  %9936 = vmatprep.mubr.bf16.mxu0 %v12066_v55  ;;  %16472 = vst [vmem:[#allocation27_spill] sm:$0xff] %v12118_v38  ;;  %16475 = vst [vmem:[#allocation30_spill] sm:$0xff] %v12165_v40 }
  0xa9   : >> { %9984 = vmatprep.mubr.bf16.mxu1 %v12068_v56  ;;  %10013 = vmatpush3.bf16.msra.mxu0 %v11337_v44  ;;  %v478_v44 = vrot.slane %v12094_v15, 7  ;;  %v525_v55 = vsel %vm509_vm0, %v482_v12, %v483_v37  ;;  %v12215_v12 = vld [vmem:[%s11941_s10 + $0x178] sm:$0xff]  }
  0xaa   : >> { %10014 = vmatprep.subr.bf16.mxu0 %v11338_v2  ;;  %10061 = vmatpush3.bf16.msra.mxu1 %v11343_v53  ;;  %v12128_v53 = vld [vmem:[#allocation2 + $0x1b8] sm:$0xff]  ;;  %16479 = vst [vmem:[#allocation34_spill] sm:$0xff] %v12215_v12 }
  0xab   : >> { %10062 = vmatprep.subr.bf16.mxu1 %v11344_v9  ;;  %v528_v14 = vsel %vm509_vm0, %v477_v42, %v478_v44  ;;  %v11349_v44 = vld [vmem:[%s11941_s10 + $0xc8] sm:$0xff]   ;;  %v481_v42 = vrot.slane %v12130_v60, 7 }
  0xad   : >> { %10015 = vmatpush3.bf16.msra.mxu0 %v11338_v2  ;;  %v531_v2 = vsel %vm509_vm0, %v473_v32, %v474_v36  ;;  %v479_v36 = vrot.slane %v12123_v45, 7  ;;  %v12169_v32 = vpack.c.bf16 %v528_v14, %v529_v22  ;;  %v11350_v14 = vld [vmem:[%s11941_s10 + $0xc0] sm:$0xff]  }
  0xae   : >> { %10016 = vmatprep.subr.bf16.mxu0 %v11339_v24  ;;  %10063 = vmatpush3.bf16.msra.mxu1 %v11344_v9  ;;  %v12143_v9 = vld [vmem:[#allocation2 + $0x188] sm:$0xff]  ;;  %v12161_v13 = vpack.c.bf16 %v530_v0, %v531_v2  ;;  %v12176_v2 = vld [vmem:[#allocation2 + $0x100] sm:$0xff] }
  0xaf   : >> { %9937 = vmatmul.mubr.bf16.gmra.mxu0 %v12106_v30  ;;  %10064 = vmatprep.subr.bf16.mxu1 %v11346_v33  ;;  %16476 = vst [vmem:[#allocation31_spill] sm:$0xff] %v12169_v32  ;;  %v484_v0 = vrot.slane %v12143_v9, 7  ;;  %v485_v30 = vrot.slane %v12178_v20, 7  ;;  %v487_v22 = vrot.slane %v12176_v2, 7 }
  0xb0   : >> { %9985 = vmatmul.mubr.bf16.gmra.mxu1 %v12110_v34  ;;  %9940 = vmatprep.mubr.bf16.mxu0 %v12114_v35  ;;  %16474 = vst [vmem:[#allocation29_spill] sm:$0xff] %v12161_v13  ;;  %v12191_v35 = vld [vmem:[#allocation2 + $0x128] sm:$0xff]  ;;  %v12266_v34 = vld [vmem:[#allocation2 + $0x2b0] sm:$0xff] }
  0xb1   : >> { %9988 = vmatprep.mubr.bf16.mxu1 %v12118_v38  ;;  %10017 = vmatpush3.bf16.msra.mxu0 %v11339_v24  ;;  %v12157_v24 = vpack.c.bf16 %v12079_v8, %v12077_v7  ;;  %v489_v50 = vrot.slane %v12191_v35, 7  ;;  %v12232_v38 = vld [vmem:[#allocation2 + $0xa0] sm:$0xff] }
  0xb2   : >> { %10018 = vmatprep.subr.bf16.mxu0 %v11342_v46  ;;  %10065 = vmatpush3.bf16.msra.mxu1 %v11346_v33  ;;  %v480_v33 = vrot.slane %v12128_v53, 7 }
  0xb3   : >> { %16473 = vst [vmem:[#allocation28_spill] sm:$0xff] %v12157_v24  ;;  %10066 = vmatprep.subr.bf16.mxu1 %v11347_v61 }
  0xb5   : >> { %10019 = vmatpush3.bf16.msra.mxu0 %v11342_v46  ;;  %v526_v46 = vsel %vm509_vm0, %v480_v33, %v481_v42  ;;  %v486_v42 = vrot.slane %v12172_v59, 7 }
  0xb6   : >> { %10020 = vmatprep.subr.bf16.mxu0 %v11345_v63  ;;  %10067 = vmatpush3.bf16.msra.mxu1 %v11347_v61  ;;  %v527_v61 = vsel %vm509_vm0, %v479_v36, %v480_v33  ;;  %v12203_v36 = vld [vmem:[%s11941_s10 + $0x138] sm:$0xff]  }
  0xb7   : >> { %9941 = vmatmul.mubr.bf16.gmra.mxu0 %v12157_v24  ;;  %10068 = vmatprep.subr.bf16.mxu1 %v11349_v44  ;;  %v12193_v24 = vld [vmem:[#allocation2 + $0x258] sm:$0xff] }
  0xb8   : >> { %9989 = vmatmul.mubr.bf16.gmra.mxu1 %v12161_v13  ;;  %9944 = vmatprep.mubr.bf16.mxu0 %v12165_v40  ;;  %v524_v40 = vsel %vm509_vm0, %v483_v37, %v484_v0  ;;  %v12212_v0 = vld [vmem:[#allocation2 + $0x308] sm:$0xff]  ;;  %v12217_v37 = vpack.c.bf16 %v526_v46, %v527_v61  ;;  %v488_v33 = vrot.slane %v12193_v24, 7  ;;  %v12236_v46 = vld [vmem:[#allocation2 + $0xf8] sm:$0xff]  ;;  %v492_v61 = vrot.slane %v12225_v29, 7 }
  0xb9   : >> { %9992 = vmatprep.mubr.bf16.mxu1 %v12169_v32  ;;  %10021 = vmatpush3.bf16.msra.mxu0 %v11345_v63  ;;  %v12208_v63 = vpack.c.bf16 %v12130_v60, %v12128_v53  ;;  %16478 = vst [vmem:[#allocation33_spill] sm:$0xff] %v12212_v0  ;;  %v12229_v32 = vpack.c.bf16 %v524_v40, %v525_v55  ;;  %v490_v13 = vrot.slane %v12212_v0, 7  ;;  %v491_v55 = vrot.slane %v12227_v25, 7 }
  0xba   : >> { %10022 = vmatprep.subr.bf16.mxu0 %v11348_v51  ;;  %10069 = vmatpush3.bf16.msra.mxu1 %v11349_v44  ;;  %16480 = vst [vmem:[#allocation35_spill] sm:$0xff] %v12217_v37  ;;  %v12221_v44 = vpack.c.bf16 %v12143_v9, %v12135_v62  ;;  %v522_v40 = vsel %vm509_vm0, %v486_v42, %v487_v22  ;;  %v493_v25 = vrot.slane %v12232_v38, 7 }
  0xbb   : >> { %16477 = vst [vmem:[#allocation32_spill] sm:$0xff] %v12208_v63  ;;  %10070 = vmatprep.subr.bf16.mxu1 %v11350_v14  ;;  %16483 = vst [vmem:[#allocation38_spill] sm:$0xff] %v12229_v32  ;;  %v12261_v22 = vpack.c.bf16 %v12176_v2, %v12172_v59 }
  0xbc   : >> { %16481 = vst [vmem:[#allocation36_spill] sm:$0xff] %v12221_v44 }
  0xbd   : >> { %10023 = vmatpush3.bf16.msra.mxu0 %v11348_v51  ;;  %v12243_v51 = vld [vmem:[#allocation2 + $0x230] sm:$0xff]  ;;  %16485 = vst [vmem:[#allocation40_spill] sm:$0xff] %v12261_v22 }
  0xbe   : >> { %10071 = vmatpush3.bf16.msra.mxu1 %v11350_v14  ;;  %10104 = vmatprep.subr.bf16.mxu0 %v12203_v36  ;;  %v523_v14 = vsel %vm509_vm0, %v485_v30, %v486_v42  ;;  %v496_v30 = vrot.slane %v12243_v51, 7  ;;  %v12264_v42 = vld [vmem:[#allocation2 + $0x250] sm:$0xff] }
  0xbf   : >> { %9945 = vmatmul.mubr.bf16.gmra.mxu0 %v12208_v63  ;;  %10152 = vmatprep.subr.bf16.mxu1 %v12215_v12  ;;  %v12251_v63 = vld [vmem:[#allocation2 + $0x68] sm:$0xff]  ;;  %v12268_v56 = vpack.c.bf16 %v522_v40, %v523_v14  ;;  %v498_v14 = vrot.slane %v12264_v42, 7 }
  0xc0   : >> { %9993 = vmatmul.mubr.bf16.gmra.mxu1 %v12217_v37  ;;  %9948 = vmatprep.mubr.bf16.mxu0 %v12221_v44  ;;  %16484 = vst [vmem:[#allocation39_spill] sm:$0xff] %v12251_v63  ;;  %v520_v37 = vsel %vm509_vm0, %v489_v50, %v490_v13  ;;  %v521_v44 = vsel %vm509_vm0, %v488_v33, %v489_v50  ;;  %v494_v50 = vrot.slane %v12251_v63, 7  ;;  %v12275_v33 = vld [vmem:[#allocation2 + $0x310] sm:$0xff]  ;;  %v499_v63 = vrot.slane %v12266_v34, 7 }
  0xc1   : >> { %9996 = vmatprep.mubr.bf16.mxu1 %v12229_v32  ;;  %v495_v32 = vrot.slane %v12236_v46, 7  ;;  %v12272_v13 = vpack.c.bf16 %v12212_v0, %v12191_v35  ;;  %v12277_v12 = vpack.c.bf16 %v520_v37, %v521_v44  ;;  %v497_v40 = vrot.slane %v12275_v33, 7 }
  0xc2   : >> { %v518_v37 = vsel %vm509_vm0, %v492_v61, %v493_v25  ;;  %v519_v44 = vsel %vm509_vm0, %v491_v55, %v492_v61  ;;  %v12305_v0 = vpack.c.bf16 %v12243_v51, %v12236_v46 }
  0xc3   : >> { %16486 = vst [vmem:[#allocation41_spill] sm:$0xff] %v12272_v13  ;;  %v516_v54 = vsel %vm509_vm0, %v495_v32, %v496_v30  ;;  %v517_v26 = vsel %vm509_vm0, %v494_v50, %v495_v32  ;;  %v571_v50 = vrot.slane %v12094_v15, 1  ;;  %v16490_v30 = vrot.slane %v11971_v1, 1  ;;  %v11352_v1 = vld [vmem:[%s11941_s10 + $0x130] sm:$0xff]   ;;  %v11366_v15 = vld [vmem:[%s11941_s10 + $0x140] sm:$0xff]  }
  0xc4   : >> { %v12307_v25 = vpack.c.bf16 %v516_v54, %v517_v26  ;;  %v514_v26 = vsel %vm509_vm0, %v498_v14, %v499_v63  ;;  %v515_v54 = vsel %vm509_vm0, %v497_v40, %v498_v14  ;;  %v16487_v40 = vrot.slane %v11980_v6, 1 }
  0xc5   : >> { %v12327_v61 = vpack.c.bf16 %v514_v26, %v515_v54  ;;  %v16488_v14 = vrot.slane %v11974_v3, 1  ;;  %v16491_v6 = vpack.c.bf16 %v11958_v57, %v11962_v58  ;;  %v16495_v58 = vrot.slane %v11976_v4, 1 }
  0xc6   : >> { %v16497_v4 = vrot.slane %v11992_v17, 1 }
  0xc7   : >> { %9949 = vmatmul.mubr.bf16.gmra.mxu0 %v12261_v22  ;;  %v12301_v22 = vpack.c.bf16 %v518_v37, %v519_v44  ;;  %v12325_v44 = vpack.c.bf16 %v12266_v34, %v12264_v42  ;;  %v572_v37 = vrot.slane %v12123_v45, 1  ;;  %v633_v26 = vsel %vm600_vm1, %v16488_v14, %v16487_v40 }
  0xc8   : >> { %9997 = vmatmul.mubr.bf16.gmra.mxu1 %v12268_v56  ;;  %9952 = vmatprep.mubr.bf16.mxu0 %v12272_v13  ;;  %v12299_v13 = vpack.c.bf16 %v12232_v38, %v12225_v29  ;;  %v16489_v54 = vmov %v16488_v14  ;;  %v578_v40 = vrot.slane %v12178_v20, 1 }
  0xc9   : >> { %10000 = vmatprep.mubr.bf16.mxu1 %v12277_v12  ;;  %v634_v55 = vsel %vm600_vm1, %v16490_v30, %v16489_v54  ;;  %v16492_v30 = vrot.slane %v11994_v18, 1  ;;  %v16493_v54 = vrot.slane %v11978_v5, 1  ;;  %v11353_v18 = vld [vmem:[%s11941_s10 + $0x128] sm:$0xff]   ;;  %v16496_v5 = vrot.slane %v12000_v21, 1 }
  0xca   : >> { %v12371_v3 = vpack.c.bf16 %v633_v26, %v634_v55  ;;  %v16498_v26 = vmov %v16497_v4  ;;  %v16501_v21 = vrot.slane %v12013_v27, 1 }
  0xcb   : >> { %v631_v32 = vsel %vm600_vm1, %v16493_v54, %v16492_v30  ;;  %v16494_v57 = vmov %v16493_v54  ;;  %v629_v55 = vsel %vm600_vm1, %v16497_v4, %v16496_v5  ;;  %v16505_v4 = vld [vmem:[#allocation33_spill] sm:$0xff] }
  0xcf   : >> { %9953 = vmatmul.mubr.bf16.gmra.mxu0 %v12299_v13 }
  0xd0   : >> { %10001 = vmatmul.mubr.bf16.gmra.mxu1 %v12301_v22  ;;  %9956 = vmatprep.mubr.bf16.mxu0 %v12305_v0 }
  0xd1   : >> { %10004 = vmatprep.mubr.bf16.mxu1 %v12307_v25 }
  0xd7   : >> { %9957 = vmatmul.mubr.bf16.gmra.mxu0 %v12325_v44 }
  0xd8   : >> { %10005 = vmatmul.mubr.bf16.gmra.mxu1 %v12327_v61  ;;  %10024 = vmatprep.mubr.bf16.mxu0 %v16491_v6  ;;  %v632_v6 = vsel %vm600_vm1, %v16495_v58, %v16494_v57  ;;  %v16502_v57 = vmov %v16501_v21  ;;  %v16503_v58 = vld [vmem:[#allocation18_spill] sm:$0xff] }
  0xd9   : >> { %10072 = vmatprep.mubr.bf16.mxu1 %v12015_v28  ;;  %v12374_v14 = vpack.c.bf16 %v631_v32, %v632_v6  ;;  %v11357_v28 = vld [vmem:[%s11941_s10 + $0x170] sm:$0xff]   ;;  %v16499_v32 = vrot.slane %v11990_v16, 1  ;;  %v16504_v17 = vrot.slane %v16503_v58, 1  ;;  %v11359_v6 = vld [vmem:[%s11941_s10 + $0x168] sm:$0xff]   ;;  %v16512_v58 = vrot.slane %v12041_v43, 1 }
  0xdb   : >> { %v630_v30 = vsel %vm600_vm1, %v16499_v32, %v16498_v26  ;;  %v628_v16 = vsel %vm600_vm1, %v16504_v17, %v16502_v57  ;;  %v16506_v32 = vld [vmem:[#allocation21_spill] sm:$0xff]  ;;  %v16508_v57 = vld [vmem:[#allocation23_spill] sm:$0xff] }
  0xdc   : >> { %v12411_v63 = vpack.c.bf16 %v629_v55, %v630_v30  ;;  %v16509_v55 = vrot.slane %v12059_v52, 1  ;;  %v16510_v30 = vrot.slane %v12048_v47, 1  ;;  %v11355_v17 = vld [vmem:[%s11941_s10 + $0x118] sm:$0xff]   ;;  %v16515_v52 = vrot.slane %v12052_v49, 1  ;;  %v11358_v26 = vld [vmem:[%s11941_s10 + $0x110] sm:$0xff]  }
  0xdd   : >> { %v16517_v47 = vrot.slane %v12050_v48, 1  ;;  %v11363_v49 = vld [vmem:[%s11941_s10 + $0x150] sm:$0xff]  }
  0xde   : >> { %v16519_v48 = vld [vmem:[#allocation27_spill] sm:$0xff] }
  0xdf   : >> { %10025 = vmatmul.mubr.bf16.vlgmr.msra.gmra.mxu0 %v12371_v3 }
  0xe0   : >> { %10105 = vmatpush3.bf16.msra.mxu0 %v12203_v36  ;;  %10073 = vmatmul.mubr.bf16.vlgmr.msra.gmra.mxu1 %v12022_v31  ;;  %v16500_v36 = vrot.slane %v12033_v39, 1  ;;  %v16507_v39 = vld [vmem:[#allocation34_spill] sm:$0xff] }
  0xe1   : >> { %10028 = vmatprep.mubr.bf16.mxu0 %v12374_v14  ;;  %10106 = vmatprep.subr.bf16.mxu0 %v11352_v1 }
  0xe2   : >> { %v627_v54 = vsel %vm600_vm1, %v16501_v21, %v16500_v36  ;;  %10076 = vmatprep.mubr.bf16.mxu1 %v16506_v32  ;;  %10153 = vmatpush3.bf16.msra.mxu1 %v16507_v39  ;;  %v11354_v36 = vld [vmem:[%s11941_s10 + $0x120] sm:$0xff]   ;;  %v16514_v39 = vrot.slane %v12084_v10, 1 }
  0xe3   : >> { %10154 = vmatprep.subr.bf16.mxu1 %v11357_v28  ;;  %v12413_v27 = vpack.c.bf16 %v627_v54, %v628_v16  ;;  %v11360_v21 = vld [vmem:[%s11941_s10 + $0x160] sm:$0xff]   ;;  %v16511_v54 = vmov %v16510_v30 }
  0xe4   : >> { %10107 = vmatpush3.bf16.msra.mxu0 %v11352_v1  ;;  %v625_v1 = vsel %vm600_vm1, %v16510_v30, %v16509_v55  ;;  %v16513_v16 = vld [vmem:[#allocation25_spill] sm:$0xff]  ;;  %v623_v5 = vsel %vm600_vm1, %v16515_v52, %v16514_v39  ;;  %v16516_v55 = vmov %v16515_v52 }
  0xe5   : >> { %10108 = vmatprep.subr.bf16.mxu0 %v11353_v18  ;;  %v624_v43 = vsel %vm600_vm1, %v16517_v47, %v16516_v55  ;;  %v16518_v30 = vld [vmem:[#allocation37_spill] sm:$0xff]  ;;  %v585_v55 = vrot.slane %v12225_v29, 1  ;;  %v16527_v29 = vrot.slane %v12150_v23, 1  ;;  %v16532_v23 = vrot.slane %v12143_v9, 1 }
  0xe6   : >> { %10155 = vmatpush3.bf16.msra.mxu1 %v11357_v28  ;;  %v626_v28 = vsel %vm600_vm1, %v16512_v58, %v16511_v54  ;;  %v584_v54 = vrot.slane %v16518_v30, 1  ;;  %v11362_v58 = vld [vmem:[%s11941_s10 + $0x158] sm:$0xff]   ;;  %v12450_v10 = vpack.c.bf16 %v623_v5, %v624_v43  ;;  %v11361_v39 = vld [vmem:[%s11941_s10 + $0x108] sm:$0xff]   ;;  %v16537_v9 = vrot.slane %v12176_v2, 1 }
  0xe7   : >> { %10029 = vmatmul.mubr.bf16.gmra.mxu0 %v12411_v63  ;;  %10156 = vmatprep.subr.bf16.mxu1 %v11359_v6  ;;  %v16524_v52 = vld [vmem:[#allocation29_spill] sm:$0xff]  ;;  %v589_v30 = vrot.slane %v12243_v51, 1 }
  0xe8   : >> { %10077 = vmatmul.mubr.bf16.gmra.mxu1 %v16508_v57  ;;  %10032 = vmatprep.mubr.bf16.mxu0 %v12413_v27  ;;  %v11365_v47 = vld [vmem:[%s11941_s10 + $0x148] sm:$0xff]  }
  0xe9   : >> { %10080 = vmatprep.mubr.bf16.mxu1 %v16513_v16  ;;  %10109 = vmatpush3.bf16.msra.mxu0 %v11353_v18  ;;  %v12448_v18 = vpack.c.bf16 %v625_v1, %v626_v28  ;;  %v16521_v1 = vrot.slane %v12079_v8, 1  ;;  %v16523_v28 = vrot.slane %v12077_v7, 1  ;;  %v16525_v8 = vrot.slane %v12086_v11, 1  ;;  %v16526_v11 = vld [vmem:[#allocation31_spill] sm:$0xff] }
  0xea   : >> { %10110 = vmatprep.subr.bf16.mxu0 %v11354_v36  ;;  %10157 = vmatpush3.bf16.msra.mxu1 %v11359_v6  ;;  %v16520_v6 = vrot.slane %v12096_v19, 1  ;;  %v619_v19 = vsel %vm600_vm1, %v571_v50, %v572_v37  ;;  %v11364_v37 = vld [vmem:[%s11941_s10 + $0x100] sm:$0xff]  }
  0xeb   : >> { %10158 = vmatprep.subr.bf16.mxu1 %v11360_v21  ;;  %v620_v7 = vsel %vm600_vm1, %v16525_v8, %v571_v50  ;;  %v16528_v50 = vrot.slane %v12130_v60, 1  ;;  %v16534_v60 = vrot.slane %v12135_v62, 1  ;;  %v16535_v62 = vld [vmem:[#allocation38_spill] sm:$0xff]  ;;  %v16539_v8 = vrot.slane %v12172_v59, 1  ;;  %v16543_v59 = vld [vmem:[#allocation39_spill] sm:$0xff] }
  0xec   : >> { %v621_v5 = vsel %vm600_vm1, %v16521_v1, %v16520_v6  ;;  %v12487_v43 = vpack.c.bf16 %v619_v19, %v620_v7  ;;  %v12507_v6 = vld [vmem:[%s11941_s10 + $0x1b8] sm:$0xff]  }
  0xed   : >> { %10111 = vmatpush3.bf16.msra.mxu0 %v11354_v36  ;;  %v16522_v36 = vmov %v16521_v1  ;;  %v16531_v1 = vld [vmem:[#allocation35_spill] sm:$0xff] }
  0xee   : >> { %10112 = vmatprep.subr.bf16.mxu0 %v11355_v17  ;;  %10159 = vmatpush3.bf16.msra.mxu1 %v11360_v21  ;;  %v622_v21 = vsel %vm600_vm1, %v16523_v28, %v16522_v36  ;;  %v16533_v36 = vmov %v16532_v23  ;;  %v586_v28 = vrot.slane %v12232_v38, 1  ;;  %v16536_v38 = vrot.slane %v12193_v24, 1 }
  0xef   : >> { %10033 = vmatmul.mubr.bf16.gmra.mxu0 %v12448_v18  ;;  %10160 = vmatprep.subr.bf16.mxu1 %v11362_v58  ;;  %v12485_v45 = vpack.c.bf16 %v621_v5, %v622_v21  ;;  %v615_v5 = vsel %vm600_vm1, %v16532_v23, %v578_v40  ;;  %v12524_v21 = vld [vmem:[%s11941_s10 + $0x1f8] sm:$0xff]  }
  0xf0   : >> { %10081 = vmatmul.mubr.bf16.gmra.mxu1 %v16519_v48  ;;  %10036 = vmatprep.mubr.bf16.mxu0 %v12450_v10  ;;  %v613_v40 = vsel %vm600_vm1, %v16537_v9, %v16536_v38 }
  0xf1   : >> { %10084 = vmatprep.mubr.bf16.mxu1 %v16524_v52  ;;  %10113 = vmatpush3.bf16.msra.mxu0 %v11355_v17  ;;  %v617_v17 = vsel %vm600_vm1, %v16528_v50, %v16527_v29  ;;  %v587_v29 = vrot.slane %v16543_v59, 1  ;;  %v11370_v59 = vld [vmem:[%s11941_s10 + $0x1a0] sm:$0xff]  }
  0xf2   : >> { %10114 = vmatprep.subr.bf16.mxu0 %v11358_v26  ;;  %10161 = vmatpush3.bf16.msra.mxu1 %v11362_v58  ;;  %v16530_v58 = vrot.slane %v12128_v53, 1  ;;  %v616_v53 = vsel %vm600_vm1, %v16534_v60, %v16533_v36  ;;  %v591_v36 = vrot.slane %v12264_v42, 1 }
  0xf3   : >> { %10162 = vmatprep.subr.bf16.mxu1 %v11363_v49  ;;  %v12528_v19 = vpack.c.bf16 %v615_v5, %v616_v53 }
  0xf5   : >> { %10115 = vmatpush3.bf16.msra.mxu0 %v11358_v26  ;;  %v16529_v26 = vmov %v16528_v50  ;;  %v588_v50 = vrot.slane %v12236_v46, 1  ;;  %v610_v46 = vsel %vm600_vm1, %v585_v55, %v586_v28  ;;  %v592_v55 = vrot.slane %v12266_v34, 1 }
  0xf6   : >> { %10116 = vmatprep.subr.bf16.mxu0 %v11361_v39  ;;  %10163 = vmatpush3.bf16.msra.mxu1 %v11363_v49  ;;  %v618_v49 = vsel %vm600_vm1, %v16530_v58, %v16529_v26  ;;  %v590_v58 = vrot.slane %v12275_v33, 1  ;;  %v446_v33 = vld [vmem:[#allocation2 + $0x270] sm:$0xff] }
  0xf7   : >> { %10037 = vmatmul.mubr.bf16.gmra.mxu0 %v12485_v45  ;;  %10164 = vmatprep.subr.bf16.mxu1 %v11365_v47  ;;  %v12526_v20 = vpack.c.bf16 %v617_v17, %v618_v49  ;;  %v608_v51 = vsel %vm600_vm1, %v588_v50, %v589_v30  ;;  %v12582_v49 = vld [vmem:[#allocation2 + $0x160] sm:$0xff]  ;;  %v593_v60 = vrot.slane %v446_v33, 1  ;;  %v500_v53 = vrot.slane %v446_v33, 7  ;;  %v11381_v33 = vld [vmem:[%s11941_s10 + $0x1c8] sm:$0xff]  }
  0xf8   : >> { %10085 = vmatmul.mubr.bf16.gmra.mxu1 %v16526_v11  ;;  %10040 = vmatprep.mubr.bf16.mxu0 %v12487_v43  ;;  %v502_v38 = vrot.slane %v12582_v49, 7  ;;  %v606_v34 = vsel %vm600_vm1, %v591_v36, %v592_v55  ;;  %v16548_v50 = vld [vmem:[#allocation24_spill] sm:$0xff] }
  0xf9   : >> { %10088 = vmatprep.mubr.bf16.mxu1 %v16531_v1  ;;  %10117 = vmatpush3.bf16.msra.mxu0 %v11361_v39  ;;  %v16538_v39 = vmov %v16537_v9  ;;  %v605_v9 = vsel %vm600_vm1, %v592_v55, %v593_v60  ;;  %v11380_v36 = vld [vmem:[%s11941_s10 + $0x180] sm:$0xff]   ;;  %v16551_v55 = vld [vmem:[#allocation30_spill] sm:$0xff] }
  0xfa   : >> { %10118 = vmatprep.subr.bf16.mxu0 %v11364_v37  ;;  %10165 = vmatpush3.bf16.msra.mxu1 %v11365_v47  ;;  %v614_v7 = vsel %vm600_vm1, %v16539_v8, %v16538_v39  ;;  %v16540_v47 = vrot.slane %v16505_v4, 1  ;;  %v607_v4 = vsel %vm600_vm1, %v589_v30, %v590_v58  ;;  %v12604_v39 = vpack.c.bf16 %v605_v9, %v606_v34  ;;  %v11378_v30 = vld [vmem:[%s11941_s10 + $0x1d8] sm:$0xff]   ;;  %v11374_v58 = vld [vmem:[%s11941_s10 + $0x190] sm:$0xff]   ;;  %v11382_v60 = vld [vmem:[%s11941_s10 + $0x1c0] sm:$0xff]  }
  0xfb   : >> { %10166 = vmatprep.subr.bf16.mxu1 %v11366_v15  ;;  %v12562_v17 = vpack.c.bf16 %v613_v40, %v614_v7  ;;  %v12586_v5 = vpack.c.bf16 %v607_v4, %v608_v51  ;;  %v16544_v7 = vld [vmem:[#allocation17_spill] sm:$0xff]  ;;  %v16550_v4 = vld [vmem:[#allocation28_spill] sm:$0xff] }
  0xfc   : >> { %v611_v24 = vsel %vm600_vm1, %v16540_v47, %v584_v54  ;;  %v12580_v54 = vld [vmem:[#allocation2 + $0x280] sm:$0xff]  ;;  %v11377_v51 = vld [vmem:[%s11941_s10 + $0x188] sm:$0xff]  }
  0xfd   : >> { %10119 = vmatpush3.bf16.msra.mxu0 %v11364_v37  ;;  %v16541_v37 = vmov %v16540_v47  ;;  %v11368_v47 = vld [vmem:[%s11941_s10 + $0x1b0] sm:$0xff]   ;;  %v16554_v9 = vld [vmem:[#allocation40_spill] sm:$0xff]  ;;  %v16555_v34 = vld [vmem:[#allocation41_spill] sm:$0xff] }
  0xfe   : >> { %10167 = vmatpush3.bf16.msra.mxu1 %v11366_v15  ;;  %10200 = vmatprep.subr.bf16.mxu0 %v12507_v6  ;;  %v16542_v15 = vrot.slane %v12191_v35, 1  ;;  %v609_v35 = vsel %vm600_vm1, %v586_v28, %v587_v29  ;;  %v501_v28 = vrot.slane %v12580_v54, 7  ;;  %v11376_v29 = vld [vmem:[%s11941_s10 + $0x1e0] sm:$0xff]  }
  0xff   : >> { %10041 = vmatmul.mubr.bf16.gmra.mxu0 %v12526_v20  ;;  %10248 = vmatprep.subr.bf16.mxu1 %v12524_v21  ;;  %v12584_v23 = vpack.c.bf16 %v609_v35, %v610_v46  ;;  %v16549_v35 = vld [vmem:[#allocation26_spill] sm:$0xff] }
 0x100   : >> { %10089 = vmatmul.mubr.bf16.gmra.mxu1 %v16535_v62  ;;  %10044 = vmatprep.mubr.bf16.mxu0 %v12528_v19  ;;  %v612_v2 = vsel %vm600_vm1, %v16542_v15, %v16541_v37  ;;  %v512_v42 = vsel %vm509_vm0, %v501_v28, %v502_v38  ;;  %v513_v40 = vsel %vm509_vm0, %v500_v53, %v501_v28  ;;  %v11373_v37 = vld [vmem:[%s11941_s10 + $0x1f0] sm:$0xff]   ;;  %v16546_v15 = vld [vmem:[#allocation20_spill] sm:$0xff] }
 0x101   : >> { %10092 = vmatprep.mubr.bf16.mxu1 %v12268_v56  ;;  %v12564_v26 = vpack.c.bf16 %v611_v24, %v612_v2  ;;  %v12606_v8 = vpack.c.bf16 %v512_v42, %v513_v40  ;;  %v16545_v24 = vld [vmem:[#allocation19_spill] sm:$0xff]  ;;  %v11369_v2 = vld [vmem:[%s11941_s10 + $0x1a8] sm:$0xff]   ;;  %v16552_v53 = vld [vmem:[#allocation32_spill] sm:$0xff]  ;;  %v594_v40 = vrot.slane %v12580_v54, 1 }
 0x102   : >> { %v11379_v46 = vld [vmem:[%s11941_s10 + $0x1d0] sm:$0xff]   ;;  %v11383_v28 = vld [vmem:[%s11941_s10 + $0x238] sm:$0xff]  }
 0x103   : >> { %v16553_v38 = vld [vmem:[#allocation36_spill] sm:$0xff]  ;;  %v12653_v42 = vld [vmem:[#allocation2 + $0x1d0] sm:$0xff] }
 0x107   : >> { %10045 = vmatmul.mubr.bf16.gmra.mxu0 %v12562_v17 }
 0x108   : >> { %10093 = vmatmul.mubr.bf16.gmra.mxu1 %v12277_v12  ;;  %10048 = vmatprep.mubr.bf16.mxu0 %v12564_v26 }
 0x109   : >> { %10096 = vmatprep.mubr.bf16.mxu1 %v12301_v22 }
 0x10f   : >> { %10049 = vmatmul.mubr.bf16.gmra.mxu0 %v12584_v23 }
 0x110   : >> { %10097 = vmatmul.mubr.bf16.gmra.mxu1 %v12307_v25  ;;  %10052 = vmatprep.mubr.bf16.mxu0 %v12586_v5 }
 0x111   : >> { %10100 = vmatprep.mubr.bf16.mxu1 %v12327_v61 }
 0x117   : >> { %10053 = vmatmul.mubr.bf16.gmra.mxu0 %v12604_v39 }
 0x118   : >> { %10101 = vmatmul.mubr.bf16.gmra.mxu1 %v12606_v8  ;;  %10120 = vmatprep.mubr.bf16.mxu0 %v16544_v7  ;;  %v595_v7 = vrot.slane %v12582_v49, 1 }
 0x119   : >> { %10168 = vmatprep.mubr.bf16.mxu1 %v12371_v3  ;;  %v11375_v3 = vld [vmem:[%s11941_s10 + $0x1e8] sm:$0xff]  }
 0x11f   : >> { %10121 = vmatmul.mubr.bf16.vlgmr.msra.gmra.mxu0 %v16545_v24 }
 0x120   : >> { %10201 = vmatpush3.bf16.msra.mxu0 %v12507_v6  ;;  %10169 = vmatmul.mubr.bf16.vlgmr.msra.gmra.mxu1 %v12374_v14  ;;  %v16547_v6 = vld [vmem:[#allocation22_spill] sm:$0xff] }
 0x121   : >> { %10124 = vmatprep.mubr.bf16.mxu0 %v16546_v15  ;;  %10202 = vmatprep.subr.bf16.mxu0 %v11368_v47 }
 0x122   : >> { %10172 = vmatprep.mubr.bf16.mxu1 %v12411_v63  ;;  %10249 = vmatpush3.bf16.msra.mxu1 %v12524_v21  ;;  %v11371_v21 = vld [vmem:[%s11941_s10 + $0x198] sm:$0xff]  }
 0x123   : >> { %10250 = vmatprep.subr.bf16.mxu1 %v11373_v37 }
 0x124   : >> { %10203 = vmatpush3.bf16.msra.mxu0 %v11368_v47  ;;  %v596_v47 = vrot.slane %v12653_v42, 1 }
 0x125   : >> { %10204 = vmatprep.subr.bf16.mxu0 %v11369_v2 }
 0x126   : >> { %10251 = vmatpush3.bf16.msra.mxu1 %v11373_v37  ;;  %v11463_v37 = vld [vmem:[#allocation2 + $0x40] sm:$0xff] }
 0x127   : >> { %10125 = vmatmul.mubr.bf16.gmra.mxu0 %v16547_v6  ;;  %10252 = vmatprep.subr.bf16.mxu1 %v11375_v3 }
 0x128   : >> { %10173 = vmatmul.mubr.bf16.gmra.mxu1 %v12413_v27  ;;  %10128 = vmatprep.mubr.bf16.mxu0 %v16548_v50 }
 0x129   : >> { %10176 = vmatprep.mubr.bf16.mxu1 %v12448_v18  ;;  %10205 = vmatpush3.bf16.msra.mxu0 %v11369_v2  ;;  %v599_v2 = vrot.slane %v11463_v37, 1  ;;  %v11385_v37 = vld [vmem:[%s11941_s10 + $0x228] sm:$0xff]  }
 0x12a   : >> { %10206 = vmatprep.subr.bf16.mxu0 %v11370_v59  ;;  %10253 = vmatpush3.bf16.msra.mxu1 %v11375_v3  ;;  %v603_v3 = vsel %vm600_vm1, %v595_v7, %v596_v47 }
 0x12b   : >> { %10254 = vmatprep.subr.bf16.mxu1 %v11376_v29 }
 0x12d   : >> { %10207 = vmatpush3.bf16.msra.mxu0 %v11370_v59  ;;  %v604_v59 = vsel %vm600_vm1, %v594_v40, %v595_v7 }
 0x12e   : >> { %10208 = vmatprep.subr.bf16.mxu0 %v11371_v21  ;;  %10255 = vmatpush3.bf16.msra.mxu1 %v11376_v29  ;;  %v12666_v29 = vld [vmem:[#allocation2 + $0x70] sm:$0xff] }
 0x12f   : >> { %10129 = vmatmul.mubr.bf16.gmra.mxu0 %v16549_v35  ;;  %10256 = vmatprep.subr.bf16.mxu1 %v11378_v30 }
 0x130   : >> { %10177 = vmatmul.mubr.bf16.gmra.mxu1 %v12450_v10  ;;  %10132 = vmatprep.mubr.bf16.mxu0 %v16550_v4 }
 0x131   : >> { %10180 = vmatprep.mubr.bf16.mxu1 %v12485_v45  ;;  %10209 = vmatpush3.bf16.msra.mxu0 %v11371_v21  ;;  %v12668_v21 = vld [vmem:[#allocation2 + $0x2e8] sm:$0xff] }
 0x132   : >> { %10210 = vmatprep.subr.bf16.mxu0 %v11374_v58  ;;  %10257 = vmatpush3.bf16.msra.mxu1 %v11378_v30  ;;  %v12672_v30 = vpack.c.bf16 %v12582_v49, %v12580_v54  ;;  %v11384_v54 = vld [vmem:[%s11941_s10 + $0x230] sm:$0xff]  }
 0x133   : >> { %10258 = vmatprep.subr.bf16.mxu1 %v11379_v46 }
 0x135   : >> { %10211 = vmatpush3.bf16.msra.mxu0 %v11374_v58  ;;  %v597_v58 = vrot.slane %v12666_v29, 1 }
 0x136   : >> { %10212 = vmatprep.subr.bf16.mxu0 %v11377_v51  ;;  %10259 = vmatpush3.bf16.msra.mxu1 %v11379_v46  ;;  %v598_v46 = vrot.slane %v12668_v21, 1 }
 0x137   : >> { %10133 = vmatmul.mubr.bf16.gmra.mxu0 %v16551_v55  ;;  %10260 = vmatprep.subr.bf16.mxu1 %v11381_v33 }
 0x138   : >> { %10181 = vmatmul.mubr.bf16.gmra.mxu1 %v12487_v43  ;;  %10136 = vmatprep.mubr.bf16.mxu0 %v16552_v53 }
 0x139   : >> { %10184 = vmatprep.mubr.bf16.mxu1 %v12526_v20  ;;  %10213 = vmatpush3.bf16.msra.mxu0 %v11377_v51  ;;  %v12676_v51 = vpack.c.bf16 %v603_v3, %v604_v59  ;;  %v11386_v59 = vld [vmem:[%s11941_s10 + $0x220] sm:$0xff]  }
 0x13a   : >> { %10214 = vmatprep.subr.bf16.mxu0 %v11380_v36  ;;  %10261 = vmatpush3.bf16.msra.mxu1 %v11381_v33  ;;  %v12680_v33 = vsel %vm600_vm1, %v598_v46, %v599_v2 }
 0x13b   : >> { %10262 = vmatprep.subr.bf16.mxu1 %v11382_v60 }
 0x13d   : >> { %10215 = vmatpush3.bf16.msra.mxu0 %v11380_v36  ;;  %v12684_v36 = vsel %vm600_vm1, %v597_v58, %v598_v46 }
 0x13e   : >> { %10263 = vmatpush3.bf16.msra.mxu1 %v11382_v60  ;;  %10296 = vmatprep.subr.bf16.mxu0 %v11383_v28 }
 0x13f   : >> { %10137 = vmatmul.mubr.bf16.gmra.mxu0 %v16553_v38 }
 0x140   : >> { %10185 = vmatmul.mubr.bf16.gmra.mxu1 %v12528_v19  ;;  %10140 = vmatprep.mubr.bf16.mxu0 %v16554_v9 }
 0x141   : >> { %10188 = vmatprep.mubr.bf16.mxu1 %v12562_v17 }
 0x147   : >> { %10141 = vmatmul.mubr.bf16.gmra.mxu0 %v16555_v34 }
 0x148   : >> { %10189 = vmatmul.mubr.bf16.gmra.mxu1 %v12564_v26  ;;  %10144 = vmatprep.mubr.bf16.mxu0 %v12299_v13 }
 0x149   : >> { %10192 = vmatprep.mubr.bf16.mxu1 %v12584_v23 }
 0x14f   : >> { %10145 = vmatmul.mubr.bf16.gmra.mxu0 %v12305_v0 }
 0x150   : >> { %10193 = vmatmul.mubr.bf16.gmra.mxu1 %v12586_v5  ;;  %10148 = vmatprep.mubr.bf16.mxu0 %v12325_v44 }
 0x151   : >> { %10196 = vmatprep.mubr.bf16.mxu1 %v12604_v39 }
 0x157   : >> { %10149 = vmatmul.mubr.bf16.gmra.mxu0 %v12672_v30 }
 0x158   : >> { %10197 = vmatmul.mubr.bf16.gmra.mxu1 %v12676_v51  ;;  %10216 = vmatprep.mubr.bf16.mxu0 %v12022_v31 }
 0x159   : >> { %10264 = vmatprep.mubr.bf16.mxu1 %v16545_v24 }
 0x15f   : >> { %v9930_v49 = vpop.f32.mrf.mxu0  ;;  %10217 = vmatmul.mubr.bf16.vlgmr.msra.gmra.mxu0 %v16506_v32 }
 0x160   : >> { %v9978_v40 = vpop.f32.mrf.mxu1  ;;  %10297 = vmatpush3.bf16.msra.mxu0 %v11383_v28  ;;  %10265 = vmatmul.mubr.bf16.vlgmr.msra.gmra.mxu1 %v16546_v15 }
 0x161   : >> { %v12695_v7 = vadd.f32 %v9978_v40, %v9930_v49  ;;  %v811_v47 = vpop.f32.mrf.mxu0  ;;  %10220 = vmatprep.mubr.bf16.mxu0 %v16508_v57  ;;  %10298 = vmatprep.subr.bf16.mxu0 %v11384_v54  ;;  %v11387_v40 = vld [vmem:[%s11941_s10 + $0x218] sm:$0xff]  }
 0x162   : >> { %v1020_v2 = vpop.f32.mrf.mxu1  ;;  %10268 = vmatprep.mubr.bf16.mxu1 %v16547_v6 }
 0x163   : >> { %v12700_v31 = vadd.f32 %v1020_v2, %v811_v47  ;;  %v9931_v24 = vpop.f32.mrf.mxu0 }
 0x164   : >> { %v9979_v3 = vpop.f32.mrf.mxu1  ;;  %10299 = vmatpush3.bf16.msra.mxu0 %v11384_v54 }
 0x165   : >> { %v12702_v32 = vadd.f32 %v9979_v3, %v9931_v24  ;;  %v814_v28 = vpop.f32.mrf.mxu0  ;;  %10300 = vmatprep.subr.bf16.mxu0 %v11385_v37 }
 0x166   : >> { %v1023_v15 = vpop.f32.mrf.mxu1 }
 0x167   : >> { %v12705_v58 = vadd.f32 %v1023_v15, %v814_v28  ;;  %v9934_v57 = vpop.f32.mrf.mxu0  ;;  %10221 = vmatmul.mubr.bf16.gmra.mxu0 %v16513_v16 }
 0x168   : >> { %v9982_v46 = vpop.f32.mrf.mxu1  ;;  %10269 = vmatmul.mubr.bf16.gmra.mxu1 %v16548_v50  ;;  %10224 = vmatprep.mubr.bf16.mxu0 %v16519_v48  ;;  %v11388_v50 = vld [vmem:[%s11941_s10 + $0x210] sm:$0xff]  }
 0x169   : >> { %v12710_v6 = vadd.f32 %v9982_v46, %v9934_v57  ;;  %v827_v54 = vpop.f32.mrf.mxu0  ;;  %10272 = vmatprep.mubr.bf16.mxu1 %v16549_v35  ;;  %10301 = vmatpush3.bf16.msra.mxu0 %v11385_v37  ;;  %v11389_v46 = vld [vmem:[%s11941_s10 + $0x208] sm:$0xff]  }
 0x16a   : >> { %v1036_v49 = vpop.f32.mrf.mxu1  ;;  %10302 = vmatprep.subr.bf16.mxu0 %v11386_v59 }
 0x16b   : >> { %v12714_v47 = vadd.f32 %v1036_v49, %v827_v54  ;;  %v9935_v2 = vpop.f32.mrf.mxu0 }
 0x16c   : >> { %v9983_v24 = vpop.f32.mrf.mxu1 }
 0x16d   : >> { %v12716_v16 = vadd.f32 %v9983_v24, %v9935_v2  ;;  %v830_v3 = vpop.f32.mrf.mxu0  ;;  %10303 = vmatpush3.bf16.msra.mxu0 %v11386_v59 }
 0x16e   : >> { %v1039_v48 = vpop.f32.mrf.mxu1  ;;  %10304 = vmatprep.subr.bf16.mxu0 %v11387_v40 }
 0x16f   : >> { %v12719_v28 = vadd.f32 %v1039_v48, %v830_v3  ;;  %v9938_v15 = vpop.f32.mrf.mxu0  ;;  %10225 = vmatmul.mubr.bf16.gmra.mxu0 %v16524_v52 }
 0x170   : >> { %v9986_v35 = vpop.f32.mrf.mxu1  ;;  %10273 = vmatmul.mubr.bf16.gmra.mxu1 %v16550_v4  ;;  %10228 = vmatprep.mubr.bf16.mxu0 %v16526_v11  ;;  %v11390_v11 = vld [vmem:[%s11941_s10 + $0x200] sm:$0xff]  }
 0x171   : >> { %v12724_v37 = vadd.f32 %v9986_v35, %v9938_v15  ;;  %v843_v57 = vpop.f32.mrf.mxu0  ;;  %10276 = vmatprep.mubr.bf16.mxu1 %v16551_v55  ;;  %10305 = vmatpush3.bf16.msra.mxu0 %v11387_v40 }
 0x172   : >> { %v1052_v59 = vpop.f32.mrf.mxu1  ;;  %10306 = vmatprep.subr.bf16.mxu0 %v11388_v50 }
 0x173   : >> { %v12728_v54 = vadd.f32 %v1052_v59, %v843_v57  ;;  %v9939_v49 = vpop.f32.mrf.mxu0 }
 0x174   : >> { %v9987_v2 = vpop.f32.mrf.mxu1 }
 0x175   : >> { %v12730_v52 = vadd.f32 %v9987_v2, %v9939_v49  ;;  %v846_v24 = vpop.f32.mrf.mxu0  ;;  %10307 = vmatpush3.bf16.msra.mxu0 %v11388_v50 }
 0x176   : >> { %v1055_v4 = vpop.f32.mrf.mxu1  ;;  %10308 = vmatprep.subr.bf16.mxu0 %v11389_v46 }
 0x177   : >> { %v12733_v3 = vadd.f32 %v1055_v4, %v846_v24  ;;  %v9942_v48 = vpop.f32.mrf.mxu0  ;;  %10229 = vmatmul.mubr.bf16.gmra.mxu0 %v16531_v1 }
 0x178   : >> { %v9990_v55 = vpop.f32.mrf.mxu1  ;;  %10277 = vmatmul.mubr.bf16.gmra.mxu1 %v16552_v53  ;;  %10232 = vmatprep.mubr.bf16.mxu0 %v16535_v62 }
 0x179   : >> { %v12738_v40 = vadd.f32 %v9990_v55, %v9942_v48  ;;  %v859_v15 = vpop.f32.mrf.mxu0  ;;  %10280 = vmatprep.mubr.bf16.mxu1 %v16553_v38  ;;  %10309 = vmatpush3.bf16.msra.mxu0 %v11389_v46 }
 0x17a   : >> { %v1068_v50 = vpop.f32.mrf.mxu1  ;;  %10310 = vmatprep.subr.bf16.mxu0 %v11390_v11 }
 0x17b   : >> { %v12741_v35 = vadd.f32 %v1068_v50, %v859_v15  ;;  %v9943_v57 = vpop.f32.mrf.mxu0 }
 0x17c   : >> { %v9991_v59 = vpop.f32.mrf.mxu1 }
 0x17d   : >> { %v12743_v49 = vadd.f32 %v9991_v59, %v9943_v57  ;;  %v862_v1 = vpop.f32.mrf.mxu0  ;;  %10311 = vmatpush3.bf16.msra.mxu0 %v11390_v11 }
 0x17e   : >> { %v1071_v2 = vpop.f32.mrf.mxu1 }
 0x17f   : >> { %v12745_v53 = vadd.f32 %v1071_v2, %v862_v1  ;;  %v9946_v62 = vpop.f32.mrf.mxu0  ;;  %10233 = vmatmul.mubr.bf16.gmra.mxu0 %v12268_v56 }
 0x180   : >> { %v9994_v24 = vpop.f32.mrf.mxu1  ;;  %10281 = vmatmul.mubr.bf16.gmra.mxu1 %v16554_v9  ;;  %10236 = vmatprep.mubr.bf16.mxu0 %v12277_v12 }
 0x181   : >> { %v12750_v38 = vadd.f32 %v9994_v24, %v9946_v62  ;;  %v875_v46 = vpop.f32.mrf.mxu0  ;;  %10284 = vmatprep.mubr.bf16.mxu1 %v16555_v34  ;;  %v503_v62 = vrot.slane %v12653_v42, 7 }
 0x182   : >> { %v1084_v4 = vpop.f32.mrf.mxu1 }
 0x183   : >> { %v12753_v48 = vadd.f32 %v1084_v4, %v875_v46  ;;  %v9947_v11 = vpop.f32.mrf.mxu0  ;;  %v504_v46 = vrot.slane %v12666_v29, 7 }
 0x184   : >> { %v9995_v55 = vpop.f32.mrf.mxu1 }
 0x185   : >> { %v12755_v15 = vadd.f32 %v9995_v55, %v9947_v11  ;;  %v12757_v50 = vpop.f32.mrf.mxu0  ;;  %v511_v55 = vsel %vm509_vm0, %v503_v62, %v504_v46 }
 0x186   : >> { %v12759_v56 = vpop.f32.mrf.mxu1 }
 0x187   : >> { %v9950_v57 = vpop.f32.mrf.mxu0  ;;  %10237 = vmatmul.mubr.bf16.gmra.mxu0 %v12301_v22  ;;  %v505_v22 = vrot.slane %v12668_v21, 7 }
 0x188   : >> { %v9998_v12 = vpop.f32.mrf.mxu1  ;;  %10285 = vmatmul.mubr.bf16.gmra.mxu1 %v12299_v13  ;;  %10240 = vmatprep.mubr.bf16.mxu0 %v12307_v25 }
 0x189   : >> { %v12764_v9 = vadd.f32 %v9998_v12, %v9950_v57  ;;  %v891_v34 = vpop.f32.mrf.mxu0  ;;  %10288 = vmatprep.mubr.bf16.mxu1 %v12305_v0  ;;  %v510_v42 = vsel %vm509_vm0, %v504_v46, %v505_v22 }
 0x18a   : >> { %v1100_v59 = vpop.f32.mrf.mxu1 }
 0x18b   : >> { %v12767_v1 = vadd.f32 %v1100_v59, %v891_v34  ;;  %v9951_v2 = vpop.f32.mrf.mxu0 }
 0x18c   : >> { %v9999_v24 = vpop.f32.mrf.mxu1 }
 0x18d   : >> { %v12772_v4 = vadd.f32 %v9999_v24, %v9951_v2  ;;  %v12774_v13 = vpop.f32.mrf.mxu0  ;;  %v654_v2 = vpack.c.bf16 %v510_v42, %v511_v55 }
 0x18e   : >> { %v12776_v25 = vpop.f32.mrf.mxu1 }
 0x18f   : >> { %v9954_v11 = vpop.f32.mrf.mxu0  ;;  %10241 = vmatmul.mubr.bf16.gmra.mxu0 %v12327_v61 }
 0x190   : >> { %v10002_v0 = vpop.f32.mrf.mxu1  ;;  %10289 = vmatmul.mubr.bf16.gmra.mxu1 %v12325_v44  ;;  %10244 = vmatprep.mubr.bf16.mxu0 %v12606_v8  ;;  %v672_v44 = vpack.c.bf16 %v12668_v21, %v12666_v29 }
 0x191   : >> { %v12785_v57 = vadd.f32 %v10002_v0, %v9954_v11  ;;  %v907_v12 = vpop.f32.mrf.mxu0  ;;  %10292 = vmatprep.mubr.bf16.mxu1 %v12672_v30 }
 0x192   : >> { %v1116_v34 = vpop.f32.mrf.mxu1 }
 0x193   : >> { %v12788_v59 = vadd.f32 %v1116_v34, %v907_v12  ;;  %v9955_v61 = vpop.f32.mrf.mxu0 }
 0x194   : >> { %v10003_v24 = vpop.f32.mrf.mxu1 }
 0x195   : >> { %v12792_v8 = vadd.f32 %v10003_v24, %v9955_v61  ;;  %v12794_v22 = vpop.f32.mrf.mxu0 }
 0x196   : >> { %v12796_v60 = vpop.f32.mrf.mxu1 }
 0x197   : >> { %v9958_v62 = vpop.f32.mrf.mxu0  ;;  %10245 = vmatmul.mubr.bf16.gmra.mxu0 %v654_v2 }
 0x198   : >> { %v10006_v46 = vpop.f32.mrf.mxu1  ;;  %10293 = vmatmul.mubr.bf16.gmra.mxu1 %v672_v44  ;;  %10312 = vmatprep.mubr.bf16.mxu0 %v12374_v14 }
 0x199   : >> { %v12799_v30 = vadd.f32 %v10006_v46, %v9958_v62  ;;  %v923_v11 = vpop.f32.mrf.mxu0 }
 0x19a   : >> { %v1132_v0 = vpop.f32.mrf.mxu1 }
 0x19b   : >> { %v12801_v42 = vadd.f32 %v1132_v0, %v923_v11  ;;  %v9959_v55 = vpop.f32.mrf.mxu0 }
 0x19c   : >> { %v10007_v29 = vpop.f32.mrf.mxu1 }
 0x19d   : >> { %v12803_v21 = vadd.f32 %v10007_v29, %v9959_v55  ;;  %v12805_v12 = vpop.f32.mrf.mxu0 }
 0x19e   : >> { %v12807_v34 = vpop.f32.mrf.mxu1 }
 0x19f   : >> { %16556 = vst [vmem:[#allocation18_spill] sm:$0xff] %v12807_v34  ;;  %v10026_v61 = vpop.f32.mrf.mxu0  ;;  %10313 = vmatmul.mubr.bf16.vlgmr.msra.gmra.mxu0 %v12411_v63 }
 0x1a0   : >> { %v1377_v2 = vadd.f32 %v10026_v61, %v12695_v7  ;;  %v10074_v14 = vpop.f32.mrf.mxu1  ;;  %10316 = vmatprep.mubr.bf16.mxu0 %v12413_v27 }
 0x1a1   : >> { %v1248_v24 = vpop.f32.mrf.mxu0 }
 0x1a2   : >> { %v1375_v44 = vadd.f32 %v1248_v24, %v12700_v31  ;;  %v12813_v62 = vadd.f32 %v10074_v14, %v1377_v2  ;;  %v1508_v46 = vpop.f32.mrf.mxu1 }
 0x1a3   : >> { %v10027_v11 = vpop.f32.mrf.mxu0 }
 0x1a4   : >> { %v1378_v0 = vadd.f32 %v10027_v11, %v12702_v32  ;;  %v12816_v55 = vadd.f32 %v1508_v46, %v1375_v44  ;;  %v10075_v29 = vpop.f32.mrf.mxu1 }
 0x1a5   : >> { %v1251_v34 = vpop.f32.mrf.mxu0 }
 0x1a6   : >> { %v12819_v63 = vadd.f32 %v1251_v34, %v12705_v58  ;;  %v12821_v7 = vadd.f32 %v10075_v29, %v1378_v0  ;;  %v12823_v61 = vpop.f32.mrf.mxu1 }
 0x1a7   : >> { %v10030_v27 = vpop.f32.mrf.mxu0  ;;  %10317 = vmatmul.mubr.bf16.gmra.mxu0 %v12448_v18 }
 0x1a8   : >> { %v1381_v31 = vadd.f32 %v10030_v27, %v12710_v6  ;;  %v10078_v2 = vpop.f32.mrf.mxu1  ;;  %10320 = vmatprep.mubr.bf16.mxu0 %v12450_v10 }
 0x1a9   : >> { %v1264_v32 = vpop.f32.mrf.mxu0 }
 0x1aa   : >> { %v1379_v14 = vadd.f32 %v1264_v32, %v12714_v47  ;;  %v12829_v24 = vadd.f32 %v10078_v2, %v1381_v31  ;;  %v1524_v44 = vpop.f32.mrf.mxu1 }
 0x1ab   : >> { %v10031_v58 = vpop.f32.mrf.mxu0 }
 0x1ac   : >> { %v1382_v34 = vadd.f32 %v10031_v58, %v12716_v16  ;;  %v12832_v46 = vadd.f32 %v1524_v44, %v1379_v14  ;;  %v10079_v11 = vpop.f32.mrf.mxu1 }
 0x1ad   : >> { %v1267_v0 = vpop.f32.mrf.mxu0 }
 0x1ae   : >> { %v12835_v18 = vadd.f32 %v1267_v0, %v12719_v28  ;;  %v12837_v6 = vadd.f32 %v10079_v11, %v1382_v34  ;;  %v12839_v29 = vpop.f32.mrf.mxu1 }
 0x1af   : >> { %v10034_v10 = vpop.f32.mrf.mxu0  ;;  %10321 = vmatmul.mubr.bf16.gmra.mxu0 %v12485_v45 }
 0x1b0   : >> { %v1385_v47 = vadd.f32 %v10034_v10, %v12724_v37  ;;  %v10082_v27 = vpop.f32.mrf.mxu1  ;;  %10324 = vmatprep.mubr.bf16.mxu0 %v12487_v43  ;;  %v11391_v43 = vld [vmem:[%s11941_s10 + $0x2b8] sm:$0xff]  }
 0x1b1   : >> { %v1280_v16 = vpop.f32.mrf.mxu0  ;;  %10344 = vmatprep.subr.bf16.mxu1 %v11391_v43 }
 0x1b2   : >> { %v1383_v31 = vadd.f32 %v1280_v16, %v12728_v54  ;;  %v12845_v2 = vadd.f32 %v10082_v27, %v1385_v47  ;;  %v1540_v28 = vpop.f32.mrf.mxu1  ;;  %10345 = vmatpush3.bf16.msra.mxu1 %v11391_v43 }
 0x1b3   : >> { %v10035_v32 = vpop.f32.mrf.mxu0 }
 0x1b4   : >> { %v1386_v14 = vadd.f32 %v10035_v32, %v12730_v52  ;;  %v12848_v44 = vadd.f32 %v1540_v28, %v1383_v31  ;;  %v10083_v58 = vpop.f32.mrf.mxu1 }
 0x1b5   : >> { %v1283_v34 = vpop.f32.mrf.mxu0 }
 0x1b6   : >> { %v12851_v45 = vadd.f32 %v1283_v34, %v12733_v3  ;;  %v12853_v37 = vadd.f32 %v10083_v58, %v1386_v14  ;;  %v12855_v11 = vpop.f32.mrf.mxu1  ;;  %v11392_v58 = vld [vmem:[%s11941_s10 + $0x2b0] sm:$0xff]  }
 0x1b7   : >> { %v10038_v0 = vpop.f32.mrf.mxu0  ;;  %10325 = vmatmul.mubr.bf16.gmra.mxu0 %v12526_v20  ;;  %10346 = vmatprep.subr.bf16.mxu1 %v11392_v58 }
 0x1b8   : >> { %v1389_v54 = vadd.f32 %v10038_v0, %v12738_v40  ;;  %v10086_v10 = vpop.f32.mrf.mxu1  ;;  %10328 = vmatprep.mubr.bf16.mxu0 %v12528_v19  ;;  %10347 = vmatpush3.bf16.msra.mxu1 %v11392_v58 }
 0x1b9   : >> { %v1296_v52 = vpop.f32.mrf.mxu0 }
 0x1ba   : >> { %v1387_v3 = vadd.f32 %v1296_v52, %v12741_v35  ;;  %v12862_v47 = vadd.f32 %v10086_v10, %v1389_v54  ;;  %v1556_v27 = vpop.f32.mrf.mxu1 }
 0x1bb   : >> { %v10039_v16 = vpop.f32.mrf.mxu0 }
 0x1bc   : >> { %v1390_v31 = vadd.f32 %v10039_v16, %v12743_v49  ;;  %v12865_v28 = vadd.f32 %v1556_v27, %v1387_v3  ;;  %v10087_v20 = vpop.f32.mrf.mxu1 }
 0x1bd   : >> { %v1299_v32 = vpop.f32.mrf.mxu0 }
 0x1be   : >> { %v12868_v40 = vadd.f32 %v1299_v32, %v12745_v53  ;;  %v12870_v14 = vadd.f32 %v10087_v20, %v1390_v31  ;;  %v12872_v19 = vpop.f32.mrf.mxu1 }
 0x1bf   : >> { %v10042_v34 = vpop.f32.mrf.mxu0  ;;  %10329 = vmatmul.mubr.bf16.gmra.mxu0 %v12562_v17 }
 0x1c0   : >> { %v1393_v35 = vadd.f32 %v10042_v34, %v12750_v38  ;;  %v10090_v43 = vpop.f32.mrf.mxu1  ;;  %10332 = vmatprep.mubr.bf16.mxu0 %v12564_v26  ;;  %v11393_v26 = vld [vmem:[%s11941_s10 + $0x2a8] sm:$0xff]  }
 0x1c1   : >> { %v1312_v49 = vpop.f32.mrf.mxu0  ;;  %10348 = vmatprep.subr.bf16.mxu1 %v11393_v26 }
 0x1c2   : >> { %v1391_v53 = vadd.f32 %v1312_v49, %v12753_v48  ;;  %v12879_v0 = vadd.f32 %v10090_v43, %v1393_v35  ;;  %v1572_v54 = vpop.f32.mrf.mxu1  ;;  %10349 = vmatpush3.bf16.msra.mxu1 %v11393_v26 }
 0x1c3   : >> { %v10043_v10 = vpop.f32.mrf.mxu0 }
 0x1c4   : >> { %v1394_v52 = vadd.f32 %v10043_v10, %v12755_v15  ;;  %v12882_v3 = vadd.f32 %v1572_v54, %v1391_v53  ;;  %v10091_v17 = vpop.f32.mrf.mxu1  ;;  %v11394_v54 = vld [vmem:[%s11941_s10 + $0x2a0] sm:$0xff]  }
 0x1c5   : >> { %v12884_v27 = vpop.f32.mrf.mxu0  ;;  %10350 = vmatprep.subr.bf16.mxu1 %v11394_v54 }
 0x1c6   : >> { %v12886_v38 = vadd.f32 %v10091_v17, %v1394_v52  ;;  %v12888_v16 = vpop.f32.mrf.mxu1  ;;  %10351 = vmatpush3.bf16.msra.mxu1 %v11394_v54 }
 0x1c7   : >> { %v10046_v31 = vpop.f32.mrf.mxu0  ;;  %10333 = vmatmul.mubr.bf16.gmra.mxu0 %v12584_v23 }
 0x1c8   : >> { %v1397_v48 = vadd.f32 %v10046_v31, %v12764_v9  ;;  %v10094_v20 = vpop.f32.mrf.mxu1  ;;  %10336 = vmatprep.mubr.bf16.mxu0 %v12586_v5 }
 0x1c9   : >> { %v1328_v15 = vpop.f32.mrf.mxu0 }
 0x1ca   : >> { %v1395_v32 = vadd.f32 %v1328_v15, %v12767_v1  ;;  %v12895_v58 = vadd.f32 %v10094_v20, %v1397_v48  ;;  %v1588_v34 = vpop.f32.mrf.mxu1 }
 0x1cb   : >> { %v10047_v35 = vpop.f32.mrf.mxu0 }
 0x1cc   : >> { %v1398_v43 = vadd.f32 %v10047_v35, %v12772_v4  ;;  %v12898_v49 = vadd.f32 %v1588_v34, %v1395_v32  ;;  %v10095_v23 = vpop.f32.mrf.mxu1  ;;  %v11396_v4 = vld [vmem:[%s11941_s10 + $0x278] sm:$0xff]  }
 0x1cd   : >> { %v12900_v9 = vpop.f32.mrf.mxu0  ;;  %10392 = vmatprep.subr.bf16.mxu0 %v11396_v4 }
 0x1ce   : >> { %v12902_v53 = vadd.f32 %v10095_v23, %v1398_v43  ;;  %v12904_v5 = vpop.f32.mrf.mxu1  ;;  %10393 = vmatpush3.bf16.msra.mxu0 %v11396_v4  ;;  %v16557_v23 = vpack.c.bf16 %v12680_v33, %v12684_v36 }
 0x1cf   : >> { %v10050_v10 = vpop.f32.mrf.mxu0  ;;  %10337 = vmatmul.mubr.bf16.gmra.mxu0 %v12604_v39 }
 0x1d0   : >> { %v1401_v1 = vadd.f32 %v10050_v10, %v12785_v57  ;;  %v10098_v52 = vpop.f32.mrf.mxu1  ;;  %10340 = vmatprep.mubr.bf16.mxu0 %v12676_v51  ;;  %v11397_v51 = vld [vmem:[%s11941_s10 + $0x270] sm:$0xff]   ;;  %v11399_v10 = vld [vmem:[%s11941_s10 + $0x268] sm:$0xff]  }
 0x1d1   : >> { %v1344_v17 = vpop.f32.mrf.mxu0  ;;  %10394 = vmatprep.subr.bf16.mxu0 %v11397_v51 }
 0x1d2   : >> { %v1399_v26 = vadd.f32 %v1344_v17, %v12788_v59  ;;  %v12912_v31 = vadd.f32 %v10098_v52, %v1401_v1  ;;  %v1604_v48 = vpop.f32.mrf.mxu1  ;;  %v11395_v59 = vld [vmem:[%s11941_s10 + $0x298] sm:$0xff]   ;;  %10395 = vmatpush3.bf16.msra.mxu0 %v11397_v51 }
 0x1d3   : >> { %v10051_v20 = vpop.f32.mrf.mxu0  ;;  %10352 = vmatprep.subr.bf16.mxu1 %v11395_v59  ;;  %10396 = vmatprep.subr.bf16.mxu0 %v11399_v10 }
 0x1d4   : >> { %v1402_v39 = vadd.f32 %v10051_v20, %v12792_v8  ;;  %v12915_v57 = vadd.f32 %v1604_v48, %v1399_v26  ;;  %v10099_v15 = vpop.f32.mrf.mxu1  ;;  %10353 = vmatpush3.bf16.msra.mxu1 %v11395_v59  ;;  %v11400_v48 = vld [vmem:[%s11941_s10 + $0x260] sm:$0xff]  }
 0x1d5   : >> { %v12918_v32 = vpop.f32.mrf.mxu0 }
 0x1d6   : >> { %v12920_v34 = vadd.f32 %v10099_v15, %v1402_v39  ;;  %v12922_v35 = vpop.f32.mrf.mxu1  ;;  %10397 = vmatpush3.bf16.msra.mxu0 %v11399_v10 }
 0x1d7   : >> { %v10054_v43 = vpop.f32.mrf.mxu0  ;;  %10341 = vmatmul.mubr.bf16.gmra.mxu0 %v16557_v23  ;;  %10398 = vmatprep.subr.bf16.mxu0 %v11400_v48 }
 0x1d8   : >> { %v1405_v54 = vadd.f32 %v10054_v43, %v12799_v30  ;;  %v10102_v8 = vpop.f32.mrf.mxu1  ;;  %v11402_v43 = vld [vmem:[%s11941_s10 + $0x258] sm:$0xff]  }
 0x1d9   : >> { %v1360_v1 = vpop.f32.mrf.mxu0 }
 0x1da   : >> { %v1403_v52 = vadd.f32 %v1360_v1, %v12801_v42  ;;  %v12931_v4 = vadd.f32 %v10102_v8, %v1405_v54  ;;  %v1620_v17 = vpop.f32.mrf.mxu1  ;;  %v11398_v42 = vld [vmem:[%s11941_s10 + $0x290] sm:$0xff]   ;;  %10399 = vmatpush3.bf16.msra.mxu0 %v11400_v48 }
 0x1db   : >> { %v10055_v26 = vpop.f32.mrf.mxu0  ;;  %10354 = vmatprep.subr.bf16.mxu1 %v11398_v42  ;;  %10400 = vmatprep.subr.bf16.mxu0 %v11402_v43 }
 0x1dc   : >> { %v1406_v33 = vadd.f32 %v10055_v26, %v12803_v21  ;;  %v12934_v36 = vadd.f32 %v1620_v17, %v1403_v52  ;;  %v10103_v30 = vpop.f32.mrf.mxu1  ;;  %10355 = vmatpush3.bf16.msra.mxu1 %v11398_v42  ;;  %v11403_v52 = vld [vmem:[%s11941_s10 + $0x250] sm:$0xff]   ;;  %v11401_v26 = vld [vmem:[%s11941_s10 + $0x288] sm:$0xff]  }
 0x1dd   : >> { %v12937_v20 = vpop.f32.mrf.mxu0  ;;  %10356 = vmatprep.subr.bf16.mxu1 %v11401_v26 }
 0x1de   : >> { %v12939_v39 = vadd.f32 %v10103_v30, %v1406_v33  ;;  %v12941_v15 = vpop.f32.mrf.mxu1  ;;  %10401 = vmatpush3.bf16.msra.mxu0 %v11402_v43 }
 0x1df   : >> { %v10122_v51 = vpop.f32.mrf.mxu0  ;;  %10402 = vmatprep.subr.bf16.mxu0 %v11403_v52 }
 0x1e0   : >> { %v12945_v59 = vadd.f32 %v10122_v51, %v12813_v62  ;;  %v12947_v21 = vpop.f32.mrf.mxu1  ;;  %10357 = vmatpush3.bf16.msra.mxu1 %v11401_v26  ;;  %v11404_v51 = vld [vmem:[%s11941_s10 + $0x280] sm:$0xff]  }
 0x1e1   : >> { %v1768_v23 = vpop.f32.mrf.mxu0  ;;  %10358 = vmatprep.subr.bf16.mxu1 %v11404_v51 }
 0x1e2   : >> { %v12951_v54 = vadd.f32 %v1768_v23, %v12816_v55  ;;  %v12953_v8 = vpop.f32.mrf.mxu1  ;;  %10403 = vmatpush3.bf16.msra.mxu0 %v11403_v52 }
 0x1e3   : >> { %v10123_v10 = vpop.f32.mrf.mxu0 }
 0x1e4   : >> { %v12956_v1 = vadd.f32 %v10123_v10, %v12821_v7  ;;  %v12958_v62 = vpop.f32.mrf.mxu1  ;;  %v11405_v7 = vld [vmem:[%s11941_s10 + $0x248] sm:$0xff]   ;;  %10359 = vmatpush3.bf16.msra.mxu1 %v11404_v51 }
 0x1e5   : >> { %16559 = vst [vmem:[#allocation21_spill] sm:$0xff] %v12958_v62  ;;  %v12961_v17 = vpop.f32.mrf.mxu0  ;;  %10404 = vmatprep.subr.bf16.mxu0 %v11405_v7 }
 0x1e6   : >> { %16558 = vst [vmem:[#allocation33_spill] sm:$0xff] %v12956_v1  ;;  %v12964_v33 = vpop.f32.mrf.mxu1  ;;  %10405 = vmatpush3.bf16.msra.mxu0 %v11405_v7 }
 0x1e7   : >> { %16560 = vst [vmem:[#allocation34_spill] sm:$0xff] %v12964_v33  ;;  %v10126_v55 = vpop.f32.mrf.mxu0  ;;  %v12978_v33 = vld [vmem:[#allocation2 + $0x318] sm:$0xff] }
 0x1e8   : >> { %v12967_v30 = vadd.f32 %v10126_v55, %v12829_v24  ;;  %v12969_v48 = vpop.f32.mrf.mxu1  ;;  %v12980_v24 = vld [vmem:[#allocation2 + $0x268] sm:$0xff]  ;;  %v3124_v55 = vld [vmem:[#allocation2 + $0x298] sm:$0xff] }
 0x1e9   : >> { %16562 = vst [vmem:[#allocation25_spill] sm:$0xff] %v12969_v48  ;;  %v1784_v42 = vpop.f32.mrf.mxu0  ;;  %v3324_v48 = vpack.c.bf16 %v12980_v24, %v12978_v33 }
 0x1ea   : >> { %16561 = vst [vmem:[#allocation23_spill] sm:$0xff] %v12967_v30  ;;  %v12974_v43 = vadd.f32 %v1784_v42, %v12832_v46  ;;  %v12976_v23 = vpop.f32.mrf.mxu1  ;;  %v3126_v46 = vrot.slane %v12978_v33, 7  ;;  %v3127_v42 = vrot.slane %v12980_v24, 7  ;;  %v3179_v30 = vrot.slane %v3124_v55, 7 }
 0x1eb   : >> { %16564 = vst [vmem:[#allocation27_spill] sm:$0xff] %v12976_v23  ;;  %v10127_v10 = vpop.f32.mrf.mxu0  ;;  %v11406_v23 = vld [vmem:[%s11941_s10 + $0x240] sm:$0xff]   ;;  %10360 = vmatprep.mubr.bf16.mxu1 %v3324_v48 }
 0x1ec   : >> { %16563 = vst [vmem:[#allocation37_spill] sm:$0xff] %v12974_v43  ;;  %v12983_v26 = vadd.f32 %v10127_v10, %v12837_v6  ;;  %v12985_v52 = vpop.f32.mrf.mxu1  ;;  %10406 = vmatprep.subr.bf16.mxu0 %v11406_v23  ;;  %v3214_v6 = vsel %vm509_vm0, %v3126_v46, %v3127_v42  ;;  %v3215_v7 = vsel %vm509_vm0, %v3179_v30, %v3126_v46 }
 0x1ed   : >> { %16566 = vst [vmem:[#allocation31_spill] sm:$0xff] %v12985_v52  ;;  %v12990_v43 = vpop.f32.mrf.mxu0  ;;  %10407 = vmatpush3.bf16.msra.mxu0 %v11406_v23 }
 0x1ee   : >> { %16565 = vst [vmem:[#allocation29_spill] sm:$0xff] %v12983_v26  ;;  %v12994_v62 = vpop.f32.mrf.mxu1  ;;  %v3306_v26 = vpack.c.bf16 %v3214_v6, %v3215_v7 }
 0x1ef   : >> { %16567 = vst [vmem:[#allocation35_spill] sm:$0xff] %v12994_v62  ;;  %v10130_v10 = vpop.f32.mrf.mxu0 }
 0x1f0   : >> { %v13001_v51 = vadd.f32 %v10130_v10, %v12845_v2  ;;  %v13003_v52 = vpop.f32.mrf.mxu1  ;;  %10408 = vmatprep.mubr.bf16.mxu0 %v3306_v26 }
 0x1f1   : >> { %v1800_v1 = vpop.f32.mrf.mxu0 }
 0x1f2   : >> { %v13006_v55 = vadd.f32 %v1800_v1, %v12848_v44  ;;  %v13008_v62 = vpop.f32.mrf.mxu1 }
 0x1f3   : >> { %v10131_v42 = vpop.f32.mrf.mxu0 }
 0x1f4   : >> { %v13011_v48 = vadd.f32 %v10131_v42, %v12853_v37  ;;  %v13013_v30 = vpop.f32.mrf.mxu1 }
 0x1f5   : >> { %16568 = vst [vmem:[#allocation38_spill] sm:$0xff] %v13013_v30  ;;  %v13015_v2 = vpop.f32.mrf.mxu0  ;;  %v13035_v30 = vld [vmem:[%s11941_s10 + $0x2f8] sm:$0xff]  }
 0x1f6   : >> { %v13017_v46 = vpop.f32.mrf.mxu1  ;;  %16574 = vst [vmem:[#allocation24_spill] sm:$0xff] %v13035_v30  ;;  %10440 = vmatprep.subr.bf16.mxu1 %v13035_v30 }
 0x1f7   : >> { %16569 = vst [vmem:[#allocation39_spill] sm:$0xff] %v13017_v46  ;;  %v10134_v23 = vpop.f32.mrf.mxu0 }
 0x1f8   : >> { %v13020_v6 = vadd.f32 %v10134_v23, %v12862_v47  ;;  %v13022_v44 = vpop.f32.mrf.mxu1 }
 0x1f9   : >> { %v1816_v1 = vpop.f32.mrf.mxu0 }
 0x1fa   : >> { %v13025_v10 = vadd.f32 %v1816_v1, %v12865_v28  ;;  %v13027_v26 = vpop.f32.mrf.mxu1 }
 0x1fb   : >> { %16571 = vst [vmem:[#allocation19_spill] sm:$0xff] %v13027_v26  ;;  %v10135_v37 = vpop.f32.mrf.mxu0 }
 0x1fc   : >> { %16570 = vst [vmem:[#allocation17_spill] sm:$0xff] %v13025_v10  ;;  %v13030_v7 = vadd.f32 %v10135_v37, %v12870_v14  ;;  %v13032_v42 = vpop.f32.mrf.mxu1 }
 0x1fd   : >> { %16573 = vst [vmem:[#allocation22_spill] sm:$0xff] %v13032_v42  ;;  %v13037_v46 = vpop.f32.mrf.mxu0 }
 0x1fe   : >> { %16572 = vst [vmem:[#allocation20_spill] sm:$0xff] %v13030_v7  ;;  %v13039_v47 = vpop.f32.mrf.mxu1 }
 0x1ff   : >> { %16575 = vst [vmem:[#allocation26_spill] sm:$0xff] %v13039_v47  ;;  %v10138_v23 = vpop.f32.mrf.mxu0 }
 0x200   : >> { %v13043_v28 = vadd.f32 %v10138_v23, %v12879_v0  ;;  %v13045_v1 = vpop.f32.mrf.mxu1 }
 0x201   : >> { %16576 = vst [vmem:[#allocation28_spill] sm:$0xff] %v13045_v1  ;;  %v1832_v26 = vpop.f32.mrf.mxu0 }
 0x202   : >> { %v13048_v14 = vadd.f32 %v1832_v26, %v12882_v3  ;;  %v13050_v37 = vpop.f32.mrf.mxu1 }
 0x203   : >> { %16577 = vst [vmem:[#allocation30_spill] sm:$0xff] %v13050_v37  ;;  %v10139_v42 = vpop.f32.mrf.mxu0 }
 0x204   : >> { %v13053_v7 = vadd.f32 %v10139_v42, %v12886_v38  ;;  %v13055_v10 = vpop.f32.mrf.mxu1 }
 0x205   : >> { %16579 = vst [vmem:[#allocation36_spill] sm:$0xff] %v13055_v10  ;;  %v13057_v47 = vpop.f32.mrf.mxu0 }
 0x206   : >> { %16578 = vst [vmem:[#allocation32_spill] sm:$0xff] %v13053_v7  ;;  %v13059_v30 = vpop.f32.mrf.mxu1 }
 0x207   : >> { %16580 = vst [vmem:[#allocation40_spill] sm:$0xff] %v13059_v30  ;;  %v10142_v0 = vpop.f32.mrf.mxu0 }
 0x208   : >> { %v13062_v23 = vadd.f32 %v10142_v0, %v12895_v58  ;;  %v13064_v1 = vpop.f32.mrf.mxu1 }
 0x209   : >> { %16581 = vst [vmem:[#allocation41_spill] sm:$0xff] %v13064_v1  ;;  %v1848_v3 = vpop.f32.mrf.mxu0 }
 0x20a   : >> { %v13067_v26 = vadd.f32 %v1848_v3, %v12898_v49  ;;  %v13069_v37 = vpop.f32.mrf.mxu1 }
 0x20b   : >> { %16582 = vst [vmem:[#allocation42_spill] sm:$0xff] %v13069_v37  ;;  %v10143_v38 = vpop.f32.mrf.mxu0 }
 0x20c   : >> { %v13072_v42 = vadd.f32 %v10143_v38, %v12902_v53  ;;  %v13074_v10 = vpop.f32.mrf.mxu1  ;;  %v13091_v53 = vld [vmem:[%s11941_s10 + $0x338] sm:$0xff]  }
 0x20d   : >> { %16584 = vst [vmem:[#allocation44_spill] sm:$0xff] %v13074_v10  ;;  %v13076_v30 = vpop.f32.mrf.mxu0  ;;  %16588 = vst [vmem:[#allocation48_spill] sm:$0xff] %v13091_v53  ;;  %10488 = vmatprep.subr.bf16.mxu0 %v13091_v53 }
 0x20e   : >> { %16583 = vst [vmem:[#allocation43_spill] sm:$0xff] %v13072_v42  ;;  %v13078_v7 = vpop.f32.mrf.mxu1 }
 0x20f   : >> { %v10146_v58 = vpop.f32.mrf.mxu0 }
 0x210   : >> { %v13081_v0 = vadd.f32 %v10146_v58, %v12912_v31  ;;  %v13083_v1 = vpop.f32.mrf.mxu1 }
 0x211   : >> { %16585 = vst [vmem:[#allocation45_spill] sm:$0xff] %v13083_v1  ;;  %v1864_v49 = vpop.f32.mrf.mxu0 }
 0x212   : >> { %v13086_v3 = vadd.f32 %v1864_v49, %v12915_v57  ;;  %v13088_v37 = vpop.f32.mrf.mxu1 }
 0x213   : >> { %16587 = vst [vmem:[#allocation47_spill] sm:$0xff] %v13088_v37  ;;  %v10147_v38 = vpop.f32.mrf.mxu0 }
 0x214   : >> { %16586 = vst [vmem:[#allocation46_spill] sm:$0xff] %v13086_v3  ;;  %v13094_v10 = vadd.f32 %v10147_v38, %v12920_v34  ;;  %v13096_v42 = vpop.f32.mrf.mxu1 }
 0x215   : >> { %16590 = vst [vmem:[#allocation50_spill] sm:$0xff] %v13096_v42  ;;  %v13099_v31 = vpop.f32.mrf.mxu0 }
 0x216   : >> { %16589 = vst [vmem:[#allocation49_spill] sm:$0xff] %v13094_v10  ;;  %v13101_v58 = vpop.f32.mrf.mxu1 }
 0x217   : >> { %16591 = vst [vmem:[#allocation51_spill] sm:$0xff] %v13101_v58  ;;  %v10150_v1 = vpop.f32.mrf.mxu0 }
 0x218   : >> { %v13104_v57 = vadd.f32 %v10150_v1, %v12931_v4  ;;  %v13106_v49 = vpop.f32.mrf.mxu1 }
 0x219   : >> { %16592 = vst [vmem:[#allocation52_spill] sm:$0xff] %v13106_v49  ;;  %v1880_v37 = vpop.f32.mrf.mxu0 }
 0x21a   : >> { %v13109_v3 = vadd.f32 %v1880_v37, %v12934_v36  ;;  %v13111_v34 = vpop.f32.mrf.mxu1 }
 0x21b   : >> { %16594 = vst [vmem:[#allocation54_spill] sm:$0xff] %v13111_v34  ;;  %v10151_v38 = vpop.f32.mrf.mxu0 }
 0x21c   : >> { %16593 = vst [vmem:[#allocation53_spill] sm:$0xff] %v13109_v3  ;;  %v13114_v42 = vadd.f32 %v10151_v38, %v12939_v39  ;;  %v13116_v53 = vpop.f32.mrf.mxu1 }
 0x21d   : >> { %16596 = vst [vmem:[#allocation56_spill] sm:$0xff] %v13116_v53  ;;  %v13118_v10 = vpop.f32.mrf.mxu0  ;;  %v3216_v53 = vrot.slane %v12978_v33, 1 }
 0x21e   : >> { %16595 = vst [vmem:[#allocation55_spill] sm:$0xff] %v13114_v42  ;;  %v13120_v58 = vpop.f32.mrf.mxu1 }
 0x21f   : >> { %16597 = vst [vmem:[#allocation57_spill] sm:$0xff] %v13120_v58  ;;  %v13122_v4 = vpop.f32.mrf.mxu0  ;;  %v3217_v58 = vrot.slane %v12980_v24, 1 }
 0x220   : >> { %v13124_v1 = vpop.f32.mrf.mxu1 }
 0x221   : >> { %16598 = vst [vmem:[#allocation58_spill] sm:$0xff] %v13124_v1  ;;  %v13126_v49 = vpop.f32.mrf.mxu0 }
 0x222   : >> { %16599 = vst [vmem:[#allocation59_spill] sm:$0xff] %v13126_v49  ;;  %v13128_v36 = vpop.f32.mrf.mxu1  ;;  %v13146_v49 = vld [vmem:[#allocation2 + $0x60] sm:$0xff] }
 0x223   : >> { %16600 = vst [vmem:[#allocation60_spill] sm:$0xff] %v13128_v36  ;;  %v13130_v37 = vpop.f32.mrf.mxu0  ;;  %16608 = vst [vmem:[#allocation68_spill] sm:$0xff] %v13146_v49 }
 0x224   : >> { %16601 = vst [vmem:[#allocation61_spill] sm:$0xff] %v13130_v37  ;;  %v13132_v34 = vpop.f32.mrf.mxu1 }
 0x225   : >> { %16602 = vst [vmem:[#allocation62_spill] sm:$0xff] %v13132_v34  ;;  %v13134_v39 = vpop.f32.mrf.mxu0  ;;  %v3218_v34 = vrot.slane %v13146_v49, 1  ;;  %v16659_v49 = vld [vmem:[#allocation36_spill] sm:$0xff] }
 0x226   : >> { %16603 = vst [vmem:[#allocation63_spill] sm:$0xff] %v13134_v39  ;;  %v13136_v38 = vpop.f32.mrf.mxu1  ;;  %v13153_v39 = vsel %vm600_vm1, %v3216_v53, %v3217_v58 }
 0x227   : >> { %16604 = vst [vmem:[#allocation64_spill] sm:$0xff] %v13136_v38  ;;  %v13140_v42 = vpop.f32.mrf.mxu0  ;;  %16610 = vst [vmem:[#allocation70_spill] sm:$0xff] %v13153_v39  ;;  %v13161_v24 = vsel %vm600_vm1, %v3217_v58, %v3218_v34 }
 0x228   : >> { %16605 = vst [vmem:[#allocation65_spill] sm:$0xff] %v13140_v42  ;;  %v13142_v3 = vpop.f32.mrf.mxu1  ;;  %16613 = vst [vmem:[#allocation73_spill] sm:$0xff] %v13161_v24 }
 0x229   : >> { %16606 = vst [vmem:[#allocation66_spill] sm:$0xff] %v13142_v3  ;;  %v13144_v1 = vpop.f32.mrf.mxu0 }
 0x22a   : >> { %16607 = vst [vmem:[#allocation67_spill] sm:$0xff] %v13144_v1  ;;  %v13148_v36 = vpop.f32.mrf.mxu1 }
 0x22b   : >> { %16609 = vst [vmem:[#allocation69_spill] sm:$0xff] %v13148_v36  ;;  %v13155_v38 = vpop.f32.mrf.mxu0 }
 0x22c   : >> { %16611 = vst [vmem:[#allocation71_spill] sm:$0xff] %v13155_v38  ;;  %v13157_v33 = vpop.f32.mrf.mxu1 }
 0x22d   : >> { %16612 = vst [vmem:[#allocation72_spill] sm:$0xff] %v13157_v33  ;;  %v13163_v3 = vpop.f32.mrf.mxu0 }
 0x22e   : >> { %16614 = vst [vmem:[#allocation74_spill] sm:$0xff] %v13163_v3  ;;  %v13167_v36 = vpop.f32.mrf.mxu1 }
 0x22f   : >> { %16615 = vst [vmem:[#allocation75_spill] sm:$0xff] %v13167_v36  ;;  %v13169_v42 = vpop.f32.mrf.mxu0 }
 0x230   : >> { %v13171_v37 = vpop.f32.mrf.mxu1 }
 0x231   : >> { %16616 = vst [vmem:[#allocation76_spill] sm:$0xff] %v13171_v37  ;;  %v13173_v53 = vpop.f32.mrf.mxu0 }
 0x232   : >> { %v13175_v38 = vpop.f32.mrf.mxu1 }
 0x233   : >> { %16617 = vst [vmem:[#allocation77_spill] sm:$0xff] %v13175_v38  ;;  %v13177_v33 = vpop.f32.mrf.mxu0  ;;  %v1088_v38 = vadd.f32 %v12759_v56, %v12757_v50 }
 0x234   : >> { %v13179_v41 = vpop.f32.mrf.mxu1 }
 0x235   : >> { %16618 = vst [vmem:[#allocation78_spill] sm:$0xff] %v13179_v41  ;;  %v13181_v58 = vpop.f32.mrf.mxu0  ;;  %v1104_v41 = vadd.f32 %v12776_v25, %v12774_v13 }
 0x236   : >> { %16619 = vst [vmem:[#allocation79_spill] sm:$0xff] %v13181_v58  ;;  %v13183_v34 = vpop.f32.mrf.mxu1 }
 0x237   : >> { %16620 = vst [vmem:[#allocation80_spill] sm:$0xff] %v13183_v34  ;;  %v13185_v3 = vpop.f32.mrf.mxu0  ;;  %v1120_v34 = vadd.f32 %v12796_v60, %v12794_v22  ;;  %v1396_v50 = vadd.f32 %v12900_v9, %v1104_v41  ;;  %v1640_v60 = vadd.f32 %v12839_v29, %v12835_v18  ;;  %v13228_v41 = vld [vmem:[#allocation2 + $0xc8] sm:$0xff] }
 0x238   : >> { %16621 = vst [vmem:[#allocation81_spill] sm:$0xff] %v13185_v3  ;;  %v13187_v1 = vpop.f32.mrf.mxu1 }
 0x239   : >> { %16622 = vst [vmem:[#allocation82_spill] sm:$0xff] %v13187_v1  ;;  %v13189_v39 = vpop.f32.mrf.mxu0  ;;  %v16627_v1 = vld [vmem:[#allocation18_spill] sm:$0xff]  ;;  %v1400_v13 = vadd.f32 %v12918_v32, %v1120_v34  ;;  %v1656_v32 = vadd.f32 %v12904_v5, %v1396_v50  ;;  %v1900_v18 = vadd.f32 %v12990_v43, %v1640_v60  ;;  %v16631_v5 = vld [vmem:[#allocation21_spill] sm:$0xff]  ;;  %v16639_v60 = vld [vmem:[#allocation31_spill] sm:$0xff] }
 0x23a   : >> { %16623 = vst [vmem:[#allocation83_spill] sm:$0xff] %v13189_v39  ;;  %v13191_v24 = vpop.f32.mrf.mxu1  ;;  %v1136_v39 = vadd.f32 %v16627_v1, %v12805_v12  ;;  %16628 = vst [vmem:[#allocation18_spill] sm:$0xff] %v13228_v41  ;;  %v16658_v41 = vld [vmem:[#allocation32_spill] sm:$0xff] }
 0x23b   : >> { %16624 = vst [vmem:[#allocation84_spill] sm:$0xff] %v13191_v24  ;;  %v13193_v37 = vpop.f32.mrf.mxu0  ;;  %v1636_v24 = vadd.f32 %v12823_v61, %v12819_v63  ;;  %v1644_v63 = vadd.f32 %v12855_v11, %v12851_v45  ;;  %v13243_v45 = vadd.f32 %v12947_v21, %v12945_v59  ;;  %v13247_v11 = vadd.f32 %v12953_v8, %v12951_v54  ;;  %v13264_v21 = vld [vmem:[#allocation2 + $0x1f8] sm:$0xff]  ;;  %v16635_v8 = vld [vmem:[#allocation25_spill] sm:$0xff] }
 0x23c   : >> { %v13195_v36 = vpop.f32.mrf.mxu1  ;;  %v1404_v25 = vadd.f32 %v12937_v20, %v1136_v39  ;;  %v1660_v20 = vadd.f32 %v12922_v35, %v1400_v13  ;;  %v16632_v35 = vld [vmem:[#allocation34_spill] sm:$0xff]  ;;  %v16634_v54 = vld [vmem:[#allocation23_spill] sm:$0xff] }
 0x23d   : >> { %16625 = vst [vmem:[#allocation85_spill] sm:$0xff] %v13195_v36  ;;  %v13201_v58 = vpop.f32.mrf.mxu0  ;;  %v1392_v36 = vadd.f32 %v12884_v27, %v1088_v38  ;;  %v1896_v22 = vadd.f32 %v12961_v17, %v1636_v24  ;;  %v1648_v27 = vadd.f32 %v12872_v19, %v12868_v40  ;;  %v13251_v19 = vld [vmem:[#allocation2 + $0x170] sm:$0xff]  ;;  %v13268_v39 = vadd.f32 %v16635_v8, %v16634_v54  ;;  %v16636_v38 = vld [vmem:[#allocation37_spill] sm:$0xff] }
 0x23e   : >> { %16626 = vst [vmem:[#allocation86_spill] sm:$0xff] %v13201_v58  ;;  %v13207_v3 = vpop.f32.mrf.mxu1  ;;  %v13239_v17 = vadd.f32 %v12941_v15, %v1404_v25  ;;  %16629 = vst [vmem:[#allocation87_spill] sm:$0xff] %v13251_v19  ;;  %v1904_v15 = vadd.f32 %v13015_v2, %v1644_v63  ;;  %v16637_v24 = vld [vmem:[#allocation27_spill] sm:$0xff]  ;;  %v16638_v25 = vld [vmem:[#allocation29_spill] sm:$0xff] }
 0x23f   : >> { %v13213_v56 = vpop.f32.mrf.mxu0  ;;  %v1652_v9 = vadd.f32 %v12888_v16, %v1392_v36  ;;  %v16630_v16 = vld [vmem:[#allocation33_spill] sm:$0xff]  ;;  %v13258_v1 = vadd.f32 %v16632_v35, %v1896_v22  ;;  %v13272_v34 = vadd.f32 %v16637_v24, %v16636_v38  ;;  %v13280_v22 = vadd.f32 %v16639_v60, %v16638_v25  ;;  %v16640_v63 = vld [vmem:[#allocation35_spill] sm:$0xff]  ;;  %v16644_v60 = vld [vmem:[#allocation38_spill] sm:$0xff] }
 0x240   : >> { %v13217_v58 = vpop.f32.mrf.mxu1  ;;  %v13255_v43 = vadd.f32 %v16631_v5, %v16630_v16  ;;  %16633 = vst [vmem:[#allocation33_spill] sm:$0xff] %v13264_v21  ;;  %v13283_v16 = vadd.f32 %v16640_v63, %v1900_v18  ;;  %v1908_v5 = vadd.f32 %v13037_v46, %v1648_v27  ;;  %v13288_v54 = vld [vmem:[#allocation2 + $0x340] sm:$0xff]  ;;  %v13293_v38 = vadd.f32 %v13003_v52, %v13001_v51  ;;  %v13303_v27 = vld [vmem:[#allocation2 + $0x1c8] sm:$0xff]  ;;  %v16645_v2 = vld [vmem:[#allocation39_spill] sm:$0xff] }
 0x241   : >> { %v13222_v12 = vpop.f32.mrf.mxu0  ;;  %16641 = vst [vmem:[#allocation21_spill] sm:$0xff] %v13288_v54  ;;  %v13297_v24 = vadd.f32 %v13008_v62, %v13006_v55  ;;  %16643 = vst [vmem:[#allocation23_spill] sm:$0xff] %v13303_v27  ;;  %v13307_v63 = vadd.f32 %v16644_v60, %v13011_v48  ;;  %v13310_v8 = vadd.f32 %v16645_v2, %v1904_v15  ;;  %v13316_v55 = vld [vmem:[#allocation2 + $0x1c0] sm:$0xff]  ;;  %v16648_v59 = vld [vmem:[#allocation19_spill] sm:$0xff] }
 0x242   : >> { %v13226_v61 = vpop.f32.mrf.mxu1  ;;  %v1912_v52 = vadd.f32 %v13057_v47, %v1652_v9  ;;  %16646 = vst [vmem:[#allocation25_spill] sm:$0xff] %v13316_v55  ;;  %v13320_v46 = vadd.f32 %v13022_v44, %v13020_v6  ;;  %v16647_v18 = vld [vmem:[#allocation17_spill] sm:$0xff]  ;;  %v16650_v9 = vld [vmem:[#allocation20_spill] sm:$0xff]  ;;  %v16651_v2 = vld [vmem:[#allocation22_spill] sm:$0xff] }
 0x243   : >> { %v13235_v29 = vpop.f32.mrf.mxu0  ;;  %v13324_v13 = vadd.f32 %v16648_v59, %v16647_v18  ;;  %v13332_v60 = vadd.f32 %v16651_v2, %v16650_v9  ;;  %v16652_v62 = vld [vmem:[#allocation26_spill] sm:$0xff]  ;;  %v13342_v59 = vld [vmem:[#allocation2 + $0xc0] sm:$0xff]  ;;  %v1916_v9 = vadd.f32 %v13076_v30, %v1656_v32  ;;  %v13368_v32 = vld [vmem:[#allocation2 + $0x278] sm:$0xff] }
 0x244   : >> { %v13249_v40 = vpop.f32.mrf.mxu1  ;;  %v13335_v21 = vadd.f32 %v16652_v62, %v1908_v5  ;;  %v13340_v44 = vld [vmem:[#allocation2 + $0x48] sm:$0xff]  ;;  %16654 = vst [vmem:[#allocation29_spill] sm:$0xff] %v13342_v59  ;;  %v16655_v15 = vld [vmem:[#allocation28_spill] sm:$0xff]  ;;  %16661 = vst [vmem:[#allocation35_spill] sm:$0xff] %v13368_v32 }
 0x245   : >> { %v13261_v36 = vpop.f32.mrf.mxu0  ;;  %16653 = vst [vmem:[#allocation27_spill] sm:$0xff] %v13340_v44  ;;  %v13347_v47 = vadd.f32 %v16655_v15, %v13043_v28  ;;  %v16657_v6 = vld [vmem:[#allocation30_spill] sm:$0xff]  ;;  %v16660_v18 = vld [vmem:[#allocation40_spill] sm:$0xff]  ;;  %v16662_v15 = vld [vmem:[#allocation41_spill] sm:$0xff] }
 0x246   : >> { %v13274_v50 = vpop.f32.mrf.mxu1  ;;  %v13356_v54 = vadd.f32 %v16657_v6, %v13048_v14  ;;  %v13363_v27 = vadd.f32 %v16660_v18, %v1912_v52  ;;  %v13372_v5 = vadd.f32 %v16662_v15, %v13062_v23  ;;  %v1920_v14 = vadd.f32 %v13099_v31, %v1660_v20  ;;  %v13377_v62 = vld [vmem:[#allocation2 + $0xb8] sm:$0xff]  ;;  %v16665_v52 = vld [vmem:[#allocation42_spill] sm:$0xff]  ;;  %v16674_v59 = vld [vmem:[#allocation49_spill] sm:$0xff] }
 0x247   : >> { %v13286_v35 = vpop.f32.mrf.mxu0  ;;  %16664 = vst [vmem:[#allocation39_spill] sm:$0xff] %v13377_v62  ;;  %v13383_v18 = vadd.f32 %v16665_v52, %v13067_v26  ;;  %v16666_v30 = vld [vmem:[#allocation43_spill] sm:$0xff]  ;;  %v16667_v55 = vld [vmem:[#allocation44_spill] sm:$0xff]  ;;  %v16670_v26 = vld [vmem:[#allocation45_spill] sm:$0xff] }
 0x248   : >> { %v13299_v25 = vpop.f32.mrf.mxu1  ;;  %v13393_v15 = vld [vmem:[#allocation2 + $0xd8] sm:$0xff]  ;;  %v13402_v52 = vadd.f32 %v16670_v26, %v13081_v0  ;;  %v16672_v31 = vld [vmem:[#allocation46_spill] sm:$0xff] }
 0x249   : >> { %16642 = vst [vmem:[#allocation34_spill] sm:$0xff] %v13299_v25  ;;  %v13313_v51 = vpop.f32.mrf.mxu0  ;;  %v16673_v44 = vld [vmem:[#allocation47_spill] sm:$0xff] }
 0x24a   : >> { %v13326_v48 = vpop.f32.mrf.mxu1  ;;  %v13410_v20 = vadd.f32 %v16673_v44, %v16672_v31  ;;  %v16676_v26 = vld [vmem:[#allocation51_spill] sm:$0xff]  ;;  %v2417_v44 = vadd.f32 %v13122_v4, %v13243_v45  ;;  %v16685_v45 = vld [vmem:[#allocation54_spill] sm:$0xff] }
 0x24b   : >> { %16649 = vst [vmem:[#allocation37_spill] sm:$0xff] %v13326_v48  ;;  %v13337_v19 = vpop.f32.mrf.mxu0  ;;  %v13360_v48 = vadd.f32 %v16659_v49, %v16658_v41  ;;  %v13398_v41 = vadd.f32 %v13078_v7, %v1916_v9  ;;  %v16681_v0 = vld [vmem:[#allocation59_spill] sm:$0xff] }
 0x24c   : >> { %v13350_v2 = vpop.f32.mrf.mxu1  ;;  %v16693_v4 = vld [vmem:[#allocation71_spill] sm:$0xff] }
 0x24d   : >> { %16656 = vst [vmem:[#allocation31_spill] sm:$0xff] %v13350_v2  ;;  %v13365_v28 = vpop.f32.mrf.mxu0  ;;  %v13387_v2 = vadd.f32 %v16667_v55, %v16666_v30  ;;  %v1924_v55 = vadd.f32 %v13118_v10, %v13239_v17  ;;  %v13429_v30 = vld [vmem:[#allocation2 + $0x1b0] sm:$0xff]  ;;  %v16684_v17 = vld [vmem:[#allocation53_spill] sm:$0xff] }
 0x24e   : >> { %v13375_v6 = vpop.f32.mrf.mxu1  ;;  %v13445_v62 = vadd.f32 %v16685_v45, %v16684_v17  ;;  %v16694_v17 = vld [vmem:[#allocation74_spill] sm:$0xff] }
 0x24f   : >> { %16663 = vst [vmem:[#allocation38_spill] sm:$0xff] %v13375_v6  ;;  %v13389_v23 = vpop.f32.mrf.mxu0  ;;  %v13395_v6 = vld [vmem:[#allocation2 + $0x80] sm:$0xff]  ;;  %v2420_v45 = vadd.f32 %v16694_v17, %v13283_v16 }
 0x250   : >> { %16668 = vst [vmem:[#allocation17_spill] sm:$0xff] %v13389_v23  ;;  %16669 = vst [vmem:[#allocation19_spill] sm:$0xff] %v13395_v6  ;;  %v13404_v49 = vpop.f32.mrf.mxu1  ;;  %v16675_v23 = vld [vmem:[#allocation50_spill] sm:$0xff]  ;;  %v16698_v16 = vld [vmem:[#allocation60_spill] sm:$0xff] }
 0x251   : >> { %16671 = vst [vmem:[#allocation20_spill] sm:$0xff] %v13404_v49  ;;  %v13414_v25 = vadd.f32 %v16675_v23, %v16674_v59  ;;  %v13416_v7 = vpop.f32.mrf.mxu0  ;;  %v13421_v49 = vadd.f32 %v16676_v26, %v1920_v14  ;;  %v16679_v23 = vld [vmem:[#allocation52_spill] sm:$0xff]  ;;  %v2415_v14 = vadd.f32 %v16681_v0, %v13247_v11  ;;  %v16682_v26 = vld [vmem:[#allocation61_spill] sm:$0xff]  ;;  %16686 = vst [vmem:[#allocation32_spill] sm:$0xff] %v13445_v62 }
 0x252   : >> { %v13427_v31 = vpop.f32.mrf.mxu1  ;;  %v13434_v9 = vadd.f32 %v16679_v23, %v13104_v57  ;;  %v2418_v32 = vadd.f32 %v16682_v26, %v13255_v43  ;;  %v16688_v59 = vld [vmem:[#allocation56_spill] sm:$0xff]  ;;  %v16689_v57 = vld [vmem:[#allocation63_spill] sm:$0xff]  ;;  %v16690_v11 = vld [vmem:[#allocation65_spill] sm:$0xff] }
 0x253   : >> { %16677 = vst [vmem:[#allocation22_spill] sm:$0xff] %v13421_v49  ;;  %16678 = vst [vmem:[#allocation26_spill] sm:$0xff] %v13427_v31  ;;  %v13440_v10 = vpop.f32.mrf.mxu0  ;;  %v16687_v31 = vld [vmem:[#allocation55_spill] sm:$0xff]  ;;  %v2416_v23 = vadd.f32 %v16689_v57, %v13258_v1  ;;  %v2421_v0 = vadd.f32 %v16690_v11, %v13268_v39  ;;  %v16696_v57 = vld [vmem:[#allocation58_spill] sm:$0xff]  ;;  %v2425_v11 = vadd.f32 %v13169_v42, %v13293_v38 }
 0x254   : >> { %16680 = vst [vmem:[#allocation28_spill] sm:$0xff] %v13434_v9  ;;  %16683 = vst [vmem:[#allocation30_spill] sm:$0xff] %v13440_v10  ;;  %v13449_v49 = vadd.f32 %v16688_v59, %v16687_v31  ;;  %v13455_v9 = vpop.f32.mrf.mxu1  ;;  %v16692_v43 = vld [vmem:[#allocation67_spill] sm:$0xff]  ;;  %v2422_v10 = vadd.f32 %v16693_v4, %v13280_v22  ;;  %v16695_v59 = vld [vmem:[#allocation57_spill] sm:$0xff]  ;;  %v2677_v39 = vadd.f32 %v16696_v57, %v2417_v44 }
 0x255   : >> { %16691 = vst [vmem:[#allocation36_spill] sm:$0xff] %v13455_v9  ;;  %v2419_v26 = vadd.f32 %v16692_v43, %v13272_v34  ;;  %v13463_v62 = vpop.f32.mrf.mxu0  ;;  %v13467_v1 = vadd.f32 %v16695_v59, %v1924_v55  ;;  %v13474_v34 = vld [vmem:[#allocation2 + $0x150] sm:$0xff]  ;;  %v2675_v4 = vadd.f32 %v16698_v16, %v2415_v14  ;;  %v2423_v55 = vadd.f32 %v13173_v53, %v13297_v24  ;;  %v16700_v57 = vld [vmem:[#allocation64_spill] sm:$0xff]  ;;  %v16702_v16 = vld [vmem:[#allocation69_spill] sm:$0xff] }
 0x256   : >> { %v13472_v9 = vpop.f32.mrf.mxu1  ;;  %16697 = vst [vmem:[#allocation40_spill] sm:$0xff] %v13474_v34  ;;  %v16699_v43 = vld [vmem:[#allocation62_spill] sm:$0xff]  ;;  %v13485_v42 = vadd.f32 %v16700_v57, %v2416_v23  ;;  %v2426_v22 = vadd.f32 %v13177_v33, %v13307_v63  ;;  %v16704_v53 = vld [vmem:[#allocation75_spill] sm:$0xff]  ;;  %v16707_v63 = vld [vmem:[#allocation81_spill] sm:$0xff]  ;;  %v2430_v14 = vadd.f32 %v13193_v37, %v13332_v60 }
 0x257   : >> { %v13479_v17 = vadd.f32 %v16699_v43, %v2418_v32  ;;  %v10246_v59 = vpop.f32.mrf.mxu0  ;;  %v16701_v38 = vld [vmem:[#allocation66_spill] sm:$0xff]  ;;  %v13494_v32 = vadd.f32 %v16702_v16, %v2419_v26  ;;  %v16703_v43 = vld [vmem:[#allocation72_spill] sm:$0xff]  ;;  %v13500_v24 = vadd.f32 %v16704_v53, %v2420_v45  ;;  %v16705_v23 = vld [vmem:[#allocation79_spill] sm:$0xff]  ;;  %v2429_v26 = vadd.f32 %v16707_v63, %v13320_v46 }
 0x258   : >> { %v13488_v31 = vadd.f32 %v16701_v38, %v2421_v0  ;;  %v13497_v6 = vadd.f32 %v16703_v43, %v2422_v10  ;;  %v2424_v57 = vadd.f32 %v16705_v23, %v13310_v8  ;;  %v13505_v0 = vld [vmem:[#allocation2 + $0x2f0] sm:$0xff]  ;;  %v16706_v38 = vld [vmem:[#allocation76_spill] sm:$0xff]  ;;  %v13514_v43 = vpop.f32.mrf.mxu1  ;;  %v16709_v8 = vld [vmem:[#allocation77_spill] sm:$0xff]  ;;  %v2433_v46 = vadd.f32 %v13213_v56, %v13347_v47 }
 0x259   : >> { %v2400_v44 = vpop.f32.mrf.mxu0  ;;  %v13508_v33 = vadd.f32 %v16706_v38, %v2425_v11  ;;  %v16708_v16 = vld [vmem:[#allocation83_spill] sm:$0xff]  ;;  %v13520_v23 = vadd.f32 %v16709_v8, %v2423_v55  ;;  %v16710_v11 = vld [vmem:[#allocation86_spill] sm:$0xff]  ;;  %v2431_v45 = vadd.f32 %v13222_v12, %v13356_v54  ;;  %v2434_v55 = vadd.f32 %v13235_v29, %v13360_v48  ;;  %v16712_v34 = vld [vmem:[#allocation80_spill] sm:$0xff] }
 0x25a   : >> { %v2427_v10 = vadd.f32 %v16708_v16, %v13324_v13  ;;  %v13517_v53 = vld [vmem:[#allocation2 + $0x210] sm:$0xff]  ;;  %v2428_v38 = vadd.f32 %v16710_v11, %v13335_v21  ;;  %v13537_v37 = vadd.f32 %v16712_v34, %v2424_v57  ;;  %v2432_v21 = vadd.f32 %v13261_v36, %v13363_v27  ;;  %v16714_v54 = vld [vmem:[#allocation84_spill] sm:$0xff]  ;;  %v2660_v34 = vpop.f32.mrf.mxu1  ;;  %v16715_v11 = vld [vmem:[#allocation85_spill] sm:$0xff] }
 0x25b   : >> { %v10247_v63 = vpop.f32.mrf.mxu0  ;;  %v16711_v13 = vld [vmem:[#allocation78_spill] sm:$0xff]  ;;  %v2437_v56 = vadd.f32 %v13286_v35, %v13372_v5  ;;  %v2435_v48 = vadd.f32 %v13313_v51, %v13383_v18  ;;  %v13554_v36 = vadd.f32 %v16715_v11, %v2430_v14  ;;  %v13560_v27 = vadd.f32 %v13217_v58, %v2433_v46  ;;  %v13569_v51 = vld [vmem:[%s13566_s16] ss:$0 sm:$0xff] }
 0x25c   : >> { %v13529_v16 = vadd.f32 %v16711_v13, %v2426_v22  ;;  %v16713_v22 = vld [vmem:[#allocation82_spill] sm:$0xff]  ;;  %v13548_v29 = vadd.f32 %v16714_v54, %v2427_v10  ;;  %v13557_v35 = vadd.f32 %v13207_v3, %v2428_v38  ;;  %v2438_v5 = vadd.f32 %v13337_v19, %v13387_v2  ;;  %v16717_v38 = vld [vmem:[#allocation17_spill] sm:$0xff]  ;;  %v16722_v54 = vld [vmem:[#allocation28_spill] sm:$0xff] }
 0x25d   : >> { %v2403_v47 = vpop.f32.mrf.mxu0  ;;  %v13545_v12 = vadd.f32 %v16713_v22, %v2429_v26  ;;  %v13572_v18 = vadd.f32 %v13226_v61, %v2431_v45  ;;  %v13575_v14 = vadd.f32 %v13249_v40, %v2434_v55  ;;  %v2436_v3 = vadd.f32 %v13365_v28, %v13398_v41  ;;  %v16716_v19 = vld [vmem:[#allocation34_spill] sm:$0xff]  ;;  %v16718_v13 = vld [vmem:[#allocation37_spill] sm:$0xff]  ;;  %v10295_v41 = vpop.f32.mrf.mxu1 }
 0x25e   : >> { %v13580_v10 = vadd.f32 %v13274_v50, %v2432_v21  ;;  %v13583_v2 = vadd.f32 %v16716_v19, %v2437_v56  ;;  %v2441_v46 = vadd.f32 %v16717_v38, %v13402_v52  ;;  %v2439_v61 = vadd.f32 %v13416_v7, %v13410_v20  ;;  %v16719_v55 = vld [vmem:[#allocation30_spill] sm:$0xff]  ;;  %v16720_v21 = vld [vmem:[#allocation31_spill] sm:$0xff]  ;;  %v16723_v20 = vld [vmem:[#allocation32_spill] sm:$0xff] }
 0x25f   : >> { %v10314_v26 = vpop.f32.mrf.mxu0  ;;  %v13590_v40 = vadd.f32 %v16718_v13, %v2435_v48  ;;  %v2442_v28 = vadd.f32 %v16719_v55, %v13414_v25  ;;  %v13596_v56 = vadd.f32 %v16720_v21, %v2438_v5  ;;  %v16721_v22 = vld [vmem:[#allocation22_spill] sm:$0xff]  ;;  %v2445_v11 = vadd.f32 %v10246_v59, %v16722_v54  ;;  %v16727_v55 = vld [vmem:[#allocation36_spill] sm:$0xff] }
 0x260   : >> { %v2937_v58 = vadd.f32 %v10314_v26, %v2677_v39  ;;  %v2440_v52 = vadd.f32 %v13463_v62, %v16721_v22  ;;  %v2443_v7 = vadd.f32 %v2400_v44, %v16723_v20  ;;  %v16724_v48 = vld [vmem:[#allocation38_spill] sm:$0xff]  ;;  %v2446_v62 = vadd.f32 %v10247_v63, %v13449_v49 }
 0x261   : >> { %v2808_v45 = vpop.f32.mrf.mxu0  ;;  %v13603_v19 = vadd.f32 %v16724_v48, %v2436_v3  ;;  %v2444_v59 = vadd.f32 %v2403_v47, %v13467_v1  ;;  %v13618_v3 = vadd.f32 %v16727_v55, %v2442_v28 }
 0x262   : >> { %v2977_v50 = vadd.f32 %v13569_v51, %v2937_v58  ;;  %v2935_v39 = vadd.f32 %v2808_v45, %v2675_v4  ;;  %v16725_v58 = vld [vmem:[#allocation20_spill] sm:$0xff]  ;;  %v16726_v45 = vld [vmem:[#allocation26_spill] sm:$0xff]  ;;  %v13628_v22 = vadd.f32 %v2660_v34, %v2443_v7  ;;  %v13635_v20 = vadd.f32 %v10295_v41, %v2446_v62 }
 0x263   : >> { %v10315_v26 = vpop.f32.mrf.mxu0  ;;  %v13610_v5 = vadd.f32 %v16725_v58, %v2441_v46  ;;  %v13613_v13 = vadd.f32 %v16726_v45, %v2439_v61  ;;  %v13623_v46 = vadd.f32 %v13472_v9, %v2440_v52  ;;  %v13626_v61 = vadd.f32 %v13514_v43, %v2445_v11  ;;  %v16732_v62 = vld [vmem:[#allocation18_spill] sm:$0xff] }
 0x264   : >> { %v13605_v38 = vmax.f32 %v2977_v50, 0.0  ;;  %v2975_v25 = vadd.f32 %v13569_v51, %v2935_v39  ;;  %v2938_v4 = vadd.f32 %v10315_v26, %v13479_v17  ;;  %v2663_v50 = vpop.f32.mrf.mxu1 }
 0x265   : >> { %v2811_v44 = vpop.f32.mrf.mxu0 }
 0x266   : >> { %v3007_v21 = vmax.f32 %v2975_v25, 0.0  ;;  %v2978_v39 = vadd.f32 %v13569_v51, %v2938_v4  ;;  %v2936_v17 = vadd.f32 %v2811_v44, %v13485_v42  ;;  %v3132_v1 = vrot.slane %v13605_v38, 7  ;;  %v16729_v25 = vld [vmem:[#allocation68_spill] sm:$0xff] }
 0x267   : >> { %v10318_v49 = vpop.f32.mrf.mxu0  ;;  %v13637_v42 = vadd.f32 %v2663_v50, %v2444_v59  ;;  %v3222_v43 = vrot.slane %v13605_v38, 1  ;;  %v16730_v4 = vrot.slane %v16729_v25, 7  ;;  %v16733_v59 = vrot.slane %v16732_v62, 7  ;;  %v16735_v25 = vld [vmem:[#allocation87_spill] sm:$0xff] }
 0x268   : >> { %v13631_v63 = vmax.f32 %v2978_v39, 0.0  ;;  %v2976_v47 = vadd.f32 %v13569_v51, %v2936_v17  ;;  %v2941_v28 = vadd.f32 %v10318_v49, %v13488_v31  ;;  %v3129_v54 = vrot.slane %v3007_v21, 7 }
 0x269   : >> { %v2824_v9 = vpop.f32.mrf.mxu0  ;;  %v3219_v52 = vrot.slane %v3007_v21, 1  ;;  %v3211_v44 = vsel %vm509_vm0, %v16733_v59, %v3132_v1 }
 0x26a   : >> { %v3008_v34 = vmax.f32 %v2976_v47, 0.0  ;;  %v2981_v11 = vadd.f32 %v13569_v51, %v2941_v28  ;;  %v2939_v7 = vadd.f32 %v2824_v9, %v13494_v32  ;;  %v3133_v26 = vrot.slane %v13631_v63, 7  ;;  %v11408_v9 = vld [vmem:[%s11941_s10 + $0x2f0] sm:$0xff]  }
 0x26b   : >> { %v10319_v48 = vpop.f32.mrf.mxu0  ;;  %v3223_v31 = vrot.slane %v13631_v63, 1  ;;  %v13646_v41 = vpack.c.bf16 %v13631_v63, %v13605_v38  ;;  %v3213_v45 = vsel %vm509_vm0, %v16730_v4, %v3129_v54  ;;  %v16736_v4 = vrot.slane %v16735_v25, 1 }
 0x26c   : >> { %v13656_v32 = vmax.f32 %v2981_v11, 0.0  ;;  %v2979_v55 = vadd.f32 %v13569_v51, %v2939_v7  ;;  %v2942_v50 = vadd.f32 %v10319_v48, %v13497_v6  ;;  %v3130_v39 = vrot.slane %v3008_v34, 7 }
 0x26d   : >> { %16728 = vst [vmem:[#allocation41_spill] sm:$0xff] %v13646_v41  ;;  %v2827_v17 = vpop.f32.mrf.mxu0  ;;  %v13660_v49 = vpack.c.bf16 %v3008_v34, %v3007_v21  ;;  %v3210_v47 = vsel %vm509_vm0, %v3132_v1, %v3133_v26  ;;  %v3220_v28 = vrot.slane %v3008_v34, 1  ;;  %v13671_v11 = vsel %vm600_vm1, %v3223_v31, %v16736_v4 }
 0x26e   : >> { %v13673_v7 = vmax.f32 %v2979_v55, 0.0  ;;  %v2982_v6 = vadd.f32 %v13569_v51, %v2942_v50  ;;  %v2940_v21 = vadd.f32 %v2827_v17, %v13500_v24  ;;  %v3212_v48 = vsel %vm509_vm0, %v3129_v54, %v3130_v39  ;;  %v11413_v24 = vld [vmem:[%s11941_s10 + $0x330] sm:$0xff]  }
 0x26f   : >> { %16734 = vst [vmem:[#allocation42_spill] sm:$0xff] %v13660_v49  ;;  %v10322_v1 = vpop.f32.mrf.mxu0  ;;  %10361 = vmatmul.mubr.bf16.vlgmr.msra.gmra.mxu1 %v13660_v49  ;;  %v13680_v34 = vpack.c.bf16 %v3212_v48, %v3213_v45  ;;  %v16737_v26 = vrot.slane %v16732_v62, 1  ;;  %v3303_v55 = vsel %vm600_vm1, %v3219_v52, %v3220_v28  ;;  %v13688_v50 = vpack.c.bf16 %v3210_v47, %v3211_v44  ;;  %v16738_v45 = vld [vmem:[#allocation24_spill] sm:$0xff] }
 0x270   : >> { %v13691_v17 = vmax.f32 %v2982_v6, 0.0  ;;  %v2980_v54 = vadd.f32 %v13569_v51, %v2940_v21  ;;  %v2945_v39 = vadd.f32 %v10322_v1, %v13508_v33  ;;  %10364 = vmatprep.mubr.bf16.mxu1 %v13646_v41  ;;  %10441 = vmatpush3.bf16.msra.mxu1 %v16738_v45  ;;  %v3135_v52 = vrot.slane %v13673_v7, 7  ;;  %v11409_v33 = vld [vmem:[%s11941_s10 + $0x2e8] sm:$0xff]  }
 0x271   : >> { %v3302_v59 = vsel %vm600_vm1, %v3220_v28, %v16737_v26  ;;  %v2840_v4 = vpop.f32.mrf.mxu0  ;;  %10409 = vmatmul.mubr.bf16.vlgmr.msra.gmra.mxu0 %v13680_v34  ;;  %10442 = vmatprep.subr.bf16.mxu1 %v11408_v9  ;;  %v3138_v47 = vrot.slane %v13656_v32, 7  ;;  %v16739_v26 = vld [vmem:[#allocation48_spill] sm:$0xff] }
 0x272   : >> { %v13697_v62 = vpack.c.bf16 %v3302_v59, %v3303_v55  ;;  %v13705_v6 = vmax.f32 %v2980_v54, 0.0  ;;  %v2985_v21 = vadd.f32 %v13569_v51, %v2945_v39  ;;  %v2943_v48 = vadd.f32 %v2840_v4, %v13520_v23  ;;  %10412 = vmatprep.mubr.bf16.mxu0 %v13688_v50  ;;  %10489 = vmatpush3.bf16.msra.mxu0 %v16739_v26  ;;  %v16742_v23 = vld [vmem:[#allocation33_spill] sm:$0xff] }
 0x273   : >> { %v3139_v1 = vrot.slane %v13691_v17, 7  ;;  %v10323_v59 = vpop.f32.mrf.mxu0  ;;  %v13715_v45 = vpack.c.bf16 %v13691_v17, %v13656_v32  ;;  %v16741_v54 = vrot.slane %v16735_v25, 7  ;;  %v16743_v4 = vrot.slane %v16742_v23, 7  ;;  %10490 = vmatprep.subr.bf16.mxu0 %v11413_v24  ;;  %v11415_v26 = vld [vmem:[%s11941_s10 + $0x328] sm:$0xff]  }
 0x274   : >> { %v13726_v8 = vmax.f32 %v2985_v21, 0.0  ;;  %v2983_v57 = vadd.f32 %v13569_v51, %v2943_v48  ;;  %v2946_v28 = vadd.f32 %v10323_v59, %v13529_v16  ;;  %v3136_v55 = vrot.slane %v13705_v6, 7  ;;  %10443 = vmatpush3.bf16.msra.mxu1 %v11408_v9  ;;  %v11410_v21 = vld [vmem:[%s11941_s10 + $0x2e0] sm:$0xff]  }
 0x275   : >> { %16740 = vst [vmem:[#allocation43_spill] sm:$0xff] %v13715_v45  ;;  %v3209_v39 = vsel %vm509_vm0, %v16741_v54, %v3135_v52  ;;  %v3207_v60 = vsel %vm509_vm0, %v16743_v4, %v3138_v47  ;;  %v2843_v25 = vpop.f32.mrf.mxu0  ;;  %v3226_v44 = vrot.slane %v13705_v6, 1  ;;  %v13734_v54 = vpack.c.bf16 %v13705_v6, %v13673_v7  ;;  %10444 = vmatprep.subr.bf16.mxu1 %v11409_v33 }
 0x276   : >> { %v3206_v4 = vsel %vm509_vm0, %v3138_v47, %v3139_v1  ;;  %v3301_v16 = vsel %vm600_vm1, %v3222_v43, %v3223_v31  ;;  %v13745_v9 = vmax.f32 %v2983_v57, 0.0  ;;  %v2986_v48 = vadd.f32 %v13569_v51, %v2946_v28  ;;  %10491 = vmatpush3.bf16.msra.mxu0 %v11413_v24  ;;  %v11416_v43 = vld [vmem:[%s11941_s10 + $0x320] sm:$0xff]  }
 0x277   : >> { %16744 = vst [vmem:[#allocation44_spill] sm:$0xff] %v13734_v54  ;;  %v2944_v6 = vadd.f32 %v2843_v25, %v13537_v37  ;;  %v3208_v59 = vsel %vm509_vm0, %v3135_v52, %v3136_v55  ;;  %v10326_v47 = vpop.f32.mrf.mxu0  ;;  %10365 = vmatmul.mubr.bf16.gmra.mxu1 %v13734_v54  ;;  %v13754_v63 = vpack.c.bf16 %v3206_v4, %v3207_v60  ;;  %v3144_v38 = vrot.slane %v13726_v8, 7  ;;  %v16745_v55 = vld [vmem:[#allocation21_spill] sm:$0xff]  ;;  %v11411_v4 = vld [vmem:[%s11941_s10 + $0x2d8] sm:$0xff]  }
 0x278   : >> { %v13752_v1 = vpack.c.bf16 %v3208_v59, %v3209_v39  ;;  %10492 = vmatprep.subr.bf16.mxu0 %v11415_v26  ;;  %v13759_v31 = vmax.f32 %v2986_v48, 0.0  ;;  %v2949_v24 = vadd.f32 %v10326_v47, %v13545_v12  ;;  %10368 = vmatprep.mubr.bf16.mxu1 %v13715_v45  ;;  %v3141_v52 = vrot.slane %v13745_v9, 7 }
 0x279   : >> { %v2984_v37 = vadd.f32 %v13569_v51, %v2944_v6  ;;  %10445 = vmatpush3.bf16.msra.mxu1 %v11409_v33  ;;  %v2856_v60 = vpop.f32.mrf.mxu0  ;;  %v16746_v39 = vrot.slane %v16745_v55, 7  ;;  %v13773_v12 = vpack.c.bf16 %v13671_v11, %v3301_v16  ;;  %v16747_v48 = vrot.slane %v16742_v23, 1  ;;  %v16749_v16 = vld [vmem:[#allocation23_spill] sm:$0xff] }
 0x27a   : >> { %10413 = vmatmul.mubr.bf16.gmra.mxu0 %v13752_v1  ;;  %10446 = vmatprep.subr.bf16.mxu1 %v11410_v21  ;;  %v2989_v59 = vadd.f32 %v13569_v51, %v2949_v24  ;;  %v2947_v47 = vadd.f32 %v2856_v60, %v13548_v29  ;;  %v13788_v23 = vpack.c.bf16 %v13759_v31, %v13726_v8  ;;  %v11418_v29 = vld [vmem:[%s11941_s10 + $0x318] sm:$0xff]   ;;  %v16751_v60 = vrot.slane %v13673_v7, 1 }
 0x27b   : >> { %v3203_v25 = vsel %vm509_vm0, %v16746_v39, %v3144_v38  ;;  %v3298_v33 = vsel %vm600_vm1, %v3226_v44, %v16747_v48  ;;  %v13779_v6 = vmax.f32 %v2984_v37, 0.0  ;;  %10416 = vmatprep.mubr.bf16.mxu0 %v13754_v63  ;;  %v3145_v39 = vrot.slane %v13759_v31, 7  ;;  %10493 = vmatpush3.bf16.msra.mxu0 %v11415_v26  ;;  %v10327_v57 = vpop.f32.mrf.mxu0 }
 0x27c   : >> { %16748 = vst [vmem:[#allocation45_spill] sm:$0xff] %v13788_v23  ;;  %v16750_v37 = vrot.slane %v16749_v16, 7  ;;  %10494 = vmatprep.subr.bf16.mxu0 %v11416_v43  ;;  %v3299_v26 = vsel %vm600_vm1, %v16751_v60, %v3226_v44  ;;  %v13799_v48 = vmax.f32 %v2989_v59, 0.0  ;;  %v2987_v11 = vadd.f32 %v13569_v51, %v2947_v47  ;;  %v11414_v44 = vld [vmem:[%s11941_s10 + $0x2d0] sm:$0xff]  }
 0x27d   : >> { %v2950_v28 = vadd.f32 %v10327_v57, %v13554_v36  ;;  %v3142_v45 = vrot.slane %v13779_v6, 7  ;;  %10447 = vmatpush3.bf16.msra.mxu1 %v11410_v21  ;;  %v2859_v54 = vpop.f32.mrf.mxu0  ;;  %v3202_v7 = vsel %vm509_vm0, %v3144_v38, %v3145_v39  ;;  %v13812_v59 = vpack.c.bf16 %v3298_v33, %v3299_v26 }
 0x27e   : >> { %v3205_v24 = vsel %vm509_vm0, %v16750_v37, %v3141_v52  ;;  %v13807_v37 = vpack.c.bf16 %v13779_v6, %v13745_v9  ;;  %10448 = vmatprep.subr.bf16.mxu1 %v11411_v4  ;;  %v13814_v47 = vmax.f32 %v2987_v11, 0.0  ;;  %v2948_v21 = vadd.f32 %v2859_v54, %v13557_v35 }
 0x27f   : >> { %v2990_v36 = vadd.f32 %v13569_v51, %v2950_v28  ;;  %v3204_v57 = vsel %vm509_vm0, %v3141_v52, %v3142_v45  ;;  %10495 = vmatpush3.bf16.msra.mxu0 %v11416_v43  ;;  %v10330_v60 = vpop.f32.mrf.mxu0  ;;  %v13823_v38 = vpack.c.bf16 %v3202_v7, %v3203_v25  ;;  %v3150_v33 = vrot.slane %v13799_v48, 7  ;;  %v11419_v28 = vld [vmem:[%s11941_s10 + $0x310] sm:$0xff]   ;;  %v16753_v25 = vld [vmem:[#allocation25_spill] sm:$0xff] }
 0x280   : >> { %16752 = vst [vmem:[#allocation46_spill] sm:$0xff] %v13807_v37  ;;  %10369 = vmatmul.mubr.bf16.gmra.mxu1 %v13807_v37  ;;  %v13821_v41 = vpack.c.bf16 %v3204_v57, %v3205_v24  ;;  %10496 = vmatprep.subr.bf16.mxu0 %v11418_v29  ;;  %v2988_v35 = vadd.f32 %v13569_v51, %v2948_v21  ;;  %v3147_v54 = vrot.slane %v13814_v47, 7  ;;  %v16754_v24 = vrot.slane %v16753_v25, 7  ;;  %v11417_v7 = vld [vmem:[%s11941_s10 + $0x2c8] sm:$0xff]  }
 0x281   : >> { %v13828_v11 = vmax.f32 %v2990_v36, 0.0  ;;  %v2953_v45 = vadd.f32 %v10330_v60, %v13560_v27  ;;  %10372 = vmatprep.mubr.bf16.mxu1 %v13788_v23  ;;  %10449 = vmatpush3.bf16.msra.mxu1 %v11411_v4  ;;  %v2872_v43 = vpop.f32.mrf.mxu0  ;;  %v16755_v27 = vrot.slane %v16749_v16, 1  ;;  %v16756_v36 = vrot.slane %v13691_v17, 1  ;;  %v16760_v17 = vld [vmem:[#allocation27_spill] sm:$0xff] }
 0x282   : >> { %10417 = vmatmul.mubr.bf16.gmra.mxu0 %v13821_v41  ;;  %v3199_v26 = vsel %vm509_vm0, %v16754_v24, %v3150_v33  ;;  %10450 = vmatprep.subr.bf16.mxu1 %v11414_v44  ;;  %v16758_v57 = vrot.slane %v13656_v32, 1  ;;  %v13853_v39 = vmax.f32 %v2988_v35, 0.0  ;;  %v2951_v52 = vadd.f32 %v2872_v43, %v13572_v18  ;;  %v11421_v18 = vld [vmem:[%s11941_s10 + $0x308] sm:$0xff]  }
 0x283   : >> { %v3296_v4 = vsel %vm600_vm1, %v16756_v36, %v16755_v27  ;;  %v16757_v21 = vmov %v16756_v36  ;;  %v2993_v24 = vadd.f32 %v13569_v51, %v2953_v45  ;;  %10420 = vmatprep.mubr.bf16.mxu0 %v13823_v38  ;;  %v3151_v16 = vrot.slane %v13828_v11, 7  ;;  %10497 = vmatpush3.bf16.msra.mxu0 %v11418_v29  ;;  %v10331_v23 = vpop.f32.mrf.mxu0 }
 0x284   : >> { %v3297_v60 = vsel %vm600_vm1, %v16758_v57, %v16757_v21  ;;  %v13862_v32 = vpack.c.bf16 %v13828_v11, %v13799_v48  ;;  %v16761_v35 = vrot.slane %v16760_v17, 7  ;;  %10498 = vmatprep.subr.bf16.mxu0 %v11419_v28  ;;  %v2991_v29 = vadd.f32 %v13569_v51, %v2951_v52 }
 0x285   : >> { %v13869_v43 = vpack.c.bf16 %v3296_v4, %v3297_v60  ;;  %v13871_v36 = vmax.f32 %v2993_v24, 0.0  ;;  %v2954_v21 = vadd.f32 %v10331_v23, %v13575_v14  ;;  %v3148_v57 = vrot.slane %v13853_v39, 7  ;;  %10451 = vmatpush3.bf16.msra.mxu1 %v11414_v44  ;;  %v2875_v27 = vpop.f32.mrf.mxu0  ;;  %v11420_v60 = vld [vmem:[%s11941_s10 + $0x2c0] sm:$0xff]  }
 0x286   : >> { %16759 = vst [vmem:[#allocation47_spill] sm:$0xff] %v13862_v32  ;;  %v3201_v45 = vsel %vm509_vm0, %v16761_v35, %v3147_v54  ;;  %v13879_v49 = vpack.c.bf16 %v13853_v39, %v13814_v47  ;;  %v3198_v4 = vsel %vm509_vm0, %v3150_v33, %v3151_v16  ;;  %10452 = vmatprep.subr.bf16.mxu1 %v11417_v7  ;;  %v16763_v52 = vrot.slane %v16745_v55, 1 }
 0x287   : >> { %v16764_v14 = vrot.slane %v13779_v6, 1  ;;  %v13890_v44 = vmax.f32 %v2991_v29, 0.0  ;;  %v2994_v24 = vadd.f32 %v13569_v51, %v2954_v21  ;;  %v2952_v35 = vadd.f32 %v2875_v27, %v13580_v10  ;;  %10499 = vmatpush3.bf16.msra.mxu0 %v11419_v28  ;;  %v10334_v33 = vpop.f32.mrf.mxu0  ;;  %v11422_v21 = vld [vmem:[%s11941_s10 + $0x300] sm:$0xff]  }
 0x288   : >> { %16762 = vst [vmem:[#allocation49_spill] sm:$0xff] %v13879_v49  ;;  %v3200_v37 = vsel %vm509_vm0, %v3147_v54, %v3148_v57  ;;  %10373 = vmatmul.mubr.bf16.gmra.mxu1 %v13879_v49  ;;  %v13899_v55 = vpack.c.bf16 %v3198_v4, %v3199_v26  ;;  %10500 = vmatprep.subr.bf16.mxu0 %v11421_v18  ;;  %v16766_v27 = vld [vmem:[#allocation29_spill] sm:$0xff]  ;;  %v13917_v4 = vld [vmem:[%s11941_s10 + $0x378] sm:$0xff]  }
 0x289   : >> { %v3294_v23 = vsel %vm600_vm1, %v16764_v14, %v16763_v52  ;;  %v13897_v16 = vpack.c.bf16 %v3200_v37, %v3201_v45  ;;  %v3156_v52 = vrot.slane %v13871_v36, 7  ;;  %v13904_v14 = vmax.f32 %v2994_v24, 0.0  ;;  %10376 = vmatprep.mubr.bf16.mxu1 %v13862_v32  ;;  %10453 = vmatpush3.bf16.msra.mxu1 %v11417_v7  ;;  %v2888_v54 = vpop.f32.mrf.mxu0 }
 0x28a   : >> { %16765 = vst [vmem:[#allocation50_spill] sm:$0xff] %v13899_v55  ;;  %v2992_v10 = vadd.f32 %v13569_v51, %v2952_v35  ;;  %v2957_v28 = vadd.f32 %v10334_v33, %v13583_v2  ;;  %v3153_v37 = vrot.slane %v13890_v44, 7  ;;  %v16767_v45 = vrot.slane %v16766_v27, 7  ;;  %10454 = vmatprep.subr.bf16.mxu1 %v11420_v60 }
 0x28b   : >> { %10421 = vmatmul.mubr.bf16.gmra.mxu0 %v13897_v16  ;;  %v16768_v2 = vrot.slane %v13779_v6, 1  ;;  %v16769_v24 = vrot.slane %v13745_v9, 1  ;;  %v16770_v35 = vrot.slane %v16760_v17, 1  ;;  %v16771_v33 = vrot.slane %v13759_v31, 1  ;;  %v10335_v6 = vpop.f32.mrf.mxu0 }
 0x28c   : >> { %v3195_v57 = vsel %vm509_vm0, %v16767_v45, %v3156_v52  ;;  %v13931_v26 = vmax.f32 %v2992_v10, 0.0  ;;  %v2997_v45 = vadd.f32 %v13569_v51, %v2957_v28  ;;  %v2955_v32 = vadd.f32 %v2888_v54, %v13590_v40  ;;  %10424 = vmatprep.mubr.bf16.mxu0 %v13899_v55  ;;  %10501 = vmatpush3.bf16.msra.mxu0 %v11421_v18  ;;  %v13949_v40 = vld [vmem:[%s11941_s10 + $0x3b8] sm:$0xff]  }
 0x28d   : >> { %v3295_v7 = vsel %vm600_vm1, %v16769_v24, %v16768_v2  ;;  %v3292_v29 = vsel %vm600_vm1, %v16771_v33, %v16770_v35  ;;  %v3157_v9 = vrot.slane %v13904_v14, 7  ;;  %v13940_v17 = vpack.c.bf16 %v13904_v14, %v13871_v36  ;;  %v16773_v24 = vld [vmem:[#allocation39_spill] sm:$0xff]  ;;  %10502 = vmatprep.subr.bf16.mxu0 %v11422_v21  ;;  %10455 = vmatpush3.bf16.msra.mxu1 %v11420_v60  ;;  %v2891_v49 = vpop.f32.mrf.mxu0 }
 0x28e   : >> { %v16774_v35 = vrot.slane %v16773_v24, 7  ;;  %v13946_v28 = vpack.c.bf16 %v3294_v23, %v3295_v7  ;;  %v13951_v54 = vmax.f32 %v2997_v45, 0.0  ;;  %v2995_v18 = vadd.f32 %v13569_v51, %v2955_v32  ;;  %10536 = vmatprep.subr.bf16.mxu1 %v13917_v4 }
 0x28f   : >> { %16772 = vst [vmem:[#allocation51_spill] sm:$0xff] %v13940_v17  ;;  %v2958_v33 = vadd.f32 %v10335_v6, %v13596_v56  ;;  %v3154_v2 = vrot.slane %v13931_v26, 7  ;;  %v3194_v23 = vsel %vm509_vm0, %v3156_v52, %v3157_v9  ;;  %v16776_v7 = vrot.slane %v13759_v31, 1  ;;  %v10338_v52 = vpop.f32.mrf.mxu0 }
 0x290   : >> { %v3197_v10 = vsel %vm509_vm0, %v16774_v35, %v3153_v37  ;;  %v13959_v35 = vpack.c.bf16 %v13931_v26, %v13890_v44  ;;  %v16777_v32 = vrot.slane %v13726_v8, 1  ;;  %v13970_v60 = vmax.f32 %v2995_v18, 0.0  ;;  %10503 = vmatpush3.bf16.msra.mxu0 %v11422_v21 }
 0x291   : >> { %v2998_v45 = vadd.f32 %v13569_v51, %v2958_v33  ;;  %v2956_v6 = vadd.f32 %v2891_v49, %v13603_v19  ;;  %v3196_v55 = vsel %vm509_vm0, %v3153_v37, %v3154_v2  ;;  %v13979_v31 = vpack.c.bf16 %v3194_v23, %v3195_v57  ;;  %10584 = vmatprep.subr.bf16.mxu0 %v13949_v40  ;;  %v16778_v57 = vld [vmem:[#allocation35_spill] sm:$0xff] }
 0x292   : >> { %16775 = vst [vmem:[#allocation52_spill] sm:$0xff] %v13959_v35  ;;  %v3293_v56 = vsel %vm600_vm1, %v16777_v32, %v16776_v7  ;;  %10377 = vmatmul.mubr.bf16.gmra.mxu1 %v13959_v35  ;;  %v13977_v9 = vpack.c.bf16 %v3196_v55, %v3197_v10  ;;  %v3162_v8 = vrot.slane %v13951_v54, 7  ;;  %v2961_v49 = vadd.f32 %v10338_v52, %v13610_v5  ;;  %v2904_v55 = vpop.f32.mrf.mxu0 }
 0x293   : >> { %v13984_v33 = vmax.f32 %v2998_v45, 0.0  ;;  %v2996_v19 = vadd.f32 %v13569_v51, %v2956_v6  ;;  %10380 = vmatprep.mubr.bf16.mxu1 %v13940_v17  ;;  %v3159_v21 = vrot.slane %v13970_v60, 7  ;;  %v16779_v2 = vrot.slane %v16778_v57, 7 }
 0x294   : >> { %10425 = vmatmul.mubr.bf16.gmra.mxu0 %v13977_v9  ;;  %v13996_v23 = vpack.c.bf16 %v3292_v29, %v3293_v56  ;;  %v16780_v7 = vrot.slane %v16753_v25, 1  ;;  %v16781_v5 = vrot.slane %v13853_v39, 1  ;;  %v3001_v6 = vadd.f32 %v13569_v51, %v2961_v49 }
 0x295   : >> { %v3191_v10 = vsel %vm509_vm0, %v16779_v2, %v3162_v8  ;;  %v14004_v45 = vmax.f32 %v2996_v19, 0.0  ;;  %v2959_v52 = vadd.f32 %v2904_v55, %v13613_v13  ;;  %10428 = vmatprep.mubr.bf16.mxu0 %v13979_v31  ;;  %v3163_v18 = vrot.slane %v13984_v33, 7  ;;  %v10339_v2 = vpop.f32.mrf.mxu0 }
 0x296   : >> { %v3290_v32 = vsel %vm600_vm1, %v16781_v5, %v16780_v7  ;;  %v14013_v25 = vpack.c.bf16 %v13984_v33, %v13951_v54  ;;  %v16783_v56 = vrot.slane %v13393_v15, 7  ;;  %v16784_v49 = vmov %v16781_v5 }
 0x297   : >> { %v16785_v13 = vrot.slane %v13814_v47, 1  ;;  %v14025_v7 = vmax.f32 %v3001_v6, 0.0  ;;  %v2999_v5 = vadd.f32 %v13569_v51, %v2959_v52  ;;  %v2962_v29 = vadd.f32 %v10339_v2, %v13618_v3  ;;  %v2907_v17 = vpop.f32.mrf.mxu0 }
 0x298   : >> { %16782 = vst [vmem:[#allocation59_spill] sm:$0xff] %v14013_v25  ;;  %v3193_v19 = vsel %vm509_vm0, %v16783_v56, %v3159_v21  ;;  %v3160_v37 = vrot.slane %v14004_v45, 7  ;;  %v14033_v56 = vpack.c.bf16 %v14004_v45, %v13970_v60  ;;  %v3190_v47 = vsel %vm509_vm0, %v3162_v8, %v3163_v18 }
 0x299   : >> { %v3291_v55 = vsel %vm600_vm1, %v16785_v13, %v16784_v49  ;;  %v14039_v6 = vmax.f32 %v2999_v5, 0.0  ;;  %v3002_v52 = vadd.f32 %v13569_v51, %v2962_v29  ;;  %v2960_v3 = vadd.f32 %v2907_v17, %v13623_v46  ;;  %v10342_v49 = vpop.f32.mrf.mxu0 }
 0x29a   : >> { %16786 = vst [vmem:[#allocation61_spill] sm:$0xff] %v14033_v56  ;;  %v14037_v39 = vpack.c.bf16 %v3290_v32, %v3291_v55  ;;  %v3192_v2 = vsel %vm509_vm0, %v3159_v21, %v3160_v37  ;;  %10381 = vmatmul.mubr.bf16.gmra.mxu1 %v14033_v56  ;;  %v14048_v35 = vpack.c.bf16 %v3190_v47, %v3191_v10  ;;  %v3168_v8 = vrot.slane %v14025_v7, 7  ;;  %v16789_v10 = vld [vmem:[#allocation19_spill] sm:$0xff] }
 0x29b   : >> { %v14046_v13 = vpack.c.bf16 %v3192_v2, %v3193_v19  ;;  %v14052_v32 = vmax.f32 %v3002_v52, 0.0  ;;  %v3000_v29 = vadd.f32 %v13569_v51, %v2960_v3  ;;  %v2965_v46 = vadd.f32 %v10342_v49, %v13626_v61  ;;  %10384 = vmatprep.mubr.bf16.mxu1 %v14013_v25  ;;  %v2920_v21 = vpop.f32.mrf.mxu0 }
 0x29c   : >> { %16788 = vst [vmem:[#allocation54_spill] sm:$0xff] %v14048_v35  ;;  %v3165_v17 = vrot.slane %v14039_v6, 7  ;;  %v3255_v37 = vrot.slane %v14039_v6, 1  ;;  %v16790_v19 = vrot.slane %v16789_v10, 7  ;;  %v16791_v5 = vrot.slane %v16773_v24, 1 }
 0x29d   : >> { %16787 = vst [vmem:[#allocation53_spill] sm:$0xff] %v14046_v13  ;;  %10429 = vmatmul.mubr.bf16.gmra.mxu0 %v14046_v13  ;;  %v16792_v47 = vrot.slane %v13828_v11, 1  ;;  %v16794_v3 = vrot.slane %v13799_v48, 1  ;;  %v3032_v49 = vmax.f32 %v3000_v29, 0.0  ;;  %v3005_v18 = vadd.f32 %v13569_v51, %v2965_v46 }
 0x29e   : >> { %v3187_v55 = vsel %vm509_vm0, %v16790_v19, %v3168_v8  ;;  %v2963_v25 = vadd.f32 %v2920_v21, %v13628_v22  ;;  %10432 = vmatprep.mubr.bf16.mxu0 %v14048_v35  ;;  %v3169_v24 = vrot.slane %v14052_v32, 7  ;;  %v10343_v19 = vpop.f32.mrf.mxu0  ;;  %v3259_v56 = vrot.slane %v14052_v32, 1 }
 0x29f   : >> { %v3288_v61 = vsel %vm600_vm1, %v16792_v47, %v16791_v5  ;;  %v16793_v52 = vmov %v16792_v47  ;;  %v14083_v11 = vpack.c.bf16 %v14052_v32, %v14025_v7  ;;  %v16795_v48 = vrot.slane %v13429_v30, 7 }
 0x2a0   : >> { %v3289_v2 = vsel %vm600_vm1, %v16794_v3, %v16793_v52  ;;  %v14091_v46 = vmax.f32 %v3005_v18, 0.0  ;;  %v3003_v22 = vadd.f32 %v13569_v51, %v2963_v25  ;;  %v2966_v21 = vadd.f32 %v10343_v19, %v13635_v20  ;;  %v2923_v52 = vpop.f32.mrf.mxu0 }
 0x2a1   : >> { %v3189_v29 = vsel %vm509_vm0, %v16795_v48, %v3165_v17  ;;  %v14089_v5 = vpack.c.bf16 %v3288_v61, %v3289_v2  ;;  %v3166_v47 = vrot.slane %v3032_v49, 7  ;;  %v3256_v3 = vrot.slane %v3032_v49, 1 }
 0x2a2   : >> { %v14096_v35 = vpack.c.bf16 %v3032_v49, %v14039_v6  ;;  %v3186_v32 = vsel %vm509_vm0, %v3168_v8, %v3169_v24  ;;  %v16796_v13 = vrot.slane %v16766_v27, 1  ;;  %v16797_v61 = vrot.slane %v13931_v26, 1 }
 0x2a3   : >> { %v3035_v2 = vmax.f32 %v3003_v22, 0.0  ;;  %v3006_v25 = vadd.f32 %v13569_v51, %v2966_v21  ;;  %v2964_v20 = vadd.f32 %v2923_v52, %v13637_v42  ;;  %v3188_v19 = vsel %vm509_vm0, %v3165_v17, %v3166_v47 }
 0x2a4   : >> { %v3286_v18 = vsel %vm600_vm1, %v16797_v61, %v16796_v13  ;;  %10385 = vmatmul.mubr.bf16.gmra.mxu1 %v14096_v35  ;;  %v14111_v6 = vpack.c.bf16 %v3188_v19, %v3189_v29  ;;  %v14113_v8 = vpack.c.bf16 %v3186_v32, %v3187_v55  ;;  %v16798_v27 = vmov %v16797_v61 }
 0x2a5   : >> { %v16799_v49 = vrot.slane %v13890_v44, 1  ;;  %v16800_v24 = vrot.slane %v13393_v15, 1  ;;  %v16801_v42 = vrot.slane %v13904_v14, 1  ;;  %v3038_v48 = vmax.f32 %v3006_v25, 0.0  ;;  %10388 = vmatprep.mubr.bf16.mxu1 %v14083_v11 }
 0x2a6   : >> { %v3004_v29 = vadd.f32 %v13569_v51, %v2964_v20  ;;  %v3171_v55 = vrot.slane %v3035_v2, 7  ;;  %v3261_v22 = vrot.slane %v3035_v2, 1  ;;  %10433 = vmatmul.mubr.bf16.gmra.mxu0 %v14111_v6  ;;  %v16803_v15 = vrot.slane %v13871_v36, 1  ;;  %v16808_v36 = vld [vmem:[#allocation40_spill] sm:$0xff] }
 0x2a7   : >> { %v3287_v13 = vsel %vm600_vm1, %v16799_v49, %v16798_v27  ;;  %v3284_v17 = vsel %vm600_vm1, %v16801_v42, %v16800_v24  ;;  %v16802_v26 = vmov %v16801_v42  ;;  %v16804_v47 = vrot.slane %v16778_v57, 1  ;;  %10436 = vmatprep.mubr.bf16.mxu0 %v14113_v8 }
 0x2a8   : >> { %v14130_v44 = vpack.c.bf16 %v3286_v18, %v3287_v13  ;;  %v3285_v21 = vsel %vm600_vm1, %v16803_v15, %v16802_v26  ;;  %v16805_v52 = vrot.slane %v14004_v45, 1  ;;  %v16807_v61 = vrot.slane %v13970_v60, 1 }
 0x2a9   : >> { %v3036_v14 = vmax.f32 %v3004_v29, 0.0  ;;  %v16809_v25 = vrot.slane %v16808_v36, 7  ;;  %v14155_v20 = vpack.c.bf16 %v3284_v17, %v3285_v21  ;;  %v16810_v27 = vrot.slane %v13429_v30, 1 }
 0x2aa   : >> { %v3282_v51 = vsel %vm600_vm1, %v16805_v52, %v16804_v47  ;;  %v16806_v32 = vmov %v16805_v52  ;;  %v16811_v45 = vrot.slane %v13984_v33, 1  ;;  %v16813_v13 = vrot.slane %v13951_v54, 1 }
 0x2ab   : >> { %v3283_v18 = vsel %vm600_vm1, %v16807_v61, %v16806_v32  ;;  %v3185_v57 = vsel %vm509_vm0, %v16809_v25, %v3171_v55  ;;  %v16814_v42 = vrot.slane %v16789_v10, 1  ;;  %v3279_v30 = vsel %vm600_vm1, %v3255_v37, %v3256_v3 }
 0x2ac   : >> { %v14157_v19 = vpack.c.bf16 %v3282_v51, %v3283_v18  ;;  %v3280_v60 = vsel %vm600_vm1, %v16811_v45, %v16810_v27  ;;  %v16812_v49 = vmov %v16811_v45  ;;  %v3172_v29 = vrot.slane %v3036_v14, 7 }
 0x2ad   : >> { %v3281_v24 = vsel %vm600_vm1, %v16813_v13, %v16812_v49  ;;  %v3278_v17 = vsel %vm600_vm1, %v3256_v3, %v16814_v42  ;;  %v3262_v26 = vrot.slane %v3036_v14, 1  ;;  %v14177_v15 = vpack.c.bf16 %v3036_v14, %v3035_v2  ;;  %v16819_v14 = vld [vmem:[#allocation70_spill] sm:$0xff] }
 0x2ae   : >> { %v14179_v21 = vpack.c.bf16 %v3280_v60, %v3281_v24  ;;  %v14181_v33 = vpack.c.bf16 %v3278_v17, %v3279_v30  ;;  %v16815_v54 = vrot.slane %v16808_v36, 1  ;;  %v16816_v10 = vrot.slane %v14025_v7, 1  ;;  %v11429_v42 = vld [vmem:[%s11941_s10 + $0x3b0] sm:$0xff]   ;;  %v11426_v17 = vld [vmem:[%s11941_s10 + $0x360] sm:$0xff]   ;;  %v11434_v30 = vld [vmem:[%s11941_s10 + $0x398] sm:$0xff]  }
 0x2af   : >> { %v3174_v37 = vrot.slane %v14091_v46, 7  ;;  %v3184_v3 = vsel %vm509_vm0, %v3171_v55, %v3172_v29  ;;  %v16817_v51 = vrot.slane %v13505_v0, 1  ;;  %v3275_v61 = vsel %vm600_vm1, %v3261_v22, %v3262_v26  ;;  %10389 = vmatmul.mubr.bf16.gmra.mxu1 %v14177_v15  ;;  %v16818_v55 = vld [vmem:[#allocation73_spill] sm:$0xff]  ;;  %v11430_v29 = vld [vmem:[%s11941_s10 + $0x350] sm:$0xff]  }
 0x2b0   : >> { %v3276_v47 = vsel %vm600_vm1, %v3259_v56, %v16815_v54  ;;  %v3277_v52 = vsel %vm600_vm1, %v16816_v10, %v3259_v56  ;;  %v14203_v7 = vpack.c.bf16 %v3184_v3, %v3185_v57  ;;  %v3175_v18 = vrot.slane %v3038_v48, 7  ;;  %v11433_v54 = vld [vmem:[%s11941_s10 + $0x348] sm:$0xff]   ;;  %v11436_v10 = vld [vmem:[%s11941_s10 + $0x340] sm:$0xff]   ;;  %v11439_v3 = vld [vmem:[%s11941_s10 + $0x3f8] sm:$0xff]  }
 0x2b1   : >> { %v14194_v2 = vpack.c.bf16 %v3276_v47, %v3277_v52  ;;  %v3274_v32 = vsel %vm600_vm1, %v3262_v26, %v16817_v51  ;;  %v16820_v36 = vpack.c.bf16 %v16818_v55, %v16819_v14  ;;  %v14211_v25 = vpack.c.bf16 %v3038_v48, %v14091_v46  ;;  %v11435_v26 = vld [vmem:[%s11941_s10 + $0x390] sm:$0xff]   ;;  %v11437_v47 = vld [vmem:[%s11941_s10 + $0x388] sm:$0xff]   ;;  %v11438_v52 = vld [vmem:[%s11941_s10 + $0x380] sm:$0xff]  }
 0x2b2   : >> { %v14205_v56 = vpack.c.bf16 %v3274_v32, %v3275_v61  ;;  %v3264_v27 = vrot.slane %v14091_v46, 1  ;;  %v3265_v45 = vrot.slane %v3038_v48, 1  ;;  %10437 = vmatmul.mubr.bf16.gmra.mxu0 %v14203_v7  ;;  %v3182_v22 = vsel %vm509_vm0, %v3174_v37, %v3175_v18  ;;  %v11444_v51 = vld [vmem:[%s11941_s10 + $0x438] sm:$0xff]   ;;  %v16824_v32 = vld [vmem:[#allocation53_spill] sm:$0xff]  ;;  %v16825_v61 = vld [vmem:[#allocation54_spill] sm:$0xff] }
 0x2b3   : >> { %10456 = vmatprep.mubr.bf16.mxu1 %v16820_v36  ;;  %v16821_v57 = vrot.slane %v13505_v0, 7  ;;  %10504 = vmatprep.mubr.bf16.mxu0 %v13680_v34  ;;  %v16822_v13 = vrot.slane %v13517_v53, 1  ;;  %v11424_v0 = vld [vmem:[%s11941_s10 + $0x370] sm:$0xff]   ;;  %v11425_v53 = vld [vmem:[%s11941_s10 + $0x368] sm:$0xff]  }
 0x2b4   : >> { %v3273_v48 = vsel %vm600_vm1, %v3264_v27, %v3265_v45  ;;  %v11431_v34 = vld [vmem:[%s11941_s10 + $0x3a8] sm:$0xff]   ;;  %v11440_v55 = vld [vmem:[%s11941_s10 + $0x3f0] sm:$0xff]   ;;  %v16828_v27 = vld [vmem:[#allocation44_spill] sm:$0xff] }
 0x2b5   : >> { %v3183_v60 = vsel %vm509_vm0, %v16821_v57, %v3174_v37  ;;  %v3272_v46 = vsel %vm600_vm1, %v3265_v45, %v16822_v13  ;;  %v16823_v37 = vld [vmem:[#allocation50_spill] sm:$0xff]  ;;  %v16827_v14 = vld [vmem:[#allocation41_spill] sm:$0xff]  ;;  %v16829_v57 = vld [vmem:[#allocation43_spill] sm:$0xff] }
 0x2b6   : >> { %v14222_v49 = vpack.c.bf16 %v3182_v22, %v3183_v60  ;;  %v14230_v24 = vpack.c.bf16 %v3272_v46, %v3273_v48  ;;  %v16826_v18 = vld [vmem:[#allocation42_spill] sm:$0xff]  ;;  %v11448_v60 = vld [vmem:[%s11941_s10 + $0x420] sm:$0xff]   ;;  %v11443_v46 = vld [vmem:[%s11941_s10 + $0x3d8] sm:$0xff]  }
 0x2b7   : >> { %10457 = vmatmul.mubr.bf16.vlgmr.msra.gmra.mxu1 %v13697_v62  ;;  %v11445_v36 = vld [vmem:[%s11941_s10 + $0x430] sm:$0xff]   ;;  %v11441_v45 = vld [vmem:[%s11941_s10 + $0x3e8] sm:$0xff]   ;;  %v11450_v48 = vld [vmem:[%s11941_s10 + $0x418] sm:$0xff]  }
 0x2b8   : >> { %10460 = vmatprep.mubr.bf16.mxu1 %v13773_v12  ;;  %10537 = vmatpush3.bf16.msra.mxu1 %v13917_v4  ;;  %v11432_v4 = vld [vmem:[%s11941_s10 + $0x3a0] sm:$0xff]   ;;  %v11447_v22 = vld [vmem:[%s11941_s10 + $0x428] sm:$0xff]  }
 0x2b9   : >> { %10538 = vmatprep.subr.bf16.mxu1 %v11424_v0  ;;  %v16830_v13 = vld [vmem:[#allocation46_spill] sm:$0xff] }
 0x2ba   : >> { %10505 = vmatmul.mubr.bf16.vlgmr.msra.gmra.mxu0 %v13688_v50 }
 0x2bb   : >> { %10508 = vmatprep.mubr.bf16.mxu0 %v13752_v1  ;;  %10585 = vmatpush3.bf16.msra.mxu0 %v13949_v40  ;;  %v11427_v40 = vld [vmem:[%s11941_s10 + $0x358] sm:$0xff]  }
 0x2bc   : >> { %10586 = vmatprep.subr.bf16.mxu0 %v11429_v42  ;;  %10539 = vmatpush3.bf16.msra.mxu1 %v11424_v0  ;;  %v11446_v0 = vld [vmem:[%s11941_s10 + $0x3d0] sm:$0xff]  }
 0x2bd   : >> { %10540 = vmatprep.subr.bf16.mxu1 %v11425_v53 }
 0x2bf   : >> { %10587 = vmatpush3.bf16.msra.mxu0 %v11429_v42  ;;  %10461 = vmatmul.mubr.bf16.gmra.mxu1 %v13812_v59  ;;  %v16831_v42 = vld [vmem:[#allocation45_spill] sm:$0xff] }
 0x2c0   : >> { %10588 = vmatprep.subr.bf16.mxu0 %v11431_v34  ;;  %10464 = vmatprep.mubr.bf16.mxu1 %v13869_v43 }
 0x2c1   : >> { %10541 = vmatpush3.bf16.msra.mxu1 %v11425_v53  ;;  %v11451_v53 = vld [vmem:[%s11941_s10 + $0x410] sm:$0xff]  }
 0x2c2   : >> { %10509 = vmatmul.mubr.bf16.gmra.mxu0 %v13754_v63  ;;  %10542 = vmatprep.subr.bf16.mxu1 %v11426_v17 }
 0x2c3   : >> { %10512 = vmatprep.mubr.bf16.mxu0 %v13821_v41  ;;  %10589 = vmatpush3.bf16.msra.mxu0 %v11431_v34  ;;  %v16832_v34 = vld [vmem:[#allocation49_spill] sm:$0xff] }
 0x2c4   : >> { %10590 = vmatprep.subr.bf16.mxu0 %v11432_v4 }
 0x2c5   : >> { %10543 = vmatpush3.bf16.msra.mxu1 %v11426_v17  ;;  %v11449_v17 = vld [vmem:[%s11941_s10 + $0x3c8] sm:$0xff]  }
 0x2c6   : >> { %10544 = vmatprep.subr.bf16.mxu1 %v11427_v40 }
 0x2c7   : >> { %10591 = vmatpush3.bf16.msra.mxu0 %v11432_v4  ;;  %10465 = vmatmul.mubr.bf16.gmra.mxu1 %v13946_v28  ;;  %v11453_v4 = vld [vmem:[%s11941_s10 + $0x408] sm:$0xff]  }
 0x2c8   : >> { %10592 = vmatprep.subr.bf16.mxu0 %v11434_v30  ;;  %10468 = vmatprep.mubr.bf16.mxu1 %v13996_v23 }
 0x2c9   : >> { %10545 = vmatpush3.bf16.msra.mxu1 %v11427_v40  ;;  %v11452_v40 = vld [vmem:[%s11941_s10 + $0x3c0] sm:$0xff]  }
 0x2ca   : >> { %10513 = vmatmul.mubr.bf16.gmra.mxu0 %v13823_v38  ;;  %10546 = vmatprep.subr.bf16.mxu1 %v11430_v29 }
 0x2cb   : >> { %10516 = vmatprep.mubr.bf16.mxu0 %v13897_v16  ;;  %10593 = vmatpush3.bf16.msra.mxu0 %v11434_v30  ;;  %v16833_v30 = vld [vmem:[#allocation47_spill] sm:$0xff] }
 0x2cc   : >> { %10594 = vmatprep.subr.bf16.mxu0 %v11435_v26 }
 0x2cd   : >> { %10547 = vmatpush3.bf16.msra.mxu1 %v11430_v29  ;;  %v11454_v29 = vld [vmem:[%s11941_s10 + $0x400] sm:$0xff]  }
 0x2ce   : >> { %10548 = vmatprep.subr.bf16.mxu1 %v11433_v54 }
 0x2cf   : >> { %10595 = vmatpush3.bf16.msra.mxu0 %v11435_v26  ;;  %10469 = vmatmul.mubr.bf16.gmra.mxu1 %v14037_v39  ;;  %v16834_v26 = vld [vmem:[#allocation52_spill] sm:$0xff] }
 0x2d0   : >> { %10596 = vmatprep.subr.bf16.mxu0 %v11437_v47  ;;  %10472 = vmatprep.mubr.bf16.mxu1 %v14089_v5 }
 0x2d1   : >> { %10549 = vmatpush3.bf16.msra.mxu1 %v11433_v54  ;;  %v11455_v54 = vld [vmem:[%s11941_s10 + $0x478] sm:$0xff]  }
 0x2d2   : >> { %10517 = vmatmul.mubr.bf16.gmra.mxu0 %v16823_v37  ;;  %10550 = vmatprep.subr.bf16.mxu1 %v11436_v10 }
 0x2d3   : >> { %10520 = vmatprep.mubr.bf16.mxu0 %v13977_v9  ;;  %10597 = vmatpush3.bf16.msra.mxu0 %v11437_v47  ;;  %v16835_v47 = vld [vmem:[#allocation51_spill] sm:$0xff] }
 0x2d4   : >> { %10598 = vmatprep.subr.bf16.mxu0 %v11438_v52 }
 0x2d5   : >> { %10551 = vmatpush3.bf16.msra.mxu1 %v11436_v10  ;;  %v16836_v10 = vld [vmem:[#allocation61_spill] sm:$0xff] }
 0x2d6   : >> { %10632 = vmatprep.subr.bf16.mxu1 %v11439_v3 }
 0x2d7   : >> { %10599 = vmatpush3.bf16.msra.mxu0 %v11438_v52  ;;  %10473 = vmatmul.mubr.bf16.gmra.mxu1 %v14130_v44  ;;  %v16837_v52 = vld [vmem:[#allocation59_spill] sm:$0xff] }
 0x2d8   : >> { %10680 = vmatprep.subr.bf16.mxu0 %v11444_v51  ;;  %10476 = vmatprep.mubr.bf16.mxu1 %v14155_v20 }
 0x2da   : >> { %10521 = vmatmul.mubr.bf16.gmra.mxu0 %v13979_v31 }
 0x2db   : >> { %10524 = vmatprep.mubr.bf16.mxu0 %v16824_v32 }
 0x2df   : >> { %10477 = vmatmul.mubr.bf16.gmra.mxu1 %v14157_v19 }
 0x2e0   : >> { %10480 = vmatprep.mubr.bf16.mxu1 %v14179_v21 }
 0x2e2   : >> { %10525 = vmatmul.mubr.bf16.gmra.mxu0 %v16825_v61 }
 0x2e3   : >> { %10528 = vmatprep.mubr.bf16.mxu0 %v14111_v6 }
 0x2e7   : >> { %10481 = vmatmul.mubr.bf16.gmra.mxu1 %v14181_v33 }
 0x2e8   : >> { %10484 = vmatprep.mubr.bf16.mxu1 %v14194_v2 }
 0x2ea   : >> { %10529 = vmatmul.mubr.bf16.gmra.mxu0 %v14113_v8 }
 0x2eb   : >> { %10532 = vmatprep.mubr.bf16.mxu0 %v14203_v7 }
 0x2ef   : >> { %10485 = vmatmul.mubr.bf16.gmra.mxu1 %v14205_v56 }
 0x2f0   : >> { %10552 = vmatprep.mubr.bf16.mxu1 %v16826_v18  ;;  %v14326_v18 = vld [vmem:[#allocation2 + $0x180] sm:$0xff] }
 0x2f2   : >> { %10533 = vmatmul.mubr.bf16.gmra.mxu0 %v14222_v49 }
 0x2f3   : >> { %10600 = vmatprep.mubr.bf16.mxu0 %v13697_v62  ;;  %v11442_v62 = vld [vmem:[%s11941_s10 + $0x3e0] sm:$0xff]  }
 0x2f7   : >> { %10553 = vmatmul.mubr.bf16.vlgmr.msra.gmra.mxu1 %v16827_v14 }
 0x2f8   : >> { %10556 = vmatprep.mubr.bf16.mxu1 %v16828_v27  ;;  %10633 = vmatpush3.bf16.msra.mxu1 %v11439_v3  ;;  %v11464_v3 = vld [vmem:[#allocation2 + $0x298] sm:$0xff] }
 0x2f9   : >> { %10634 = vmatprep.subr.bf16.mxu1 %v11440_v55 }
 0x2fa   : >> { %10601 = vmatmul.mubr.bf16.vlgmr.msra.gmra.mxu0 %v13773_v12 }
 0x2fb   : >> { %10604 = vmatprep.mubr.bf16.mxu0 %v13812_v59  ;;  %10681 = vmatpush3.bf16.msra.mxu0 %v11444_v51  ;;  %v3269_v51 = vrot.slane %v11464_v3, 1 }
 0x2fc   : >> { %10682 = vmatprep.subr.bf16.mxu0 %v11445_v36  ;;  %10635 = vmatpush3.bf16.msra.mxu1 %v11440_v55  ;;  %v14328_v55 = vld [vmem:[#allocation2 + $0x8] sm:$0xff] }
 0x2fd   : >> { %10636 = vmatprep.subr.bf16.mxu1 %v11441_v45 }
 0x2ff   : >> { %10683 = vmatpush3.bf16.msra.mxu0 %v11445_v36  ;;  %10557 = vmatmul.mubr.bf16.gmra.mxu1 %v16829_v57  ;;  %v3267_v36 = vrot.slane %v14326_v18, 1 }
 0x300   : >> { %10684 = vmatprep.subr.bf16.mxu0 %v11447_v22  ;;  %10560 = vmatprep.mubr.bf16.mxu1 %v16830_v13 }
 0x301   : >> { %10637 = vmatpush3.bf16.msra.mxu1 %v11441_v45  ;;  %v3268_v45 = vrot.slane %v14328_v55, 1 }
 0x302   : >> { %10605 = vmatmul.mubr.bf16.gmra.mxu0 %v13869_v43  ;;  %10638 = vmatprep.subr.bf16.mxu1 %v11442_v62 }
 0x303   : >> { %10608 = vmatprep.mubr.bf16.mxu0 %v13946_v28  ;;  %10685 = vmatpush3.bf16.msra.mxu0 %v11447_v22  ;;  %v14337_v22 = vsel %vm600_vm1, %v3268_v45, %v3269_v51 }
 0x304   : >> { %10686 = vmatprep.subr.bf16.mxu0 %v11448_v60 }
 0x305   : >> { %10639 = vmatpush3.bf16.msra.mxu1 %v11442_v62  ;;  %v14341_v62 = vsel %vm600_vm1, %v3267_v36, %v3268_v45  ;;  %v11459_v45 = vld [vmem:[%s11941_s10 + $0x458] sm:$0xff]  }
 0x306   : >> { %10640 = vmatprep.subr.bf16.mxu1 %v11443_v46 }
 0x307   : >> { %10687 = vmatpush3.bf16.msra.mxu0 %v11448_v60  ;;  %10561 = vmatmul.mubr.bf16.gmra.mxu1 %v16831_v42  ;;  %v11456_v60 = vld [vmem:[%s11941_s10 + $0x470] sm:$0xff]  }
 0x308   : >> { %10688 = vmatprep.subr.bf16.mxu0 %v11450_v48  ;;  %10564 = vmatprep.mubr.bf16.mxu1 %v16832_v34 }
 0x309   : >> { %10641 = vmatpush3.bf16.msra.mxu1 %v11443_v46 }
 0x30a   : >> { %10609 = vmatmul.mubr.bf16.gmra.mxu0 %v13996_v23  ;;  %10642 = vmatprep.subr.bf16.mxu1 %v11446_v0 }
 0x30b   : >> { %10612 = vmatprep.mubr.bf16.mxu0 %v14037_v39  ;;  %10689 = vmatpush3.bf16.msra.mxu0 %v11450_v48 }
 0x30c   : >> { %10690 = vmatprep.subr.bf16.mxu0 %v11451_v53 }
 0x30d   : >> { %10643 = vmatpush3.bf16.msra.mxu1 %v11446_v0  ;;  %v11457_v0 = vld [vmem:[%s11941_s10 + $0x468] sm:$0xff]  }
 0x30e   : >> { %10644 = vmatprep.subr.bf16.mxu1 %v11449_v17 }
 0x30f   : >> { %10691 = vmatpush3.bf16.msra.mxu0 %v11451_v53  ;;  %10565 = vmatmul.mubr.bf16.gmra.mxu1 %v16833_v30 }
 0x310   : >> { %10692 = vmatprep.subr.bf16.mxu0 %v11453_v4  ;;  %10568 = vmatprep.mubr.bf16.mxu1 %v16834_v26 }
 0x311   : >> { %10645 = vmatpush3.bf16.msra.mxu1 %v11449_v17 }
 0x312   : >> { %10613 = vmatmul.mubr.bf16.gmra.mxu0 %v14089_v5  ;;  %10646 = vmatprep.subr.bf16.mxu1 %v11452_v40 }
 0x313   : >> { %10616 = vmatprep.mubr.bf16.mxu0 %v14130_v44  ;;  %10693 = vmatpush3.bf16.msra.mxu0 %v11453_v4 }
 0x314   : >> { %10694 = vmatprep.subr.bf16.mxu0 %v11454_v29 }
 0x315   : >> { %10647 = vmatpush3.bf16.msra.mxu1 %v11452_v40 }
 0x316   : >> { %10728 = vmatprep.subr.bf16.mxu1 %v11455_v54 }
 0x317   : >> { %10695 = vmatpush3.bf16.msra.mxu0 %v11454_v29  ;;  %10569 = vmatmul.mubr.bf16.gmra.mxu1 %v16835_v47  ;;  %v11458_v29 = vld [vmem:[%s11941_s10 + $0x460] sm:$0xff]  }
 0x318   : >> { %10572 = vmatprep.mubr.bf16.mxu1 %v16836_v10 }
 0x31a   : >> { %10617 = vmatmul.mubr.bf16.gmra.mxu0 %v14155_v20 }
 0x31b   : >> { %10620 = vmatprep.mubr.bf16.mxu0 %v14157_v19 }
 0x31f   : >> { %10573 = vmatmul.mubr.bf16.gmra.mxu1 %v16837_v52 }
 0x320   : >> { %10576 = vmatprep.mubr.bf16.mxu1 %v14096_v35 }
 0x322   : >> { %10621 = vmatmul.mubr.bf16.gmra.mxu0 %v14179_v21 }
 0x323   : >> { %10624 = vmatprep.mubr.bf16.mxu0 %v14181_v33 }
 0x327   : >> { %10577 = vmatmul.mubr.bf16.gmra.mxu1 %v14083_v11 }
 0x328   : >> { %10580 = vmatprep.mubr.bf16.mxu1 %v14177_v15 }
 0x32a   : >> { %10625 = vmatmul.mubr.bf16.gmra.mxu0 %v14194_v2 }
 0x32b   : >> { %10628 = vmatprep.mubr.bf16.mxu0 %v14205_v56 }
 0x32f   : >> { %10581 = vmatmul.mubr.bf16.gmra.mxu1 %v14211_v25  ;;  %v10362_v46 = vpop.f32.mrf.mxu1 }
 0x330   : >> { %10648 = vmatprep.mubr.bf16.mxu1 %v13688_v50  ;;  %v3359_v50 = vpack.c.bf16 %v14337_v22, %v14341_v62 }
 0x331   : >> { %v10410_v48 = vpop.f32.mrf.mxu0 }
 0x332   : >> { %10629 = vmatmul.mubr.bf16.gmra.mxu0 %v14230_v24  ;;  %v14350_v53 = vadd.f32 %v10410_v48, %v10362_v46 }
 0x333   : >> { %10696 = vmatprep.mubr.bf16.mxu0 %v16827_v14  ;;  %v3480_v14 = vpop.f32.mrf.mxu1  ;;  %v3689_v4 = vpop.f32.mrf.mxu0 }
 0x334   : >> { %v14353_v40 = vadd.f32 %v3689_v4, %v3480_v14 }
 0x335   : >> { %v10363_v17 = vpop.f32.mrf.mxu1 }
 0x337   : >> { %10649 = vmatmul.mubr.bf16.vlgmr.msra.gmra.mxu1 %v13752_v1  ;;  %v3483_v1 = vpop.f32.mrf.mxu1 }
 0x338   : >> { %10652 = vmatprep.mubr.bf16.mxu1 %v13754_v63  ;;  %10729 = vmatpush3.bf16.msra.mxu1 %v11455_v54  ;;  %v10411_v63 = vpop.f32.mrf.mxu0 }
 0x339   : >> { %10730 = vmatprep.subr.bf16.mxu1 %v11456_v60  ;;  %v14356_v54 = vadd.f32 %v10411_v63, %v10363_v17  ;;  %v10366_v3 = vpop.f32.mrf.mxu1 }
 0x33a   : >> { %10697 = vmatmul.mubr.bf16.vlgmr.msra.gmra.mxu0 %v16828_v27  ;;  %v3692_v27 = vpop.f32.mrf.mxu0 }
 0x33b   : >> { %10700 = vmatprep.mubr.bf16.mxu0 %v16829_v57  ;;  %v14359_v51 = vadd.f32 %v3692_v27, %v3483_v1  ;;  %v3496_v57 = vpop.f32.mrf.mxu1 }
 0x33c   : >> { %10731 = vmatpush3.bf16.msra.mxu1 %v11456_v60  ;;  %v10414_v36 = vpop.f32.mrf.mxu0 }
 0x33d   : >> { %10732 = vmatprep.subr.bf16.mxu1 %v11457_v0  ;;  %v14364_v60 = vadd.f32 %v10414_v36, %v10366_v3  ;;  %v10367_v46 = vpop.f32.mrf.mxu1 }
 0x33e   : >> { %v3705_v14 = vpop.f32.mrf.mxu0 }
 0x33f   : >> { %10653 = vmatmul.mubr.bf16.gmra.mxu1 %v13821_v41  ;;  %v14367_v41 = vadd.f32 %v3705_v14, %v3496_v57  ;;  %v3499_v48 = vpop.f32.mrf.mxu1 }
 0x340   : >> { %10656 = vmatprep.mubr.bf16.mxu1 %v13823_v38  ;;  %10733 = vmatpush3.bf16.msra.mxu1 %v11457_v0  ;;  %v10415_v38 = vpop.f32.mrf.mxu0  ;;  %v11460_v0 = vld [vmem:[%s11941_s10 + $0x450] sm:$0xff]  }
 0x341   : >> { %10734 = vmatprep.subr.bf16.mxu1 %v11458_v29  ;;  %v14370_v17 = vadd.f32 %v10415_v38, %v10367_v46  ;;  %v10370_v4 = vpop.f32.mrf.mxu1 }
 0x342   : >> { %10701 = vmatmul.mubr.bf16.gmra.mxu0 %v16830_v13  ;;  %v3708_v13 = vpop.f32.mrf.mxu0 }
 0x343   : >> { %10704 = vmatprep.mubr.bf16.mxu0 %v16831_v42  ;;  %v14373_v1 = vadd.f32 %v3708_v13, %v3499_v48  ;;  %v3512_v42 = vpop.f32.mrf.mxu1 }
 0x344   : >> { %10735 = vmatpush3.bf16.msra.mxu1 %v11458_v29  ;;  %v10418_v63 = vpop.f32.mrf.mxu0  ;;  %v11461_v29 = vld [vmem:[%s11941_s10 + $0x448] sm:$0xff]  }
 0x345   : >> { %10736 = vmatprep.subr.bf16.mxu1 %v11459_v45  ;;  %v14378_v3 = vadd.f32 %v10418_v63, %v10370_v4  ;;  %v10371_v27 = vpop.f32.mrf.mxu1 }
 0x346   : >> { %v3721_v57 = vpop.f32.mrf.mxu0 }
 0x347   : >> { %10657 = vmatmul.mubr.bf16.gmra.mxu1 %v13897_v16  ;;  %v14381_v16 = vadd.f32 %v3721_v57, %v3512_v42  ;;  %v3515_v36 = vpop.f32.mrf.mxu1 }
 0x348   : >> { %10660 = vmatprep.mubr.bf16.mxu1 %v16823_v37  ;;  %10737 = vmatpush3.bf16.msra.mxu1 %v11459_v45  ;;  %v10419_v46 = vpop.f32.mrf.mxu0  ;;  %v11462_v37 = vld [vmem:[%s11941_s10 + $0x440] sm:$0xff]  }
 0x349   : >> { %10738 = vmatprep.subr.bf16.mxu1 %v11460_v0  ;;  %v14384_v45 = vadd.f32 %v10419_v46, %v10371_v27  ;;  %v10374_v14 = vpop.f32.mrf.mxu1 }
 0x34a   : >> { %10705 = vmatmul.mubr.bf16.gmra.mxu0 %v16832_v34  ;;  %v3724_v34 = vpop.f32.mrf.mxu0 }
 0x34b   : >> { %10708 = vmatprep.mubr.bf16.mxu0 %v16833_v30  ;;  %v14387_v48 = vadd.f32 %v3724_v34, %v3515_v36  ;;  %v3528_v30 = vpop.f32.mrf.mxu1 }
 0x34c   : >> { %10739 = vmatpush3.bf16.msra.mxu1 %v11460_v0  ;;  %v10422_v38 = vpop.f32.mrf.mxu0 }
 0x34d   : >> { %10740 = vmatprep.subr.bf16.mxu1 %v11461_v29  ;;  %v14391_v0 = vadd.f32 %v10422_v38, %v10374_v14  ;;  %v10375_v4 = vpop.f32.mrf.mxu1 }
 0x34e   : >> { %v3737_v13 = vpop.f32.mrf.mxu0 }
 0x34f   : >> { %10661 = vmatmul.mubr.bf16.gmra.mxu1 %v13977_v9  ;;  %v14394_v42 = vadd.f32 %v3737_v13, %v3528_v30  ;;  %v3531_v9 = vpop.f32.mrf.mxu1 }
 0x350   : >> { %10664 = vmatprep.mubr.bf16.mxu1 %v13979_v31  ;;  %10741 = vmatpush3.bf16.msra.mxu1 %v11461_v29  ;;  %v10423_v63 = vpop.f32.mrf.mxu0 }
 0x351   : >> { %10742 = vmatprep.subr.bf16.mxu1 %v11462_v37  ;;  %v14396_v27 = vadd.f32 %v10423_v63, %v10375_v4 }
 0x352   : >> { %10709 = vmatmul.mubr.bf16.gmra.mxu0 %v16834_v26  ;;  %v10378_v31 = vpop.f32.mrf.mxu1  ;;  %v3740_v29 = vpop.f32.mrf.mxu0 }
 0x353   : >> { %10712 = vmatprep.mubr.bf16.mxu0 %v16835_v47  ;;  %v14399_v57 = vadd.f32 %v3740_v29, %v3531_v9  ;;  %v11465_v29 = vld [vmem:[#allocation2 + $0x210] sm:$0xff] }
 0x354   : >> { %10743 = vmatpush3.bf16.msra.mxu1 %v11462_v37  ;;  %v3544_v26 = vpop.f32.mrf.mxu1  ;;  %v10426_v36 = vpop.f32.mrf.mxu0 }
 0x355   : >> { %v14403_v47 = vadd.f32 %v10426_v36, %v10378_v31  ;;  %v3178_v36 = vrot.slane %v14328_v55, 7 }
 0x356   : >> { %v10379_v46 = vpop.f32.mrf.mxu1  ;;  %v3753_v37 = vpop.f32.mrf.mxu0 }
 0x357   : >> { %10665 = vmatmul.mubr.bf16.gmra.mxu1 %v16824_v32  ;;  %v14406_v14 = vadd.f32 %v3753_v37, %v3544_v26  ;;  %v3176_v26 = vrot.slane %v11465_v29, 7 }
 0x358   : >> { %10668 = vmatprep.mubr.bf16.mxu1 %v16825_v61  ;;  %v3547_v34 = vpop.f32.mrf.mxu1  ;;  %v10427_v30 = vpop.f32.mrf.mxu0 }
 0x359   : >> { %v14408_v32 = vadd.f32 %v10427_v30, %v10379_v46 }
 0x35a   : >> { %10713 = vmatmul.mubr.bf16.gmra.mxu0 %v16836_v10  ;;  %v10382_v38 = vpop.f32.mrf.mxu1  ;;  %v3756_v61 = vpop.f32.mrf.mxu0 }
 0x35b   : >> { %10716 = vmatprep.mubr.bf16.mxu0 %v16837_v52  ;;  %v14411_v4 = vadd.f32 %v3756_v61, %v3547_v34 }
 0x35c   : >> { %v3560_v10 = vpop.f32.mrf.mxu1 }
 0x35d   : >> { %v10430_v13 = vpop.f32.mrf.mxu0 }
 0x35e   : >> { %v14415_v52 = vadd.f32 %v10430_v13, %v10382_v38  ;;  %v10383_v9 = vpop.f32.mrf.mxu1 }
 0x35f   : >> { %10669 = vmatmul.mubr.bf16.gmra.mxu1 %v14111_v6  ;;  %v3769_v63 = vpop.f32.mrf.mxu0  ;;  %v3177_v6 = vrot.slane %v14326_v18, 7 }
 0x360   : >> { %10672 = vmatprep.mubr.bf16.mxu1 %v14113_v8  ;;  %v14418_v31 = vadd.f32 %v3769_v63, %v3560_v10  ;;  %v3563_v46 = vpop.f32.mrf.mxu1 }
 0x361   : >> { %v10431_v8 = vpop.f32.mrf.mxu0  ;;  %v3181_v38 = vsel %vm509_vm0, %v3176_v26, %v3177_v6 }
 0x362   : >> { %10717 = vmatmul.mubr.bf16.gmra.mxu0 %v14096_v35  ;;  %v14422_v37 = vadd.f32 %v10431_v8, %v10383_v9 }
 0x363   : >> { %10720 = vmatprep.mubr.bf16.mxu0 %v14083_v11  ;;  %v3772_v35 = vpop.f32.mrf.mxu0  ;;  %v3180_v11 = vsel %vm509_vm0, %v3177_v6, %v3178_v36  ;;  %v3341_v36 = vpack.c.bf16 %v14328_v55, %v14326_v18 }
 0x364   : >> { %v10386_v34 = vpop.f32.mrf.mxu1  ;;  %v14425_v30 = vadd.f32 %v3772_v35, %v3563_v46  ;;  %v3323_v63 = vpack.c.bf16 %v3180_v11, %v3181_v38 }
 0x366   : >> { %v3576_v61 = vpop.f32.mrf.mxu1  ;;  %v10434_v10 = vpop.f32.mrf.mxu0 }
 0x367   : >> { %10673 = vmatmul.mubr.bf16.gmra.mxu1 %v14203_v7  ;;  %v14433_v13 = vadd.f32 %v10434_v10, %v10386_v34 }
 0x368   : >> { %10676 = vmatprep.mubr.bf16.mxu1 %v14222_v49  ;;  %v10387_v7 = vpop.f32.mrf.mxu1  ;;  %v3785_v9 = vpop.f32.mrf.mxu0 }
 0x369   : >> { %v14436_v29 = vadd.f32 %v3785_v9, %v3576_v61 }
 0x36a   : >> { %10721 = vmatmul.mubr.bf16.gmra.mxu0 %v14177_v15  ;;  %v3579_v49 = vpop.f32.mrf.mxu1  ;;  %v10435_v46 = vpop.f32.mrf.mxu0 }
 0x36b   : >> { %10724 = vmatprep.mubr.bf16.mxu0 %v14211_v25  ;;  %v14440_v58 = vadd.f32 %v10435_v46, %v10387_v7 }
 0x36c   : >> { %v3788_v6 = vpop.f32.mrf.mxu0 }
 0x36d   : >> { %v14442_v15 = vadd.f32 %v3788_v6, %v3579_v49 }
 0x36f   : >> { %v10390_v26 = vpop.f32.mrf.mxu1  ;;  %10677 = vmatmul.mubr.bf16.gmra.mxu1 %v3323_v63 }
 0x370   : >> { %10744 = vmatprep.mubr.bf16.mxu1 %v13773_v12 }
 0x371   : >> { %v3592_v25 = vpop.f32.mrf.mxu1 }
 0x372   : >> { %v10438_v8 = vpop.f32.mrf.mxu0  ;;  %10725 = vmatmul.mubr.bf16.gmra.mxu0 %v3341_v36 }
 0x373   : >> { %v14445_v34 = vadd.f32 %v10438_v8, %v10390_v26  ;;  %v10391_v35 = vpop.f32.mrf.mxu1 }
 0x374   : >> { %v3801_v11 = vpop.f32.mrf.mxu0 }
 0x375   : >> { %v14447_v38 = vadd.f32 %v3801_v11, %v3592_v25  ;;  %v3595_v61 = vpop.f32.mrf.mxu1 }
 0x376   : >> { %v10439_v18 = vpop.f32.mrf.mxu0 }
 0x377   : >> { %v14449_v55 = vadd.f32 %v10439_v18, %v10391_v35  ;;  %v10458_v10 = vpop.f32.mrf.mxu1  ;;  %10745 = vmatmul.mubr.bf16.vlgmr.msra.gmra.mxu1 %v13812_v59 }
 0x378   : >> { %v3804_v7 = vpop.f32.mrf.mxu0  ;;  %v4046_v9 = vadd.f32 %v10458_v10, %v14350_v53  ;;  %10748 = vmatprep.mubr.bf16.mxu1 %v13869_v43 }
 0x379   : >> { %v14453_v12 = vadd.f32 %v3804_v7, %v3595_v61  ;;  %v3917_v63 = vpop.f32.mrf.mxu1 }
 0x37a   : >> { %v10506_v49 = vpop.f32.mrf.mxu0  ;;  %v4044_v46 = vadd.f32 %v3917_v63, %v14353_v40 }
 0x37b   : >> { %v14457_v36 = vadd.f32 %v10506_v49, %v4046_v9  ;;  %v10459_v26 = vpop.f32.mrf.mxu1 }
 0x37c   : >> { %v4177_v6 = vpop.f32.mrf.mxu0  ;;  %v4047_v25 = vadd.f32 %v10459_v26, %v14356_v54 }
 0x37d   : >> { %v14460_v8 = vadd.f32 %v4177_v6, %v4044_v46  ;;  %v3920_v59 = vpop.f32.mrf.mxu1 }
 0x37e   : >> { %v10507_v35 = vpop.f32.mrf.mxu0  ;;  %v4045_v53 = vadd.f32 %v3920_v59, %v14359_v51 }
 0x37f   : >> { %v14463_v11 = vadd.f32 %v10507_v35, %v4047_v25  ;;  %v10462_v61 = vpop.f32.mrf.mxu1  ;;  %10749 = vmatmul.mubr.bf16.gmra.mxu1 %v13946_v28 }
 0x380   : >> { %v4180_v43 = vpop.f32.mrf.mxu0  ;;  %v4050_v40 = vadd.f32 %v10462_v61, %v14364_v60  ;;  %10752 = vmatprep.mubr.bf16.mxu1 %v13996_v23 }
 0x381   : >> { %v14467_v18 = vadd.f32 %v4180_v43, %v4045_v53  ;;  %v3933_v10 = vpop.f32.mrf.mxu1 }
 0x382   : >> { %v10510_v54 = vpop.f32.mrf.mxu0  ;;  %v4048_v7 = vadd.f32 %v3933_v10, %v14367_v41 }
 0x383   : >> { %v14471_v9 = vadd.f32 %v10510_v54, %v4050_v40  ;;  %v10463_v63 = vpop.f32.mrf.mxu1 }
 0x384   : >> { %v4193_v51 = vpop.f32.mrf.mxu0  ;;  %v4051_v49 = vadd.f32 %v10463_v63, %v14370_v17 }
 0x385   : >> { %v14474_v46 = vadd.f32 %v4193_v51, %v4048_v7  ;;  %v3936_v28 = vpop.f32.mrf.mxu1 }
 0x386   : >> { %v10511_v26 = vpop.f32.mrf.mxu0  ;;  %v4049_v60 = vadd.f32 %v3936_v28, %v14373_v1 }
 0x387   : >> { %v14477_v6 = vadd.f32 %v10511_v26, %v4051_v49  ;;  %v10466_v25 = vpop.f32.mrf.mxu1  ;;  %10753 = vmatmul.mubr.bf16.gmra.mxu1 %v14037_v39 }
 0x388   : >> { %v4196_v23 = vpop.f32.mrf.mxu0  ;;  %v4054_v41 = vadd.f32 %v10466_v25, %v14378_v3  ;;  %10756 = vmatprep.mubr.bf16.mxu1 %v14089_v5 }
 0x389   : >> { %v14481_v59 = vadd.f32 %v4196_v23, %v4049_v60  ;;  %v3949_v35 = vpop.f32.mrf.mxu1 }
 0x38a   : >> { %v10514_v17 = vpop.f32.mrf.mxu0  ;;  %v4052_v53 = vadd.f32 %v3949_v35, %v14381_v16 }
 0x38b   : >> { %v14485_v61 = vadd.f32 %v10514_v17, %v4054_v41  ;;  %v10467_v43 = vpop.f32.mrf.mxu1 }
 0x38c   : >> { %v4209_v1 = vpop.f32.mrf.mxu0  ;;  %v4055_v40 = vadd.f32 %v10467_v43, %v14384_v45 }
 0x38d   : >> { %v14488_v10 = vadd.f32 %v4209_v1, %v4052_v53  ;;  %v3952_v39 = vpop.f32.mrf.mxu1 }
 0x38e   : >> { %v10515_v54 = vpop.f32.mrf.mxu0  ;;  %v4053_v3 = vadd.f32 %v3952_v39, %v14387_v48 }
 0x38f   : >> { %v14491_v7 = vadd.f32 %v10515_v54, %v4055_v40  ;;  %v10470_v63 = vpop.f32.mrf.mxu1  ;;  %10757 = vmatmul.mubr.bf16.gmra.mxu1 %v14130_v44 }
 0x390   : >> { %v4212_v5 = vpop.f32.mrf.mxu0  ;;  %v4058_v16 = vadd.f32 %v10470_v63, %v14391_v0  ;;  %10760 = vmatprep.mubr.bf16.mxu1 %v14155_v20 }
 0x391   : >> { %v14495_v51 = vadd.f32 %v4212_v5, %v4053_v3  ;;  %v3965_v49 = vpop.f32.mrf.mxu1 }
 0x392   : >> { %v10518_v45 = vpop.f32.mrf.mxu0  ;;  %v4056_v28 = vadd.f32 %v3965_v49, %v14394_v42 }
 0x393   : >> { %v14499_v26 = vadd.f32 %v10518_v45, %v4058_v16  ;;  %v10471_v60 = vpop.f32.mrf.mxu1 }
 0x394   : >> { %v4225_v48 = vpop.f32.mrf.mxu0  ;;  %v4059_v25 = vadd.f32 %v10471_v60, %v14396_v27 }
 0x395   : >> { %v14502_v23 = vadd.f32 %v4225_v48, %v4056_v28  ;;  %v3968_v44 = vpop.f32.mrf.mxu1 }
 0x396   : >> { %v10519_v41 = vpop.f32.mrf.mxu0  ;;  %v4057_v0 = vadd.f32 %v3968_v44, %v14399_v57 }
 0x397   : >> { %v14505_v35 = vadd.f32 %v10519_v41, %v4059_v25  ;;  %v10474_v17 = vpop.f32.mrf.mxu1  ;;  %10761 = vmatmul.mubr.bf16.gmra.mxu1 %v14157_v19 }
 0x398   : >> { %v4228_v20 = vpop.f32.mrf.mxu0  ;;  %v4062_v42 = vadd.f32 %v10474_v17, %v14403_v47  ;;  %10764 = vmatprep.mubr.bf16.mxu1 %v14179_v21 }
 0x399   : >> { %v14509_v53 = vadd.f32 %v4228_v20, %v4057_v0  ;;  %v3981_v43 = vpop.f32.mrf.mxu1 }
 0x39a   : >> { %v10522_v27 = vpop.f32.mrf.mxu0  ;;  %v4060_v1 = vadd.f32 %v3981_v43, %v14406_v14 }
 0x39b   : >> { %v14513_v40 = vadd.f32 %v10522_v27, %v4062_v42  ;;  %v10475_v39 = vpop.f32.mrf.mxu1 }
 0x39c   : >> { %v4241_v57 = vpop.f32.mrf.mxu0  ;;  %v4063_v54 = vadd.f32 %v10475_v39, %v14408_v32 }
 0x39d   : >> { %v14516_v3 = vadd.f32 %v4241_v57, %v4060_v1  ;;  %v3984_v19 = vpop.f32.mrf.mxu1 }
 0x39e   : >> { %v10523_v63 = vpop.f32.mrf.mxu0  ;;  %v4061_v47 = vadd.f32 %v3984_v19, %v14411_v4 }
 0x39f   : >> { %v14519_v5 = vadd.f32 %v10523_v63, %v4063_v54  ;;  %v10478_v16 = vpop.f32.mrf.mxu1  ;;  %10765 = vmatmul.mubr.bf16.gmra.mxu1 %v14181_v33 }
 0x3a0   : >> { %v4244_v21 = vpop.f32.mrf.mxu0  ;;  %v4066_v14 = vadd.f32 %v10478_v16, %v14415_v52  ;;  %10768 = vmatprep.mubr.bf16.mxu1 %v14194_v2 }
 0x3a1   : >> { %v14523_v49 = vadd.f32 %v4244_v21, %v4061_v47  ;;  %v3997_v45 = vpop.f32.mrf.mxu1 }
 0x3a2   : >> { %v10526_v32 = vpop.f32.mrf.mxu0  ;;  %v4064_v28 = vadd.f32 %v3997_v45, %v14418_v31 }
 0x3a3   : >> { %v14527_v60 = vadd.f32 %v10526_v32, %v4066_v14  ;;  %v10479_v48 = vpop.f32.mrf.mxu1 }
 0x3a4   : >> { %v4257_v4 = vpop.f32.mrf.mxu0  ;;  %v4067_v25 = vadd.f32 %v10479_v48, %v14422_v37 }
 0x3a5   : >> { %v14530_v44 = vadd.f32 %v4257_v4, %v4064_v28  ;;  %v4000_v33 = vpop.f32.mrf.mxu1 }
 0x3a6   : >> { %v10527_v41 = vpop.f32.mrf.mxu0  ;;  %v4065_v52 = vadd.f32 %v4000_v33, %v14425_v30 }
 0x3a7   : >> { %v14533_v0 = vadd.f32 %v10527_v41, %v4067_v25  ;;  %v10482_v17 = vpop.f32.mrf.mxu1  ;;  %10769 = vmatmul.mubr.bf16.gmra.mxu1 %v14205_v56 }
 0x3a8   : >> { %v4260_v2 = vpop.f32.mrf.mxu0  ;;  %v4070_v31 = vadd.f32 %v10482_v17, %v14433_v13  ;;  %10772 = vmatprep.mubr.bf16.mxu1 %v14230_v24 }
 0x3a9   : >> { %v14537_v20 = vadd.f32 %v4260_v2, %v4065_v52  ;;  %v4013_v42 = vpop.f32.mrf.mxu1 }
 0x3aa   : >> { %v10530_v37 = vpop.f32.mrf.mxu0  ;;  %v4068_v43 = vadd.f32 %v4013_v42, %v14436_v29 }
 0x3ab   : >> { %v14541_v27 = vadd.f32 %v10530_v37, %v4070_v31  ;;  %v10483_v1 = vpop.f32.mrf.mxu1 }
 0x3ac   : >> { %v4273_v30 = vpop.f32.mrf.mxu0  ;;  %v4071_v39 = vadd.f32 %v10483_v1, %v14440_v58 }
 0x3ad   : >> { %v14544_v57 = vadd.f32 %v4273_v30, %v4068_v43  ;;  %v4016_v56 = vpop.f32.mrf.mxu1 }
 0x3ae   : >> { %v10531_v54 = vpop.f32.mrf.mxu0  ;;  %v4069_v13 = vadd.f32 %v4016_v56, %v14442_v15 }
 0x3af   : >> { %v14547_v19 = vadd.f32 %v10531_v54, %v4071_v39  ;;  %v10486_v63 = vpop.f32.mrf.mxu1  ;;  %10773 = vmatmul.mubr.bf16.gmra.mxu1 %v3359_v50 }
 0x3b0   : >> { %v4276_v24 = vpop.f32.mrf.mxu0  ;;  %v4074_v29 = vadd.f32 %v10486_v63, %v14445_v34 }
 0x3b1   : >> { %v14553_v47 = vadd.f32 %v4276_v24, %v4069_v13  ;;  %v4029_v16 = vpop.f32.mrf.mxu1 }
 0x3b2   : >> { %v10534_v58 = vpop.f32.mrf.mxu0  ;;  %v4072_v21 = vadd.f32 %v4029_v16, %v14447_v38 }
 0x3b3   : >> { %v14556_v14 = vadd.f32 %v10534_v58, %v4074_v29  ;;  %v10487_v45 = vpop.f32.mrf.mxu1 }
 0x3b4   : >> { %v4289_v15 = vpop.f32.mrf.mxu0  ;;  %v4075_v32 = vadd.f32 %v10487_v45, %v14449_v55 }
 0x3b5   : >> { %v14559_v28 = vadd.f32 %v4289_v15, %v4072_v21  ;;  %v4032_v48 = vpop.f32.mrf.mxu1 }
 0x3b6   : >> { %v10535_v22 = vpop.f32.mrf.mxu0  ;;  %v4073_v62 = vadd.f32 %v4032_v48, %v14453_v12 }
 0x3b7   : >> { %v14562_v50 = vadd.f32 %v10535_v22, %v4075_v32  ;;  %v10554_v34 = vpop.f32.mrf.mxu1 }
 0x3b8   : >> { %v4292_v4 = vpop.f32.mrf.mxu0  ;;  %v14565_v25 = vadd.f32 %v10554_v34, %v14457_v36 }
 0x3b9   : >> { %v14567_v38 = vadd.f32 %v4292_v4, %v4073_v62  ;;  %v4437_v33 = vpop.f32.mrf.mxu1 }
 0x3ba   : >> { %v14569_v41 = vpop.f32.mrf.mxu0  ;;  %v14572_v55 = vadd.f32 %v4437_v33, %v14460_v8 }
 0x3bb   : >> { %v10555_v52 = vpop.f32.mrf.mxu1 }
 0x3bc   : >> { %v14574_v17 = vpop.f32.mrf.mxu0  ;;  %v14577_v12 = vadd.f32 %v10555_v52, %v14463_v11 }
 0x3bd   : >> { %v4440_v2 = vpop.f32.mrf.mxu1 }
 0x3be   : >> { %v14579_v31 = vpop.f32.mrf.mxu0  ;;  %v14582_v36 = vadd.f32 %v4440_v2, %v14467_v18 }
 0x3bf   : >> { %v10558_v42 = vpop.f32.mrf.mxu1 }
 0x3c0   : >> { %v14584_v37 = vpop.f32.mrf.mxu0  ;;  %v14587_v43 = vadd.f32 %v10558_v42, %v14471_v9 }
 0x3c1   : >> { %v4453_v8 = vpop.f32.mrf.mxu1 }
 0x3c2   : >> { %v14589_v1 = vpop.f32.mrf.mxu0  ;;  %v14592_v30 = vadd.f32 %v4453_v8, %v14474_v46 }
 0x3c3   : >> { %v10559_v11 = vpop.f32.mrf.mxu1 }
 0x3c4   : >> { %v14594_v39 = vpop.f32.mrf.mxu0  ;;  %v14597_v56 = vadd.f32 %v10559_v11, %v14477_v6 }
 0x3c5   : >> { %v4456_v18 = vpop.f32.mrf.mxu1 }
 0x3c6   : >> { %v14599_v54 = vpop.f32.mrf.mxu0  ;;  %v14602_v13 = vadd.f32 %v4456_v18, %v14481_v59 }
 0x3c7   : >> { %v10562_v9 = vpop.f32.mrf.mxu1 }
 0x3c8   : >> { %v14604_v63 = vpop.f32.mrf.mxu0  ;;  %v14607_v24 = vadd.f32 %v10562_v9, %v14485_v61 }
 0x3c9   : >> { %v4469_v46 = vpop.f32.mrf.mxu1 }
 0x3ca   : >> { %v14609_v29 = vpop.f32.mrf.mxu0  ;;  %v14612_v16 = vadd.f32 %v4469_v46, %v14488_v10 }
 0x3cb   : >> { %v10563_v6 = vpop.f32.mrf.mxu1 }
 0x3cc   : >> { %v14614_v58 = vpop.f32.mrf.mxu0  ;;  %v14617_v21 = vadd.f32 %v10563_v6, %v14491_v7 }
 0x3cd   : >> { %v4472_v59 = vpop.f32.mrf.mxu1 }
 0x3ce   : >> { %v14619_v45 = vpop.f32.mrf.mxu0  ;;  %v14622_v15 = vadd.f32 %v4472_v59, %v14495_v51 }
 0x3cf   : >> { %v10566_v61 = vpop.f32.mrf.mxu1 }
 0x3d0   : >> { %v14624_v32 = vpop.f32.mrf.mxu0  ;;  %v14627_v48 = vadd.f32 %v10566_v61, %v14499_v26 }
 0x3d1   : >> { %v4485_v10 = vpop.f32.mrf.mxu1 }
 0x3d2   : >> { %v14629_v22 = vpop.f32.mrf.mxu0  ;;  %v14632_v62 = vadd.f32 %v4485_v10, %v14502_v23 }
 0x3d3   : >> { %v10567_v7 = vpop.f32.mrf.mxu1 }
 0x3d4   : >> { %v14634_v34 = vpop.f32.mrf.mxu0  ;;  %v14637_v4 = vadd.f32 %v10567_v7, %v14505_v35 }
 0x3d5   : >> { %v4488_v51 = vpop.f32.mrf.mxu1 }
 0x3d6   : >> { %v14639_v33 = vpop.f32.mrf.mxu0  ;;  %v14642_v52 = vadd.f32 %v4488_v51, %v14509_v53 }
 0x3d7   : >> { %16838 = vst [vmem:[#allocation55_spill] sm:$0xff] %v14639_v33  ;;  %v10570_v26 = vpop.f32.mrf.mxu1 }
 0x3d8   : >> { %16839 = vst [vmem:[#allocation56_spill] sm:$0xff] %v14642_v52  ;;  %v14644_v2 = vpop.f32.mrf.mxu0  ;;  %v14647_v42 = vadd.f32 %v10570_v26, %v14513_v40 }
 0x3d9   : >> { %16840 = vst [vmem:[#allocation63_spill] sm:$0xff] %v14644_v2  ;;  %v4501_v23 = vpop.f32.mrf.mxu1 }
 0x3da   : >> { %16841 = vst [vmem:[#allocation65_spill] sm:$0xff] %v14647_v42  ;;  %v14649_v8 = vpop.f32.mrf.mxu0  ;;  %v14652_v11 = vadd.f32 %v4501_v23, %v14516_v3 }
 0x3db   : >> { %16842 = vst [vmem:[#allocation67_spill] sm:$0xff] %v14649_v8  ;;  %v10571_v35 = vpop.f32.mrf.mxu1 }
 0x3dc   : >> { %16843 = vst [vmem:[#allocation71_spill] sm:$0xff] %v14652_v11  ;;  %v14654_v18 = vpop.f32.mrf.mxu0  ;;  %v14657_v9 = vadd.f32 %v10571_v35, %v14519_v5 }
 0x3dd   : >> { %16844 = vst [vmem:[#allocation74_spill] sm:$0xff] %v14654_v18  ;;  %v4504_v53 = vpop.f32.mrf.mxu1 }
 0x3de   : >> { %16845 = vst [vmem:[#allocation57_spill] sm:$0xff] %v14657_v9  ;;  %v14659_v46 = vpop.f32.mrf.mxu0  ;;  %v14662_v6 = vadd.f32 %v4504_v53, %v14523_v49 }
 0x3df   : >> { %16846 = vst [vmem:[#allocation58_spill] sm:$0xff] %v14659_v46  ;;  %v10574_v40 = vpop.f32.mrf.mxu1 }
 0x3e0   : >> { %16847 = vst [vmem:[#allocation60_spill] sm:$0xff] %v14662_v6  ;;  %v14664_v59 = vpop.f32.mrf.mxu0  ;;  %v14667_v61 = vadd.f32 %v10574_v40, %v14527_v60 }
 0x3e1   : >> { %16848 = vst [vmem:[#allocation62_spill] sm:$0xff] %v14664_v59  ;;  %v4517_v3 = vpop.f32.mrf.mxu1 }
 0x3e2   : >> { %16849 = vst [vmem:[#allocation64_spill] sm:$0xff] %v14667_v61  ;;  %v14669_v10 = vpop.f32.mrf.mxu0  ;;  %v14672_v7 = vadd.f32 %v4517_v3, %v14530_v44 }
 0x3e3   : >> { %16850 = vst [vmem:[#allocation66_spill] sm:$0xff] %v14669_v10  ;;  %v10575_v5 = vpop.f32.mrf.mxu1 }
 0x3e4   : >> { %16851 = vst [vmem:[#allocation69_spill] sm:$0xff] %v14672_v7  ;;  %v14674_v51 = vpop.f32.mrf.mxu0  ;;  %v14677_v26 = vadd.f32 %v10575_v5, %v14533_v0 }
 0x3e5   : >> { %16852 = vst [vmem:[#allocation72_spill] sm:$0xff] %v14674_v51  ;;  %v4520_v49 = vpop.f32.mrf.mxu1 }
 0x3e6   : >> { %16853 = vst [vmem:[#allocation75_spill] sm:$0xff] %v14677_v26  ;;  %v14679_v23 = vpop.f32.mrf.mxu0  ;;  %v14682_v35 = vadd.f32 %v4520_v49, %v14537_v20 }
 0x3e7   : >> { %16854 = vst [vmem:[#allocation79_spill] sm:$0xff] %v14679_v23  ;;  %v10578_v60 = vpop.f32.mrf.mxu1 }
 0x3e8   : >> { %16855 = vst [vmem:[#allocation76_spill] sm:$0xff] %v14682_v35  ;;  %v14684_v53 = vpop.f32.mrf.mxu0  ;;  %v14687_v40 = vadd.f32 %v10578_v60, %v14541_v27 }
 0x3e9   : >> { %16856 = vst [vmem:[#allocation81_spill] sm:$0xff] %v14684_v53  ;;  %v4533_v44 = vpop.f32.mrf.mxu1 }
 0x3ea   : >> { %16857 = vst [vmem:[#allocation83_spill] sm:$0xff] %v14687_v40  ;;  %v14689_v3 = vpop.f32.mrf.mxu0  ;;  %v14692_v51 = vadd.f32 %v4533_v44, %v14544_v57 }
 0x3eb   : >> { %16858 = vst [vmem:[#allocation77_spill] sm:$0xff] %v14689_v3  ;;  %v10579_v0 = vpop.f32.mrf.mxu1 }
 0x3ec   : >> { %16859 = vst [vmem:[#allocation86_spill] sm:$0xff] %v14692_v51  ;;  %v14694_v5 = vpop.f32.mrf.mxu0  ;;  %v14697_v23 = vadd.f32 %v10579_v0, %v14547_v19 }
 0x3ed   : >> { %16860 = vst [vmem:[#allocation78_spill] sm:$0xff] %v14694_v5  ;;  %v4536_v20 = vpop.f32.mrf.mxu1 }
 0x3ee   : >> { %16861 = vst [vmem:[#allocation80_spill] sm:$0xff] %v14697_v23  ;;  %v14699_v49 = vpop.f32.mrf.mxu0  ;;  %v14702_v53 = vadd.f32 %v4536_v20, %v14553_v47 }
 0x3ef   : >> { %16862 = vst [vmem:[#allocation82_spill] sm:$0xff] %v14699_v49  ;;  %v10582_v27 = vpop.f32.mrf.mxu1 }
 0x3f0   : >> { %16863 = vst [vmem:[#allocation84_spill] sm:$0xff] %v14702_v53  ;;  %v14704_v60 = vpop.f32.mrf.mxu0  ;;  %v14707_v3 = vadd.f32 %v10582_v27, %v14556_v14 }
 0x3f1   : >> { %16864 = vst [vmem:[#allocation85_spill] sm:$0xff] %v14704_v60  ;;  %v4549_v57 = vpop.f32.mrf.mxu1 }
 0x3f2   : >> { %16865 = vst [vmem:[#allocation34_spill] sm:$0xff] %v14707_v3  ;;  %v14709_v44 = vpop.f32.mrf.mxu0  ;;  %v14712_v5 = vadd.f32 %v4549_v57, %v14559_v28 }
 0x3f3   : >> { %16866 = vst [vmem:[#allocation17_spill] sm:$0xff] %v14709_v44  ;;  %v10583_v19 = vpop.f32.mrf.mxu1 }
 0x3f4   : >> { %16867 = vst [vmem:[#allocation37_spill] sm:$0xff] %v14712_v5  ;;  %v14714_v0 = vpop.f32.mrf.mxu0  ;;  %v14717_v49 = vadd.f32 %v10583_v19, %v14562_v50 }
 0x3f5   : >> { %16868 = vst [vmem:[#allocation30_spill] sm:$0xff] %v14714_v0  ;;  %v4552_v47 = vpop.f32.mrf.mxu1 }
 0x3f6   : >> { %16869 = vst [vmem:[#allocation31_spill] sm:$0xff] %v14717_v49  ;;  %v14719_v20 = vpop.f32.mrf.mxu0  ;;  %v14722_v60 = vadd.f32 %v4552_v47, %v14567_v38 }
 0x3f7   : >> { %16870 = vst [vmem:[#allocation22_spill] sm:$0xff] %v14719_v20  ;;  %v10650_v14 = vpop.f32.mrf.mxu1 }
 0x3f8   : >> { %16871 = vst [vmem:[#allocation28_spill] sm:$0xff] %v14722_v60  ;;  %v14724_v27 = vpop.f32.mrf.mxu0 }
 0x3f9   : >> { %16872 = vst [vmem:[#allocation32_spill] sm:$0xff] %v14724_v27  ;;  %v4957_v3 = vpop.f32.mrf.mxu1 }
 0x3fa   : >> { %v10698_v44 = vpop.f32.mrf.mxu0 }
 0x3fb   : >> { %v10651_v53 = vpop.f32.mrf.mxu1 }
 0x3fc   : >> { %v5217_v28 = vpop.f32.mrf.mxu0 }
 0x3fd   : >> { %v4960_v57 = vpop.f32.mrf.mxu1 }
 0x3fe   : >> { %v10699_v5 = vpop.f32.mrf.mxu0 }
 0x3ff   : >> { %v10654_v23 = vpop.f32.mrf.mxu1 }
 0x400   : >> { %v14726_v0 = vpop.f32.mrf.mxu0 }
 0x401   : >> { %v4973_v50 = vpop.f32.mrf.mxu1 }
 0x402   : >> { %v14730_v49 = vpop.f32.mrf.mxu0 }
 0x403   : >> { %v14728_v19 = vpop.f32.mrf.mxu1 }
 0x404   : >> { %v14736_v47 = vpop.f32.mrf.mxu0 }
 0x405   : >> { %v14732_v20 = vpop.f32.mrf.mxu1 }
 0x406   : >> { %v14742_v51 = vpop.f32.mrf.mxu0 }
 0x407   : >> { %v14734_v38 = vpop.f32.mrf.mxu1 }
 0x408   : >> { %v14748_v26 = vpop.f32.mrf.mxu0 }
 0x409   : >> { %v14738_v27 = vpop.f32.mrf.mxu1 }
 0x40a   : >> { %v14754_v61 = vpop.f32.mrf.mxu0 }
 0x40b   : >> { %v14740_v60 = vpop.f32.mrf.mxu1 }
 0x40c   : >> { %v14760_v46 = vpop.f32.mrf.mxu0 }
 0x40d   : >> { %v14744_v40 = vpop.f32.mrf.mxu1 }
 0x40e   : >> { %v14766_v11 = vpop.f32.mrf.mxu0 }
 0x40f   : >> { %v14746_v35 = vpop.f32.mrf.mxu1 }
 0x410   : >> { %v14772_v2 = vpop.f32.mrf.mxu0 }
 0x411   : >> { %v14750_v7 = vpop.f32.mrf.mxu1  ;;  %16881 = vst [vmem:[#allocation48_spill] sm:$0xff] %v14772_v2 }
 0x412   : >> { %16873 = vst [vmem:[#allocation38_spill] sm:$0xff] %v14750_v7 }
 0x413   : >> { %v14752_v10 = vpop.f32.mrf.mxu1 }
 0x414   : >> { %16874 = vst [vmem:[#allocation20_spill] sm:$0xff] %v14752_v10 }
 0x415   : >> { %v14756_v59 = vpop.f32.mrf.mxu1 }
 0x416   : >> { %16875 = vst [vmem:[#allocation26_spill] sm:$0xff] %v14756_v59  ;;  %v14778_v59 = vpop.f32.mrf.mxu0 }
 0x417   : >> { %v14758_v6 = vpop.f32.mrf.mxu1 }
 0x418   : >> { %16876 = vst [vmem:[#allocation36_spill] sm:$0xff] %v14758_v6 }
 0x419   : >> { %v14762_v9 = vpop.f32.mrf.mxu1 }
 0x41a   : >> { %16877 = vst [vmem:[#allocation68_spill] sm:$0xff] %v14762_v9  ;;  %v14784_v9 = vpop.f32.mrf.mxu0 }
 0x41b   : >> { %v14764_v18 = vpop.f32.mrf.mxu1  ;;  %16886 = vst [vmem:[#allocation27_spill] sm:$0xff] %v14784_v9 }
 0x41c   : >> { %16878 = vst [vmem:[#allocation18_spill] sm:$0xff] %v14764_v18 }
 0x41d   : >> { %v14768_v8 = vpop.f32.mrf.mxu1 }
 0x41e   : >> { %16879 = vst [vmem:[#allocation87_spill] sm:$0xff] %v14768_v8  ;;  %v14790_v8 = vpop.f32.mrf.mxu0 }
 0x41f   : >> { %v14770_v42 = vpop.f32.mrf.mxu1  ;;  %16889 = vst [vmem:[#allocation35_spill] sm:$0xff] %v14790_v8 }
 0x420   : >> { %16880 = vst [vmem:[#allocation24_spill] sm:$0xff] %v14770_v42 }
 0x421   : >> { %v14774_v10 = vpop.f32.mrf.mxu1 }
 0x422   : >> { %16882 = vst [vmem:[#allocation33_spill] sm:$0xff] %v14774_v10  ;;  %v14798_v10 = vpop.f32.mrf.mxu0 }
 0x423   : >> { %v14776_v52 = vpop.f32.mrf.mxu1  ;;  %16892 = vst [vmem:[#allocation73_spill] sm:$0xff] %v14798_v10 }
 0x424   : >> { %16883 = vst [vmem:[#allocation21_spill] sm:$0xff] %v14776_v52  ;;  %v4826_v52 = vadd.f32 %v14569_v41, %v14565_v25  ;;  %v14808_v8 = vpop.f32.mrf.mxu0  ;;  %v4825_v25 = vadd.f32 %v14584_v37, %v14582_v36 }
 0x425   : >> { %v14780_v6 = vpop.f32.mrf.mxu1 }
 0x426   : >> { %16884 = vst [vmem:[#allocation23_spill] sm:$0xff] %v14780_v6 }
 0x427   : >> { %v14782_v7 = vpop.f32.mrf.mxu1 }
 0x428   : >> { %16885 = vst [vmem:[#allocation25_spill] sm:$0xff] %v14782_v7  ;;  %v4824_v7 = vadd.f32 %v14574_v17, %v14572_v55  ;;  %v14817_v17 = vld [vmem:[%s13566_s16 + $0x1] ss:$0 sm:$0xff] }
 0x429   : >> { %v14786_v18 = vpop.f32.mrf.mxu1 }
 0x42a   : >> { %16887 = vst [vmem:[#allocation29_spill] sm:$0xff] %v14786_v18  ;;  %v5086_v18 = vadd.f32 %v10650_v14, %v4826_v52  ;;  %v5085_v14 = vadd.f32 %v4960_v57, %v4825_v25  ;;  %v4832_v57 = vadd.f32 %v14614_v58, %v14612_v16 }
 0x42b   : >> { %v14788_v33 = vpop.f32.mrf.mxu1 }
 0x42c   : >> { %16888 = vst [vmem:[#allocation39_spill] sm:$0xff] %v14788_v33  ;;  %v4827_v33 = vadd.f32 %v14579_v31, %v14577_v12  ;;  %v5346_v41 = vadd.f32 %v10698_v44, %v5086_v18  ;;  %v4828_v12 = vadd.f32 %v14594_v39, %v14592_v30  ;;  %v4829_v30 = vadd.f32 %v14604_v63, %v14602_v13 }
 0x42d   : >> { %v14792_v42 = vpop.f32.mrf.mxu1 }
 0x42e   : >> { %16890 = vst [vmem:[#allocation19_spill] sm:$0xff] %v14792_v42  ;;  %v5084_v42 = vadd.f32 %v4957_v3, %v4824_v7  ;;  %v5087_v10 = vadd.f32 %v10651_v53, %v4827_v33  ;;  %v14821_v7 = vpop.f32.mrf.mxu0  ;;  %v5089_v13 = vadd.f32 %v14732_v20, %v4829_v30  ;;  %v16897_v30 = vld [vmem:[#allocation38_spill] sm:$0xff] }
 0x42f   : >> { %v14794_v2 = vpop.f32.mrf.mxu1 }
 0x430   : >> { %16891 = vst [vmem:[#allocation40_spill] sm:$0xff] %v14794_v2  ;;  %v5344_v52 = vadd.f32 %v5217_v28, %v5084_v42  ;;  %v5345_v42 = vadd.f32 %v14726_v0, %v5085_v14  ;;  %v5349_v16 = vadd.f32 %v14748_v26, %v5089_v13  ;;  %v16901_v13 = vld [vmem:[#allocation20_spill] sm:$0xff] }
 0x431   : >> { %v14800_v6 = vpop.f32.mrf.mxu1 }
 0x432   : >> { %16893 = vst [vmem:[#allocation70_spill] sm:$0xff] %v14800_v6  ;;  %v4830_v6 = vadd.f32 %v14589_v1, %v14587_v43  ;;  %v4831_v43 = vadd.f32 %v14599_v54, %v14597_v56  ;;  %v5088_v1 = vadd.f32 %v4973_v50, %v4828_v12 }
 0x433   : >> { %v14804_v9 = vpop.f32.mrf.mxu1 }
 0x434   : >> { %16894 = vst [vmem:[#allocation50_spill] sm:$0xff] %v14804_v9  ;;  %v5090_v31 = vadd.f32 %v10654_v23, %v4830_v6  ;;  %v14831_v6 = vpop.f32.mrf.mxu0 }
 0x435   : >> { %v14810_v2 = vpop.f32.mrf.mxu1 }
 0x436   : >> { %16895 = vst [vmem:[#allocation53_spill] sm:$0xff] %v14810_v2  ;;  %v5347_v2 = vadd.f32 %v10699_v5, %v5087_v10  ;;  %v5350_v39 = vadd.f32 %v14730_v49, %v5090_v31  ;;  %v5091_v10 = vadd.f32 %v14728_v19, %v4831_v43  ;;  %v4834_v5 = vadd.f32 %v14609_v29, %v14607_v24  ;;  %v14843_v19 = vpop.f32.mrf.mxu0 }
 0x437   : >> { %v10746_v55 = vpop.f32.mrf.mxu1 }
 0x438   : >> { %v5606_v9 = vadd.f32 %v10746_v55, %v5346_v41  ;;  %v5094_v50 = vadd.f32 %v14734_v38, %v4834_v5  ;;  %v5351_v24 = vadd.f32 %v14742_v51, %v5091_v10  ;;  %v4835_v41 = vadd.f32 %v14619_v45, %v14617_v21  ;;  %v14855_v31 = vpop.f32.mrf.mxu0  ;;  %v16898_v10 = vld [vmem:[#allocation48_spill] sm:$0xff] }
 0x439   : >> { %v5477_v3 = vpop.f32.mrf.mxu1  ;;  %v5092_v55 = vadd.f32 %v14738_v27, %v4832_v57  ;;  %v4833_v51 = vadd.f32 %v14624_v32, %v14622_v15  ;;  %v16902_v57 = vld [vmem:[#allocation65_spill] sm:$0xff] }
 0x43a   : >> { %v5646_v36 = vadd.f32 %v14817_v17, %v5606_v9  ;;  %v5604_v37 = vadd.f32 %v5477_v3, %v5344_v52  ;;  %v5354_v12 = vadd.f32 %v14754_v61, %v5094_v50  ;;  %v5095_v21 = vadd.f32 %v14740_v60, %v4835_v41  ;;  %v16903_v50 = vld [vmem:[#allocation67_spill] sm:$0xff] }
 0x43b   : >> { %v10747_v33 = vpop.f32.mrf.mxu1  ;;  %v5093_v15 = vadd.f32 %v14744_v40, %v4833_v51  ;;  %v4836_v60 = vadd.f32 %v14634_v34, %v14632_v62 }
 0x43c   : >> { %v5678_v18 = vmax.f32 %v5646_v36, 0.0  ;;  %v5644_v53 = vadd.f32 %v14817_v17, %v5604_v37  ;;  %v5607_v44 = vadd.f32 %v10747_v33, %v5347_v2  ;;  %v5348_v2 = vadd.f32 %v14736_v47, %v5088_v1 }
 0x43d   : >> { %v5480_v9 = vpop.f32.mrf.mxu1  ;;  %v4838_v36 = vadd.f32 %v14629_v22, %v14627_v48  ;;  %v5352_v37 = vadd.f32 %v14760_v46, %v5092_v55  ;;  %v5355_v48 = vadd.f32 %v14766_v11, %v5095_v21  ;;  %v5353_v62 = vadd.f32 %v16898_v10, %v5093_v15  ;;  %v16900_v11 = vld [vmem:[#allocation63_spill] sm:$0xff] }
 0x43e   : >> { %5710 = vst [vmem:[#allocation2 + $0x218] sm:$0xff] %v5678_v18  ;;  %v5676_v56 = vmax.f32 %v5644_v53, 0.0  ;;  %v5647_v54 = vadd.f32 %v14817_v17, %v5607_v44  ;;  %v5605_v23 = vadd.f32 %v5480_v9, %v5345_v42  ;;  %v14867_v42 = vpop.f32.mrf.mxu0  ;;  %v16896_v53 = vld [vmem:[#allocation55_spill] sm:$0xff] }
 0x43f   : >> { %v10750_v0 = vpop.f32.mrf.mxu1  ;;  %v5098_v33 = vadd.f32 %v14746_v35, %v4838_v36  ;;  %v4839_v44 = vadd.f32 %v16896_v53, %v14637_v4  ;;  %v16909_v21 = vld [vmem:[#allocation35_spill] sm:$0xff] }
 0x440   : >> { %5708 = vst [vmem:[#allocation2 + $0xb0] sm:$0xff] %v5676_v56  ;;  %v5679_v63 = vmax.f32 %v5647_v54, 0.0  ;;  %v5645_v49 = vadd.f32 %v14817_v17, %v5605_v23  ;;  %v5610_v28 = vadd.f32 %v10750_v0, %v5350_v39  ;;  %v5096_v39 = vadd.f32 %v16897_v30, %v4836_v60  ;;  %v16899_v54 = vld [vmem:[#allocation56_spill] sm:$0xff]  ;;  %v16913_v60 = vld [vmem:[#allocation73_spill] sm:$0xff] }
 0x441   : >> { %v5493_v25 = vpop.f32.mrf.mxu1  ;;  %v4837_v23 = vadd.f32 %v16900_v11, %v16899_v54  ;;  %v5358_v5 = vadd.f32 %v14778_v59, %v5098_v33  ;;  %v5099_v4 = vadd.f32 %v16901_v13, %v4839_v44  ;;  %v16918_v54 = vld [vmem:[#allocation66_spill] sm:$0xff] }
 0x442   : >> { %5711 = vst [vmem:[#allocation2 + $0x2d0] sm:$0xff] %v5679_v63  ;;  %v5677_v29 = vmax.f32 %v5645_v49, 0.0  ;;  %v5650_v47 = vadd.f32 %v14817_v17, %v5610_v28  ;;  %v5608_v20 = vadd.f32 %v5493_v25, %v5348_v2  ;;  %v14879_v2 = vpop.f32.mrf.mxu0  ;;  %v4842_v25 = vadd.f32 %v16903_v50, %v16902_v57  ;;  %v16922_v50 = vld [vmem:[#allocation24_spill] sm:$0xff] }
 0x443   : >> { %v10751_v52 = vpop.f32.mrf.mxu1 }
 0x444   : >> { %5709 = vst [vmem:[#allocation2 + $0xa8] sm:$0xff] %v5677_v29  ;;  %v5682_v58 = vmax.f32 %v5650_v47, 0.0  ;;  %v5648_v38 = vadd.f32 %v14817_v17, %v5608_v20  ;;  %v5611_v14 = vadd.f32 %v10751_v52, %v5351_v24  ;;  %v16904_v24 = vld [vmem:[#allocation27_spill] sm:$0xff]  ;;  %v16905_v20 = vld [vmem:[#allocation26_spill] sm:$0xff] }
 0x445   : >> { %v5496_v3 = vpop.f32.mrf.mxu1  ;;  %v5356_v29 = vadd.f32 %v16904_v24, %v5096_v39  ;;  %v5097_v41 = vadd.f32 %v16905_v20, %v4837_v23 }
 0x446   : >> { %5714 = vst [vmem:[#allocation2 + $0x38] sm:$0xff] %v5682_v58  ;;  %v5680_v45 = vmax.f32 %v5648_v38, 0.0  ;;  %v5651_v27 = vadd.f32 %v14817_v17, %v5611_v14  ;;  %v5609_v26 = vadd.f32 %v5496_v3, %v5349_v16  ;;  %v16906_v16 = vld [vmem:[#allocation71_spill] sm:$0xff]  ;;  %v16907_v58 = vld [vmem:[#allocation74_spill] sm:$0xff]  ;;  %v16908_v14 = vld [vmem:[#allocation36_spill] sm:$0xff] }
 0x447   : >> { %v10754_v43 = vpop.f32.mrf.mxu1  ;;  %v4840_v38 = vadd.f32 %v16907_v58, %v16906_v16  ;;  %v5102_v51 = vadd.f32 %v16908_v14, %v4842_v25  ;;  %v5357_v33 = vadd.f32 %v16913_v60, %v5097_v41  ;;  %v16925_v16 = vld [vmem:[#allocation33_spill] sm:$0xff] }
 0x448   : >> { %5712 = vst [vmem:[#allocation2 + $0x248] sm:$0xff] %v5680_v45  ;;  %v5683_v32 = vmax.f32 %v5651_v27, 0.0  ;;  %v5649_v61 = vadd.f32 %v14817_v17, %v5609_v26  ;;  %v5614_v1 = vadd.f32 %v10754_v43, %v5354_v12  ;;  %v14891_v12 = vpop.f32.mrf.mxu0  ;;  %v5359_v45 = vadd.f32 %v16909_v21, %v5099_v4  ;;  %v16911_v43 = vld [vmem:[#allocation58_spill] sm:$0xff]  ;;  %v16930_v60 = vld [vmem:[#allocation77_spill] sm:$0xff] }
 0x449   : >> { %v5509_v18 = vpop.f32.mrf.mxu1  ;;  %v5362_v44 = vadd.f32 %v14808_v8, %v5102_v51 }
 0x44a   : >> { %5715 = vst [vmem:[#allocation2 + $0x108] sm:$0xff] %v5683_v32  ;;  %v5681_v22 = vmax.f32 %v5649_v61, 0.0  ;;  %v5654_v46 = vadd.f32 %v14817_v17, %v5614_v1  ;;  %v5612_v40 = vadd.f32 %v5509_v18, %v5352_v37  ;;  %v16910_v37 = vld [vmem:[#allocation57_spill] sm:$0xff]  ;;  %v16912_v32 = vld [vmem:[#allocation68_spill] sm:$0xff]  ;;  %v14903_v30 = vpop.f32.mrf.mxu0 }
 0x44b   : >> { %v10755_v9 = vpop.f32.mrf.mxu1  ;;  %v4843_v15 = vadd.f32 %v16911_v43, %v16910_v37  ;;  %v5100_v61 = vadd.f32 %v16912_v32, %v4840_v38  ;;  %v16928_v43 = vld [vmem:[#allocation21_spill] sm:$0xff] }
 0x44c   : >> { %5713 = vst [vmem:[#allocation2 + $0x140] sm:$0xff] %v5681_v22  ;;  %v5686_v34 = vmax.f32 %v5654_v46, 0.0  ;;  %v5652_v35 = vadd.f32 %v14817_v17, %v5612_v40  ;;  %v5615_v56 = vadd.f32 %v10755_v9, %v5355_v48  ;;  %v16914_v46 = vld [vmem:[#allocation60_spill] sm:$0xff]  ;;  %v16915_v40 = vld [vmem:[#allocation62_spill] sm:$0xff]  ;;  %v5313_v24 = vpop.f32.mrf.mxu0 }
 0x44d   : >> { %v5512_v0 = vpop.f32.mrf.mxu1  ;;  %v4841_v53 = vadd.f32 %v16915_v40, %v16914_v46  ;;  %v16916_v9 = vld [vmem:[#allocation18_spill] sm:$0xff]  ;;  %v5360_v23 = vadd.f32 %v14821_v7, %v5100_v61 }
 0x44e   : >> { %5718 = vst [vmem:[#allocation2 + $0x2a8] sm:$0xff] %v5686_v34  ;;  %v5684_v63 = vmax.f32 %v5652_v35, 0.0  ;;  %v5655_v49 = vadd.f32 %v14817_v17, %v5615_v56  ;;  %v5613_v28 = vadd.f32 %v5512_v0, %v5353_v62  ;;  %v5103_v10 = vadd.f32 %v16916_v9, %v4843_v15  ;;  %v16917_v56 = vld [vmem:[#allocation64_spill] sm:$0xff]  ;;  %v16919_v0 = vld [vmem:[#allocation87_spill] sm:$0xff] }
 0x44f   : >> { %v10758_v47 = vpop.f32.mrf.mxu1  ;;  %v4846_v11 = vadd.f32 %v16918_v54, %v16917_v56  ;;  %v5101_v13 = vadd.f32 %v16919_v0, %v4841_v53 }
 0x450   : >> { %5716 = vst [vmem:[#allocation2 + $0x290] sm:$0xff] %v5684_v63  ;;  %v5687_v59 = vmax.f32 %v5655_v49, 0.0  ;;  %v5653_v55 = vadd.f32 %v14817_v17, %v5613_v28  ;;  %v5618_v52 = vadd.f32 %v10758_v47, %v5358_v5  ;;  %v16920_v49 = vld [vmem:[#allocation69_spill] sm:$0xff]  ;;  %v16921_v28 = vld [vmem:[#allocation72_spill] sm:$0xff]  ;;  %v5363_v47 = vadd.f32 %v14831_v6, %v5103_v10 }
 0x451   : >> { %v5525_v3 = vpop.f32.mrf.mxu1  ;;  %v4844_v57 = vadd.f32 %v16921_v28, %v16920_v49  ;;  %v5106_v25 = vadd.f32 %v16922_v50, %v4846_v11  ;;  %v5361_v14 = vadd.f32 %v14843_v19, %v5101_v13  ;;  %v16927_v6 = vld [vmem:[#allocation81_spill] sm:$0xff]  ;;  %v16929_v19 = vld [vmem:[#allocation83_spill] sm:$0xff]  ;;  %v16938_v50 = vld [vmem:[#allocation84_spill] sm:$0xff] }
 0x452   : >> { %5719 = vst [vmem:[#allocation2 + $0x190] sm:$0xff] %v5687_v59  ;;  %v5685_v27 = vmax.f32 %v5653_v55, 0.0  ;;  %v5658_v26 = vadd.f32 %v14817_v17, %v5618_v52  ;;  %v5616_v36 = vadd.f32 %v5525_v3, %v5356_v29  ;;  %v16923_v59 = vld [vmem:[#allocation75_spill] sm:$0xff]  ;;  %v16934_v10 = vld [vmem:[#allocation25_spill] sm:$0xff] }
 0x453   : >> { %v10759_v1 = vpop.f32.mrf.mxu1  ;;  %v16924_v55 = vld [vmem:[#allocation79_spill] sm:$0xff]  ;;  %v5104_v58 = vadd.f32 %v16925_v16, %v4844_v57  ;;  %v16937_v13 = vld [vmem:[#allocation29_spill] sm:$0xff] }
 0x454   : >> { %5717 = vst [vmem:[#allocation2 + $0x110] sm:$0xff] %v5685_v27  ;;  %v5690_v18 = vmax.f32 %v5658_v26, 0.0  ;;  %v5656_v48 = vadd.f32 %v14817_v17, %v5616_v36  ;;  %v5619_v22 = vadd.f32 %v10759_v1, %v5359_v45  ;;  %v4847_v52 = vadd.f32 %v16924_v55, %v16923_v59  ;;  %v16926_v45 = vld [vmem:[#allocation76_spill] sm:$0xff]  ;;  %v10723_v36 = vpop.f32.mrf.mxu0  ;;  %v16942_v16 = vld [vmem:[#allocation17_spill] sm:$0xff] }
 0x455   : >> { %v5528_v39 = vpop.f32.mrf.mxu1  ;;  %v4845_v27 = vadd.f32 %v16927_v6, %v16926_v45  ;;  %v5366_v26 = vadd.f32 %v14855_v31, %v5106_v25  ;;  %v16944_v6 = vld [vmem:[#allocation37_spill] sm:$0xff] }
 0x456   : >> { %5722 = vst [vmem:[#allocation2 + $0x1d8] sm:$0xff] %v5690_v18  ;;  %v5688_v62 = vmax.f32 %v5656_v48, 0.0  ;;  %v5659_v34 = vadd.f32 %v14817_v17, %v5619_v22  ;;  %v5617_v35 = vadd.f32 %v5528_v39, %v5357_v33  ;;  %v5107_v15 = vadd.f32 %v16928_v43, %v4847_v52  ;;  %v16931_v22 = vld [vmem:[#allocation23_spill] sm:$0xff]  ;;  %v16933_v39 = vld [vmem:[#allocation78_spill] sm:$0xff] }
 0x457   : >> { %v10762_v5 = vpop.f32.mrf.mxu1  ;;  %v4850_v33 = vadd.f32 %v16930_v60, %v16929_v19  ;;  %v5364_v18 = vadd.f32 %v14867_v42, %v5104_v58  ;;  %v5105_v46 = vadd.f32 %v16931_v22, %v4845_v27  ;;  %v16945_v27 = vld [vmem:[#allocation30_spill] sm:$0xff]  ;;  %v16947_v60 = vld [vmem:[#allocation31_spill] sm:$0xff] }
 0x458   : >> { %5720 = vst [vmem:[#allocation2 + $0x1e0] sm:$0xff] %v5688_v62  ;;  %v5691_v8 = vmax.f32 %v5659_v34, 0.0  ;;  %v5657_v4 = vadd.f32 %v14817_v17, %v5617_v35  ;;  %v5622_v63 = vadd.f32 %v10762_v5, %v5362_v44  ;;  %v16932_v44 = vld [vmem:[#allocation86_spill] sm:$0xff]  ;;  %v5316_v34 = vpop.f32.mrf.mxu0  ;;  %v5367_v56 = vadd.f32 %v14879_v2, %v5107_v15  ;;  %v16939_v2 = vld [vmem:[#allocation85_spill] sm:$0xff] }
 0x459   : >> { %v5541_v29 = vpop.f32.mrf.mxu1  ;;  %v4848_v9 = vadd.f32 %v16933_v39, %v16932_v44  ;;  %v5110_v62 = vadd.f32 %v16934_v10, %v4850_v33  ;;  %v16936_v5 = vld [vmem:[#allocation82_spill] sm:$0xff]  ;;  %v4849_v25 = vadd.f32 %v16939_v2, %v16938_v50  ;;  %v16950_v39 = vld [vmem:[#allocation28_spill] sm:$0xff] }
 0x45a   : >> { %5723 = vst [vmem:[#allocation2] sm:$0xff] %v5691_v8  ;;  %v5689_v20 = vmax.f32 %v5657_v4, 0.0  ;;  %v5662_v7 = vadd.f32 %v14817_v17, %v5622_v63  ;;  %v5620_v41 = vadd.f32 %v5541_v29, %v5360_v23  ;;  %v16935_v23 = vld [vmem:[#allocation80_spill] sm:$0xff]  ;;  %v5365_v63 = vadd.f32 %v14891_v12, %v5105_v46  ;;  %v16941_v12 = vld [vmem:[#allocation34_spill] sm:$0xff] }
 0x45b   : >> { %v10763_v38 = vpop.f32.mrf.mxu1  ;;  %v4851_v0 = vadd.f32 %v16936_v5, %v16935_v23  ;;  %v5108_v8 = vadd.f32 %v16937_v13, %v4848_v9  ;;  %v5370_v29 = vadd.f32 %v14903_v30, %v5110_v62  ;;  %v4854_v58 = vadd.f32 %v16942_v16, %v16941_v12  ;;  %v16948_v33 = vld [vmem:[#allocation22_spill] sm:$0xff]  ;;  %v16951_v9 = vld [vmem:[#allocation32_spill] sm:$0xff] }
 0x45c   : >> { %5721 = vst [vmem:[#allocation2 + $0x178] sm:$0xff] %v5689_v20  ;;  %v5694_v51 = vmax.f32 %v5662_v7, 0.0  ;;  %v5660_v3 = vadd.f32 %v14817_v17, %v5620_v41  ;;  %v5623_v21 = vadd.f32 %v10763_v38, %v5363_v47  ;;  %v10726_v47 = vpop.f32.mrf.mxu0  ;;  %v16940_v7 = vld [vmem:[#allocation39_spill] sm:$0xff] }
 0x45d   : >> { %v5544_v37 = vpop.f32.mrf.mxu1  ;;  %v5111_v41 = vadd.f32 %v16940_v7, %v4851_v0  ;;  %v5368_v38 = vadd.f32 %v5313_v24, %v5108_v8  ;;  %v16953_v0 = vld [vmem:[#allocation53_spill] sm:$0xff] }
 0x45e   : >> { %5726 = vst [vmem:[#allocation2 + $0x2f8] sm:$0xff] %v5694_v51  ;;  %v5692_v32 = vmax.f32 %v5660_v3, 0.0  ;;  %v5663_v61 = vadd.f32 %v14817_v17, %v5623_v21  ;;  %v5621_v1 = vadd.f32 %v5544_v37, %v5361_v14  ;;  %v16943_v51 = vld [vmem:[#allocation19_spill] sm:$0xff]  ;;  %v16946_v37 = vld [vmem:[#allocation40_spill] sm:$0xff]  ;;  %v5329_v15 = vpop.f32.mrf.mxu0 }
 0x45f   : >> { %v10766_v48 = vpop.f32.mrf.mxu1  ;;  %v5109_v3 = vadd.f32 %v16943_v51, %v4849_v25  ;;  %v5114_v43 = vadd.f32 %v16946_v37, %v4854_v58  ;;  %v11467_v51 = vld [vmem:[#allocation3 + $0xdf0] sm:$0xff] (%p394_p2)   ;;  %v11470_v37 = vld [vmem:[#allocation3 + $0xdd8] sm:$0xff] (%p394_p2)  }
 0x460   : >> { %5724 = vst [vmem:[#allocation2 + $0x1b8] sm:$0xff] %v5692_v32  ;;  %v5695_v40 = vmax.f32 %v5663_v61, 0.0  ;;  %v5661_v31 = vadd.f32 %v14817_v17, %v5621_v1  ;;  %v5626_v53 = vadd.f32 %v10766_v48, %v5366_v26  ;;  %v4852_v26 = vadd.f32 %v16945_v27, %v16944_v6  ;;  %v16949_v48 = vld [vmem:[#allocation70_spill] sm:$0xff]  ;;  %v10727_v62 = vpop.f32.mrf.mxu0 }
 0x461   : >> { %v5557_v35 = vpop.f32.mrf.mxu1  ;;  %v5371_v61 = vadd.f32 %v10723_v36, %v5111_v41  ;;  %v4853_v36 = vadd.f32 %v16951_v9, %v16950_v39  ;;  %v5374_v10 = vadd.f32 %v10726_v47, %v5114_v43  ;;  %v14978_v6 = vld [vmem:[#allocation2] sm:$0xff] (%p394_p2) }
 0x462   : >> { %5727 = vst [vmem:[#allocation2 + $0x188] sm:$0xff] %v5695_v40  ;;  %v5693_v54 = vmax.f32 %v5661_v31, 0.0  ;;  %v5666_v42 = vadd.f32 %v14817_v17, %v5626_v53  ;;  %v5624_v11 = vadd.f32 %v5557_v35, %v5364_v18  ;;  %v4855_v18 = vadd.f32 %v16948_v33, %v16947_v60  ;;  %v11472_v33 = vld [vmem:[#allocation3 + $0xdc8] sm:$0xff] (%p394_p2)  }
 0x463   : >> { %v10767_v4 = vpop.f32.mrf.mxu1  ;;  %v5112_v22 = vadd.f32 %v16949_v48, %v4852_v26  ;;  %v5369_v40 = vadd.f32 %v5316_v34, %v5109_v3  ;;  %v5113_v13 = vadd.f32 %v16953_v0, %v4853_v36  ;;  %v11468_v3 = vld [vmem:[#allocation3 + $0xde8] sm:$0xff] (%p394_p2)   ;;  %v15003_v48 = vld [vmem:[#allocation2 + $0xb0] sm:$0xff] (%p394_p2) }
 0x464   : >> { %5725 = vst [vmem:[#allocation2 + $0x18] sm:$0xff] %v5693_v54  ;;  %v5698_v49 = vmax.f32 %v5666_v42, 0.0  ;;  %v5664_v28 = vadd.f32 %v14817_v17, %v5624_v11  ;;  %v5627_v57 = vadd.f32 %v10767_v4, %v5367_v56  ;;  %v16952_v56 = vld [vmem:[#allocation50_spill] sm:$0xff] }
 0x465   : >> { %v5560_v20 = vpop.f32.mrf.mxu1  ;;  %v5115_v54 = vadd.f32 %v16952_v56, %v4855_v18  ;;  %v5372_v5 = vadd.f32 %v5329_v15, %v5112_v22  ;;  %v5819_v15 = vrot.slane (%p394_p2), %v14978_v6, 7  ;;  %v11473_v18 = vld [vmem:[#allocation3 + $0xdc0] sm:$0xff] (%p394_p2)   ;;  %v15005_v22 = vld [vmem:[#allocation2 + $0xa8] sm:$0xff] (%p394_p2)  ;;  %v15021_v36 = vld [vmem:[#allocation2 + $0x2d0] sm:$0xff] (%p394_p2) }
 0x466   : >> { %5730 = vst [vmem:[#allocation2 + $0x128] sm:$0xff] %v5698_v49  ;;  %v5696_v59 = vmax.f32 %v5664_v28, 0.0  ;;  %v5667_v55 = vadd.f32 %v14817_v17, %v5627_v57  ;;  %v5625_v52 = vadd.f32 %v5560_v20, %v5365_v63  ;;  %v5332_v49 = vpop.f32.mrf.mxu0  ;;  %v15015_v39 = vpack.c.bf16 (%p394_p2), %v15005_v22, %v15003_v48  ;;  %v11477_v56 = vld [vmem:[#allocation3 + $0xe30] sm:$0xff] (%p394_p2)   ;;  %v11478_v0 = vld [vmem:[#allocation3 + $0xda8] sm:$0xff] (%p394_p2)  }
 0x467   : >> { %v10770_v14 = vpop.f32.mrf.mxu1  ;;  %v5375_v57 = vadd.f32 %v10727_v62, %v5115_v54  ;;  %v5373_v47 = vadd.f32 %v5332_v49, %v5113_v13  ;;  %v11479_v13 = vld [vmem:[#allocation3 + $0xe28] sm:$0xff] (%p394_p2)  }
 0x468   : >> { %5728 = vst [vmem:[#allocation2 + $0x148] sm:$0xff] %v5696_v59  ;;  %v5699_v21 = vmax.f32 %v5667_v55, 0.0  ;;  %v5665_v30 = vadd.f32 %v14817_v17, %v5625_v52  ;;  %v5630_v45 = vadd.f32 %v10770_v14, %v5370_v29  ;;  %v11466_v14 = vld [vmem:[#allocation3 + $0xdf8] sm:$0xff] (%p394_p2)  }
 0x469   : >> { %v5573_v32 = vpop.f32.mrf.mxu1  ;;  %10776 = vmatprep.subr.bf16.mxu0 (%p394_p2), %v11466_v14  ;;  %11208 = vmatprep.subr.bf16.mxu1 (%p394_p2), %v11466_v14  ;;  %v15025_v62 = vld [vmem:[#allocation2 + $0x188] sm:$0xff] (%p394_p2) }
 0x46a   : >> { %5731 = vst [vmem:[#allocation2 + $0x308] sm:$0xff] %v5699_v21  ;;  %v5697_v1 = vmax.f32 %v5665_v30, 0.0  ;;  %v5670_v24 = vadd.f32 %v14817_v17, %v5630_v45  ;;  %v5628_v19 = vadd.f32 %v5573_v32, %v5368_v38  ;;  %10777 = vmatpush3.bf16.msra.mxu0 (%p394_p2), %v11466_v14  ;;  %11216 = vmatpush3.bf16.msra.mxu1 (%p394_p2), %v11466_v14  ;;  %v14972_v21 = vld [vmem:[#allocation2 + $0x240] sm:$0xff] (%p394_p2)  ;;  %v14974_v30 = vld [vmem:[#allocation2 + $0x350] sm:$0xff] (%p394_p2)  ;;  %v14976_v45 = vld [vmem:[#allocation2 + $0x1d8] sm:$0xff] (%p394_p2) }
 0x46b   : >> { %v10771_v46 = vpop.f32.mrf.mxu1  ;;  %10778 = vmatprep.subr.bf16.mxu0 (%p394_p2), %v11467_v51  ;;  %11209 = vmatprep.subr.bf16.mxu1 (%p394_p2), %v11467_v51  ;;  %v5996_v27 = vpack.c.bf16 (%p394_p2), %v14974_v30, %v14972_v21  ;;  %v14984_v26 = vpack.c.bf16 (%p394_p2), %v14978_v6, %v14976_v45  ;;  %v5818_v43 = vrot.slane (%p394_p2), %v14976_v45, 7  ;;  %v5911_v32 = vrot.slane (%p394_p2), %v14976_v45, 1 }
 0x46c   : >> { %5729 = vst [vmem:[#allocation2 + $0x100] sm:$0xff] %v5697_v1  ;;  %v5702_v31 = vmax.f32 %v5670_v24, 0.0  ;;  %v5668_v53 = vadd.f32 %v14817_v17, %v5628_v19  ;;  %v5631_v44 = vadd.f32 %v10771_v46, %v5371_v61  ;;  %v16426_v61 = vrot.slane (%p394_p2), %v14978_v6, 1  ;;  %v11471_v1 = vld [vmem:[#allocation3 + $0xdd0] sm:$0xff] (%p394_p2)   ;;  %v15007_v46 = vld [vmem:[#allocation2 + $0x1b8] sm:$0xff] (%p394_p2) }
 0x46d   : >> { %v5576_v35 = vpop.f32.mrf.mxu1  ;;  %16954 = vst [vmem:[#allocation88_spill] sm:$0xff] (%p394_p2), %v14984_v26  ;;  %10792 = vmatprep.mubr.bf16.mxu0 (%p394_p2), %v5996_v27  ;;  %10808 = vmatprep.mubr.bf16.mxu1 (%p394_p2), %v14984_v26  ;;  %v14995_v19 = vsel (%p394_p2), %vm509_vm0, %v5818_v43, %v5819_v15  ;;  %v5793_v27 = vld [vmem:[#allocation2 + $0x40] sm:$0xff] (%p394_p2)  ;;  %v5891_v45 = vrot.slane (%p394_p2), %v15005_v22, 1 }
 0x46e   : >> { %5734 = vst [vmem:[#allocation2 + $0xf8] sm:$0xff] %v5702_v31  ;;  %v5700_v42 = vmax.f32 %v5668_v53, 0.0  ;;  %v5671_v11 = vadd.f32 %v14817_v17, %v5631_v44  ;;  %v5629_v23 = vadd.f32 %v5576_v35, %v5369_v40  ;;  %10779 = vmatpush3.bf16.msra.mxu0 (%p394_p2), %v11467_v51  ;;  %11217 = vmatpush3.bf16.msra.mxu1 (%p394_p2), %v11467_v51  ;;  %v15009_v40 = vld [vmem:[#allocation2 + $0x18] sm:$0xff] (%p394_p2)  ;;  %v11476_v35 = vld [vmem:[#allocation3 + $0xdb0] sm:$0xff] (%p394_p2)   ;;  %v15098_v15 = vld [vmem:[#allocation2 + $0x220] sm:$0xff] (%p394_p2) }
 0x46f   : >> { %v10774_v34 = vpop.f32.mrf.mxu1  ;;  %10780 = vmatprep.subr.bf16.mxu0 (%p394_p2), %v11468_v3  ;;  %11210 = vmatprep.subr.bf16.mxu1 (%p394_p2), %v11468_v3  ;;  %v15001_v60 = vsel (%p394_p2), %vm600_vm1, %v5911_v32, %v16426_v61  ;;  %v11474_v31 = vld [vmem:[#allocation3 + $0xdb8] sm:$0xff] (%p394_p2)   ;;  %v15019_v9 = vpack.c.bf16 (%p394_p2), %v15009_v40, %v15007_v46  ;;  %v5890_v32 = vrot.slane (%p394_p2), %v15003_v48, 1  ;;  %v5847_v61 = vrot.slane (%p394_p2), %v5793_v27, 7 }
 0x470   : >> { %5732 = vst [vmem:[#allocation2 + $0x338] sm:$0xff] %v5700_v42  ;;  %v5703_v8 = vmax.f32 %v5671_v11, 0.0  ;;  %v5669_v4 = vadd.f32 %v14817_v17, %v5629_v23  ;;  %v5634_v63 = vadd.f32 %v10774_v34, %v5374_v10  ;;  %v11475_v53 = vld [vmem:[#allocation3 + $0xe38] sm:$0xff] (%p394_p2)   ;;  %v15035_v11 = vld [vmem:[#allocation2 + $0x248] sm:$0xff] (%p394_p2)  ;;  %v15037_v23 = vld [vmem:[#allocation2 + $0x140] sm:$0xff] (%p394_p2)  ;;  %v5892_v26 = vrot.slane (%p394_p2), %v15098_v15, 1 }
 0x471   : >> { %v5589_v28 = vpop.f32.mrf.mxu1  ;;  %v15011_v44 = vld [vmem:[#allocation2 + $0x218] sm:$0xff] (%p394_p2)  ;;  %16956 = vst [vmem:[#allocation89_spill] sm:$0xff] (%p394_p2), %v15019_v9 }
 0x472   : >> { %5735 = vst [vmem:[#allocation2 + $0x230] sm:$0xff] %v5703_v8  ;;  %v5701_v50 = vmax.f32 %v5669_v4, 0.0  ;;  %v5674_v2 = vadd.f32 %v14817_v17, %v5634_v63  ;;  %v5632_v25 = vadd.f32 %v5589_v28, %v5372_v5  ;;  %10781 = vmatpush3.bf16.msra.mxu0 (%p394_p2), %v11468_v3  ;;  %11218 = vmatpush3.bf16.msra.mxu1 (%p394_p2), %v11468_v3  ;;  %v15023_v10 = vld [vmem:[#allocation2 + $0x2f8] sm:$0xff] (%p394_p2)  ;;  %v15041_v5 = vld [vmem:[#allocation2 + $0x148] sm:$0xff] (%p394_p2)  ;;  %v5888_v3 = vrot.slane (%p394_p2), %v14974_v30, 1 }
 0x473   : >> { %v10775_v29 = vpop.f32.mrf.mxu1  ;;  %v15029_v54 = vpack.c.bf16 (%p394_p2), %v15021_v36, %v15011_v44  ;;  %v15033_v42 = vpack.c.bf16 (%p394_p2), %v15025_v62, %v15023_v10  ;;  %v15043_v34 = vld [vmem:[#allocation2 + $0x100] sm:$0xff] (%p394_p2)  ;;  %v15045_v8 = vld [vmem:[#allocation2 + $0x38] sm:$0xff] (%p394_p2)  ;;  %v15049_v4 = vld [vmem:[#allocation2 + $0x108] sm:$0xff] (%p394_p2)  ;;  %v15053_v63 = vpack.c.bf16 (%p394_p2), %v15037_v23, %v15035_v11 }
 0x474   : >> { %5733 = vst [vmem:[#allocation2 + $0xa0] sm:$0xff] %v5701_v50  ;;  %v5706_v20 = vmax.f32 %v5674_v2, 0.0  ;;  %v5672_v7 = vadd.f32 %v14817_v17, %v5632_v25  ;;  %v5635_v41 = vadd.f32 %v10775_v29, %v5375_v57  ;;  %v15057_v49 = vpack.c.bf16 (%p394_p2), %v15043_v34, %v15041_v5  ;;  %v15059_v28 = vld [vmem:[#allocation2 + $0x128] sm:$0xff] (%p394_p2)  ;;  %v11480_v50 = vld [vmem:[#allocation3 + $0xda0] sm:$0xff] (%p394_p2)  }
 0x475   : >> { %v5592_v59 = vpop.f32.mrf.mxu1  ;;  %16957 = vst [vmem:[#allocation90_spill] sm:$0xff] (%p394_p2), %v15033_v42  ;;  %v15061_v57 = vld [vmem:[#allocation2 + $0x308] sm:$0xff] (%p394_p2)  ;;  %v11481_v2 = vld [vmem:[#allocation3 + $0xe20] sm:$0xff] (%p394_p2)   ;;  %v15065_v25 = vpack.c.bf16 (%p394_p2), %v15049_v4, %v15045_v8  ;;  %v15088_v14 = vld [vmem:[#allocation2 + $0xf8] sm:$0xff] (%p394_p2) }
 0x476   : >> { %5738 = vst [vmem:[#allocation2 + $0x280] sm:$0xff] %v5706_v20  ;;  %v5704_v55 = vmax.f32 %v5672_v7, 0.0  ;;  %v5675_v52 = vadd.f32 %v14817_v17, %v5635_v41  ;;  %v5633_v12 = vadd.f32 %v5592_v59, %v5373_v47  ;;  %16958 = vst [vmem:[#allocation91_spill] sm:$0xff] (%p394_p2), %v15057_v49  ;;  %v15069_v29 = vpack.c.bf16 (%p394_p2), %v15061_v57, %v15059_v28  ;;  %v15071_v47 = vld [vmem:[#allocation2 + $0x290] sm:$0xff] (%p394_p2)  ;;  %v11482_v59 = vld [vmem:[#allocation3 + $0xd98] sm:$0xff] (%p394_p2)  }
 0x477   : > { %16959 = vst [vmem:[#allocation92_spill] sm:$0xff] (%p394_p2), %v15065_v25  ;;  %v15073_v20 = vld [vmem:[#allocation2 + $0x110] sm:$0xff] (%p394_p2)  ;;  %v15075_v7 = vld [vmem:[#allocation2 + $0x338] sm:$0xff] (%p394_p2) }
 0x478   : >> { %5736 = vst [vmem:[#allocation2 + $0x250] sm:$0xff] %v5704_v55  ;;  %v5707_v16 = vmax.f32 %v5675_v52, 0.0  ;;  %v5673_v58 = vadd.f32 %v14817_v17, %v5633_v12  ;;  %396 = sbr.rel (!%p394_p2) target bundleno = 123 (0x7b), region = 134  ;;  %v11469_v17 = vld [vmem:[#allocation3 + $0xde0] sm:$0xff] (%p394_p2)   ;;  %16960 = vst [vmem:[#allocation93_spill] sm:$0xff] (%p394_p2), %v15069_v29  ;;  %v11483_v52 = vld [vmem:[#allocation3 + $0xe18] sm:$0xff] (%p394_p2)  }
 0x479   : > { %10782 = vmatprep.subr.bf16.mxu0 (%p394_p2), %v11469_v17  ;;  %11211 = vmatprep.subr.bf16.mxu1 (%p394_p2), %v11469_v17  ;;  %v5795_v12 = vrot.slane (%p394_p2), %v14974_v30, 7  ;;  %v15090_v51 = vld [vmem:[#allocation2 + $0x230] sm:$0xff] (%p394_p2) }
 0x47a   : >> { %5739 = vst [vmem:[#allocation2 + $0x160] sm:$0xff] %v5707_v16  ;;  %v5705_v38 = vmax.f32 %v5673_v58, 0.0  ;;  %10783 = vmatpush3.bf16.msra.mxu0 (%p394_p2), %v11469_v17  ;;  %11219 = vmatpush3.bf16.msra.mxu1 (%p394_p2), %v11469_v17  ;;  %v5887_v16 = vrot.slane (%p394_p2), %v14972_v21, 1  ;;  %v15084_v58 = vld [vmem:[#allocation2 + $0x2a8] sm:$0xff] (%p394_p2)  ;;  %v15122_v17 = vpack.c.bf16 (%p394_p2), %v15090_v51, %v15088_v14 }
 0x47b   : > { %10784 = vmatprep.subr.bf16.mxu0 (%p394_p2), %v11470_v37  ;;  %11212 = vmatprep.subr.bf16.mxu1 (%p394_p2), %v11470_v37  ;;  %v15077_v41 = vld [vmem:[#allocation2 + $0xa0] sm:$0xff] (%p394_p2) }
 0x47c   : >> { %5737 = vst [vmem:[#allocation2 + $0x2b0] sm:$0xff] %v5705_v38  ;;  %v15086_v38 = vld [vmem:[#allocation2 + $0x190] sm:$0xff] (%p394_p2)  ;;  %v15107_v30 = vpack.c.bf16 (%p394_p2), %v15077_v41, %v15075_v7  ;;  %16964 = vst [vmem:[#allocation97_spill] sm:$0xff] (%p394_p2), %v15122_v17 }
 0x47e   : > { %10785 = vmatpush3.bf16.msra.mxu0 %v11470_v37  ;;  %11220 = vmatpush3.bf16.msra.mxu1 %v11470_v37  ;;  %v15096_v37 = vld [vmem:[#allocation2 + $0x198] sm:$0xff]  ;;  %16962 = vst [vmem:[#allocation95_spill] sm:$0xff] %v15107_v30 }
 0x47f   : > { %10786 = vmatprep.subr.bf16.mxu0 %v11471_v1  ;;  %11213 = vmatprep.subr.bf16.mxu1 %v11471_v1 }
 0x482   : > { %10787 = vmatpush3.bf16.msra.mxu0 %v11471_v1  ;;  %11221 = vmatpush3.bf16.msra.mxu1 %v11471_v1  ;;  %v15103_v1 = vpack.c.bf16 %v15073_v20, %v15071_v47 }
 0x483   : > { %10788 = vmatprep.subr.bf16.mxu0 %v11472_v33  ;;  %11214 = vmatprep.subr.bf16.mxu1 %v11472_v33 }
 0x484   : > { %16961 = vst [vmem:[#allocation94_spill] sm:$0xff] %v15103_v1 }
 0x486   : > { %10789 = vmatpush3.bf16.msra.mxu0 %v11472_v33  ;;  %11222 = vmatpush3.bf16.msra.mxu1 %v11472_v33  ;;  %v11484_v33 = vld [vmem:[#allocation3 + $0xd90] sm:$0xff]  }
 0x487   : > { %10790 = vmatprep.subr.bf16.mxu0 %v11473_v18  ;;  %11215 = vmatprep.subr.bf16.mxu1 %v11473_v18 }
 0x48a   : > { %10791 = vmatpush3.bf16.msra.mxu0 %v11473_v18  ;;  %11223 = vmatpush3.bf16.msra.mxu1 %v11473_v18  ;;  %v15109_v18 = vld [vmem:[#allocation2 + $0x260] sm:$0xff] }
 0x48b   : > { %10824 = vmatprep.subr.bf16.mxu1 %v11474_v31  ;;  %10872 = vmatprep.subr.bf16.mxu0 %v11475_v53 }
 0x48d   : > { %10793 = vmatmul.mubr.bf16.vlgmr.msra.gmra.mxu0 %v15015_v39  ;;  %10809 = vmatmul.mubr.bf16.vlgmr.msra.gmra.mxu1 %v15019_v9 }
 0x48e   : > { %10825 = vmatpush3.bf16.msra.mxu1 %v11474_v31  ;;  %10873 = vmatpush3.bf16.msra.mxu0 %v11475_v53  ;;  %v15111_v31 = vld [vmem:[#allocation2 + $0x10] sm:$0xff]  ;;  %v5817_v53 = vrot.slane %v15096_v37, 7 }
 0x48f   : > { %10826 = vmatprep.subr.bf16.mxu1 %v11476_v35  ;;  %10874 = vmatprep.subr.bf16.mxu0 %v11477_v56 }
 0x490   : > { %10796 = vmatprep.mubr.bf16.mxu0 %v15029_v54  ;;  %10812 = vmatprep.mubr.bf16.mxu1 %v15033_v42  ;;  %v5870_v55 = vsel %vm509_vm0, %v5817_v53, %v5818_v43  ;;  %v16965_v42 = vrot.slane %v14978_v6, 1  ;;  %v15144_v43 = vld [vmem:[#allocation2 + $0x250] sm:$0xff]  ;;  %v11487_v6 = vld [vmem:[#allocation3 + $0xe08] sm:$0xff]  }
 0x491   : > { %v15146_v53 = vld [vmem:[#allocation2 + $0x2b0] sm:$0xff] }
 0x492   : > { %10827 = vmatpush3.bf16.msra.mxu1 %v11476_v35  ;;  %10875 = vmatpush3.bf16.msra.mxu0 %v11477_v56  ;;  %v11485_v35 = vld [vmem:[#allocation3 + $0xe10] sm:$0xff]   ;;  %v5913_v56 = vrot.slane %v15109_v18, 1 }
 0x493   : > { %10828 = vmatprep.subr.bf16.mxu1 %v11478_v0  ;;  %10876 = vmatprep.subr.bf16.mxu0 %v11479_v13 }
 0x494   : > { %v5960_v9 = vsel %vm600_vm1, %v16965_v42, %v5913_v56  ;;  %v5800_v42 = vrot.slane %v15011_v44, 7  ;;  %v15169_v56 = vpack.c.bf16 %v15146_v53, %v15144_v43 }
 0x495   : > { %10797 = vmatmul.mubr.bf16.gmra.mxu0 %v15053_v63  ;;  %10813 = vmatmul.mubr.bf16.gmra.mxu1 %v15057_v49  ;;  %v15136_v49 = vpack.c.bf16 %v14995_v19, %v5870_v55  ;;  %v15149_v27 = vpack.c.bf16 %v5960_v9, %v15001_v60  ;;  %v11486_v19 = vld [vmem:[#allocation3 + $0xd88] sm:$0xff]   ;;  %v5799_v55 = vrot.slane %v15098_v15, 7  ;;  %v5977_v60 = vsel %vm600_vm1, %v5887_v16, %v5888_v3 }
 0x496   : > { %10829 = vmatpush3.bf16.msra.mxu1 %v11478_v0  ;;  %10877 = vmatpush3.bf16.msra.mxu0 %v11479_v13  ;;  %v5798_v0 = vrot.slane %v15005_v22, 7  ;;  %v15118_v13 = vpack.c.bf16 %v15086_v38, %v15084_v58  ;;  %v16966_v22 = vrot.slane %v14972_v21, 7  ;;  %v5893_v9 = vrot.slane %v15011_v44, 1 }
 0x497   : > { %10830 = vmatprep.subr.bf16.mxu1 %v11480_v50  ;;  %10878 = vmatprep.subr.bf16.mxu0 %v11481_v2  ;;  %v5796_v44 = vrot.slane %v15111_v31, 7  ;;  %v5974_v21 = vsel %vm600_vm1, %v5891_v45, %v5892_v26  ;;  %v11490_v26 = vld [vmem:[#allocation3 + $0xe78] sm:$0xff]  }
 0x498   : > { %10800 = vmatprep.mubr.bf16.mxu0 %v15065_v25  ;;  %10816 = vmatprep.mubr.bf16.mxu1 %v15069_v29  ;;  %16963 = vst [vmem:[#allocation96_spill] sm:$0xff] %v15118_v13  ;;  %v5889_v29 = vrot.slane %v15111_v31, 1 }
 0x49a   : > { %10831 = vmatpush3.bf16.msra.mxu1 %v11480_v50  ;;  %10879 = vmatpush3.bf16.msra.mxu0 %v11481_v2  ;;  %v15124_v50 = vld [vmem:[#allocation2 + $0x1e0] sm:$0xff]  ;;  %v15126_v2 = vld [vmem:[#allocation2 + $0x178] sm:$0xff]  ;;  %v5976_v16 = vsel %vm600_vm1, %v5888_v3, %v5889_v29 }
 0x49b   : > { %10832 = vmatprep.subr.bf16.mxu1 %v11482_v59  ;;  %10880 = vmatprep.subr.bf16.mxu0 %v11483_v52  ;;  %v15165_v15 = vpack.c.bf16 %v15126_v2, %v15124_v50  ;;  %v11488_v29 = vld [vmem:[#allocation3 + $0xd80] sm:$0xff]  }
 0x49c   : > { %v11489_v3 = vld [vmem:[#allocation3 + $0xe00] sm:$0xff]  }
 0x49d   : > { %10801 = vmatmul.mubr.bf16.gmra.mxu0 %v15103_v1  ;;  %10817 = vmatmul.mubr.bf16.gmra.mxu1 %v15107_v30  ;;  %v5894_v30 = vrot.slane %v15021_v36, 1 }
 0x49e   : > { %10833 = vmatpush3.bf16.msra.mxu1 %v11482_v59  ;;  %10881 = vmatpush3.bf16.msra.mxu0 %v11483_v52  ;;  %v5885_v59 = vsel %vm509_vm0, %v16966_v22, %v5795_v12  ;;  %v5801_v52 = vrot.slane %v15021_v36, 7 }
 0x49f   : > { %10834 = vmatprep.subr.bf16.mxu1 %v11484_v33  ;;  %10882 = vmatprep.subr.bf16.mxu0 %v11485_v35 }
 0x4a0   : > { %10804 = vmatprep.mubr.bf16.mxu0 %v15118_v13  ;;  %10820 = vmatprep.mubr.bf16.mxu1 %v15122_v17  ;;  %v16967_v17 = vmov %v16966_v22  ;;  %v15177_v22 = vld [vmem:[#allocation2 + $0x238] sm:$0xff]  ;;  %v5897_v13 = vrot.slane %v15037_v23, 1 }
 0x4a1   : > { %v5886_v12 = vsel %vm509_vm0, %v5847_v61, %v16967_v17  ;;  %v5975_v61 = vsel %vm600_vm1, %v5890_v32, %v5891_v45  ;;  %v5804_v17 = vrot.slane %v15037_v23, 7  ;;  %v5895_v36 = vrot.slane %v15177_v22, 1 }
 0x4a2   : > { %10835 = vmatpush3.bf16.msra.mxu1 %v11484_v33  ;;  %10883 = vmatpush3.bf16.msra.mxu0 %v11485_v35  ;;  %v5896_v33 = vrot.slane %v15035_v11, 1  ;;  %v5978_v31 = vpack.c.bf16 %v5885_v59, %v5886_v12  ;;  %v6014_v35 = vpack.c.bf16 %v5976_v16, %v5977_v60  ;;  %v5822_v32 = vrot.slane %v15009_v40, 7  ;;  %v11491_v60 = vld [vmem:[#allocation3 + $0xeb8] sm:$0xff]  }
 0x4a3   : > { %10836 = vmatprep.subr.bf16.mxu1 %v11486_v19  ;;  %10884 = vmatprep.subr.bf16.mxu0 %v11487_v6  ;;  %v16968_v45 = vrot.slane %v15003_v48, 7  ;;  %v15198_v25 = vpack.c.bf16 %v5974_v21, %v5975_v61  ;;  %v5881_v16 = vsel %vm509_vm0, %v5800_v42, %v5801_v52  ;;  %v5806_v21 = vrot.slane %v15045_v8, 7 }
 0x4a4   : > { %v5807_v61 = vrot.slane %v15049_v4, 7  ;;  %v5899_v52 = vrot.slane %v15045_v8, 1 }
 0x4a5   : > { %10805 = vmatmul.mubr.bf16.gmra.mxu0 %v15165_v15  ;;  %10821 = vmatmul.mubr.bf16.gmra.mxu1 %v15169_v56  ;;  %v5883_v1 = vsel %vm509_vm0, %v16968_v45, %v5798_v0  ;;  %v16969_v59 = vmov %v16968_v45  ;;  %v5882_v0 = vsel %vm509_vm0, %v5799_v55, %v5800_v42  ;;  %v15216_v45 = vld [vmem:[#allocation2 + $0x2c0] sm:$0xff]  ;;  %v5802_v42 = vrot.slane %v15177_v22, 7 }
 0x4a6   : > { %10837 = vmatpush3.bf16.msra.mxu1 %v11486_v19  ;;  %10885 = vmatpush3.bf16.msra.mxu0 %v11487_v6  ;;  %v5884_v23 = vsel %vm509_vm0, %v5796_v44, %v16969_v59  ;;  %v5973_v19 = vsel %vm600_vm1, %v5893_v9, %v5894_v30  ;;  %v5751_v6 = vld [vmem:[#allocation2 + $0x118] sm:$0xff]  ;;  %v5972_v44 = vsel %vm600_vm1, %v5894_v30, %v5895_v36  ;;  %v5900_v9 = vrot.slane %v15049_v4, 1  ;;  %v11492_v30 = vld [vmem:[#allocation3 + $0xe70] sm:$0xff]  }
 0x4a7   : > { %10838 = vmatprep.subr.bf16.mxu1 %v11488_v29  ;;  %10886 = vmatprep.subr.bf16.mxu0 %v11489_v3  ;;  %v15219_v55 = vpack.c.bf16 %v5883_v1, %v5884_v23  ;;  %v15224_v36 = vpack.c.bf16 %v5881_v16, %v5882_v0  ;;  %v15226_v59 = vpack.c.bf16 %v5972_v44, %v5973_v19  ;;  %v5805_v12 = vrot.slane %v5751_v6, 7  ;;  %v11493_v1 = vld [vmem:[#allocation3 + $0xeb0] sm:$0xff]   ;;  %v5757_v23 = vld [vmem:[#allocation2 + $0x2e0] sm:$0xff] }
 0x4a8   : > { %10840 = vmatprep.mubr.bf16.mxu1 %v5978_v31  ;;  %10888 = vmatprep.mubr.bf16.mxu0 %v6014_v35  ;;  %v5809_v31 = vrot.slane %v15071_v47, 7  ;;  %v5898_v35 = vrot.slane %v5751_v6, 1  ;;  %v5901_v8 = vrot.slane %v15216_v45, 1  ;;  %v5810_v22 = vrot.slane %v15073_v20, 7 }
 0x4a9   : > { %v16970_v4 = vrot.slane %v15035_v11, 7  ;;  %v5902_v16 = vrot.slane %v15071_v47, 1  ;;  %v5877_v44 = vsel %vm509_vm0, %v5806_v21, %v5807_v61  ;;  %v15258_v61 = vld [vmem:[#allocation2 + $0x208] sm:$0xff]  ;;  %v5811_v48 = vrot.slane %v5757_v23, 7 }
 0x4aa   : > { %10839 = vmatpush3.bf16.msra.mxu1 %v11488_v29  ;;  %10887 = vmatpush3.bf16.msra.mxu0 %v11489_v3  ;;  %v5971_v3 = vsel %vm600_vm1, %v5896_v33, %v5897_v13  ;;  %v5970_v6 = vsel %vm600_vm1, %v5897_v13, %v5898_v35  ;;  %v5878_v33 = vsel %vm509_vm0, %v5805_v12, %v5806_v21  ;;  %v11495_v13 = vld [vmem:[#allocation3 + $0xea8] sm:$0xff]   ;;  %v5905_v12 = vrot.slane %v15084_v58, 1 }
 0x4ab   : > { %10920 = vmatprep.subr.bf16.mxu1 %v11490_v26  ;;  %10968 = vmatprep.subr.bf16.mxu0 %v11491_v60  ;;  %v5879_v29 = vsel %vm509_vm0, %v16970_v4, %v5804_v17  ;;  %v16971_v0 = vmov %v16970_v4  ;;  %v5903_v17 = vrot.slane %v15073_v20, 1  ;;  %v11494_v4 = vld [vmem:[#allocation3 + $0xe68] sm:$0xff]   ;;  %v5968_v11 = vsel %vm600_vm1, %v5900_v9, %v5901_v8 }
 0x4ac   : > { %v5880_v19 = vsel %vm509_vm0, %v5802_v42, %v16971_v0  ;;  %v5813_v20 = vrot.slane %v15086_v38, 7  ;;  %v15262_v35 = vpack.c.bf16 %v5970_v6, %v5971_v3  ;;  %v5906_v21 = vrot.slane %v15086_v38, 1  ;;  %v11496_v3 = vld [vmem:[#allocation3 + $0xe60] sm:$0xff]  }
 0x4ad   : > { %10841 = vmatmul.mubr.bf16.vlgmr.msra.gmra.mxu1 %v15219_v55  ;;  %10889 = vmatmul.mubr.bf16.vlgmr.msra.gmra.mxu0 %v15198_v25  ;;  %v15260_v42 = vpack.c.bf16 %v5879_v29, %v5880_v19  ;;  %v5808_v8 = vrot.slane %v15216_v45, 7  ;;  %v5904_v0 = vrot.slane %v5757_v23, 1  ;;  %v5907_v29 = vrot.slane %v15258_v61, 1  ;;  %v11497_v19 = vld [vmem:[#allocation3 + $0xea0] sm:$0xff]  }
 0x4ae   : > { %10921 = vmatpush3.bf16.msra.mxu1 %v11490_v26  ;;  %10969 = vmatpush3.bf16.msra.mxu0 %v11491_v60  ;;  %v5969_v26 = vsel %vm600_vm1, %v5899_v52, %v5900_v9  ;;  %v5812_v60 = vrot.slane %v15084_v58, 7  ;;  %v15266_v52 = vpack.c.bf16 %v5877_v44, %v5878_v33  ;;  %v5824_v58 = vrot.slane %v15023_v10, 7 }
 0x4af   : > { %10844 = vmatprep.mubr.bf16.mxu1 %v15224_v36  ;;  %10892 = vmatprep.mubr.bf16.mxu0 %v15226_v59  ;;  %v15268_v9 = vpack.c.bf16 %v5968_v11, %v5969_v26  ;;  %v5825_v38 = vrot.slane %v15025_v62, 7  ;;  %v5875_v45 = vsel %vm509_vm0, %v5809_v31, %v5810_v22  ;;  %v5917_v23 = vrot.slane %v15023_v10, 1  ;;  %v11498_v26 = vld [vmem:[#allocation3 + $0xe58] sm:$0xff]  }
 0x4b0   : > { %10922 = vmatprep.subr.bf16.mxu1 %v11492_v30  ;;  %10970 = vmatprep.subr.bf16.mxu0 %v11493_v1  ;;  %v5876_v6 = vsel %vm509_vm0, %v5808_v8, %v5809_v31  ;;  %v5966_v44 = vsel %vm600_vm1, %v5903_v17, %v5904_v0  ;;  %v5873_v22 = vsel %vm509_vm0, %v5812_v60, %v5813_v20  ;;  %v5908_v31 = vrot.slane %v15124_v50, 1  ;;  %v5769_v20 = vld [vmem:[#allocation2 + $0x2d8] sm:$0xff] }
 0x4b1   : > { %v5874_v33 = vsel %vm509_vm0, %v5811_v48, %v5812_v60  ;;  %v5964_v11 = vsel %vm600_vm1, %v5906_v21, %v5907_v29  ;;  %v5965_v47 = vsel %vm600_vm1, %v5905_v12, %v5906_v21  ;;  %v11499_v8 = vld [vmem:[#allocation3 + $0xe98] sm:$0xff]   ;;  %v5814_v48 = vrot.slane %v15258_v61, 7  ;;  %v15308_v60 = vld [vmem:[#allocation2 + $0x1a0] sm:$0xff]  ;;  %v11500_v21 = vld [vmem:[#allocation3 + $0xe50] sm:$0xff]  }
 0x4b2   : > { %10923 = vmatpush3.bf16.msra.mxu1 %v11492_v30  ;;  %10971 = vmatpush3.bf16.msra.mxu0 %v11493_v1  ;;  %v5967_v30 = vsel %vm600_vm1, %v5902_v16, %v5903_v17  ;;  %v5815_v1 = vrot.slane %v15124_v50, 7  ;;  %v5816_v16 = vrot.slane %v15126_v2, 7  ;;  %v5909_v17 = vrot.slane %v15126_v2, 1  ;;  %v11501_v29 = vld [vmem:[#allocation3 + $0xe90] sm:$0xff]  }
 0x4b3   : > { %10924 = vmatprep.subr.bf16.mxu1 %v11494_v4  ;;  %10972 = vmatprep.subr.bf16.mxu0 %v11495_v13  ;;  %v15310_v0 = vpack.c.bf16 %v5873_v22, %v5874_v33  ;;  %v15312_v12 = vpack.c.bf16 %v5964_v11, %v5965_v47  ;;  %v5910_v50 = vrot.slane %v15096_v37, 1  ;;  %v5918_v2 = vrot.slane %v15025_v62, 1  ;;  %v11502_v22 = vld [vmem:[#allocation3 + $0xe48] sm:$0xff]   ;;  %v11505_v11 = vld [vmem:[#allocation3 + $0xe80] sm:$0xff]  }
 0x4b4   : > { %v5820_v61 = vrot.slane %v15109_v18, 7  ;;  %v5919_v37 = vrot.slane %v15308_v60, 1  ;;  %v16972_v47 = vrot.slane %v15007_v46, 7  ;;  %v5827_v62 = vrot.slane %v15041_v5, 7 }
 0x4b5   : > { %10845 = vmatmul.mubr.bf16.gmra.mxu1 %v15260_v42  ;;  %10893 = vmatmul.mubr.bf16.gmra.mxu0 %v15262_v35 }
 0x4b6   : > { %10848 = vmatprep.mubr.bf16.mxu1 %v15266_v52  ;;  %10896 = vmatprep.mubr.bf16.mxu0 %v15268_v9 }
 0x4b7   : > { %10925 = vmatpush3.bf16.msra.mxu1 %v11494_v4  ;;  %10973 = vmatpush3.bf16.msra.mxu0 %v11495_v13  ;;  %v15303_v4 = vpack.c.bf16 %v5875_v45, %v5876_v6  ;;  %v15305_v13 = vpack.c.bf16 %v5966_v44, %v5967_v30  ;;  %v5871_v45 = vsel %vm509_vm0, %v5815_v1, %v5816_v16  ;;  %v5916_v30 = vrot.slane %v5769_v20, 1  ;;  %v11503_v16 = vld [vmem:[#allocation3 + $0xe88] sm:$0xff]  }
 0x4b8   : > { %10926 = vmatprep.subr.bf16.mxu1 %v11496_v3  ;;  %10974 = vmatprep.subr.bf16.mxu0 %v11497_v19  ;;  %v5823_v6 = vrot.slane %v5769_v20, 7  ;;  %v5963_v44 = vsel %vm600_vm1, %v5908_v31, %v5909_v17  ;;  %v5867_v31 = vsel %vm509_vm0, %v16972_v47, %v5822_v32 }
 0x4bb   : > { %10927 = vmatpush3.bf16.msra.mxu1 %v11496_v3  ;;  %10975 = vmatpush3.bf16.msra.mxu0 %v11497_v19  ;;  %v5872_v3 = vsel %vm509_vm0, %v5814_v48, %v5815_v1  ;;  %v5962_v19 = vsel %vm600_vm1, %v5909_v17, %v5910_v50  ;;  %v11504_v1 = vld [vmem:[#allocation3 + $0xe40] sm:$0xff]   ;;  %v16974_v17 = vrot.slane %v15007_v46, 1  ;;  %v5866_v46 = vsel %vm509_vm0, %v5823_v6, %v5824_v58  ;;  %v15380_v6 = vld [vmem:[#allocation3 + $0xf38] sm:$0xff]  }
 0x4bc   : > { %10928 = vmatprep.subr.bf16.mxu1 %v11498_v26  ;;  %10976 = vmatprep.subr.bf16.mxu0 %v11499_v8  ;;  %v15330_v18 = vpack.c.bf16 %v5871_v45, %v5872_v3  ;;  %v15332_v33 = vpack.c.bf16 %v5962_v19, %v5963_v44  ;;  %v5956_v45 = vsel %vm600_vm1, %v5918_v2, %v5919_v37  ;;  %v5778_v3 = vld [vmem:[#allocation2 + $0x50] sm:$0xff] }
 0x4bd   : > { %10849 = vmatmul.mubr.bf16.gmra.mxu1 %v15303_v4  ;;  %10897 = vmatmul.mubr.bf16.gmra.mxu0 %v15305_v13 }
 0x4be   : > { %10852 = vmatprep.mubr.bf16.mxu1 %v15310_v0  ;;  %10900 = vmatprep.mubr.bf16.mxu0 %v15312_v12 }
 0x4bf   : > { %10929 = vmatpush3.bf16.msra.mxu1 %v11498_v26  ;;  %10977 = vmatpush3.bf16.msra.mxu0 %v11499_v8  ;;  %v16973_v26 = vrot.slane %v15009_v40, 1  ;;  %v16975_v8 = vmov %v16972_v47  ;;  %v5957_v40 = vsel %vm600_vm1, %v5917_v23, %v5918_v2  ;;  %v5826_v2 = vrot.slane %v15308_v60, 7 }
 0x4c0   : > { %10930 = vmatprep.subr.bf16.mxu1 %v11500_v21  ;;  %10978 = vmatprep.subr.bf16.mxu0 %v11501_v29  ;;  %v5868_v48 = vsel %vm509_vm0, %v5820_v61, %v16975_v8  ;;  %v5920_v61 = vrot.slane %v15041_v5, 1  ;;  %v15389_v44 = vpack.c.bf16 %v5956_v45, %v5957_v40  ;;  %v5924_v47 = vrot.slane %v15061_v57, 1 }
 0x4c1   : > { %v5959_v20 = vsel %vm600_vm1, %v16974_v17, %v16973_v26  ;;  %v16976_v50 = vmov %v16973_v26  ;;  %v15382_v10 = vpack.c.bf16 %v5867_v31, %v5868_v48  ;;  %v5925_v31 = vrot.slane %v5778_v3, 1 }
 0x4c2   : > { %v5958_v32 = vsel %vm600_vm1, %v16976_v50, %v5916_v30  ;;  %v5921_v30 = vrot.slane %v15043_v34, 1  ;;  %v5864_v26 = vsel %vm509_vm0, %v5826_v2, %v5827_v62  ;;  %v5926_v45 = vrot.slane %v15075_v7, 1 }
 0x4c3   : > { %10931 = vmatpush3.bf16.msra.mxu1 %v11500_v21  ;;  %10979 = vmatpush3.bf16.msra.mxu0 %v11501_v29  ;;  %v5865_v21 = vsel %vm509_vm0, %v5824_v58, %v5825_v38  ;;  %v5775_v29 = vld [vmem:[#allocation2 + $0x258] sm:$0xff]  ;;  %v5828_v38 = vrot.slane %v15043_v34, 7  ;;  %v15384_v23 = vpack.c.bf16 %v5958_v32, %v5959_v20  ;;  %v5830_v34 = vrot.slane %v15059_v28, 7 }
 0x4c4   : > { %10932 = vmatprep.subr.bf16.mxu1 %v11502_v22  ;;  %10980 = vmatprep.subr.bf16.mxu0 %v11503_v16  ;;  %v15378_v58 = vld [vmem:[#allocation3 + $0xef8] sm:$0xff]   ;;  %v5922_v37 = vrot.slane %v5775_v29, 1  ;;  %v15387_v19 = vpack.c.bf16 %v5865_v21, %v5866_v46  ;;  %v5829_v5 = vrot.slane %v5775_v29, 7  ;;  %v5952_v20 = vsel %vm600_vm1, %v5924_v47, %v5925_v31  ;;  %v5784_v29 = vld [vmem:[#allocation2 + $0x310] sm:$0xff] }
 0x4c5   : > { %10853 = vmatmul.mubr.bf16.gmra.mxu1 %v15330_v18  ;;  %10901 = vmatmul.mubr.bf16.gmra.mxu0 %v15332_v33  ;;  %v5863_v60 = vsel %vm509_vm0, %v5827_v62, %v5828_v38  ;;  %v5833_v32 = vrot.slane %v15075_v7, 7  ;;  %v5834_v21 = vrot.slane %v15077_v41, 7  ;;  %v5832_v46 = vrot.slane %v5778_v3, 7 }
 0x4c6   : > { %10856 = vmatprep.mubr.bf16.mxu1 %v15136_v49  ;;  %10904 = vmatprep.mubr.bf16.mxu0 %v15149_v27  ;;  %v5862_v17 = vsel %vm509_vm0, %v5829_v5, %v5830_v34  ;;  %v15417_v48 = vpack.c.bf16 %v5863_v60, %v5864_v26  ;;  %v5927_v40 = vrot.slane %v15077_v41, 1  ;;  %v5836_v2 = vrot.slane %v15088_v14, 7  ;;  %v15453_v60 = vld [vmem:[#allocation2 + $0x270] sm:$0xff] }
 0x4c7   : > { %10933 = vmatpush3.bf16.msra.mxu1 %v11502_v22  ;;  %10981 = vmatpush3.bf16.msra.mxu0 %v11503_v16  ;;  %v5831_v22 = vrot.slane %v15061_v57, 7  ;;  %v5923_v16 = vrot.slane %v15059_v28, 1  ;;  %v5954_v28 = vsel %vm600_vm1, %v5921_v30, %v5922_v37  ;;  %v5955_v57 = vsel %vm600_vm1, %v5920_v61, %v5921_v30 }
 0x4c8   : > { %10934 = vmatprep.subr.bf16.mxu1 %v11504_v1  ;;  %10982 = vmatprep.subr.bf16.mxu0 %v11505_v11  ;;  %v15419_v50 = vpack.c.bf16 %v5954_v28, %v5955_v57  ;;  %v5837_v37 = vrot.slane %v15090_v51, 7  ;;  %v5929_v5 = vrot.slane %v15088_v14, 1  ;;  %v5859_v7 = vsel %vm509_vm0, %v5833_v32, %v5834_v21 }
 0x4c9   : > { %v5953_v8 = vsel %vm600_vm1, %v5923_v16, %v5924_v47  ;;  %v5860_v41 = vsel %vm509_vm0, %v5832_v46, %v5833_v32  ;;  %v5951_v16 = vsel %vm600_vm1, %v5926_v45, %v5927_v40  ;;  %v5838_v57 = vrot.slane %v5784_v29, 7  ;;  %v15480_v45 = vld [vmem:[#allocation2 + $0x280] sm:$0xff] }
 0x4ca   : > { %v15427_v61 = vpack.c.bf16 %v5952_v20, %v5953_v8  ;;  %v5857_v14 = vsel %vm509_vm0, %v5836_v2, %v5837_v37  ;;  %v15455_v26 = vpack.c.bf16 %v5859_v7, %v5860_v41  ;;  %v5933_v32 = vrot.slane %v15146_v53, 1 }
 0x4cb   : > { %10935 = vmatpush3.bf16.msra.mxu1 %v11504_v1  ;;  %10983 = vmatpush3.bf16.msra.mxu0 %v11505_v11  ;;  %v5781_v1 = vld [vmem:[#allocation2 + $0x68] sm:$0xff]  ;;  %v5861_v11 = vsel %vm509_vm0, %v5830_v34, %v5831_v22  ;;  %v5930_v34 = vrot.slane %v15090_v51, 1  ;;  %v5931_v22 = vrot.slane %v5784_v29, 1  ;;  %v5934_v21 = vrot.slane %v15453_v60, 1 }
 0x4cc   : > { %11016 = vmatprep.subr.bf16.mxu1 %v15378_v58  ;;  %11064 = vmatprep.subr.bf16.mxu0 %v15380_v6  ;;  %v5928_v62 = vrot.slane %v5781_v1, 1  ;;  %v15425_v38 = vpack.c.bf16 %v5861_v11, %v5862_v17  ;;  %v5835_v30 = vrot.slane %v5781_v1, 7  ;;  %v5839_v1 = vrot.slane %v15144_v43, 7 }
 0x4cd   : > { %10857 = vmatmul.mubr.bf16.gmra.mxu1 %v15382_v10  ;;  %10905 = vmatmul.mubr.bf16.gmra.mxu0 %v15384_v23  ;;  %v5948_v47 = vsel %vm600_vm1, %v5930_v34, %v5931_v22  ;;  %v5949_v31 = vsel %vm600_vm1, %v5929_v5, %v5930_v34  ;;  %v5840_v11 = vrot.slane %v15146_v53, 7  ;;  %v5932_v17 = vrot.slane %v15144_v43, 1 }
 0x4ce   : > { %10860 = vmatprep.mubr.bf16.mxu1 %v15387_v19  ;;  %10908 = vmatprep.mubr.bf16.mxu0 %v15389_v44  ;;  %v5950_v3 = vsel %vm600_vm1, %v5927_v40, %v5928_v62  ;;  %v5858_v51 = vsel %vm509_vm0, %v5835_v30, %v5836_v2  ;;  %v15464_v8 = vpack.c.bf16 %v5948_v47, %v5949_v31  ;;  %v15482_v40 = vld [vmem:[#allocation2 + $0x160] sm:$0xff]  ;;  %v15484_v62 = vld [vmem:[#allocation2 + $0x1d0] sm:$0xff]  ;;  %v5935_v30 = vrot.slane %v15480_v45, 1  ;;  %v11515_v31 = vld [vmem:[#allocation3 + $0xf18] sm:$0xff]  }
 0x4cf   : > { %v15457_v28 = vpack.c.bf16 %v5950_v3, %v5951_v16  ;;  %v15462_v20 = vpack.c.bf16 %v5857_v14, %v5858_v51  ;;  %v5856_v29 = vsel %vm509_vm0, %v5838_v57, %v5839_v1  ;;  %v5855_v43 = vsel %vm509_vm0, %v5839_v1, %v5840_v11  ;;  %v11508_v3 = vld [vmem:[#allocation3 + $0xef0] sm:$0xff]   ;;  %v11510_v14 = vld [vmem:[#allocation3 + $0xee8] sm:$0xff]  }
 0x4d0   : > { %v5946_v46 = vsel %vm600_vm1, %v5933_v32, %v5934_v21  ;;  %v5947_v53 = vsel %vm600_vm1, %v5932_v17, %v5933_v32  ;;  %v5936_v2 = vrot.slane %v15482_v40, 1  ;;  %v5937_v37 = vrot.slane %v15484_v62, 1  ;;  %v11509_v16 = vld [vmem:[#allocation3 + $0xf30] sm:$0xff]   ;;  %v11511_v51 = vld [vmem:[#allocation3 + $0xf28] sm:$0xff]   ;;  %v11520_v21 = vld [vmem:[#allocation3 + $0xec0] sm:$0xff]  }
 0x4d1   : > { %v15489_v5 = vpack.c.bf16 %v5855_v43, %v5856_v29  ;;  %v15491_v34 = vpack.c.bf16 %v5946_v46, %v5947_v53  ;;  %v16979_v47 = vld [vmem:[#allocation92_spill] sm:$0xff]  ;;  %v11518_v17 = vld [vmem:[#allocation3 + $0xec8] sm:$0xff]   ;;  %v11521_v29 = vld [vmem:[#allocation3 + $0xf00] sm:$0xff]  }
 0x4d2   : > { %v5944_v22 = vsel %vm600_vm1, %v5936_v2, %v5937_v37  ;;  %v5945_v7 = vsel %vm600_vm1, %v5935_v30, %v5936_v2  ;;  %v11516_v57 = vld [vmem:[#allocation3 + $0xed0] sm:$0xff]   ;;  %v11519_v32 = vld [vmem:[#allocation3 + $0xf08] sm:$0xff]   ;;  %v16983_v46 = vld [vmem:[#allocation89_spill] sm:$0xff] }
 0x4d3   : > { %16977 = vst [vmem:[#allocation98_spill] sm:$0xff] %v15491_v34  ;;  %v15497_v41 = vpack.c.bf16 %v5944_v22, %v5945_v7  ;;  %v11517_v1 = vld [vmem:[#allocation3 + $0xf10] sm:$0xff]   ;;  %v11522_v53 = vld [vmem:[#allocation3 + $0xf78] sm:$0xff]   ;;  %v16984_v2 = vld [vmem:[#allocation90_spill] sm:$0xff] }
 0x4d4   : > { %v16981_v11 = vld [vmem:[#allocation96_spill] sm:$0xff]  ;;  %v16985_v37 = vld [vmem:[#allocation91_spill] sm:$0xff]  ;;  %v16986_v22 = vld [vmem:[#allocation93_spill] sm:$0xff] }
 0x4d5   : > { %10861 = vmatmul.mubr.bf16.gmra.mxu1 %v15417_v48  ;;  %10909 = vmatmul.mubr.bf16.gmra.mxu0 %v15419_v50  ;;  %16978 = vst [vmem:[#allocation99_spill] sm:$0xff] %v15497_v41  ;;  %v16982_v43 = vld [vmem:[#allocation88_spill] sm:$0xff]  ;;  %v16987_v7 = vld [vmem:[#allocation95_spill] sm:$0xff] }
 0x4d6   : > { %10864 = vmatprep.mubr.bf16.mxu1 %v15425_v38  ;;  %10912 = vmatprep.mubr.bf16.mxu0 %v15427_v61  ;;  %v11523_v30 = vld [vmem:[#allocation3 + $0xfb8] sm:$0xff]  }
 0x4dd   : > { %10865 = vmatmul.mubr.bf16.gmra.mxu1 %v15455_v26  ;;  %10913 = vmatmul.mubr.bf16.gmra.mxu0 %v15457_v28 }
 0x4de   : > { %10868 = vmatprep.mubr.bf16.mxu1 %v15462_v20  ;;  %10916 = vmatprep.mubr.bf16.mxu0 %v15464_v8 }
 0x4e5   : > { %10869 = vmatmul.mubr.bf16.gmra.mxu1 %v15489_v5  ;;  %10917 = vmatmul.mubr.bf16.gmra.mxu0 %v15491_v34 }
 0x4e6   : > { %10936 = vmatprep.mubr.bf16.mxu1 %v15219_v55  ;;  %10984 = vmatprep.mubr.bf16.mxu0 %v15015_v39  ;;  %v11512_v39 = vld [vmem:[#allocation3 + $0xee0] sm:$0xff]  }
 0x4e7   : > { %v11513_v55 = vld [vmem:[#allocation3 + $0xf20] sm:$0xff]  }
 0x4ed   : > { %10937 = vmatmul.mubr.bf16.vlgmr.msra.gmra.mxu1 %v15224_v36  ;;  %10985 = vmatmul.mubr.bf16.vlgmr.msra.gmra.mxu0 %v15029_v54 }
 0x4ee   : > { %11017 = vmatpush3.bf16.msra.mxu1 %v15378_v58  ;;  %11065 = vmatpush3.bf16.msra.mxu0 %v15380_v6  ;;  %v16980_v58 = vld [vmem:[#allocation94_spill] sm:$0xff]  ;;  %v11514_v6 = vld [vmem:[#allocation3 + $0xed8] sm:$0xff]  }
 0x4ef   : > { %10940 = vmatprep.mubr.bf16.mxu1 %v15260_v42  ;;  %10988 = vmatprep.mubr.bf16.mxu0 %v15053_v63 }
 0x4f0   : > { %11018 = vmatprep.subr.bf16.mxu1 %v11508_v3  ;;  %11066 = vmatprep.subr.bf16.mxu0 %v11509_v16 }
 0x4f2   : > { %11019 = vmatpush3.bf16.msra.mxu1 %v11508_v3  ;;  %11067 = vmatpush3.bf16.msra.mxu0 %v11509_v16  ;;  %v5841_v3 = vrot.slane %v15453_v60, 7  ;;  %v5842_v16 = vrot.slane %v15480_v45, 7  ;;  %v15544_v60 = vpack.c.bf16 %v15482_v40, %v15480_v45  ;;  %v11526_v45 = vld [vmem:[#allocation3 + $0xf68] sm:$0xff]  }
 0x4f3   : > { %11020 = vmatprep.subr.bf16.mxu1 %v11510_v14  ;;  %11068 = vmatprep.subr.bf16.mxu0 %v11511_v51 }
 0x4f4   : > { %16989 = vst [vmem:[#allocation92_spill] sm:$0xff] %v15544_v60 }
 0x4f5   : > { %10941 = vmatmul.mubr.bf16.gmra.mxu1 %v15266_v52  ;;  %10989 = vmatmul.mubr.bf16.gmra.mxu0 %v16979_v47 }
 0x4f6   : > { %10944 = vmatprep.mubr.bf16.mxu1 %v15303_v4  ;;  %10992 = vmatprep.mubr.bf16.mxu0 %v16980_v58 }
 0x4f7   : > { %11021 = vmatpush3.bf16.msra.mxu1 %v11510_v14  ;;  %11069 = vmatpush3.bf16.msra.mxu0 %v11511_v51  ;;  %v5843_v14 = vrot.slane %v15482_v40, 7  ;;  %v16988_v51 = vld [vmem:[#allocation97_spill] sm:$0xff]  ;;  %v11527_v40 = vld [vmem:[#allocation3 + $0xfa8] sm:$0xff]  }
 0x4f8   : > { %11022 = vmatprep.subr.bf16.mxu1 %v11512_v39  ;;  %11070 = vmatprep.subr.bf16.mxu0 %v11513_v55 }
 0x4fb   : > { %11023 = vmatpush3.bf16.msra.mxu1 %v11512_v39  ;;  %11071 = vmatpush3.bf16.msra.mxu0 %v11513_v55  ;;  %v5853_v39 = vsel %vm509_vm0, %v5842_v16, %v5843_v14  ;;  %v5854_v55 = vsel %vm509_vm0, %v5841_v3, %v5842_v16 }
 0x4fc   : > { %11024 = vmatprep.subr.bf16.mxu1 %v11514_v6  ;;  %11072 = vmatprep.subr.bf16.mxu0 %v11515_v31 }
 0x4fd   : > { %10945 = vmatmul.mubr.bf16.gmra.mxu1 %v15310_v0  ;;  %10993 = vmatmul.mubr.bf16.gmra.mxu0 %v16981_v11 }
 0x4fe   : > { %10948 = vmatprep.mubr.bf16.mxu1 %v15330_v18  ;;  %10996 = vmatprep.mubr.bf16.mxu0 %v15165_v15 }
 0x4ff   : > { %11025 = vmatpush3.bf16.msra.mxu1 %v11514_v6  ;;  %11073 = vmatpush3.bf16.msra.mxu0 %v11515_v31  ;;  %v15540_v6 = vpack.c.bf16 %v5853_v39, %v5854_v55  ;;  %v11524_v31 = vld [vmem:[#allocation3 + $0xf70] sm:$0xff]   ;;  %v15594_v55 = vld [vmem:[#allocation2 + $0x2e8] sm:$0xff] }
 0x500   : > { %11026 = vmatprep.subr.bf16.mxu1 %v11516_v57  ;;  %11074 = vmatprep.subr.bf16.mxu0 %v11517_v1  ;;  %v15592_v39 = vld [vmem:[#allocation2 + $0x70] sm:$0xff] }
 0x503   : > { %11027 = vmatpush3.bf16.msra.mxu1 %v11516_v57  ;;  %11075 = vmatpush3.bf16.msra.mxu0 %v11517_v1  ;;  %v11525_v57 = vld [vmem:[#allocation3 + $0xfb0] sm:$0xff]  }
 0x504   : > { %11028 = vmatprep.subr.bf16.mxu1 %v11518_v17  ;;  %11076 = vmatprep.subr.bf16.mxu0 %v11519_v32  ;;  %v11532_v1 = vld [vmem:[#allocation3 + $0xf50] sm:$0xff]  }
 0x505   : > { %10949 = vmatmul.mubr.bf16.gmra.mxu1 %v15136_v49  ;;  %10997 = vmatmul.mubr.bf16.gmra.mxu0 %v16982_v43 }
 0x506   : > { %10952 = vmatprep.mubr.bf16.mxu1 %v15382_v10  ;;  %11000 = vmatprep.mubr.bf16.mxu0 %v16983_v46 }
 0x507   : > { %11029 = vmatpush3.bf16.msra.mxu1 %v11518_v17  ;;  %11077 = vmatpush3.bf16.msra.mxu0 %v11519_v32  ;;  %v11533_v17 = vld [vmem:[#allocation3 + $0xf90] sm:$0xff]   ;;  %v11536_v32 = vld [vmem:[#allocation3 + $0xf40] sm:$0xff]  }
 0x508   : > { %11030 = vmatprep.subr.bf16.mxu1 %v11520_v21  ;;  %11078 = vmatprep.subr.bf16.mxu0 %v11521_v29 }
 0x50b   : > { %11031 = vmatpush3.bf16.msra.mxu1 %v11520_v21  ;;  %11079 = vmatpush3.bf16.msra.mxu0 %v11521_v29  ;;  %v11537_v21 = vld [vmem:[#allocation3 + $0xf80] sm:$0xff]  }
 0x50c   : > { %11112 = vmatprep.subr.bf16.mxu1 %v11522_v53  ;;  %11160 = vmatprep.subr.bf16.mxu0 %v11523_v30 }
 0x50d   : > { %10953 = vmatmul.mubr.bf16.gmra.mxu1 %v15387_v19  ;;  %11001 = vmatmul.mubr.bf16.gmra.mxu0 %v16984_v2 }
 0x50e   : > { %10956 = vmatprep.mubr.bf16.mxu1 %v15417_v48  ;;  %11004 = vmatprep.mubr.bf16.mxu0 %v16985_v37 }
 0x515   : > { %10957 = vmatmul.mubr.bf16.gmra.mxu1 %v15425_v38  ;;  %11005 = vmatmul.mubr.bf16.gmra.mxu0 %v16986_v22 }
 0x516   : > { %10960 = vmatprep.mubr.bf16.mxu1 %v15455_v26  ;;  %11008 = vmatprep.mubr.bf16.mxu0 %v16987_v7 }
 0x51d   : > { %10961 = vmatmul.mubr.bf16.gmra.mxu1 %v15462_v20  ;;  %11009 = vmatmul.mubr.bf16.gmra.mxu0 %v16988_v51 }
 0x51e   : > { %10964 = vmatprep.mubr.bf16.mxu1 %v15489_v5  ;;  %11012 = vmatprep.mubr.bf16.mxu0 %v15169_v56 }
 0x525   : > { %10965 = vmatmul.mubr.bf16.gmra.mxu1 %v15540_v6  ;;  %11013 = vmatmul.mubr.bf16.gmra.mxu0 %v15544_v60 }
 0x526   : > { %11032 = vmatprep.mubr.bf16.mxu1 %v15198_v25  ;;  %11080 = vmatprep.mubr.bf16.mxu0 %v15224_v36  ;;  %v11528_v25 = vld [vmem:[#allocation3 + $0xf60] sm:$0xff]  }
 0x527   : > { %v11529_v36 = vld [vmem:[#allocation3 + $0xfa0] sm:$0xff]  }
 0x52d   : > { %11033 = vmatmul.mubr.bf16.vlgmr.msra.gmra.mxu1 %v15226_v59  ;;  %11081 = vmatmul.mubr.bf16.vlgmr.msra.gmra.mxu0 %v15260_v42  ;;  %v11530_v42 = vld [vmem:[#allocation3 + $0xf58] sm:$0xff]  }
 0x52e   : > { %11113 = vmatpush3.bf16.msra.mxu1 %v11522_v53  ;;  %11161 = vmatpush3.bf16.msra.mxu0 %v11523_v30 }
 0x52f   : > { %11036 = vmatprep.mubr.bf16.mxu1 %v15262_v35  ;;  %11084 = vmatprep.mubr.bf16.mxu0 %v15266_v52  ;;  %v11531_v52 = vld [vmem:[#allocation3 + $0xf98] sm:$0xff]  }
 0x530   : > { %11114 = vmatprep.subr.bf16.mxu1 %v11524_v31  ;;  %11162 = vmatprep.subr.bf16.mxu0 %v11525_v57 }
 0x532   : > { %11115 = vmatpush3.bf16.msra.mxu1 %v11524_v31  ;;  %11163 = vmatpush3.bf16.msra.mxu0 %v11525_v57 }
 0x533   : > { %11116 = vmatprep.subr.bf16.mxu1 %v11526_v45  ;;  %11164 = vmatprep.subr.bf16.mxu0 %v11527_v40 }
 0x535   : > { %11037 = vmatmul.mubr.bf16.gmra.mxu1 %v15268_v9  ;;  %11085 = vmatmul.mubr.bf16.gmra.mxu0 %v15303_v4  ;;  %v11534_v4 = vld [vmem:[#allocation3 + $0xf48] sm:$0xff]  }
 0x536   : > { %11040 = vmatprep.mubr.bf16.mxu1 %v15305_v13  ;;  %11088 = vmatprep.mubr.bf16.mxu0 %v15310_v0  ;;  %v11535_v0 = vld [vmem:[#allocation3 + $0xf88] sm:$0xff]  }
 0x537   : > { %11117 = vmatpush3.bf16.msra.mxu1 %v11526_v45  ;;  %11165 = vmatpush3.bf16.msra.mxu0 %v11527_v40  ;;  %v5844_v45 = vrot.slane %v15484_v62, 7  ;;  %v5846_v40 = vrot.slane %v15594_v55, 7 }
 0x538   : > { %11118 = vmatprep.subr.bf16.mxu1 %v11528_v25  ;;  %11166 = vmatprep.subr.bf16.mxu0 %v11529_v36 }
 0x53b   : > { %11119 = vmatpush3.bf16.msra.mxu1 %v11528_v25  ;;  %11167 = vmatpush3.bf16.msra.mxu0 %v11529_v36 }
 0x53c   : > { %11120 = vmatprep.subr.bf16.mxu1 %v11530_v42  ;;  %11168 = vmatprep.subr.bf16.mxu0 %v11531_v52 }
 0x53d   : > { %11041 = vmatmul.mubr.bf16.gmra.mxu1 %v15312_v12  ;;  %11089 = vmatmul.mubr.bf16.gmra.mxu0 %v15330_v18 }
 0x53e   : > { %11044 = vmatprep.mubr.bf16.mxu1 %v15332_v33  ;;  %11092 = vmatprep.mubr.bf16.mxu0 %v15136_v49 }
 0x53f   : > { %11121 = vmatpush3.bf16.msra.mxu1 %v11530_v42  ;;  %11169 = vmatpush3.bf16.msra.mxu0 %v11531_v52 }
 0x540   : > { %11122 = vmatprep.subr.bf16.mxu1 %v11532_v1  ;;  %11170 = vmatprep.subr.bf16.mxu0 %v11533_v17 }
 0x543   : > { %11123 = vmatpush3.bf16.msra.mxu1 %v11532_v1  ;;  %11171 = vmatpush3.bf16.msra.mxu0 %v11533_v17 }
 0x544   : > { %11124 = vmatprep.subr.bf16.mxu1 %v11534_v4  ;;  %11172 = vmatprep.subr.bf16.mxu0 %v11535_v0 }
 0x545   : > { %11045 = vmatmul.mubr.bf16.gmra.mxu1 %v15149_v27  ;;  %11093 = vmatmul.mubr.bf16.gmra.mxu0 %v15382_v10 }
 0x546   : > { %11048 = vmatprep.mubr.bf16.mxu1 %v15384_v23  ;;  %11096 = vmatprep.mubr.bf16.mxu0 %v15387_v19 }
 0x547   : > { %11125 = vmatpush3.bf16.msra.mxu1 %v11534_v4  ;;  %11173 = vmatpush3.bf16.msra.mxu0 %v11535_v0 }
 0x548   : > { %11126 = vmatprep.subr.bf16.mxu1 %v11536_v32  ;;  %11174 = vmatprep.subr.bf16.mxu0 %v11537_v21 }
 0x54b   : > { %11127 = vmatpush3.bf16.msra.mxu1 %v11536_v32  ;;  %11175 = vmatpush3.bf16.msra.mxu0 %v11537_v21 }
 0x54d   : > { %v10794_v49 = vpop.f32.mrf.mxu0  ;;  %v15566_v18 = vpop.f32.mrf.mxu1  ;;  %11049 = vmatmul.mubr.bf16.gmra.mxu1 %v15389_v44  ;;  %11097 = vmatmul.mubr.bf16.gmra.mxu0 %v15417_v48 }
 0x54e   : > { %11052 = vmatprep.mubr.bf16.mxu1 %v15419_v50  ;;  %11100 = vmatprep.mubr.bf16.mxu0 %v15425_v38 }
 0x54f   : > { %v6148_v10 = vpop.f32.mrf.mxu0  ;;  %v15572_v29 = vpop.f32.mrf.mxu1 }
 0x551   : > { %v10795_v19 = vpop.f32.mrf.mxu0  ;;  %v15574_v53 = vpop.f32.mrf.mxu1 }
 0x553   : > { %v15576_v30 = vpop.f32.mrf.mxu0  ;;  %v15578_v3 = vpop.f32.mrf.mxu1 }
 0x555   : > { %v15580_v16 = vpop.f32.mrf.mxu0  ;;  %v15582_v14 = vpop.f32.mrf.mxu1  ;;  %11053 = vmatmul.mubr.bf16.gmra.mxu1 %v15427_v61  ;;  %11101 = vmatmul.mubr.bf16.gmra.mxu0 %v15455_v26  ;;  %v5845_v26 = vrot.slane %v15592_v39, 7 }
 0x556   : > { %11056 = vmatprep.mubr.bf16.mxu1 %v15457_v28  ;;  %11104 = vmatprep.mubr.bf16.mxu0 %v15462_v20 }
 0x557   : > { %v15588_v48 = vpop.f32.mrf.mxu0  ;;  %v15590_v38 = vpop.f32.mrf.mxu1  ;;  %v5851_v62 = vsel %vm509_vm0, %v5845_v26, %v5846_v40  ;;  %v5852_v52 = vsel %vm509_vm0, %v5844_v45, %v5845_v26 }
 0x558   : > { %v5995_v32 = vpack.c.bf16 %v5851_v62, %v5852_v52 }
 0x559   : > { %v15596_v31 = vpop.f32.mrf.mxu0  ;;  %v15598_v57 = vpop.f32.mrf.mxu1 }
 0x55b   : > { %v15603_v25 = vpop.f32.mrf.mxu0  ;;  %v15605_v20 = vpop.f32.mrf.mxu1 }
 0x55d   : > { %v15607_v36 = vpop.f32.mrf.mxu0  ;;  %v15609_v42 = vpop.f32.mrf.mxu1  ;;  %11057 = vmatmul.mubr.bf16.gmra.mxu1 %v15464_v8  ;;  %11105 = vmatmul.mubr.bf16.gmra.mxu0 %v15489_v5 }
 0x55e   : > { %16990 = vst [vmem:[#allocation94_spill] sm:$0xff] %v15609_v42  ;;  %11060 = vmatprep.mubr.bf16.mxu1 %v15491_v34  ;;  %11108 = vmatprep.mubr.bf16.mxu0 %v15540_v6 }
 0x55f   : > { %v15619_v1 = vpop.f32.mrf.mxu0  ;;  %v15621_v17 = vpop.f32.mrf.mxu1 }
 0x560   : > { %16991 = vst [vmem:[#allocation96_spill] sm:$0xff] %v15621_v17 }
 0x561   : > { %v15623_v4 = vpop.f32.mrf.mxu0  ;;  %v15625_v0 = vpop.f32.mrf.mxu1 }
 0x562   : > { %16992 = vst [vmem:[#allocation88_spill] sm:$0xff] %v15625_v0 }
 0x563   : > { %v15627_v5 = vpop.f32.mrf.mxu0  ;;  %v15629_v21 = vpop.f32.mrf.mxu1 }
 0x564   : > { %16993 = vst [vmem:[#allocation89_spill] sm:$0xff] %v15629_v21 }
 0x565   : > { %v15631_v6 = vpop.f32.mrf.mxu0  ;;  %v15633_v60 = vpop.f32.mrf.mxu1  ;;  %11061 = vmatmul.mubr.bf16.gmra.mxu1 %v15497_v41  ;;  %11109 = vmatmul.mubr.bf16.gmra.mxu0 %v5995_v32 }
 0x566   : > { %16994 = vst [vmem:[#allocation90_spill] sm:$0xff] %v15633_v60  ;;  %11128 = vmatprep.mubr.bf16.mxu1 %v15029_v54  ;;  %11176 = vmatprep.mubr.bf16.mxu0 %v15226_v59 }
 0x567   : > { %v15638_v45 = vpop.f32.mrf.mxu0  ;;  %v15640_v26 = vpop.f32.mrf.mxu1 }
 0x568   : > { %16995 = vst [vmem:[#allocation91_spill] sm:$0xff] %v15640_v26 }
 0x569   : > { %v15642_v40 = vpop.f32.mrf.mxu0  ;;  %v15644_v62 = vpop.f32.mrf.mxu1 }
 0x56a   : > { %16996 = vst [vmem:[#allocation93_spill] sm:$0xff] %v15644_v62 }
 0x56b   : > { %v15646_v52 = vpop.f32.mrf.mxu0  ;;  %v15648_v21 = vpop.f32.mrf.mxu1 }
 0x56c   : > { %16997 = vst [vmem:[#allocation95_spill] sm:$0xff] %v15648_v21 }
 0x56d   : > { %v10842_v60 = vpop.f32.mrf.mxu1  ;;  %v10890_v0 = vpop.f32.mrf.mxu0  ;;  %11129 = vmatmul.mubr.bf16.vlgmr.msra.gmra.mxu1 %v15053_v63  ;;  %11177 = vmatmul.mubr.bf16.vlgmr.msra.gmra.mxu0 %v15262_v35 }
 0x56e   : > { %v6366_v54 = vadd.f32 %v10842_v60, %v10794_v49  ;;  %11132 = vmatprep.mubr.bf16.mxu1 %v16979_v47  ;;  %11180 = vmatprep.mubr.bf16.mxu0 %v15268_v9 }
 0x56f   : > { %v6357_v59 = vpop.f32.mrf.mxu1  ;;  %v6583_v32 = vpop.f32.mrf.mxu0 }
 0x570   : > { %v15654_v26 = vadd.f32 %v10890_v0, %v6366_v54  ;;  %v6358_v62 = vadd.f32 %v6357_v59, %v6148_v10 }
 0x571   : > { %v10843_v17 = vpop.f32.mrf.mxu1  ;;  %v10891_v41 = vpop.f32.mrf.mxu0 }
 0x572   : > { %v15656_v42 = vadd.f32 %v6583_v32, %v6358_v62  ;;  %v6369_v21 = vadd.f32 %v10843_v17, %v10795_v19 }
 0x573   : > { %v6360_v24 = vpop.f32.mrf.mxu1  ;;  %v6586_v34 = vpop.f32.mrf.mxu0 }
 0x574   : > { %v15658_v63 = vadd.f32 %v10891_v41, %v6369_v21  ;;  %v6361_v35 = vadd.f32 %v6360_v24, %v15576_v30 }
 0x575   : > { %v10846_v60 = vpop.f32.mrf.mxu1  ;;  %v10894_v47 = vpop.f32.mrf.mxu0  ;;  %11133 = vmatmul.mubr.bf16.gmra.mxu1 %v16980_v58  ;;  %11181 = vmatmul.mubr.bf16.gmra.mxu0 %v15305_v13 }
 0x576   : > { %v15663_v9 = vadd.f32 %v6586_v34, %v6361_v35  ;;  %v6382_v49 = vadd.f32 %v10846_v60, %v15580_v16  ;;  %11136 = vmatprep.mubr.bf16.mxu1 %v16981_v11  ;;  %11184 = vmatprep.mubr.bf16.mxu0 %v15312_v12 }
 0x577   : > { %v6373_v10 = vpop.f32.mrf.mxu1  ;;  %v6599_v19 = vpop.f32.mrf.mxu0 }
 0x578   : > { %v15668_v41 = vadd.f32 %v10894_v47, %v6382_v49  ;;  %v6374_v24 = vadd.f32 %v6373_v10, %v15588_v48 }
 0x579   : > { %v10847_v30 = vpop.f32.mrf.mxu1  ;;  %v10895_v17 = vpop.f32.mrf.mxu0 }
 0x57a   : > { %v15671_v0 = vadd.f32 %v6599_v19, %v6374_v24  ;;  %v6385_v13 = vadd.f32 %v10847_v30, %v15596_v31 }
 0x57b   : > { %v6376_v34 = vpop.f32.mrf.mxu1  ;;  %v6602_v58 = vpop.f32.mrf.mxu0 }
 0x57c   : > { %v15674_v21 = vadd.f32 %v10895_v17, %v6385_v13  ;;  %v6377_v11 = vadd.f32 %v6376_v34, %v15603_v25 }
 0x57d   : > { %v10850_v16 = vpop.f32.mrf.mxu1  ;;  %v10898_v12 = vpop.f32.mrf.mxu0  ;;  %11137 = vmatmul.mubr.bf16.gmra.mxu1 %v15165_v15  ;;  %11185 = vmatmul.mubr.bf16.gmra.mxu0 %v15332_v33 }
 0x57e   : > { %v15679_v62 = vadd.f32 %v6602_v58, %v6377_v11  ;;  %v6398_v48 = vadd.f32 %v10850_v16, %v15607_v36  ;;  %11140 = vmatprep.mubr.bf16.mxu1 %v16982_v43  ;;  %11188 = vmatprep.mubr.bf16.mxu0 %v15149_v27 }
 0x57f   : > { %v6389_v31 = vpop.f32.mrf.mxu1  ;;  %v6615_v54 = vpop.f32.mrf.mxu0 }
 0x580   : > { %v15684_v59 = vadd.f32 %v10898_v12, %v6398_v48  ;;  %v6390_v25 = vadd.f32 %v6389_v31, %v15619_v1 }
 0x581   : > { %v10851_v32 = vpop.f32.mrf.mxu1  ;;  %v10899_v35 = vpop.f32.mrf.mxu0 }
 0x582   : > { %v15687_v60 = vadd.f32 %v6615_v54, %v6390_v25  ;;  %v6401_v15 = vadd.f32 %v10851_v32, %v15623_v4 }
 0x583   : > { %v6392_v33 = vpop.f32.mrf.mxu1  ;;  %v6618_v47 = vpop.f32.mrf.mxu0 }
 0x584   : > { %v15690_v49 = vadd.f32 %v10899_v35, %v6401_v15  ;;  %v6393_v43 = vadd.f32 %v6392_v33, %v15627_v5 }
 0x585   : > { %v10854_v36 = vpop.f32.mrf.mxu1  ;;  %v10902_v27 = vpop.f32.mrf.mxu0  ;;  %11141 = vmatmul.mubr.bf16.gmra.mxu1 %v16983_v46  ;;  %11189 = vmatmul.mubr.bf16.gmra.mxu0 %v15384_v23 }
 0x586   : > { %v15695_v10 = vadd.f32 %v6618_v47, %v6393_v43  ;;  %v6414_v1 = vadd.f32 %v10854_v36, %v15631_v6  ;;  %11144 = vmatprep.mubr.bf16.mxu1 %v16984_v2  ;;  %11192 = vmatprep.mubr.bf16.mxu0 %v15389_v44  ;;  %v11538_v47 = vld [vmem:[#allocation2 + $0x40] sm:$0xff] }
 0x587   : > { %v6405_v4 = vpop.f32.mrf.mxu1  ;;  %v6631_v19 = vpop.f32.mrf.mxu0  ;;  %v5940_v43 = vrot.slane %v11538_v47, 1 }
 0x588   : > { %v15700_v24 = vadd.f32 %v10902_v27, %v6414_v1  ;;  %v6406_v5 = vadd.f32 %v6405_v4, %v15638_v45 }
 0x589   : > { %v10855_v30 = vpop.f32.mrf.mxu1  ;;  %v10903_v17 = vpop.f32.mrf.mxu0 }
 0x58a   : > { %v15703_v13 = vadd.f32 %v6631_v19, %v6406_v5  ;;  %v6417_v23 = vadd.f32 %v10855_v30, %v15642_v40  ;;  %v16998_v30 = vld [vmem:[#allocation98_spill] sm:$0xff] }
 0x58b   : > { %v6408_v46 = vpop.f32.mrf.mxu1  ;;  %v6634_v34 = vpop.f32.mrf.mxu0 }
 0x58c   : > { %v15706_v58 = vadd.f32 %v10903_v17, %v6417_v23  ;;  %v6409_v2 = vadd.f32 %v6408_v46, %v15646_v52 }
 0x58d   : > { %v10858_v6 = vpop.f32.mrf.mxu1  ;;  %v10906_v44 = vpop.f32.mrf.mxu0  ;;  %11145 = vmatmul.mubr.bf16.gmra.mxu1 %v16985_v37  ;;  %11193 = vmatmul.mubr.bf16.gmra.mxu0 %v15419_v50 }
 0x58e   : > { %v15711_v11 = vadd.f32 %v6634_v34, %v6409_v2  ;;  %v6430_v45 = vadd.f32 %v10858_v6, %v15566_v18  ;;  %11148 = vmatprep.mubr.bf16.mxu1 %v16986_v22  ;;  %11196 = vmatprep.mubr.bf16.mxu0 %v15427_v61  ;;  %v17001_v2 = vld [vmem:[#allocation92_spill] sm:$0xff]  ;;  %v17002_v6 = vld [vmem:[#allocation99_spill] sm:$0xff] }
 0x58f   : > { %v6421_v40 = vpop.f32.mrf.mxu1  ;;  %v6647_v16 = vpop.f32.mrf.mxu0 }
 0x590   : > { %v15716_v12 = vadd.f32 %v10906_v44, %v6430_v45  ;;  %v6422_v52 = vadd.f32 %v6421_v40, %v15572_v29 }
 0x591   : > { %v10859_v48 = vpop.f32.mrf.mxu1  ;;  %v10907_v31 = vpop.f32.mrf.mxu0 }
 0x592   : > { %v15719_v54 = vadd.f32 %v6647_v16, %v6422_v52  ;;  %v6433_v50 = vadd.f32 %v10859_v48, %v15574_v53 }
 0x593   : > { %v6424_v37 = vpop.f32.mrf.mxu1  ;;  %v6650_v25 = vpop.f32.mrf.mxu0 }
 0x594   : > { %v15722_v32 = vadd.f32 %v10907_v31, %v6433_v50  ;;  %v6425_v22 = vadd.f32 %v6424_v37, %v15578_v3  ;;  %v6013_v31 = vpack.c.bf16 %v15594_v55, %v15592_v39 }
 0x595   : > { %v10862_v18 = vpop.f32.mrf.mxu1  ;;  %v10910_v61 = vpop.f32.mrf.mxu0  ;;  %11149 = vmatmul.mubr.bf16.gmra.mxu1 %v16987_v7  ;;  %11197 = vmatmul.mubr.bf16.gmra.mxu0 %v15457_v28  ;;  %v5939_v28 = vrot.slane %v15594_v55, 1 }
 0x596   : > { %v15727_v35 = vadd.f32 %v6650_v25, %v6425_v22  ;;  %v6446_v29 = vadd.f32 %v10862_v18, %v15582_v14  ;;  %11152 = vmatprep.mubr.bf16.mxu1 %v16988_v51  ;;  %11200 = vmatprep.mubr.bf16.mxu0 %v15464_v8  ;;  %v5938_v51 = vrot.slane %v15592_v39, 1  ;;  %v17004_v25 = vld [vmem:[#allocation88_spill] sm:$0xff] }
 0x597   : > { %v6437_v53 = vpop.f32.mrf.mxu1  ;;  %v6663_v15 = vpop.f32.mrf.mxu0  ;;  %v5942_v23 = vsel %vm600_vm1, %v5939_v28, %v5940_v43 }
 0x598   : > { %v15732_v33 = vadd.f32 %v10910_v61, %v6446_v29  ;;  %v6438_v3 = vadd.f32 %v6437_v53, %v15590_v38  ;;  %v17005_v53 = vld [vmem:[#allocation89_spill] sm:$0xff] }
 0x599   : > { %v10863_v36 = vpop.f32.mrf.mxu1  ;;  %v10911_v7 = vpop.f32.mrf.mxu0 }
 0x59a   : > { %v15736_v27 = vadd.f32 %v6663_v15, %v6438_v3  ;;  %v6449_v14 = vadd.f32 %v10863_v36, %v15598_v57  ;;  %v17000_v57 = vld [vmem:[#allocation94_spill] sm:$0xff] }
 0x59b   : > { %v6440_v1 = vpop.f32.mrf.mxu1  ;;  %v6666_v8 = vpop.f32.mrf.mxu0  ;;  %v17006_v36 = vld [vmem:[#allocation90_spill] sm:$0xff] }
 0x59c   : > { %v15740_v4 = vadd.f32 %v10911_v7, %v6449_v14  ;;  %v6441_v19 = vadd.f32 %v6440_v1, %v15605_v20  ;;  %v5943_v20 = vsel %vm600_vm1, %v5938_v51, %v5939_v28  ;;  %v17007_v14 = vld [vmem:[#allocation91_spill] sm:$0xff] }
 0x59d   : > { %v10866_v5 = vpop.f32.mrf.mxu1  ;;  %v10914_v38 = vpop.f32.mrf.mxu0  ;;  %11153 = vmatmul.mubr.bf16.gmra.mxu1 %v15169_v56  ;;  %11201 = vmatmul.mubr.bf16.gmra.mxu0 %v16998_v30  ;;  %v17003_v56 = vld [vmem:[#allocation96_spill] sm:$0xff]  ;;  %v6031_v50 = vpack.c.bf16 %v5942_v23, %v5943_v20 }
 0x59e   : > { %v15747_v46 = vadd.f32 %v6666_v8, %v6441_v19  ;;  %v6462_v34 = vadd.f32 %v10866_v5, %v17000_v57  ;;  %11156 = vmatprep.mubr.bf16.mxu1 %v17001_v2  ;;  %11204 = vmatprep.mubr.bf16.mxu0 %v17002_v6  ;;  %v17008_v5 = vld [vmem:[#allocation93_spill] sm:$0xff]  ;;  %v17009_v57 = vld [vmem:[#allocation95_spill] sm:$0xff] }
 0x59f   : > { %v6453_v44 = vpop.f32.mrf.mxu1  ;;  %v6679_v45 = vpop.f32.mrf.mxu0 }
 0x5a0   : > { %v15754_v40 = vadd.f32 %v10914_v38, %v6462_v34  ;;  %v6454_v16 = vadd.f32 %v6453_v44, %v17003_v56 }
 0x5a1   : > { %v10867_v52 = vpop.f32.mrf.mxu1  ;;  %v10915_v48 = vpop.f32.mrf.mxu0 }
 0x5a2   : > { %v15759_v37 = vadd.f32 %v6679_v45, %v6454_v16  ;;  %v6465_v22 = vadd.f32 %v10867_v52, %v17004_v25 }
 0x5a3   : > { %v6456_v18 = vpop.f32.mrf.mxu1  ;;  %v6682_v61 = vpop.f32.mrf.mxu0 }
 0x5a4   : > { %v15762_v29 = vadd.f32 %v10915_v48, %v6465_v22  ;;  %v6457_v15 = vadd.f32 %v6456_v18, %v17005_v53 }
 0x5a5   : > { %v10870_v3 = vpop.f32.mrf.mxu1  ;;  %v10918_v47 = vpop.f32.mrf.mxu0  ;;  %11157 = vmatmul.mubr.bf16.gmra.mxu1 %v6013_v31  ;;  %11205 = vmatmul.mubr.bf16.gmra.mxu0 %v6031_v50 }
 0x5a6   : > { %v15765_v43 = vadd.f32 %v6682_v61, %v6457_v15  ;;  %v6478_v7 = vadd.f32 %v10870_v3, %v17006_v36 }
 0x5a7   : > { %v6469_v39 = vpop.f32.mrf.mxu1  ;;  %v6695_v55 = vpop.f32.mrf.mxu0 }
 0x5a8   : > { %v15768_v28 = vadd.f32 %v10918_v47, %v6478_v7  ;;  %v6470_v51 = vadd.f32 %v6469_v39, %v17007_v14 }
 0x5a9   : > { %v10871_v1 = vpop.f32.mrf.mxu1  ;;  %v10919_v8 = vpop.f32.mrf.mxu0 }
 0x5aa   : > { %v15771_v19 = vadd.f32 %v6695_v55, %v6470_v51  ;;  %v6481_v38 = vadd.f32 %v10871_v1, %v17008_v5 }
 0x5ab   : > { %v6472_v30 = vpop.f32.mrf.mxu1  ;;  %v6698_v17 = vpop.f32.mrf.mxu0 }
 0x5ac   : > { %v15774_v23 = vadd.f32 %v10919_v8, %v6481_v38  ;;  %v6473_v34 = vadd.f32 %v6472_v30, %v17009_v57 }
 0x5ad   : > { %v10938_v2 = vpop.f32.mrf.mxu1  ;;  %v10986_v6 = vpop.f32.mrf.mxu0 }
 0x5ae   : > { %v15777_v20 = vadd.f32 %v6698_v17, %v6473_v34  ;;  %v6970_v44 = vadd.f32 %v10938_v2, %v15654_v26 }
 0x5af   : > { %v6841_v45 = vpop.f32.mrf.mxu1  ;;  %v7099_v56 = vpop.f32.mrf.mxu0 }
 0x5b0   : > { %v15780_v16 = vadd.f32 %v10986_v6, %v6970_v44  ;;  %v6968_v52 = vadd.f32 %v6841_v45, %v15656_v42 }
 0x5b1   : > { %v10939_v48 = vpop.f32.mrf.mxu1  ;;  %v10987_v31 = vpop.f32.mrf.mxu0 }
 0x5b2   : > { %v15783_v50 = vadd.f32 %v7099_v56, %v6968_v52  ;;  %v6971_v25 = vadd.f32 %v10939_v48, %v15658_v63 }
 0x5b3   : > { %v6844_v22 = vpop.f32.mrf.mxu1  ;;  %v7102_v18 = vpop.f32.mrf.mxu0 }
 0x5b4   : > { %v15786_v61 = vadd.f32 %v10987_v31, %v6971_v25  ;;  %v6969_v53 = vadd.f32 %v6844_v22, %v15663_v9 }
 0x5b5   : > { %v10942_v15 = vpop.f32.mrf.mxu1  ;;  %v10990_v26 = vpop.f32.mrf.mxu0 }
 0x5b6   : > { %v15789_v3 = vadd.f32 %v7102_v18, %v6969_v53  ;;  %v6974_v47 = vadd.f32 %v10942_v15, %v15668_v41 }
 0x5b7   : > { %v6857_v36 = vpop.f32.mrf.mxu1  ;;  %v7115_v42 = vpop.f32.mrf.mxu0 }
 0x5b8   : > { %v15792_v7 = vadd.f32 %v10990_v26, %v6974_v47  ;;  %v6972_v39 = vadd.f32 %v6857_v36, %v15671_v0 }
 0x5b9   : > { %v10943_v55 = vpop.f32.mrf.mxu1  ;;  %v10991_v63 = vpop.f32.mrf.mxu0 }
 0x5ba   : > { %v15795_v14 = vadd.f32 %v7115_v42, %v6972_v39  ;;  %v6975_v51 = vadd.f32 %v10943_v55, %v15674_v21 }
 0x5bb   : > { %v6860_v1 = vpop.f32.mrf.mxu1  ;;  %v7118_v9 = vpop.f32.mrf.mxu0 }
 0x5bc   : > { %v15798_v8 = vadd.f32 %v10991_v63, %v6975_v51  ;;  %v6973_v5 = vadd.f32 %v6860_v1, %v15679_v62 }
 0x5bd   : > { %v10946_v38 = vpop.f32.mrf.mxu1  ;;  %v10994_v41 = vpop.f32.mrf.mxu0 }
 0x5be   : > { %v15801_v30 = vadd.f32 %v7118_v9, %v6973_v5  ;;  %v6978_v17 = vadd.f32 %v10946_v38, %v15684_v59 }
 0x5bf   : > { %v6873_v57 = vpop.f32.mrf.mxu1  ;;  %v7131_v0 = vpop.f32.mrf.mxu0 }
 0x5c0   : > { %v15804_v34 = vadd.f32 %v10994_v41, %v6978_v17  ;;  %v6976_v2 = vadd.f32 %v6873_v57, %v15687_v60 }
 0x5c1   : > { %v10947_v6 = vpop.f32.mrf.mxu1  ;;  %v10995_v21 = vpop.f32.mrf.mxu0 }
 0x5c2   : > { %v15807_v44 = vadd.f32 %v7131_v0, %v6976_v2  ;;  %v6979_v45 = vadd.f32 %v10947_v6, %v15690_v49 }
 0x5c3   : > { %v6876_v56 = vpop.f32.mrf.mxu1  ;;  %v7134_v62 = vpop.f32.mrf.mxu0 }
 0x5c4   : > { %v15810_v52 = vadd.f32 %v10995_v21, %v6979_v45  ;;  %v6977_v48 = vadd.f32 %v6876_v56, %v15695_v10 }
 0x5c5   : > { %v10950_v31 = vpop.f32.mrf.mxu1  ;;  %v10998_v59 = vpop.f32.mrf.mxu0 }
 0x5c6   : > { %v15813_v25 = vadd.f32 %v7134_v62, %v6977_v48  ;;  %v6982_v22 = vadd.f32 %v10950_v31, %v15700_v24 }
 0x5c7   : > { %v6889_v18 = vpop.f32.mrf.mxu1  ;;  %v7147_v60 = vpop.f32.mrf.mxu0 }
 0x5c8   : > { %v15816_v53 = vadd.f32 %v10998_v59, %v6982_v22  ;;  %v6980_v15 = vadd.f32 %v6889_v18, %v15703_v13 }
 0x5c9   : > { %v10951_v26 = vpop.f32.mrf.mxu1  ;;  %v10999_v49 = vpop.f32.mrf.mxu0 }
 0x5ca   : > { %v15819_v47 = vadd.f32 %v7147_v60, %v6980_v15  ;;  %v6983_v36 = vadd.f32 %v10951_v26, %v15706_v58 }
 0x5cb   : > { %v6892_v42 = vpop.f32.mrf.mxu1  ;;  %v7150_v10 = vpop.f32.mrf.mxu0 }
 0x5cc   : > { %v15822_v39 = vadd.f32 %v10999_v49, %v6983_v36  ;;  %v6981_v55 = vadd.f32 %v6892_v42, %v15711_v11 }
 0x5cd   : > { %v10954_v63 = vpop.f32.mrf.mxu1  ;;  %v11002_v24 = vpop.f32.mrf.mxu0 }
 0x5ce   : > { %v15825_v51 = vadd.f32 %v7150_v10, %v6981_v55  ;;  %v6986_v1 = vadd.f32 %v10954_v63, %v15716_v12 }
 0x5cf   : > { %v6905_v9 = vpop.f32.mrf.mxu1  ;;  %v7163_v13 = vpop.f32.mrf.mxu0 }
 0x5d0   : > { %v15828_v5 = vadd.f32 %v11002_v24, %v6986_v1  ;;  %v6984_v38 = vadd.f32 %v6905_v9, %v15719_v54 }
 0x5d1   : > { %v10955_v41 = vpop.f32.mrf.mxu1  ;;  %v11003_v58 = vpop.f32.mrf.mxu0 }
 0x5d2   : > { %v15831_v17 = vadd.f32 %v7163_v13, %v6984_v38  ;;  %v6987_v57 = vadd.f32 %v10955_v41, %v15722_v32 }
 0x5d3   : > { %v6908_v0 = vpop.f32.mrf.mxu1  ;;  %v7166_v11 = vpop.f32.mrf.mxu0 }
 0x5d4   : > { %v15834_v2 = vadd.f32 %v11003_v58, %v6987_v57  ;;  %v6985_v6 = vadd.f32 %v6908_v0, %v15727_v35 }
 0x5d5   : > { %v10958_v21 = vpop.f32.mrf.mxu1  ;;  %v11006_v12 = vpop.f32.mrf.mxu0 }
 0x5d6   : > { %v15837_v45 = vadd.f32 %v7166_v11, %v6985_v6  ;;  %v6990_v56 = vadd.f32 %v10958_v21, %v15732_v33 }
 0x5d7   : > { %v6921_v62 = vpop.f32.mrf.mxu1  ;;  %v7179_v54 = vpop.f32.mrf.mxu0 }
 0x5d8   : > { %17010 = vst [vmem:[#allocation97_spill] sm:$0xff] %v15837_v45  ;;  %v15840_v48 = vadd.f32 %v11006_v12, %v6990_v56  ;;  %v6988_v31 = vadd.f32 %v6921_v62, %v15736_v27 }
 0x5d9   : > { %v10959_v59 = vpop.f32.mrf.mxu1  ;;  %v11007_v32 = vpop.f32.mrf.mxu0 }
 0x5da   : > { %17011 = vst [vmem:[#allocation98_spill] sm:$0xff] %v15840_v48  ;;  %v15843_v22 = vadd.f32 %v7179_v54, %v6988_v31  ;;  %v6991_v18 = vadd.f32 %v10959_v59, %v15740_v4 }
 0x5db   : > { %v6924_v60 = vpop.f32.mrf.mxu1  ;;  %v7182_v35 = vpop.f32.mrf.mxu0 }
 0x5dc   : > { %17012 = vst [vmem:[#allocation16_spill] sm:$0xff] %v15843_v22  ;;  %v15846_v15 = vadd.f32 %v11007_v32, %v6991_v18  ;;  %v6989_v26 = vadd.f32 %v6924_v60, %v15747_v46 }
 0x5dd   : > { %v10962_v49 = vpop.f32.mrf.mxu1  ;;  %v11010_v33 = vpop.f32.mrf.mxu0 }
 0x5de   : > { %17013 = vst [vmem:[#allocation94_spill] sm:$0xff] %v15846_v15  ;;  %v15849_v36 = vadd.f32 %v7182_v35, %v6989_v26  ;;  %v6994_v42 = vadd.f32 %v10962_v49, %v15754_v40 }
 0x5df   : > { %v6937_v10 = vpop.f32.mrf.mxu1  ;;  %v7195_v27 = vpop.f32.mrf.mxu0 }
 0x5e0   : > { %17014 = vst [vmem:[#allocation92_spill] sm:$0xff] %v15849_v36  ;;  %v15852_v55 = vadd.f32 %v11010_v33, %v6994_v42  ;;  %v6992_v63 = vadd.f32 %v6937_v10, %v15759_v37 }
 0x5e1   : > { %v10963_v24 = vpop.f32.mrf.mxu1  ;;  %v11011_v4 = vpop.f32.mrf.mxu0 }
 0x5e2   : > { %17015 = vst [vmem:[#allocation99_spill] sm:$0xff] %v15852_v55  ;;  %v15855_v1 = vadd.f32 %v7195_v27, %v6992_v63  ;;  %v6995_v9 = vadd.f32 %v10963_v24, %v15762_v29 }
 0x5e3   : > { %v6940_v13 = vpop.f32.mrf.mxu1  ;;  %v7198_v46 = vpop.f32.mrf.mxu0 }
 0x5e4   : > { %17016 = vst [vmem:[#allocation96_spill] sm:$0xff] %v15855_v1  ;;  %v15858_v38 = vadd.f32 %v11011_v4, %v6995_v9  ;;  %v6993_v41 = vadd.f32 %v6940_v13, %v15765_v43 }
 0x5e5   : > { %v10966_v58 = vpop.f32.mrf.mxu1  ;;  %v11014_v40 = vpop.f32.mrf.mxu0 }
 0x5e6   : > { %17017 = vst [vmem:[#allocation88_spill] sm:$0xff] %v15858_v38  ;;  %v15861_v57 = vadd.f32 %v7198_v46, %v6993_v41  ;;  %v6998_v0 = vadd.f32 %v10966_v58, %v15768_v28 }
 0x5e7   : > { %v6953_v11 = vpop.f32.mrf.mxu1  ;;  %v7211_v37 = vpop.f32.mrf.mxu0 }
 0x5e8   : > { %17018 = vst [vmem:[#allocation89_spill] sm:$0xff] %v15861_v57  ;;  %v15864_v6 = vadd.f32 %v11014_v40, %v6998_v0  ;;  %v6996_v21 = vadd.f32 %v6953_v11, %v15771_v19 }
 0x5e9   : > { %v10967_v12 = vpop.f32.mrf.mxu1  ;;  %v11015_v29 = vpop.f32.mrf.mxu0 }
 0x5ea   : > { %17019 = vst [vmem:[#allocation90_spill] sm:$0xff] %v15864_v6  ;;  %v15867_v56 = vadd.f32 %v7211_v37, %v6996_v21  ;;  %v6999_v62 = vadd.f32 %v10967_v12, %v15774_v23 }
 0x5eb   : > { %v6956_v54 = vpop.f32.mrf.mxu1  ;;  %v7214_v43 = vpop.f32.mrf.mxu0 }
 0x5ec   : > { %17020 = vst [vmem:[#allocation91_spill] sm:$0xff] %v15867_v56  ;;  %v15870_v31 = vadd.f32 %v11015_v29, %v6999_v62  ;;  %v6997_v59 = vadd.f32 %v6956_v54, %v15777_v20 }
 0x5ed   : > { %v11034_v32 = vpop.f32.mrf.mxu1  ;;  %v15873_v28 = vpop.f32.mrf.mxu0 }
 0x5ee   : > { %17021 = vst [vmem:[#allocation93_spill] sm:$0xff] %v15870_v31  ;;  %v15875_v18 = vadd.f32 %v7214_v43, %v6997_v59 }
 0x5ef   : > { %v7357_v60 = vpop.f32.mrf.mxu1  ;;  %v15877_v35 = vpop.f32.mrf.mxu0 }
 0x5f0   : > { %17022 = vst [vmem:[#allocation95_spill] sm:$0xff] %v15875_v18 }
 0x5f1   : > { %v11035_v19 = vpop.f32.mrf.mxu1  ;;  %v15879_v26 = vpop.f32.mrf.mxu0 }
 0x5f3   : > { %v7360_v49 = vpop.f32.mrf.mxu1  ;;  %v15881_v33 = vpop.f32.mrf.mxu0 }
 0x5f5   : > { %v11038_v23 = vpop.f32.mrf.mxu1  ;;  %v15883_v42 = vpop.f32.mrf.mxu0 }
 0x5f7   : > { %v7373_v10 = vpop.f32.mrf.mxu1  ;;  %v15885_v27 = vpop.f32.mrf.mxu0 }
 0x5f9   : > { %v11039_v20 = vpop.f32.mrf.mxu1  ;;  %v15887_v63 = vpop.f32.mrf.mxu0 }
 0x5fb   : > { %v7376_v24 = vpop.f32.mrf.mxu1  ;;  %v15889_v4 = vpop.f32.mrf.mxu0 }
 0x5fd   : > { %v11042_v9 = vpop.f32.mrf.mxu1  ;;  %v15891_v13 = vpop.f32.mrf.mxu0 }
 0x5ff   : > { %v7389_v46 = vpop.f32.mrf.mxu1  ;;  %v15893_v41 = vpop.f32.mrf.mxu0 }
 0x601   : > { %v11043_v58 = vpop.f32.mrf.mxu1  ;;  %v15895_v40 = vpop.f32.mrf.mxu0 }
 0x603   : > { %v7392_v0 = vpop.f32.mrf.mxu1  ;;  %v15897_v11 = vpop.f32.mrf.mxu0 }
 0x605   : > { %v11046_v37 = vpop.f32.mrf.mxu1  ;;  %v15899_v21 = vpop.f32.mrf.mxu0 }
 0x607   : > { %v15901_v12 = vpop.f32.mrf.mxu1  ;;  %v15903_v29 = vpop.f32.mrf.mxu0 }
 0x609   : > { %v15905_v62 = vpop.f32.mrf.mxu1  ;;  %v15907_v54 = vpop.f32.mrf.mxu0 }
 0x60b   : > { %v15909_v43 = vpop.f32.mrf.mxu1  ;;  %v15911_v59 = vpop.f32.mrf.mxu0 }
 0x60c   : > { %17023 = vst [vmem:[#allocation100_spill] sm:$0xff] %v15911_v59 }
 0x60d   : > { %v15913_v18 = vpop.f32.mrf.mxu1  ;;  %v15915_v31 = vpop.f32.mrf.mxu0 }
 0x60e   : > { %17024 = vst [vmem:[#allocation101_spill] sm:$0xff] %v15915_v31 }
 0x60f   : > { %v15917_v56 = vpop.f32.mrf.mxu1  ;;  %v15919_v6 = vpop.f32.mrf.mxu0 }
 0x610   : > { %17025 = vst [vmem:[#allocation102_spill] sm:$0xff] %v15919_v6 }
 0x611   : > { %v15921_v57 = vpop.f32.mrf.mxu1  ;;  %v15923_v38 = vpop.f32.mrf.mxu0 }
 0x612   : > { %17026 = vst [vmem:[#allocation103_spill] sm:$0xff] %v15923_v38 }
 0x613   : > { %v15925_v1 = vpop.f32.mrf.mxu1  ;;  %v15927_v55 = vpop.f32.mrf.mxu0 }
 0x614   : > { %17027 = vst [vmem:[#allocation104_spill] sm:$0xff] %v15925_v1  ;;  %17028 = vst [vmem:[#allocation105_spill] sm:$0xff] %v15927_v55 }
 0x615   : > { %v15929_v36 = vpop.f32.mrf.mxu1  ;;  %v15931_v15 = vpop.f32.mrf.mxu0 }
 0x616   : > { %17029 = vst [vmem:[#allocation106_spill] sm:$0xff] %v15929_v36  ;;  %17030 = vst [vmem:[#allocation107_spill] sm:$0xff] %v15931_v15 }
 0x617   : > { %v15933_v22 = vpop.f32.mrf.mxu1  ;;  %v15935_v48 = vpop.f32.mrf.mxu0 }
 0x618   : > { %17031 = vst [vmem:[#allocation108_spill] sm:$0xff] %v15933_v22  ;;  %17032 = vst [vmem:[#allocation109_spill] sm:$0xff] %v15935_v48 }
 0x619   : > { %v15937_v31 = vpop.f32.mrf.mxu1  ;;  %v15939_v59 = vpop.f32.mrf.mxu0 }
 0x61a   : > { %17033 = vst [vmem:[#allocation110_spill] sm:$0xff] %v15937_v31  ;;  %17034 = vst [vmem:[#allocation111_spill] sm:$0xff] %v15939_v59 }
 0x61b   : > { %v15941_v6 = vpop.f32.mrf.mxu1  ;;  %v15943_v45 = vpop.f32.mrf.mxu0 }
 0x61c   : > { %17035 = vst [vmem:[#allocation112_spill] sm:$0xff] %v15941_v6  ;;  %17036 = vst [vmem:[#allocation113_spill] sm:$0xff] %v15943_v45 }
 0x61d   : > { %v15945_v38 = vpop.f32.mrf.mxu1  ;;  %v15947_v1 = vpop.f32.mrf.mxu0 }
 0x61e   : > { %17037 = vst [vmem:[#allocation114_spill] sm:$0xff] %v15945_v38  ;;  %17038 = vst [vmem:[#allocation115_spill] sm:$0xff] %v15947_v1  ;;  %v7486_v1 = vadd.f32 %v11034_v32, %v15780_v16  ;;  %v7494_v32 = vadd.f32 %v11042_v9, %v15804_v34  ;;  %v16030_v9 = vld [vmem:[#allocation8] ss:$0 sm:$0xff] }
 0x61f   : > { %v15949_v55 = vpop.f32.mrf.mxu1  ;;  %v15951_v36 = vpop.f32.mrf.mxu0 }
 0x620   : > { %17039 = vst [vmem:[#allocation116_spill] sm:$0xff] %v15949_v55  ;;  %17040 = vst [vmem:[#allocation117_spill] sm:$0xff] %v15951_v36  ;;  %v7484_v36 = vadd.f32 %v7357_v60, %v15783_v50  ;;  %v7744_v16 = vadd.f32 %v15873_v28, %v7486_v1  ;;  %v7489_v50 = vadd.f32 %v7376_v24, %v15801_v30 }
 0x621   : > { %v15953_v15 = vpop.f32.mrf.mxu1  ;;  %v15955_v22 = vpop.f32.mrf.mxu0 }
 0x622   : > { %17041 = vst [vmem:[#allocation118_spill] sm:$0xff] %v15953_v15  ;;  %17042 = vst [vmem:[#allocation119_spill] sm:$0xff] %v15955_v22  ;;  %v7487_v22 = vadd.f32 %v11035_v19, %v15786_v61  ;;  %v7742_v61 = vadd.f32 %v15877_v35, %v7484_v36  ;;  %v15999_v36 = vld [vmem:[#allocation6 + $0x6] ss:$0 sm:$0xff] }
 0x623   : > { %v15957_v48 = vpop.f32.mrf.mxu1  ;;  %v15959_v31 = vpop.f32.mrf.mxu0 }
 0x624   : > { %17043 = vst [vmem:[#allocation120_spill] sm:$0xff] %v15957_v48  ;;  %17044 = vst [vmem:[#allocation121_spill] sm:$0xff] %v15959_v31  ;;  %v7485_v31 = vadd.f32 %v7360_v49, %v15789_v3  ;;  %v7492_v3 = vadd.f32 %v7389_v46, %v15807_v44  ;;  %v7493_v49 = vadd.f32 %v7392_v0, %v15813_v25 }
 0x625   : > { %v15961_v59 = vpop.f32.mrf.mxu1  ;;  %v15963_v6 = vpop.f32.mrf.mxu0  ;;  %v7498_v44 = vadd.f32 %v11046_v37, %v15816_v53  ;;  %v7496_v53 = vadd.f32 %v15901_v12, %v15819_v47  ;;  %v7502_v47 = vadd.f32 %v15913_v18, %v15828_v5  ;;  %v7503_v5 = vadd.f32 %v15921_v57, %v15834_v2  ;;  %v17049_v18 = vld [vmem:[#allocation97_spill] sm:$0xff]  ;;  %v16043_v37 = vld [vmem:[#allocation9] ss:$0 sm:$0xff] }
 0x626   : > { %17045 = vst [vmem:[#allocation122_spill] sm:$0xff] %v15961_v59  ;;  %17046 = vst [vmem:[#allocation123_spill] sm:$0xff] %v15963_v6  ;;  %v7490_v59 = vadd.f32 %v11038_v23, %v15792_v7  ;;  %v7488_v6 = vadd.f32 %v7373_v10, %v15795_v14  ;;  %v7495_v7 = vadd.f32 %v11043_v58, %v15810_v52  ;;  %v17053_v2 = vld [vmem:[#allocation102_spill] sm:$0xff] }
 0x627   : > { %v15965_v45 = vpop.f32.mrf.mxu1  ;;  %v15967_v38 = vpop.f32.mrf.mxu0  ;;  %v7743_v19 = vadd.f32 %v15881_v33, %v7485_v31  ;;  %v16005_v31 = vadd.f32 %v15891_v13, %v7494_v32  ;;  %v16018_v10 = vadd.f32 %v15897_v11, %v7493_v49  ;;  %v16022_v24 = vadd.f32 %v15899_v21, %v7498_v44  ;;  %v17054_v49 = vld [vmem:[#allocation103_spill] sm:$0xff]  ;;  %v17055_v44 = vld [vmem:[#allocation105_spill] sm:$0xff] }
 0x628   : > { %17047 = vst [vmem:[#allocation124_spill] sm:$0xff] %v15965_v45  ;;  %17048 = vst [vmem:[#allocation125_spill] sm:$0xff] %v15967_v38  ;;  %v7491_v45 = vadd.f32 %v11039_v20, %v15798_v8  ;;  %v7745_v8 = vadd.f32 %v15879_v26, %v7487_v22  ;;  %v7748_v1 = vadd.f32 %v15883_v42, %v7490_v59 }
 0x629   : > { %v15971_v55 = vpop.f32.mrf.mxu1  ;;  %v15973_v15 = vpop.f32.mrf.mxu0  ;;  %v7746_v30 = vadd.f32 %v15885_v27, %v7488_v6  ;;  %v16002_v22 = vadd.f32 %v15889_v4, %v7489_v50  ;;  %v16008_v26 = vadd.f32 %v15893_v41, %v7492_v3  ;;  %v7499_v6 = vadd.f32 %v15905_v62, %v15822_v39 }
 0x62a   : > { %v15996_v34 = vadd.f32 %v15887_v63, %v7491_v45  ;;  %v16011_v45 = vadd.f32 %v15895_v40, %v7495_v7  ;;  %v7497_v4 = vadd.f32 %v15909_v43, %v15825_v51  ;;  %v7500_v39 = vadd.f32 %v15917_v56, %v15831_v17  ;;  %v17050_v17 = vld [vmem:[#allocation104_spill] sm:$0xff] }
 0x62b   : > { %v15980_v48 = vpop.f32.mrf.mxu1  ;;  %v15982_v38 = vpop.f32.mrf.mxu0  ;;  %v16034_v11 = vadd.f32 %v15903_v29, %v7496_v53  ;;  %v16037_v51 = vadd.f32 %v15907_v54, %v7499_v6  ;;  %v7501_v56 = vadd.f32 %v17050_v17, %v17049_v18  ;;  %v17052_v54 = vld [vmem:[#allocation101_spill] sm:$0xff] }
 0x62c   : > { %v16051_v32 = vadd.f32 %v17052_v54, %v7502_v47  ;;  %v16054_v57 = vadd.f32 %v17053_v2, %v7500_v39 }
 0x62d   : > { %v11130_v60 = vpop.f32.mrf.mxu1  ;;  %v11178_v14 = vpop.f32.mrf.mxu0 }
 0x62e   : > { %v8002_v23 = vadd.f32 %v11130_v60, %v7744_v16  ;;  %v17051_v16 = vld [vmem:[#allocation100_spill] sm:$0xff] }
 0x62f   : > { %v7873_v52 = vpop.f32.mrf.mxu1  ;;  %v8131_v28 = vpop.f32.mrf.mxu0  ;;  %v16048_v50 = vadd.f32 %v17051_v16, %v7497_v4  ;;  %v17060_v16 = vld [vmem:[#allocation107_spill] sm:$0xff] }
 0x630   : > { %v8260_v25 = vadd.f32 %v11178_v14, %v8002_v23  ;;  %v8000_v35 = vadd.f32 %v7873_v52, %v7742_v61  ;;  %v16060_v23 = vadd.f32 %v17054_v49, %v7503_v5  ;;  %v16063_v52 = vadd.f32 %v17055_v44, %v7501_v56  ;;  %v17059_v5 = vld [vmem:[#allocation108_spill] sm:$0xff]  ;;  %v17061_v49 = vld [vmem:[#allocation109_spill] sm:$0xff] }
 0x631   : > { %v11131_v33 = vpop.f32.mrf.mxu1  ;;  %v11179_v42 = vpop.f32.mrf.mxu0 }
 0x632   : > { %v8300_v27 = vadd.f32 %v15999_v36, %v8260_v25  ;;  %v8258_v20 = vadd.f32 %v8131_v28, %v8000_v35  ;;  %v8003_v63 = vadd.f32 %v11131_v33, %v7745_v8 }
 0x633   : > { %v7876_v13 = vpop.f32.mrf.mxu1  ;;  %v8134_v46 = vpop.f32.mrf.mxu0 }
 0x634   : > { %v8332_v41 = vmax.f32 %v8300_v27, 0.0  ;;  %v8298_v58 = vadd.f32 %v15999_v36, %v8258_v20  ;;  %v8261_v40 = vadd.f32 %v11179_v42, %v8003_v63  ;;  %v8001_v0 = vadd.f32 %v7876_v13, %v7743_v19  ;;  %v17056_v27 = vld [vmem:[#allocation98_spill] sm:$0xff] }
 0x635   : > { %v11134_v21 = vpop.f32.mrf.mxu1  ;;  %v11182_v12 = vpop.f32.mrf.mxu0  ;;  %v17057_v20 = vld [vmem:[#allocation106_spill] sm:$0xff] }
 0x636   : > { %v8371_v62 = vmul.f32 %v16030_v9, %v8332_v41  ;;  %v8330_v43 = vmax.f32 %v8298_v58, 0.0  ;;  %v8301_v59 = vadd.f32 %v15999_v36, %v8261_v40  ;;  %v8259_v29 = vadd.f32 %v8134_v46, %v8001_v0  ;;  %v17058_v0 = vld [vmem:[#allocation16_spill] sm:$0xff] }
 0x637   : > { %v8006_v61 = vadd.f32 %v11134_v21, %v7748_v1  ;;  %v7889_v3 = vpop.f32.mrf.mxu1  ;;  %v8147_v7 = vpop.f32.mrf.mxu0  ;;  %v7506_v63 = vadd.f32 %v17057_v20, %v17056_v27  ;;  %v7504_v18 = vadd.f32 %v17059_v5, %v17058_v0  ;;  %v17062_v27 = vld [vmem:[#allocation94_spill] sm:$0xff]  ;;  %v17065_v0 = vld [vmem:[#allocation112_spill] sm:$0xff] }
 0x638   : > { %v8410_v60 = vadd.f32 %v16043_v37, %v8371_v62  ;;  %v8369_v14 = vmul.f32 %v16030_v9, %v8330_v43  ;;  %v8333_v8 = vmax.f32 %v8301_v59, 0.0  ;;  %v8299_v19 = vadd.f32 %v15999_v36, %v8259_v29 }
 0x639   : > { %v8264_v28 = vadd.f32 %v11182_v12, %v8006_v61  ;;  %v8004_v25 = vadd.f32 %v7889_v3, %v7746_v30  ;;  %v11135_v35 = vpop.f32.mrf.mxu1  ;;  %v11183_v1 = vpop.f32.mrf.mxu0  ;;  %v16082_v54 = vadd.f32 %v17060_v16, %v7506_v63 }
 0x63a   : > { %v8442_v53 = vmax.f32 %v8410_v60, 0.0  ;;  %v8408_v6 = vadd.f32 %v16043_v37, %v8369_v14  ;;  %v8372_v33 = vmul.f32 %v16030_v9, %v8333_v8  ;;  %v8331_v42 = vmax.f32 %v8299_v19, 0.0 }
 0x63b   : > { %v8304_v4 = vadd.f32 %v15999_v36, %v8264_v28  ;;  %v8262_v47 = vadd.f32 %v8147_v7, %v8004_v25  ;;  %v8007_v39 = vadd.f32 %v11135_v35, %v15996_v34  ;;  %v7892_v13 = vpop.f32.mrf.mxu1  ;;  %v8150_v46 = vpop.f32.mrf.mxu0 }
 0x63c   : > { %8474 = vst [vmem:[%s11930_s12 + $0x10] sm:$0xff] %v8442_v53  ;;  %v8440_v30 = vmax.f32 %v8408_v6, 0.0  ;;  %v8411_v41 = vadd.f32 %v16043_v37, %v8372_v33  ;;  %v8370_v58 = vmul.f32 %v16030_v9, %v8331_v42  ;;  %v8005_v40 = vadd.f32 %v7892_v13, %v16002_v22 }
 0x63d   : > { %v8336_v17 = vmax.f32 %v8304_v4, 0.0  ;;  %v8302_v56 = vadd.f32 %v15999_v36, %v8262_v47  ;;  %v8265_v21 = vadd.f32 %v11183_v1, %v8007_v39  ;;  %v11138_v12 = vpop.f32.mrf.mxu1  ;;  %v11186_v34 = vpop.f32.mrf.mxu0 }
 0x63e   : > { %8472 = vst [vmem:[%s11930_s12] sm:$0xff] %v8440_v30  ;;  %v8443_v62 = vmax.f32 %v8411_v41, 0.0  ;;  %v8409_v43 = vadd.f32 %v16043_v37, %v8370_v58  ;;  %v8263_v59 = vadd.f32 %v8150_v46, %v8005_v40  ;;  %v8010_v29 = vadd.f32 %v11138_v12, %v16005_v31  ;;  %v17064_v40 = vld [vmem:[#allocation92_spill] sm:$0xff] }
 0x63f   : > { %v8375_v22 = vmul.f32 %v16030_v9, %v8336_v17  ;;  %v8334_v2 = vmax.f32 %v8302_v56, 0.0  ;;  %v8305_v61 = vadd.f32 %v15999_v36, %v8265_v21  ;;  %v7905_v3 = vpop.f32.mrf.mxu1  ;;  %v8163_v7 = vpop.f32.mrf.mxu0  ;;  %v16090_v31 = vadd.f32 %v17061_v49, %v7504_v18 }
 0x640   : > { %8475 = vst [vmem:[%s11930_s12 + $0x18] sm:$0xff] %v8443_v62  ;;  %v8441_v60 = vmax.f32 %v8409_v43, 0.0  ;;  %v8303_v14 = vadd.f32 %v15999_v36, %v8263_v59  ;;  %v8268_v8 = vadd.f32 %v11186_v34, %v8010_v29  ;;  %v8008_v19 = vadd.f32 %v7905_v3, %v16008_v26  ;;  %v17063_v26 = vld [vmem:[#allocation110_spill] sm:$0xff]  ;;  %v17066_v59 = vld [vmem:[#allocation111_spill] sm:$0xff] }
 0x641   : > { %v8414_v44 = vadd.f32 %v16043_v37, %v8375_v22  ;;  %v8373_v28 = vmul.f32 %v16030_v9, %v8334_v2  ;;  %v8337_v25 = vmax.f32 %v8305_v61, 0.0  ;;  %v11139_v35 = vpop.f32.mrf.mxu1  ;;  %v11187_v1 = vpop.f32.mrf.mxu0  ;;  %v7507_v20 = vadd.f32 %v17063_v26, %v17062_v27 }
 0x642   : > { %8473 = vst [vmem:[%s11930_s12 + $0x8] sm:$0xff] %v8441_v60  ;;  %v8335_v53 = vmax.f32 %v8303_v14, 0.0  ;;  %v8308_v6 = vadd.f32 %v15999_v36, %v8268_v8  ;;  %v8266_v33 = vadd.f32 %v8163_v7, %v8008_v19  ;;  %v8011_v42 = vadd.f32 %v11139_v35, %v16011_v45  ;;  %v17067_v8 = vld [vmem:[#allocation113_spill] sm:$0xff] }
 0x643   : > { %v8446_v63 = vmax.f32 %v8414_v44, 0.0  ;;  %v8412_v4 = vadd.f32 %v16043_v37, %v8373_v28  ;;  %v8376_v47 = vmul.f32 %v16030_v9, %v8337_v25  ;;  %v7908_v39 = vpop.f32.mrf.mxu1  ;;  %v8166_v13 = vpop.f32.mrf.mxu0  ;;  %v7505_v45 = vadd.f32 %v17065_v0, %v17064_v40 }
 0x644   : > { %v8374_v46 = vmul.f32 %v16030_v9, %v8335_v53  ;;  %v8340_v30 = vmax.f32 %v8308_v6, 0.0  ;;  %v8306_v41 = vadd.f32 %v15999_v36, %v8266_v33  ;;  %v8269_v58 = vadd.f32 %v11187_v1, %v8011_v42  ;;  %v17068_v33 = vld [vmem:[#allocation99_spill] sm:$0xff]  ;;  %v17069_v42 = vld [vmem:[#allocation114_spill] sm:$0xff] }
 0x645   : > { %8478 = vst [vmem:[%s11930_s12 + $0x30] sm:$0xff] %v8446_v63  ;;  %v8444_v5 = vmax.f32 %v8412_v4, 0.0  ;;  %v8415_v18 = vadd.f32 %v16043_v37, %v8376_v47  ;;  %v8009_v17 = vadd.f32 %v7908_v39, %v16018_v10  ;;  %v11142_v56 = vpop.f32.mrf.mxu1  ;;  %v11190_v21 = vpop.f32.mrf.mxu0  ;;  %v16112_v29 = vadd.f32 %v17066_v59, %v7507_v20 }
 0x646   : > { %v8413_v12 = vadd.f32 %v16043_v37, %v8374_v46  ;;  %v8379_v34 = vmul.f32 %v16030_v9, %v8340_v30  ;;  %v8338_v62 = vmax.f32 %v8306_v41, 0.0  ;;  %v8309_v43 = vadd.f32 %v15999_v36, %v8269_v58  ;;  %v17070_v30 = vld [vmem:[#allocation96_spill] sm:$0xff] }
 0x647   : > { %8476 = vst [vmem:[%s11930_s12 + $0x20] sm:$0xff] %v8444_v5  ;;  %v8447_v16 = vmax.f32 %v8415_v18, 0.0  ;;  %v8267_v22 = vadd.f32 %v8166_v13, %v8009_v17  ;;  %v8014_v2 = vadd.f32 %v11142_v56, %v16022_v24  ;;  %v7921_v10 = vpop.f32.mrf.mxu1  ;;  %v8179_v61 = vpop.f32.mrf.mxu0  ;;  %v16119_v19 = vadd.f32 %v17067_v8, %v7505_v45  ;;  %v17071_v41 = vld [vmem:[#allocation116_spill] sm:$0xff] }
 0x648   : > { %v8445_v3 = vmax.f32 %v8413_v12, 0.0  ;;  %v8418_v7 = vadd.f32 %v16043_v37, %v8379_v34  ;;  %v8377_v60 = vmul.f32 %v16030_v9, %v8338_v62  ;;  %v8341_v14 = vmax.f32 %v8309_v43, 0.0  ;;  %v17072_v12 = vld [vmem:[#allocation115_spill] sm:$0xff] }
 0x649   : > { %8479 = vst [vmem:[%s11930_s12 + $0x38] sm:$0xff] %v8447_v16  ;;  %v8307_v49 = vadd.f32 %v15999_v36, %v8267_v22  ;;  %v8272_v44 = vadd.f32 %v11190_v21, %v8014_v2  ;;  %v8012_v28 = vadd.f32 %v7921_v10, %v16034_v11  ;;  %v11143_v25 = vpop.f32.mrf.mxu1  ;;  %v11191_v24 = vpop.f32.mrf.mxu0  ;;  %v7510_v27 = vadd.f32 %v17069_v42, %v17068_v33 }
 0x64a   : > { %8477 = vst [vmem:[%s11930_s12 + $0x28] sm:$0xff] %v8445_v3  ;;  %v8450_v35 = vmax.f32 %v8418_v7, 0.0  ;;  %v8416_v1 = vadd.f32 %v16043_v37, %v8377_v60  ;;  %v8380_v53 = vmul.f32 %v16030_v9, %v8341_v14  ;;  %v8015_v6 = vadd.f32 %v11143_v25, %v16037_v51  ;;  %v17073_v3 = vld [vmem:[#allocation117_spill] sm:$0xff] }
 0x64b   : > { %v8339_v26 = vmax.f32 %v8307_v49, 0.0  ;;  %v8312_v20 = vadd.f32 %v15999_v36, %v8272_v44  ;;  %v8270_v63 = vadd.f32 %v8179_v61, %v8012_v28  ;;  %v7924_v4 = vpop.f32.mrf.mxu1  ;;  %v8182_v11 = vpop.f32.mrf.mxu0  ;;  %v7508_v51 = vadd.f32 %v17071_v41, %v17070_v30 }
 0x64c   : > { %8482 = vst [vmem:[%s11930_s12 + $0x50] sm:$0xff] %v8450_v35  ;;  %v8448_v47 = vmax.f32 %v8416_v1, 0.0  ;;  %v8419_v39 = vadd.f32 %v16043_v37, %v8380_v53  ;;  %v8273_v13 = vadd.f32 %v11191_v24, %v8015_v6  ;;  %v8013_v46 = vadd.f32 %v7924_v4, %v16048_v50  ;;  %v17074_v35 = vld [vmem:[#allocation88_spill] sm:$0xff]  ;;  %v17075_v1 = vld [vmem:[#allocation118_spill] sm:$0xff] }
 0x64d   : > { %v8378_v58 = vmul.f32 %v16030_v9, %v8339_v26  ;;  %v8344_v40 = vmax.f32 %v8312_v20, 0.0  ;;  %v8310_v0 = vadd.f32 %v15999_v36, %v8270_v63  ;;  %v11146_v45 = vpop.f32.mrf.mxu1  ;;  %v11194_v5 = vpop.f32.mrf.mxu0  ;;  %v16142_v50 = vadd.f32 %v17072_v12, %v7510_v27 }
 0x64e   : > { %8480 = vst [vmem:[%s11930_s12 + $0x40] sm:$0xff] %v8448_v47  ;;  %v8451_v18 = vmax.f32 %v8419_v39, 0.0  ;;  %v8313_v17 = vadd.f32 %v15999_v36, %v8273_v13  ;;  %v8271_v56 = vadd.f32 %v8182_v11, %v8013_v46  ;;  %v8018_v21 = vadd.f32 %v11146_v45, %v16051_v32  ;;  %v17076_v11 = vld [vmem:[#allocation89_spill] sm:$0xff]  ;;  %v17077_v47 = vld [vmem:[#allocation120_spill] sm:$0xff]  ;;  %v17078_v45 = vld [vmem:[#allocation119_spill] sm:$0xff] }
 0x64f   : > { %v8417_v34 = vadd.f32 %v16043_v37, %v8378_v58  ;;  %v8383_v62 = vmul.f32 %v16030_v9, %v8344_v40  ;;  %v8342_v43 = vmax.f32 %v8310_v0, 0.0  ;;  %v7937_v59 = vpop.f32.mrf.mxu1  ;;  %v8195_v16 = vpop.f32.mrf.mxu0  ;;  %v16150_v32 = vadd.f32 %v17073_v3, %v7508_v51 }
 0x650   : > { %8483 = vst [vmem:[%s11930_s12 + $0x58] sm:$0xff] %v8451_v18  ;;  %v8345_v22 = vmax.f32 %v8313_v17, 0.0  ;;  %v8311_v2 = vadd.f32 %v15999_v36, %v8271_v56  ;;  %v8276_v10 = vadd.f32 %v11194_v5, %v8018_v21  ;;  %v8016_v61 = vadd.f32 %v7937_v59, %v16054_v57  ;;  %v17079_v59 = vld [vmem:[#allocation121_spill] sm:$0xff] }
 0x651   : > { %v8449_v7 = vmax.f32 %v8417_v34, 0.0  ;;  %v8422_v60 = vadd.f32 %v16043_v37, %v8383_v62  ;;  %v8381_v14 = vmul.f32 %v16030_v9, %v8342_v43  ;;  %v11147_v8 = vpop.f32.mrf.mxu1  ;;  %v11195_v49 = vpop.f32.mrf.mxu0  ;;  %v7511_v57 = vadd.f32 %v17075_v1, %v17074_v35 }
 0x652   : > { %v8384_v44 = vmul.f32 %v16030_v9, %v8345_v22  ;;  %v8343_v28 = vmax.f32 %v8311_v2, 0.0  ;;  %v8316_v25 = vadd.f32 %v15999_v36, %v8276_v10  ;;  %v8274_v24 = vadd.f32 %v8195_v16, %v8016_v61 }
 0x653   : > { %8481 = vst [vmem:[%s11930_s12 + $0x48] sm:$0xff] %v8449_v7  ;;  %v8454_v53 = vmax.f32 %v8422_v60, 0.0  ;;  %v8420_v6 = vadd.f32 %v16043_v37, %v8381_v14  ;;  %v8019_v33 = vadd.f32 %v11147_v8, %v16060_v23  ;;  %v7940_v42 = vpop.f32.mrf.mxu1  ;;  %v8198_v27 = vpop.f32.mrf.mxu0  ;;  %v7509_v39 = vadd.f32 %v17077_v47, %v17076_v11  ;;  %v17080_v8 = vld [vmem:[#allocation90_spill] sm:$0xff] }
 0x654   : > { %v8423_v26 = vadd.f32 %v16043_v37, %v8384_v44  ;;  %v8382_v20 = vmul.f32 %v16030_v9, %v8343_v28  ;;  %v8348_v63 = vmax.f32 %v8316_v25, 0.0  ;;  %v8314_v4 = vadd.f32 %v15999_v36, %v8274_v24 }
 0x655   : > { %8486 = vst [vmem:[%s11930_s12 + $0x70] sm:$0xff] %v8454_v53  ;;  %v8452_v13 = vmax.f32 %v8420_v6, 0.0  ;;  %v8277_v46 = vadd.f32 %v11195_v49, %v8019_v33  ;;  %v8017_v30 = vadd.f32 %v7940_v42, %v16063_v52  ;;  %v11150_v23 = vpop.f32.mrf.mxu1  ;;  %v11198_v41 = vpop.f32.mrf.mxu0  ;;  %v16171_v5 = vadd.f32 %v17078_v45, %v7511_v57  ;;  %v17081_v49 = vld [vmem:[#allocation122_spill] sm:$0xff]  ;;  %v17082_v33 = vld [vmem:[#allocation91_spill] sm:$0xff] }
 0x656   : > { %v8455_v51 = vmax.f32 %v8423_v26, 0.0  ;;  %v8421_v58 = vadd.f32 %v16043_v37, %v8382_v20  ;;  %v8387_v40 = vmul.f32 %v16030_v9, %v8348_v63  ;;  %v8346_v0 = vmax.f32 %v8314_v4, 0.0 }
 0x657   : > { %8484 = vst [vmem:[%s11930_s12 + $0x60] sm:$0xff] %v8452_v13  ;;  %v8317_v18 = vadd.f32 %v15999_v36, %v8277_v46  ;;  %v8275_v17 = vadd.f32 %v8198_v27, %v8017_v30  ;;  %v8022_v56 = vadd.f32 %v11150_v23, %v16082_v54  ;;  %v7953_v21 = vpop.f32.mrf.mxu1  ;;  %v8211_v52 = vpop.f32.mrf.mxu0  ;;  %v16181_v16 = vadd.f32 %v17079_v59, %v7509_v39  ;;  %v17084_v46 = vld [vmem:[#allocation123_spill] sm:$0xff] }
 0x658   : > { %8487 = vst [vmem:[%s11930_s12 + $0x78] sm:$0xff] %v8455_v51  ;;  %v8453_v12 = vmax.f32 %v8421_v58, 0.0  ;;  %v8426_v34 = vadd.f32 %v16043_v37, %v8387_v40  ;;  %v8385_v62 = vmul.f32 %v16030_v9, %v8346_v0  ;;  %v8020_v43 = vadd.f32 %v7953_v21, %v16090_v31 }
 0x659   : > { %v8349_v22 = vmax.f32 %v8317_v18, 0.0  ;;  %v8315_v2 = vadd.f32 %v15999_v36, %v8275_v17  ;;  %v8280_v10 = vadd.f32 %v11198_v41, %v8022_v56  ;;  %v11151_v61 = vpop.f32.mrf.mxu1  ;;  %v11199_v54 = vpop.f32.mrf.mxu0  ;;  %v7514_v31 = vadd.f32 %v17081_v49, %v17080_v8  ;;  %v17085_v17 = vld [vmem:[#allocation125_spill] sm:$0xff] }
 0x65a   : > { %8485 = vst [vmem:[%s11930_s12 + $0x68] sm:$0xff] %v8453_v12  ;;  %v8458_v3 = vmax.f32 %v8426_v34, 0.0  ;;  %v8424_v7 = vadd.f32 %v16043_v37, %v8385_v62  ;;  %v8278_v60 = vadd.f32 %v8211_v52, %v8020_v43  ;;  %v8023_v14 = vadd.f32 %v11151_v61, %v16112_v29  ;;  %v17083_v29 = vld [vmem:[#allocation124_spill] sm:$0xff] }
 0x65b   : > { %v8388_v44 = vmul.f32 %v16030_v9, %v8349_v22  ;;  %v8347_v28 = vmax.f32 %v8315_v2, 0.0  ;;  %v8320_v25 = vadd.f32 %v15999_v36, %v8280_v10  ;;  %v7956_v24 = vpop.f32.mrf.mxu1  ;;  %v8214_v35 = vpop.f32.mrf.mxu0  ;;  %v7512_v42 = vadd.f32 %v17083_v29, %v17082_v33  ;;  %v17086_v2 = vld [vmem:[#allocation93_spill] sm:$0xff] }
 0x65c   : > { %8490 = vst [vmem:[%s11930_s12 + $0x90] sm:$0xff] %v8458_v3  ;;  %v8456_v1 = vmax.f32 %v8424_v7, 0.0  ;;  %v8318_v57 = vadd.f32 %v15999_v36, %v8278_v60  ;;  %v8281_v53 = vadd.f32 %v11199_v54, %v8023_v14  ;;  %v8021_v6 = vadd.f32 %v7956_v24, %v16119_v19 }
 0x65d   : > { %v8427_v27 = vadd.f32 %v16043_v37, %v8388_v44  ;;  %v8386_v26 = vmul.f32 %v16030_v9, %v8347_v28  ;;  %v8352_v20 = vmax.f32 %v8320_v25, 0.0  ;;  %v11154_v63 = vpop.f32.mrf.mxu1  ;;  %v11202_v4 = vpop.f32.mrf.mxu0  ;;  %v7772_v19 = vadd.f32 %v17084_v46, %v7514_v31  ;;  %v17087_v31 = vld [vmem:[#allocation95_spill] sm:$0xff] }
 0x65e   : > { %8488 = vst [vmem:[%s11930_s12 + $0x80] sm:$0xff] %v8456_v1  ;;  %v8350_v11 = vmax.f32 %v8318_v57, 0.0  ;;  %v8321_v47 = vadd.f32 %v15999_v36, %v8281_v53  ;;  %v8279_v39 = vadd.f32 %v8214_v35, %v8021_v6  ;;  %v8026_v13 = vadd.f32 %v11154_v63, %v16142_v50 }
 0x65f   : > { %v8459_v30 = vmax.f32 %v8427_v27, 0.0  ;;  %v8425_v23 = vadd.f32 %v16043_v37, %v8386_v26  ;;  %v8391_v41 = vmul.f32 %v16030_v9, %v8352_v20  ;;  %v7969_v51 = vpop.f32.mrf.mxu1  ;;  %v8227_v58 = vpop.f32.mrf.mxu0  ;;  %v7770_v56 = vadd.f32 %v17085_v17, %v7512_v42 }
 0x660   : > { %v8389_v40 = vmul.f32 %v16030_v9, %v8350_v11  ;;  %v8353_v0 = vmax.f32 %v8321_v47, 0.0  ;;  %v8319_v45 = vadd.f32 %v15999_v36, %v8279_v39  ;;  %v8284_v18 = vadd.f32 %v11202_v4, %v8026_v13 }
 0x661   : > { %8491 = vst [vmem:[%s11930_s12 + $0x98] sm:$0xff] %v8459_v30  ;;  %v8457_v50 = vmax.f32 %v8425_v23, 0.0  ;;  %v8430_v21 = vadd.f32 %v16043_v37, %v8391_v41  ;;  %v8024_v52 = vadd.f32 %v7969_v51, %v16150_v32  ;;  %v11155_v12 = vpop.f32.mrf.mxu1  ;;  %v11203_v34 = vpop.f32.mrf.mxu0  ;;  %v7515_v10 = vadd.f32 %v15971_v55, %v17086_v2 }
 0x662   : > { %v8428_v62 = vadd.f32 %v16043_v37, %v8389_v40  ;;  %v8392_v43 = vmul.f32 %v16030_v9, %v8353_v0  ;;  %v8351_v59 = vmax.f32 %v8319_v45, 0.0  ;;  %v8324_v22 = vadd.f32 %v15999_v36, %v8284_v18 }
 0x663   : > { %8489 = vst [vmem:[%s11930_s12 + $0x88] sm:$0xff] %v8457_v50  ;;  %v8462_v61 = vmax.f32 %v8430_v21, 0.0  ;;  %v8282_v54 = vadd.f32 %v8227_v58, %v8024_v52  ;;  %v8027_v3 = vadd.f32 %v11155_v12, %v16171_v5  ;;  %v7972_v32 = vpop.f32.mrf.mxu1  ;;  %v8230_v7 = vpop.f32.mrf.mxu0  ;;  %v7513_v44 = vadd.f32 %v15980_v48, %v17087_v31 }
 0x664   : > { %v8460_v60 = vmax.f32 %v8428_v62, 0.0  ;;  %v8431_v14 = vadd.f32 %v16043_v37, %v8392_v43  ;;  %v8390_v8 = vmul.f32 %v16030_v9, %v8351_v59  ;;  %v8356_v49 = vmax.f32 %v8324_v22, 0.0 }
 0x665   : > { %8494 = vst [vmem:[%s11930_s12 + $0xb0] sm:$0xff] %v8462_v61  ;;  %v8322_v55 = vadd.f32 %v15999_v36, %v8282_v54  ;;  %v8285_v28 = vadd.f32 %v11203_v34, %v8027_v3  ;;  %v8025_v25 = vadd.f32 %v7972_v32, %v16181_v16  ;;  %v11158_v24 = vpop.f32.mrf.mxu1  ;;  %v11206_v5 = vpop.f32.mrf.mxu0  ;;  %v7773_v6 = vadd.f32 %v15973_v15, %v7515_v10 }
 0x666   : > { %8492 = vst [vmem:[%s11930_s12 + $0xa0] sm:$0xff] %v8460_v60  ;;  %v8463_v35 = vmax.f32 %v8431_v14, 0.0  ;;  %v8429_v1 = vadd.f32 %v16043_v37, %v8390_v8  ;;  %v8395_v57 = vmul.f32 %v16030_v9, %v8356_v49  ;;  %v8030_v53 = vadd.f32 %v11158_v24, %v7772_v19 }
 0x667   : > { %v8354_v33 = vmax.f32 %v8322_v55, 0.0  ;;  %v8325_v48 = vadd.f32 %v15999_v36, %v8285_v28  ;;  %v8283_v29 = vadd.f32 %v8230_v7, %v8025_v25  ;;  %v7985_v42 = vpop.f32.mrf.mxu1  ;;  %v8243_v27 = vpop.f32.mrf.mxu0  ;;  %v7771_v4 = vadd.f32 %v15982_v38, %v7513_v44 }
 0x668   : > { %8495 = vst [vmem:[%s11930_s12 + $0xb8] sm:$0xff] %v8463_v35  ;;  %v8461_v16 = vmax.f32 %v8429_v1, 0.0  ;;  %v8434_v26 = vadd.f32 %v16043_v37, %v8395_v57  ;;  %v8288_v20 = vadd.f32 %v11206_v5, %v8030_v53  ;;  %v8028_v63 = vadd.f32 %v7985_v42, %v7770_v56 }
 0x669   : > { %v8393_v11 = vmul.f32 %v16030_v9, %v8354_v33  ;;  %v8357_v47 = vmax.f32 %v8325_v48, 0.0  ;;  %v8323_v15 = vadd.f32 %v15999_v36, %v8283_v29  ;;  %v11159_v39 = vpop.f32.mrf.mxu1  ;;  %v11207_v13 = vpop.f32.mrf.mxu0 }
 0x66a   : > { %8493 = vst [vmem:[%s11930_s12 + $0xa8] sm:$0xff] %v8461_v16  ;;  %v8466_v46 = vmax.f32 %v8434_v26, 0.0  ;;  %v8328_v19 = vadd.f32 %v15999_v36, %v8288_v20  ;;  %v8286_v30 = vadd.f32 %v8243_v27, %v8028_v63  ;;  %v8031_v23 = vadd.f32 %v11159_v39, %v7773_v6 }
 0x66b   : > { %v8432_v41 = vadd.f32 %v16043_v37, %v8393_v11  ;;  %v8396_v51 = vmul.f32 %v16030_v9, %v8357_v47  ;;  %v8355_v58 = vmax.f32 %v8323_v15, 0.0  ;;  %v7988_v38 = vpop.f32.mrf.mxu1  ;;  %v8246_v21 = vpop.f32.mrf.mxu0 }
 0x66c   : > { %8498 = vst [vmem:[%s11930_s12 + $0xd0] sm:$0xff] %v8466_v46  ;;  %v8360_v40 = vmax.f32 %v8328_v19, 0.0  ;;  %v8326_v0 = vadd.f32 %v15999_v36, %v8286_v30  ;;  %v8289_v45 = vadd.f32 %v11207_v13, %v8031_v23  ;;  %v8029_v18 = vadd.f32 %v7988_v38, %v7771_v4 }
 0x66d   : > { %v8464_v17 = vmax.f32 %v8432_v41, 0.0  ;;  %v8435_v56 = vadd.f32 %v16043_v37, %v8396_v51  ;;  %v8394_v50 = vmul.f32 %v16030_v9, %v8355_v58 }
 0x66e   : > { %v8399_v52 = vmul.f32 %v16030_v9, %v8360_v40  ;;  %v8358_v12 = vmax.f32 %v8326_v0, 0.0  ;;  %v8329_v34 = vadd.f32 %v15999_v36, %v8289_v45  ;;  %v8287_v62 = vadd.f32 %v8246_v21, %v8029_v18 }
 0x66f   : > { %8496 = vst [vmem:[%s11930_s12 + $0xc0] sm:$0xff] %v8464_v17  ;;  %v8467_v43 = vmax.f32 %v8435_v56, 0.0  ;;  %v8433_v59 = vadd.f32 %v16043_v37, %v8394_v50 }
 0x670   : > { %v8438_v22 = vadd.f32 %v16043_v37, %v8399_v52  ;;  %v8397_v2 = vmul.f32 %v16030_v9, %v8358_v12  ;;  %v8361_v10 = vmax.f32 %v8329_v34, 0.0  ;;  %v8327_v61 = vadd.f32 %v15999_v36, %v8287_v62 }
 0x671   : > { %8499 = vst [vmem:[%s11930_s12 + $0xd8] sm:$0xff] %v8467_v43  ;;  %v8465_v54 = vmax.f32 %v8433_v59, 0.0 }
 0x672   : > { %v8470_v3 = vmax.f32 %v8438_v22, 0.0  ;;  %v8436_v32 = vadd.f32 %v16043_v37, %v8397_v2  ;;  %v8400_v7 = vmul.f32 %v16030_v9, %v8361_v10  ;;  %v8359_v60 = vmax.f32 %v8327_v61, 0.0 }
 0x673   : > { %8497 = vst [vmem:[%s11930_s12 + $0xc8] sm:$0xff] %v8465_v54 }
 0x674   : > { %8502 = vst [vmem:[%s11930_s12 + $0xf0] sm:$0xff] %v8470_v3  ;;  %v8468_v14 = vmax.f32 %v8436_v32, 0.0  ;;  %v8439_v8 = vadd.f32 %v16043_v37, %v8400_v7  ;;  %v8398_v49 = vmul.f32 %v16030_v9, %v8359_v60 }
 0x676   : > { %8500 = vst [vmem:[%s11930_s12 + $0xe0] sm:$0xff] %v8468_v14  ;;  %v8471_v36 = vmax.f32 %v8439_v8, 0.0  ;;  %v8437_v31 = vadd.f32 %v16043_v37, %v8398_v49 }
 0x678   : > { %8503 = vst [vmem:[%s11930_s12 + $0xf8] sm:$0xff] %v8471_v36  ;;  %v8469_v44 = vmax.f32 %v8437_v31, 0.0 }
 0x67a   : > { %8501 = vst [vmem:[%s11930_s12 + $0xe8] sm:$0xff] %v8469_v44 }
 0x67b   : > { %11656 = shalt.err (!%p11653_p9)
}
 0x67c   : > { %s11657_s30 = scalar_lea.hbm %s16263_s26, 4096  ;;  %s11661_s14 = scalar_lea.hbm %s16316_s5, 8192 }
 0x67d   : > { %p11658_p13 = scmp.ne.s32.totalorder %s16263_s26, %s11657_s30  ;;  %p11662_p12 = scmp.lt.s32.totalorder %s16263_s26, %s16316_s5 }
 0x67e   : > { %p11663_p10 = scmp.lt.s32.totalorder %s11661_s14, %s11657_s30 }
 0x67f   : > { %p11659_p5 = pnand %p11658_p13, %p17088_p4 }
 0x680   : > { %p11664_p2 = por %p11663_p10, %p11662_p12 }
 0x681   : > { %p11660_p6 = pneg %p11659_p5 }
 0x683   : > { %p11665_p3 = pnand %p11664_p2, %p11660_p6 }
 0x685   : > { %11668 = shalt.err (!%p11665_p3)
}
 0x686   : > { %s11735_s16 = smov 128   ;;  %s11736_s17 = smov 8  }
 0x687   : > { %11240 = dma.vmem_to_hbm [thread:$0]  (%p17088_p4), %s16265_s23, 4096, %s16263_s26, %s16271_s22, %s11735_s16, %s11735_s16, %s11736_s17  }
 0x688 PF: > { %p11267_p7 = scmp.ge.s32.totalorder %s11719_s21, 2  ;;  %s8533_s25 = sand.u32 1, %s11707_s18  }
 0x689   : > { %p17089_p8 = scmp.ne.s32.totalorder %s16452_s29, 0  ;;  %s8534_s8 = scalar_lea.sflag [#allocation5], %s8533_s25 }
 0x68b   : > { %p11256_p11 = pnand %p11267_p7, %p17089_p8 }
 0x68d   : > { %p11257_p1 = pneg %p11256_p11 }
 0x68f   : > { %11702 = dma.done.wait (%p11257_p1), %s8534_s8, 4096  }
 0x690   : > { %11704 = vsyncadd (%p11257_p1), %s8534_s8, 4294963200  ;;  %p18_p0 = scmp.ge.s32.totalorder %s11792_s24, 4   ;;  %s17090_s18 = smov %s11711_s19 }
 0x691   : > { %s17091_s19 = smov %s11715_s20  ;;  %s17092_s20 = smov %s11803_s27 }
 0x692   : > { %s17093_s21 = smov %s11792_s24  ;;  %20 = sbr.rel (!%p18_p0) target bundleno = 6 (0x6), region = 145 }
 0x697   :  { %8539 = vsyncpa [#allocation4], 1 }
 0x698   :  { %8541 = vsyncpa [#allocation4 + $0x1], 1 }
 0x699   :  { %8542 = vsyncpa [#allocation7], 1 }
 0x69a   :  { %8543 = vsyncpa [#allocation10], 1 }
 0x69b   :  { %8544 = vsyncpa [#allocation5], 1 }
 0x69c   :  { %8546 = vsyncpa [#allocation5 + $0x1], 1 }

</bundles_post_ra>
